<compile_context>
chip_gen: v6e
topology: v6e:2x2x1
jax: 0.10.0
libtpu: 0.0.40
codegen_flags: <defaults>
</compile_context>

<pallas_src>
import functools

import jax
import jax.numpy as jnp
from jax.experimental import pallas as pl
from jax.experimental.pallas import tpu as pltpu


def _round_up(x, m):
    return ((x + m - 1) // m) * m


def _gelu_tanh(x):
    # torch.nn.functional.gelu(x, approximate='tanh'), computed in f32.
    c = 0.7978845608028654  # sqrt(2/pi)
    return 0.5 * x * (1.0 + jnp.tanh(c * (x + 0.044715 * x * x * x)))


def _mlp_step(x_ref, w1_ref, b1_ref, w2_ref, b2_ref, acc_ref, *, ti):
    """One ti-wide slice of fc1 -> gelu -> fc2, accumulated into acc_ref."""
    k = pl.program_id(1)

    @pl.when(k == 0)
    def _init():
        # Fold the fc2 bias into the accumulator init (saves a finalize pass).
        acc_ref[...] = jnp.broadcast_to(b2_ref[...], acc_ref.shape).astype(
            acc_ref.dtype)

    off = pl.multiple_of(k * ti, ti)

    # fc1 slice: (tm, H) @ (H, ti) -> (tm, ti); bf16 MXU, f32 accumulation.
    h = jnp.dot(x_ref[...], w1_ref[:, pl.ds(off, ti)],
                preferred_element_type=jnp.float32)
    h = _gelu_tanh(h + b1_ref[:, pl.ds(off, ti)])        # f32 (VPU + EUP tanh)

    # fc2 partial: (tm, ti) @ (ti, H), accumulate in f32.
    acc_ref[...] += jnp.dot(h.astype(w2_ref.dtype), w2_ref[pl.ds(off, ti), :],
                            preferred_element_type=jnp.float32)


def mlp_kernel_f32_out(x_ref, w1_ref, b1_ref, w2_ref, b2_ref, o_ref, *, ti):
    # f32 output: accumulate straight into o_ref (its block index is constant
    # across the k axis), no scratch accumulator needed.
    _mlp_step(x_ref, w1_ref, b1_ref, w2_ref, b2_ref, o_ref, ti=ti)


def mlp_kernel_acc(x_ref, w1_ref, b1_ref, w2_ref, b2_ref, o_ref, acc_ref, *, ti):
    _mlp_step(x_ref, w1_ref, b1_ref, w2_ref, b2_ref, acc_ref, ti=ti)

    @pl.when(pl.program_id(1) == pl.num_programs(1) - 1)
    def _finalize():
        o_ref[...] = acc_ref[...].astype(o_ref.dtype)


def prepare_siglip_mlp_params(w1, b1, w2, b2, *, ti=None,
                              compute_dtype=jnp.bfloat16):
    """One-time parameter prep — call OUTSIDE the jitted hot path.

    w1: (H, I), b1: (I,), w2: (I, H), b2: (H,)  (stored (in, out), i.e. already
    transposed relative to torch nn.Linear.weight).

    Pads I up to a multiple of ti (zero W1 cols / b1 / W2 rows are exact
    no-ops: gelu(0) == 0 and zero W2 rows contribute nothing) and casts the
    weights to the MXU compute dtype once.
    Returns ((w1, b1, w2, b2), ti) with b1/b2 reshaped to (1, I_pad)/(1, H).
    """
    H, I = w1.shape
    if ti is None:
        ti = next((c for c in (1024, 512, 256) if I % c == 0), 512)
    I_pad = _round_up(I, ti)
    if I_pad != I:
        w1 = jnp.pad(w1, ((0, 0), (0, I_pad - I)))
        b1 = jnp.pad(b1, ((0, I_pad - I),))
        w2 = jnp.pad(w2, ((0, I_pad - I), (0, 0)))
    params = (
        w1.astype(compute_dtype),
        b1.reshape(1, I_pad).astype(jnp.float32),
        w2.astype(compute_dtype),
        b2.reshape(1, H).astype(jnp.float32),
    )
    return params, ti


def siglip_mlp(hidden_state, w1, b1, w2, b2, *, ti, tm=256):
    """hidden_state: (B, S, H); w1/b1/w2/b2 from prepare_siglip_mlp_params."""
    B, S, H = hidden_state.shape
    I_pad = w1.shape[1]
    assert I_pad % ti == 0, "prepared intermediate size must be divisible by ti"
    M = B * S

    compute_dtype = w1.dtype
    out_dtype = hidden_state.dtype

    # Row tile: multiple of 16 (bf16 sublane packing), never larger than M_pad.
    tm = _round_up(max(16, min(tm, _round_up(M, 16))), 16)
    M_pad = _round_up(M, tm)

    x2d = hidden_state.reshape(M, H).astype(compute_dtype)
    if M_pad != M:
        x2d = jnp.pad(x2d, ((0, M_pad - M), (0, 0)))

    grid = (M_pad // tm, I_pad // ti)
    f32_out = jnp.dtype(out_dtype) == jnp.dtype(jnp.float32)

    if f32_out:
        kernel = functools.partial(mlp_kernel_f32_out, ti=ti)
        scratch_shapes = []
    else:
        kernel = functools.partial(mlp_kernel_acc, ti=ti)
        scratch_shapes = [pltpu.VMEM((tm, H), jnp.float32)]

    # VMEM estimate (conservative: assume 2 buffers per pipelined operand even
    # though the constant-index weight blocks are only ever fetched once).
    itemsize = jnp.dtype(compute_dtype).itemsize
    est = 2 * (w1.size + w2.size) * itemsize            # resident W1/W2
    est += 2 * tm * H * itemsize                        # x tile
    est += 2 * tm * H * jnp.dtype(out_dtype).itemsize   # out tile
    est += 0 if f32_out else tm * H * 4                 # acc scratch
    est += 2 * (I_pad + H) * 4                          # biases
    vmem_limit = int(min(max(est + (4 << 20), 16 << 20), 112 << 20))

    out = pl.pallas_call(
        kernel,
        out_shape=jax.ShapeDtypeStruct((M_pad, H), out_dtype),
        grid_spec=pltpu.PrefetchScalarGridSpec(
            num_scalar_prefetch=0,
            grid=grid,
            in_specs=[
                pl.BlockSpec((tm, H), lambda i, k: (i, 0)),      # x tile
                pl.BlockSpec((H, I_pad), lambda i, k: (0, 0)),   # W1 (resident)
                pl.BlockSpec((1, I_pad), lambda i, k: (0, 0)),   # b1 (resident)
                pl.BlockSpec((I_pad, H), lambda i, k: (0, 0)),   # W2 (resident)
                pl.BlockSpec((1, H), lambda i, k: (0, 0)),       # b2 (resident)
            ],
            out_specs=pl.BlockSpec((tm, H), lambda i, k: (i, 0)),
            scratch_shapes=scratch_shapes,
        ),
        compiler_params=pltpu.CompilerParams(
            dimension_semantics=("parallel", "arbitrary"),
            vmem_limit_bytes=vmem_limit,
        ),
    )(x2d, w1, b1, w2, b2)

    if M_pad != M:
        out = out[:M]
    return out.reshape(B, S, H)


if __name__ == "__main__":
    # Small lane/sublane-friendly demo config; ragged M = 400 exercises the
    # pad + multi-M-tile path.
    B, S, H, I = 2, 200, 256, 1024

    key = jax.random.PRNGKey(0)
    k_x, k_w1, k_b1, k_w2, k_b2 = jax.random.split(key, 5)

    x = jax.random.normal(k_x, (B, S, H), dtype=jnp.float32)
    # Parameters stored (in, out): kernel does x @ W + b (== torch x @ W.T + b)
    w1 = jax.random.normal(k_w1, (H, I), dtype=jnp.float32) * 0.02
    b1 = jax.random.normal(k_b1, (I,), dtype=jnp.float32) * 0.02
    w2 = jax.random.normal(k_w2, (I, H), dtype=jnp.float32) * 0.02
    b2 = jax.random.normal(k_b2, (H,), dtype=jnp.float32) * 0.02

    # One-time prep (bf16 cast + bias reshape + I padding) hoisted out of the
    # jitted hot path.
    (w1p, b1p, w2p, b2p), ti = prepare_siglip_mlp_params(w1, b1, w2, b2)

    run = jax.jit(functools.partial(siglip_mlp, ti=ti, tm=256))
    out = jax.block_until_ready(run(x, w1p, b1p, w2p, b2p))

    # Reference in plain JAX following the same bf16-input / f32-accumulate path.
    xb = x.reshape(-1, H).astype(jnp.bfloat16)
    h = jnp.dot(xb, w1.astype(jnp.bfloat16),
                preferred_element_type=jnp.float32) + b1
    h = _gelu_tanh(h)
    ref = jnp.dot(h.astype(jnp.bfloat16), w2.astype(jnp.bfloat16),
                  preferred_element_type=jnp.float32) + b2
    ref = ref.reshape(B, S, H).astype(x.dtype)

    assert out.shape == (B, S, H)
    assert jnp.allclose(out, ref, atol=2e-3, rtol=2e-3), "mismatch vs reference"

    print("KERNEL_OK")
</pallas_src>

<mosaic_0001>
module attributes {stable_mosaic.version = 11 : i64} {
  func.func @mlp_kernel_f32_out(%arg0: i32, %arg1: i32, %arg2: memref<256x256xbf16, #tpu.memory_space<vmem>>, %arg3: memref<256x1024xbf16, #tpu.memory_space<vmem>>, %arg4: memref<1x1024xf32, #tpu.memory_space<vmem>>, %arg5: memref<1024x256xbf16, #tpu.memory_space<vmem>>, %arg6: memref<1x256xf32, #tpu.memory_space<vmem>>, %arg7: memref<256x256xf32, #tpu.memory_space<vmem>>) attributes {dimension_semantics = [#tpu.dimension_semantics<parallel>, #tpu.dimension_semantics<arbitrary>], iteration_bounds = array<i64: 2, 1>, scalar_prefetch = 0 : i64, scratch_operands = 0 : i64, tpu.core_type = #tpu.core_type<tc>, window_params = [{transform_indices = @transform_0, window_bounds = array<i64: 256, 256>}, {pipeline_mode = #tpu.pipeline_mode<synchronous>, transform_indices = @transform_1, window_bounds = array<i64: 256, 1024>}, {pipeline_mode = #tpu.pipeline_mode<synchronous>, transform_indices = @transform_2, window_bounds = array<i64: 1, 1024>}, {pipeline_mode = #tpu.pipeline_mode<synchronous>, transform_indices = @transform_3, window_bounds = array<i64: 1024, 256>}, {pipeline_mode = #tpu.pipeline_mode<synchronous>, transform_indices = @transform_4, window_bounds = array<i64: 1, 256>}, {transform_indices = @transform_5, window_bounds = array<i64: 256, 256>}]} {
    %c0_i32 = arith.constant 0 : i32
    %0 = arith.cmpi eq, %arg1, %c0_i32 : i32
    %1 = arith.extui %0 : i1 to i32
    %c0_i32_0 = arith.constant 0 : i32
    %2 = arith.cmpi ne, %1, %c0_i32_0 : i32
    scf.if %2 {
      %c0_14 = arith.constant 0 : index
      %c0_15 = arith.constant 0 : index
      %33 = vector.load %arg6[%c0_14, %c0_15] : memref<1x256xf32, #tpu.memory_space<vmem>>, vector<1x256xf32>
      %34 = vector.shape_cast %33 : vector<1x256xf32> to vector<1x256xf32>
      %35 = vector.broadcast %34 : vector<1x256xf32> to vector<256x256xf32>
      %c0_16 = arith.constant 0 : index
      %c0_17 = arith.constant 0 : index
      %36 = vector.load %arg7[%c0_16, %c0_17] : memref<256x256xf32, #tpu.memory_space<vmem>>, vector<256x256xf32>
      tpu.vector_store %arg7[%c0_16, %c0_17], %35 {strides = array<i32>} : memref<256x256xf32, #tpu.memory_space<vmem>>, vector<256x256xf32>,
    } else {
    }
    %c1024_i32 = arith.constant 1024 : i32
    %3 = arith.muli %arg1, %c1024_i32 : i32
    %4 = tpu.assume_multiple %3, 1024 : i32
    %c0 = arith.constant 0 : index
    %c0_1 = arith.constant 0 : index
    %5 = vector.load %arg2[%c0, %c0_1] : memref<256x256xbf16, #tpu.memory_space<vmem>>, vector<256x256xbf16>
    %c0_2 = arith.constant 0 : index
    %6 = arith.index_cast %4 : i32 to index
    %7 = vector.load %arg3[%c0_2, %6] : memref<256x1024xbf16, #tpu.memory_space<vmem>>, vector<256x1024xbf16>
    %cst = arith.constant dense<0.000000e+00> : vector<256x1024xf32>
    %8 = tpu.matmul %5, %7, %cst {dimension_numbers = #tpu.dot_dimension_numbers<[1], [0], [0], [1], [0, 0, 1, 1], [], []>} : vector<256x256xbf16>, vector<256x1024xbf16>, vector<256x1024xf32> -> vector<256x1024xf32>
    %c0_3 = arith.constant 0 : index
    %9 = arith.index_cast %4 : i32 to index
    %10 = vector.load %arg4[%c0_3, %9] : memref<1x1024xf32, #tpu.memory_space<vmem>>, vector<1x1024xf32>
    %11 = vector.broadcast %10 : vector<1x1024xf32> to vector<256x1024xf32>
    %12 = arith.addf %8, %11 : vector<256x1024xf32>
    %cst_4 = arith.constant 5.000000e-01 : f32
    %13 = vector.broadcast %cst_4 : f32 to vector<256x1024xf32>
    %14 = arith.mulf %13, %12 : vector<256x1024xf32>
    %cst_5 = arith.constant 4.471500e-02 : f32
    %15 = vector.broadcast %cst_5 : f32 to vector<256x1024xf32>
    %16 = arith.mulf %15, %12 : vector<256x1024xf32>
    %17 = arith.mulf %16, %12 : vector<256x1024xf32>
    %18 = arith.mulf %17, %12 : vector<256x1024xf32>
    %19 = arith.addf %12, %18 : vector<256x1024xf32>
    %cst_6 = arith.constant 0.797884583 : f32
    %20 = vector.broadcast %cst_6 : f32 to vector<256x1024xf32>
    %21 = arith.mulf %20, %19 : vector<256x1024xf32>
    %22 = math.tanh %21 : vector<256x1024xf32>
    %cst_7 = arith.constant 1.000000e+00 : f32
    %23 = vector.broadcast %cst_7 : f32 to vector<256x1024xf32>
    %24 = arith.addf %23, %22 : vector<256x1024xf32>
    %25 = arith.mulf %14, %24 : vector<256x1024xf32>
    %c0_8 = arith.constant 0 : index
    %c0_9 = arith.constant 0 : index
    %26 = vector.load %arg7[%c0_8, %c0_9] : memref<256x256xf32, #tpu.memory_space<vmem>>, vector<256x256xf32>
    %27 = arith.truncf %25 : vector<256x1024xf32> to vector<256x1024xbf16>
    %28 = arith.index_cast %4 : i32 to index
    %c0_10 = arith.constant 0 : index
    %29 = vector.load %arg5[%28, %c0_10] : memref<1024x256xbf16, #tpu.memory_space<vmem>>, vector<1024x256xbf16>
    %cst_11 = arith.constant dense<0.000000e+00> : vector<256x256xf32>
    %30 = tpu.matmul %27, %29, %cst_11 {dimension_numbers = #tpu.dot_dimension_numbers<[1], [0], [0], [1], [0, 0, 1, 1], [], []>} : vector<256x1024xbf16>, vector<1024x256xbf16>, vector<256x256xf32> -> vector<256x256xf32>
    %31 = arith.addf %26, %30 : vector<256x256xf32>
    %c0_12 = arith.constant 0 : index
    %c0_13 = arith.constant 0 : index
    %32 = vector.load %arg7[%c0_12, %c0_13] : memref<256x256xf32, #tpu.memory_space<vmem>>, vector<256x256xf32>
    tpu.vector_store %arg7[%c0_12, %c0_13], %31 {strides = array<i32>} : memref<256x256xf32, #tpu.memory_space<vmem>>, vector<256x256xf32>,
    return
  }
  func.func @transform_0(%arg0: i32, %arg1: i32) -> (i32, i32) {
    %c0_i32 = arith.constant 0 : i32
    %c0_i32_0 = arith.constant 0 : i32
    return %arg0, %c0_i32 : i32, i32
  }
  func.func @transform_1(%arg0: i32, %arg1: i32) -> (i32, i32) {
    %c0_i32 = arith.constant 0 : i32
    %c0_i32_0 = arith.constant 0 : i32
    %c0_i32_1 = arith.constant 0 : i32
    return %c0_i32, %c0_i32_0 : i32, i32
  }
  func.func @transform_2(%arg0: i32, %arg1: i32) -> (i32, i32) {
    %c0_i32 = arith.constant 0 : i32
    %c0_i32_0 = arith.constant 0 : i32
    %c0_i32_1 = arith.constant 0 : i32
    return %c0_i32, %c0_i32_0 : i32, i32
  }
  func.func @transform_3(%arg0: i32, %arg1: i32) -> (i32, i32) {
    %c0_i32 = arith.constant 0 : i32
    %c0_i32_0 = arith.constant 0 : i32
    %c0_i32_1 = arith.constant 0 : i32
    return %c0_i32, %c0_i32_0 : i32, i32
  }
  func.func @transform_4(%arg0: i32, %arg1: i32) -> (i32, i32) {
    %c0_i32 = arith.constant 0 : i32
    %c0_i32_0 = arith.constant 0 : i32
    %c0_i32_1 = arith.constant 0 : i32
    return %c0_i32, %c0_i32_0 : i32, i32
  }
  func.func @transform_5(%arg0: i32, %arg1: i32) -> (i32, i32) {
    %c0_i32 = arith.constant 0 : i32
    %c0_i32_0 = arith.constant 0 : i32
    return %arg0, %c0_i32 : i32, i32
  }
}

</mosaic_0001>

<bundles_post_ra>
// kernel: siglip_mlp.1
= control target key start
LH: loop header
LB: loop body
LE: loop exit
PB: predicated region body
PF: predicated region fallthrough
CT: control target
= control target key end

     0   :  { %s7481_s18 = smov 0   ;;  %s7483_s19 = smov 0   ;;  %s13137_s0 = inlined_call_operand.vmem [shape: bf16[512,256], index: 0, kind: input, shape index: {}]   ;;  %s13138_s1 = inlined_call_operand.vmem [shape: bf16[256,1024], index: 1, kind: input, shape index: {}]   ;;  %s13139_s2 = inlined_call_operand.vmem [shape: f32[1,1024], index: 2, kind: input, shape index: {}]   ;;  %s13140_s3 = inlined_call_operand.vmem [shape: bf16[1024,256], index: 3, kind: input, shape index: {}]   ;;  %s13141_s4 = inlined_call_operand.vmem [shape: f32[1,256], index: 4, kind: input, shape index: {}]   ;;  %s13142_s5 = inlined_call_operand.vmem [shape: f32[512,256], index: 5, kind: output, shape index: {}]  }
   0x1   :  { %s7485_s20 = smov 0  }
   0x2 LB: > { %s27_s21 = sadd.s32 1, %s7445_s19  ;;  %p6350_p0 = scmp.ge.s32.totalorder %s7449_s20, 1  ;;  %s7449_s20 = sphi %s7485_s20, %s15_s20   ;;  %s7445_s19 = sphi %s7483_s19, %s14844_s19   ;;  %s7441_s18 = sphi %s7481_s18, %s14843_s18  }
   0x3   : > { %p29_p1 = scmp.ge.s32.totalorder %s27_s21, 2  ;;  %p201_p2 = scmp.lt.s32.totalorder %s7449_s20, 3 }
   0x5   : > { %s14846_s21 = smov (%p29_p1, %s27_s21), 0  ;;  %p202_p3 = pnand %p6350_p0, %p201_p2 }
   0x7   : > { %205 = sbr.rel (%p202_p3) target bundleno = 1174 (0x496), region = 40 }
   0xc   : > { %v418_v0 = vld [vmem:[%s13138_s1 + $0x1c0] sm:$0xff]  ;;  %v419_v2 = vld [vmem:[%s13138_s1 + $0x1c8] sm:$0xff]  ;;  %s6351_s25 = sshll.u32 %s7441_s18, 5 }
   0xd   : > { %v422_v1 = vld [vmem:[%s13138_s1 + $0x1e0] sm:$0xff]  ;;  %v423_v4 = vld [vmem:[%s13138_s1 + $0x1e8] sm:$0xff]  ;;  %p232_p4 = scmp.lt.s32.totalorder %s6351_s25, 63 }
   0xe   : > { %v6446_v3 = vcombine.high %v418_v0, %v422_v1  ;;  %v6445_v5 = vcombine.low %v418_v0, %v422_v1  ;;  %v410_v6 = vld [vmem:[%s13138_s1 + $0x180] sm:$0xff]  ;;  %v6448_v8 = vcombine.high %v419_v2, %v423_v4  ;;  %v6447_v9 = vcombine.low %v419_v2, %v423_v4  ;;  %v411_v11 = vld [vmem:[%s13138_s1 + $0x188] sm:$0xff] }
   0xf   : > { %v414_v7 = vld [vmem:[%s13138_s1 + $0x1a0] sm:$0xff]  ;;  %v415_v12 = vld [vmem:[%s13138_s1 + $0x1a8] sm:$0xff]  ;;  %s14848_s25 = smov (!%p232_p4, %s6351_s25), 63 }
  0x10   : > { %v6438_v10 = vcombine.high %v410_v6, %v414_v7  ;;  %v402_v13 = vld [vmem:[%s13138_s1 + $0x140] sm:$0xff]  ;;  %1333 = vmatprep.subr.bf16.mxu0 %v6446_v3  ;;  %v6440_v14 = vcombine.high %v411_v11, %v415_v12  ;;  %v403_v16 = vld [vmem:[%s13138_s1 + $0x148] sm:$0xff]  ;;  %1526 = vmatprep.subr.bf16.mxu1 %v6448_v8  ;;  %v6437_v18 = vcombine.low %v410_v6, %v414_v7  ;;  %s6647_s29 = sshll.u32 %s14848_s25, 3  ;;  %s6648_s30 = sshll.u32 %s14848_s25, 4 }
  0x11   : > { %v406_v15 = vld [vmem:[%s13138_s1 + $0x160] sm:$0xff]  ;;  %v407_v17 = vld [vmem:[%s13138_s1 + $0x168] sm:$0xff]  ;;  %1334 = vmatpush1.bf16.msra.mxu0 %v6445_v5  ;;  %1527 = vmatpush1.bf16.msra.mxu1 %v6447_v9  ;;  %v6439_v19 = vcombine.low %v411_v11, %v415_v12  ;;  %s7592_s14 = scalar_lea.vmem %s13137_s0, %s6647_s29 }
  0x12   : > { %1335 = vmatprep.subr.bf16.mxu0 %v6438_v10  ;;  %v6430_v20 = vcombine.high %v402_v13, %v406_v15  ;;  %1528 = vmatprep.subr.bf16.mxu1 %v6440_v14  ;;  %v6432_v21 = vcombine.high %v403_v16, %v407_v17  ;;  %v394_v22 = vld [vmem:[%s13138_s1 + $0x100] sm:$0xff]  ;;  %v395_v24 = vld [vmem:[%s13138_s1 + $0x108] sm:$0xff]  ;;  %v6429_v26 = vcombine.low %v402_v13, %v406_v15 }
  0x13   : > { %v398_v23 = vld [vmem:[%s13138_s1 + $0x120] sm:$0xff]  ;;  %v399_v25 = vld [vmem:[%s13138_s1 + $0x128] sm:$0xff]  ;;  %v6431_v27 = vcombine.low %v403_v16, %v407_v17 }
  0x14   : > { %v6422_v28 = vcombine.high %v394_v22, %v398_v23  ;;  %v6424_v29 = vcombine.high %v395_v24, %v399_v25  ;;  %v386_v30 = vld [vmem:[%s13138_s1 + $0xc0] sm:$0xff]  ;;  %v387_v32 = vld [vmem:[%s13138_s1 + $0xc8] sm:$0xff]  ;;  %v6421_v34 = vcombine.low %v394_v22, %v398_v23  ;;  %v6423_v35 = vcombine.low %v395_v24, %v399_v25 }
  0x15   : > { %1336 = vmatpush1.bf16.msra.mxu0 %v6437_v18  ;;  %1529 = vmatpush1.bf16.msra.mxu1 %v6439_v19  ;;  %v390_v31 = vld [vmem:[%s13138_s1 + $0xe0] sm:$0xff]  ;;  %v391_v33 = vld [vmem:[%s13138_s1 + $0xe8] sm:$0xff] }
  0x16   : > { %1337 = vmatprep.subr.bf16.mxu0 %v6430_v20  ;;  %1530 = vmatprep.subr.bf16.mxu1 %v6432_v21  ;;  %v6414_v36 = vcombine.high %v386_v30, %v390_v31  ;;  %v6416_v37 = vcombine.high %v387_v32, %v391_v33  ;;  %v378_v38 = vld [vmem:[%s13138_s1 + $0x80] sm:$0xff]  ;;  %v379_v40 = vld [vmem:[%s13138_s1 + $0x88] sm:$0xff]  ;;  %v6413_v42 = vcombine.low %v386_v30, %v390_v31 }
  0x17   : > { %v382_v39 = vld [vmem:[%s13138_s1 + $0xa0] sm:$0xff]  ;;  %v383_v41 = vld [vmem:[%s13138_s1 + $0xa8] sm:$0xff]  ;;  %v6415_v43 = vcombine.low %v387_v32, %v391_v33 }
  0x18   : > { %v6406_v44 = vcombine.high %v378_v38, %v382_v39  ;;  %v6408_v45 = vcombine.high %v379_v40, %v383_v41  ;;  %v370_v46 = vld [vmem:[%s13138_s1 + $0x40] sm:$0xff]  ;;  %v371_v48 = vld [vmem:[%s13138_s1 + $0x48] sm:$0xff]  ;;  %v6405_v50 = vcombine.low %v378_v38, %v382_v39  ;;  %v6407_v51 = vcombine.low %v379_v40, %v383_v41 }
  0x19   : > { %1338 = vmatpush1.bf16.msra.mxu0 %v6429_v26  ;;  %1531 = vmatpush1.bf16.msra.mxu1 %v6431_v27  ;;  %v374_v47 = vld [vmem:[%s13138_s1 + $0x60] sm:$0xff]  ;;  %v375_v49 = vld [vmem:[%s13138_s1 + $0x68] sm:$0xff] }
  0x1a   : > { %1339 = vmatprep.subr.bf16.mxu0 %v6422_v28  ;;  %1532 = vmatprep.subr.bf16.mxu1 %v6424_v29  ;;  %v6398_v52 = vcombine.high %v370_v46, %v374_v47  ;;  %v6400_v53 = vcombine.high %v371_v48, %v375_v49  ;;  %v362_v54 = vld [vmem:[%s13138_s1] sm:$0xff]  ;;  %v363_v57 = vld [vmem:[%s13138_s1 + $0x8] sm:$0xff]  ;;  %v6397_v59 = vcombine.low %v370_v46, %v374_v47 }
  0x1b   : > { %v366_v55 = vld [vmem:[%s13138_s1 + $0x20] sm:$0xff]  ;;  %v367_v58 = vld [vmem:[%s13138_s1 + $0x28] sm:$0xff]  ;;  %v6399_v60 = vcombine.low %v371_v48, %v375_v49 }
  0x1c   : > { %v6673_v56 = vld [vmem:[%s7592_s14 + $0x4] ss:$8 sps:$4 sm:$0xff]   ;;  %v6390_v61 = vcombine.high %v362_v54, %v366_v55  ;;  %v6392_v62 = vcombine.high %v363_v57, %v367_v58  ;;  %v6389_v3 = vcombine.low %v362_v54, %v366_v55  ;;  %v6391_v4 = vcombine.low %v363_v57, %v367_v58 }
  0x1d   : > { %1340 = vmatpush1.bf16.msra.mxu0 %v6421_v34  ;;  %1533 = vmatpush1.bf16.msra.mxu1 %v6423_v35  ;;  %v482_v63 = vld [vmem:[%s13138_s1 + $0x3c0] sm:$0xff]  ;;  %v483_v1 = vld [vmem:[%s13138_s1 + $0x3c8] sm:$0xff] }
  0x1e   : > { %1341 = vmatprep.subr.bf16.mxu0 %v6414_v36  ;;  %1534 = vmatprep.subr.bf16.mxu1 %v6416_v37  ;;  %v486_v0 = vld [vmem:[%s13138_s1 + $0x3e0] sm:$0xff]  ;;  %v487_v2 = vld [vmem:[%s13138_s1 + $0x3e8] sm:$0xff] }
  0x1f   : > { %1365 = vmatprep.mubr.bf16.mxu0 %v6673_v56  ;;  %1558 = vmatprep.mubr.bf16.mxu1 %v6673_v56  ;;  %v6510_v5 = vcombine.high %v482_v63, %v486_v0  ;;  %v6512_v6 = vcombine.high %v483_v1, %v487_v2  ;;  %v474_v7 = vld [vmem:[%s13138_s1 + $0x380] sm:$0xff]  ;;  %v475_v9 = vld [vmem:[%s13138_s1 + $0x388] sm:$0xff]  ;;  %v6509_v11 = vcombine.low %v482_v63, %v486_v0  ;;  %v420_v63 = vld [vmem:[%s13138_s1 + $0x1d0] sm:$0xff] }
  0x20   : > { %v478_v8 = vld [vmem:[%s13138_s1 + $0x3a0] sm:$0xff]  ;;  %v479_v10 = vld [vmem:[%s13138_s1 + $0x3a8] sm:$0xff]  ;;  %v6511_v12 = vcombine.low %v483_v1, %v487_v2  ;;  %v424_v0 = vld [vmem:[%s13138_s1 + $0x1f0] sm:$0xff] }
  0x21   : > { %1342 = vmatpush1.bf16.msra.mxu0 %v6413_v42  ;;  %1535 = vmatpush1.bf16.msra.mxu1 %v6415_v43  ;;  %v6502_v13 = vcombine.high %v474_v7, %v478_v8  ;;  %v6504_v14 = vcombine.high %v475_v9, %v479_v10  ;;  %v466_v15 = vld [vmem:[%s13138_s1 + $0x340] sm:$0xff]  ;;  %v467_v17 = vld [vmem:[%s13138_s1 + $0x348] sm:$0xff]  ;;  %v6501_v19 = vcombine.low %v474_v7, %v478_v8  ;;  %v421_v1 = vld [vmem:[%s13138_s1 + $0x1d8] sm:$0xff] }
  0x22   : > { %1343 = vmatprep.subr.bf16.mxu0 %v6406_v44  ;;  %1536 = vmatprep.subr.bf16.mxu1 %v6408_v45  ;;  %v470_v16 = vld [vmem:[%s13138_s1 + $0x360] sm:$0xff]  ;;  %v471_v18 = vld [vmem:[%s13138_s1 + $0x368] sm:$0xff]  ;;  %v6503_v20 = vcombine.low %v475_v9, %v479_v10  ;;  %v425_v2 = vld [vmem:[%s13138_s1 + $0x1f8] sm:$0xff] }
  0x23   : > { %v6494_v21 = vcombine.high %v466_v15, %v470_v16  ;;  %v6496_v22 = vcombine.high %v467_v17, %v471_v18  ;;  %v458_v23 = vld [vmem:[%s13138_s1 + $0x300] sm:$0xff]  ;;  %v459_v25 = vld [vmem:[%s13138_s1 + $0x308] sm:$0xff]  ;;  %v6493_v27 = vcombine.low %v466_v15, %v470_v16  ;;  %v6495_v28 = vcombine.low %v467_v17, %v471_v18  ;;  %v412_v8 = vld [vmem:[%s13138_s1 + $0x190] sm:$0xff] }
  0x24   : > { %v462_v24 = vld [vmem:[%s13138_s1 + $0x320] sm:$0xff]  ;;  %v463_v26 = vld [vmem:[%s13138_s1 + $0x328] sm:$0xff]  ;;  %v6452_v7 = vcombine.high %v421_v1, %v425_v2  ;;  %v7722_v9 = vld [vmem:[%s7592_s14 + $0x14] ss:$8 sps:$4 sm:$0xff]   ;;  %v6451_v16 = vcombine.low %v421_v1, %v425_v2 }
  0x25   : > { %1344 = vmatpush1.bf16.msra.mxu0 %v6405_v50  ;;  %1537 = vmatpush1.bf16.msra.mxu1 %v6407_v51  ;;  %v6486_v29 = vcombine.high %v458_v23, %v462_v24  ;;  %v6488_v30 = vcombine.high %v459_v25, %v463_v26  ;;  %v450_v31 = vld [vmem:[%s13138_s1 + $0x2c0] sm:$0xff]  ;;  %v451_v33 = vld [vmem:[%s13138_s1 + $0x2c8] sm:$0xff]  ;;  %v6485_v35 = vcombine.low %v458_v23, %v462_v24  ;;  %v416_v10 = vld [vmem:[%s13138_s1 + $0x1b0] sm:$0xff] }
  0x26   : > { %1345 = vmatprep.subr.bf16.mxu0 %v6398_v52  ;;  %1538 = vmatprep.subr.bf16.mxu1 %v6400_v53  ;;  %v454_v32 = vld [vmem:[%s13138_s1 + $0x2e0] sm:$0xff]  ;;  %v455_v34 = vld [vmem:[%s13138_s1 + $0x2e8] sm:$0xff]  ;;  %v6487_v36 = vcombine.low %v459_v25, %v463_v26  ;;  %v408_v15 = vld [vmem:[%s13138_s1 + $0x170] sm:$0xff] }
  0x27   : > { %v6478_v37 = vcombine.high %v450_v31, %v454_v32  ;;  %v6480_v38 = vcombine.high %v451_v33, %v455_v34  ;;  %v442_v39 = vld [vmem:[%s13138_s1 + $0x280] sm:$0xff]  ;;  %v443_v41 = vld [vmem:[%s13138_s1 + $0x288] sm:$0xff]  ;;  %v6477_v43 = vcombine.low %v450_v31, %v454_v32  ;;  %v6479_v44 = vcombine.low %v451_v33, %v455_v34  ;;  %v405_v17 = vld [vmem:[%s13138_s1 + $0x158] sm:$0xff] }
  0x28   : > { %v446_v40 = vld [vmem:[%s13138_s1 + $0x2a0] sm:$0xff]  ;;  %v447_v42 = vld [vmem:[%s13138_s1 + $0x2a8] sm:$0xff]  ;;  %v409_v18 = vld [vmem:[%s13138_s1 + $0x178] sm:$0xff] }
  0x29   : > { %1346 = vmatpush1.bf16.msra.mxu0 %v6397_v59  ;;  %1539 = vmatpush1.bf16.msra.mxu1 %v6399_v60  ;;  %v6470_v45 = vcombine.high %v442_v39, %v446_v40  ;;  %v6472_v46 = vcombine.high %v443_v41, %v447_v42  ;;  %v434_v47 = vld [vmem:[%s13138_s1 + $0x240] sm:$0xff]  ;;  %v435_v49 = vld [vmem:[%s13138_s1 + $0x248] sm:$0xff]  ;;  %v6469_v51 = vcombine.low %v442_v39, %v446_v40  ;;  %v396_v25 = vld [vmem:[%s13138_s1 + $0x110] sm:$0xff] }
  0x2a   : > { %1347 = vmatprep.subr.bf16.mxu0 %v6390_v61  ;;  %1540 = vmatprep.subr.bf16.mxu1 %v6392_v62  ;;  %v438_v48 = vld [vmem:[%s13138_s1 + $0x260] sm:$0xff]  ;;  %v439_v50 = vld [vmem:[%s13138_s1 + $0x268] sm:$0xff]  ;;  %v6471_v52 = vcombine.low %v443_v41, %v447_v42  ;;  %v400_v26 = vld [vmem:[%s13138_s1 + $0x130] sm:$0xff]  ;;  %v6435_v34 = vcombine.low %v405_v17, %v409_v18 }
  0x2b   : > { %v6462_v53 = vcombine.high %v434_v47, %v438_v48  ;;  %v6464_v54 = vcombine.high %v435_v49, %v439_v50  ;;  %v426_v55 = vld [vmem:[%s13138_s1 + $0x200] sm:$0xff]  ;;  %v427_v57 = vld [vmem:[%s13138_s1 + $0x208] sm:$0xff]  ;;  %v6461_v59 = vcombine.low %v434_v47, %v438_v48  ;;  %v6463_v60 = vcombine.low %v435_v49, %v439_v50  ;;  %v388_v32 = vld [vmem:[%s13138_s1 + $0xd0] sm:$0xff] }
  0x2c   : > { %v430_v56 = vld [vmem:[%s13138_s1 + $0x220] sm:$0xff]  ;;  %v431_v58 = vld [vmem:[%s13138_s1 + $0x228] sm:$0xff]  ;;  %v392_v33 = vld [vmem:[%s13138_s1 + $0xf0] sm:$0xff]  ;;  %v6425_v40 = vcombine.low %v396_v25, %v400_v26 }
  0x2d   : > { %1348 = vmatpush1.bf16.msra.mxu0 %v6389_v3  ;;  %1541 = vmatpush1.bf16.msra.mxu1 %v6391_v4  ;;  %v6454_v61 = vcombine.high %v426_v55, %v430_v56  ;;  %v6456_v62 = vcombine.high %v427_v57, %v431_v58  ;;  %v6453_v3 = vcombine.low %v426_v55, %v430_v56  ;;  %v7784_v39 = vld [vmem:[%s7592_s14 + $0x20] ss:$8 sps:$4 sm:$0xff]   ;;  %v380_v41 = vld [vmem:[%s13138_s1 + $0x90] sm:$0xff]  ;;  %v385_v47 = vld [vmem:[%s13138_s1 + $0xb8] sm:$0xff] }
  0x2e   : > { %1349 = vmatprep.subr.bf16.mxu0 %v6510_v5  ;;  %1542 = vmatprep.subr.bf16.mxu1 %v6512_v6  ;;  %v6455_v4 = vcombine.low %v427_v57, %v431_v58  ;;  %v6450_v5 = vcombine.high %v420_v63, %v424_v0  ;;  %v7716_v6 = vld [vmem:[%s7592_s14] ss:$8 sps:$4 sm:$0xff]   ;;  %v384_v42 = vld [vmem:[%s13138_s1 + $0xb0] sm:$0xff]  ;;  %v6417_v49 = vcombine.low %v388_v32, %v392_v33  ;;  %v373_v55 = vld [vmem:[%s13138_s1 + $0x58] sm:$0xff] }
  0x2f   : > { %v372_v50 = vld [vmem:[%s13138_s1 + $0x50] sm:$0xff]  ;;  %v377_v56 = vld [vmem:[%s13138_s1 + $0x78] sm:$0xff]  ;;  %v6409_v58 = vcombine.low %v380_v41, %v384_v42 }
  0x30   : > { %v7818_v57 = vld [vmem:[%s7592_s14 + $0x30] ss:$8 sps:$4 sm:$0xff]   ;;  %v6404_v2 = vcombine.high %v373_v55, %v377_v56 }
  0x31   : > { %1350 = vmatpush2.bf16.msra.mxu0 %v6509_v11  ;;  %1543 = vmatpush2.bf16.msra.mxu1 %v6511_v12  ;;  %v413_v11 = vld [vmem:[%s13138_s1 + $0x198] sm:$0xff] }
  0x32   : > { %1351 = vmatprep.subr.bf16.mxu0 %v6502_v13  ;;  %1544 = vmatprep.subr.bf16.mxu1 %v6504_v14  ;;  %v417_v12 = vld [vmem:[%s13138_s1 + $0x1b8] sm:$0xff]  ;;  %v6449_v13 = vcombine.low %v420_v63, %v424_v0  ;;  %v404_v14 = vld [vmem:[%s13138_s1 + $0x150] sm:$0xff] }
  0x33   : > { %v6443_v23 = vcombine.low %v413_v11, %v417_v12  ;;  %v6434_v24 = vcombine.high %v404_v14, %v408_v15  ;;  %v6433_v31 = vcombine.low %v404_v14, %v408_v15  ;;  %v365_v0 = vld [vmem:[%s13138_s1 + $0x18] sm:$0xff]  ;;  %v476_v15 = vld [vmem:[%s13138_s1 + $0x390] sm:$0xff] }
  0x34   : > { %v369_v1 = vld [vmem:[%s13138_s1 + $0x38] sm:$0xff] }
  0x35   : > { %1352 = vmatpush2.bf16.msra.mxu0 %v6501_v19  ;;  %1545 = vmatpush2.bf16.msra.mxu1 %v6503_v20  ;;  %v6442_v19 = vcombine.high %v412_v8, %v416_v10  ;;  %v6444_v20 = vcombine.high %v413_v11, %v417_v12  ;;  %v485_v11 = vld [vmem:[%s13138_s1 + $0x3d8] sm:$0xff] }
  0x36   : > { %1353 = vmatprep.subr.bf16.mxu0 %v6494_v21  ;;  %1546 = vmatprep.subr.bf16.mxu1 %v6496_v22  ;;  %v6441_v21 = vcombine.low %v412_v8, %v416_v10  ;;  %v7749_v22 = vld [vmem:[%s7592_s14 + $0x10] ss:$8 sps:$4 sm:$0xff]   ;;  %v6396_v10 = vcombine.high %v365_v0, %v369_v1 }
  0x37   : > { %v489_v12 = vld [vmem:[%s13138_s1 + $0x3f8] sm:$0xff] }
  0x39   : > { %1354 = vmatpush2.bf16.msra.mxu0 %v6493_v27  ;;  %1547 = vmatpush2.bf16.msra.mxu1 %v6495_v28  ;;  %v7759_v27 = vld [vmem:[%s7592_s14 + $0x24] ss:$8 sps:$4 sm:$0xff]   ;;  %v6436_v28 = vcombine.high %v405_v17, %v409_v18  ;;  %v7861_v17 = vld [vmem:[%s7592_s14 + $0x54] ss:$8 sps:$4 sm:$0xff]   ;;  %v6395_v18 = vcombine.low %v365_v0, %v369_v1 }
  0x3a   : > { %1355 = vmatprep.subr.bf16.mxu0 %v6486_v29  ;;  %1548 = vmatprep.subr.bf16.mxu1 %v6488_v30  ;;  %v397_v29 = vld [vmem:[%s13138_s1 + $0x118] sm:$0xff] }
  0x3b   : > { %v401_v30 = vld [vmem:[%s13138_s1 + $0x138] sm:$0xff] }
  0x3d   : > { %1356 = vmatpush2.bf16.msra.mxu0 %v6485_v35  ;;  %1549 = vmatpush2.bf16.msra.mxu1 %v6487_v36  ;;  %v6426_v35 = vcombine.high %v396_v25, %v400_v26  ;;  %v6428_v36 = vcombine.high %v397_v29, %v401_v30  ;;  %v468_v25 = vld [vmem:[%s13138_s1 + $0x350] sm:$0xff] }
  0x3e   : > { %1357 = vmatprep.subr.bf16.mxu0 %v6478_v37  ;;  %1550 = vmatprep.subr.bf16.mxu1 %v6480_v38  ;;  %v389_v37 = vld [vmem:[%s13138_s1 + $0xd8] sm:$0xff]  ;;  %v472_v26 = vld [vmem:[%s13138_s1 + $0x370] sm:$0xff] }
  0x3f   : > { %v393_v38 = vld [vmem:[%s13138_s1 + $0xf8] sm:$0xff] }
  0x40   : > { %v6420_v48 = vcombine.high %v389_v37, %v393_v38 }
  0x41   : > { %1358 = vmatpush2.bf16.msra.mxu0 %v6477_v43  ;;  %1551 = vmatpush2.bf16.msra.mxu1 %v6479_v44  ;;  %v7793_v43 = vld [vmem:[%s7592_s14 + $0x34] ss:$8 sps:$4 sm:$0xff]   ;;  %v6427_v44 = vcombine.low %v397_v29, %v401_v30 }
  0x42   : > { %1359 = vmatprep.subr.bf16.mxu0 %v6470_v45  ;;  %1552 = vmatprep.subr.bf16.mxu1 %v6472_v46  ;;  %v6418_v45 = vcombine.high %v388_v32, %v392_v33  ;;  %v381_v46 = vld [vmem:[%s13138_s1 + $0x98] sm:$0xff] }
  0x43   : > { %v473_v32 = vld [vmem:[%s13138_s1 + $0x378] sm:$0xff] }
  0x44   : > { %v7886_v33 = vld [vmem:[%s7592_s14 + $0x50] ss:$8 sps:$4 sm:$0xff]  }
  0x45   : > { %1360 = vmatpush2.bf16.msra.mxu0 %v6469_v51  ;;  %1553 = vmatpush2.bf16.msra.mxu1 %v6471_v52  ;;  %v376_v51 = vld [vmem:[%s13138_s1 + $0x70] sm:$0xff]  ;;  %v6419_v52 = vcombine.low %v389_v37, %v393_v38  ;;  %v7895_v37 = vld [vmem:[%s7592_s14 + $0x64] ss:$8 sps:$4 sm:$0xff]  }
  0x46   : > { %1361 = vmatprep.subr.bf16.mxu0 %v6462_v53  ;;  %1554 = vmatprep.subr.bf16.mxu1 %v6464_v54  ;;  %v6410_v53 = vcombine.high %v380_v41, %v384_v42  ;;  %v6412_v54 = vcombine.high %v381_v46, %v385_v47  ;;  %v6402_v63 = vcombine.high %v372_v50, %v376_v51  ;;  %v461_v41 = vld [vmem:[%s13138_s1 + $0x318] sm:$0xff] }
  0x47   : > { %v465_v42 = vld [vmem:[%s13138_s1 + $0x338] sm:$0xff] }
  0x49   : > { %1362 = vmatpush2.bf16.msra.mxu0 %v6461_v59  ;;  %1555 = vmatpush2.bf16.msra.mxu1 %v6463_v60  ;;  %v364_v59 = vld [vmem:[%s13138_s1 + $0x10] sm:$0xff] }
  0x4a   : > { %1363 = vmatprep.subr.bf16.mxu0 %v6454_v61  ;;  %1556 = vmatprep.subr.bf16.mxu1 %v6456_v62  ;;  %v368_v60 = vld [vmem:[%s13138_s1 + $0x30] sm:$0xff]  ;;  %v7827_v61 = vld [vmem:[%s7592_s14 + $0x44] ss:$8 sps:$4 sm:$0xff]   ;;  %v6411_v62 = vcombine.low %v381_v46, %v385_v47 }
  0x4b   : > { %v6394_v8 = vcombine.high %v364_v59, %v368_v60  ;;  %v6393_v14 = vcombine.low %v364_v59, %v368_v60  ;;  %v452_v46 = vld [vmem:[%s13138_s1 + $0x2d0] sm:$0xff]  ;;  %v6491_v59 = vcombine.low %v461_v41, %v465_v42 }
  0x4c   : > { %v456_v47 = vld [vmem:[%s13138_s1 + $0x2f0] sm:$0xff] }
  0x4d   : > { %1364 = vmatpush2.bf16.msra.mxu0 %v6453_v3  ;;  %1557 = vmatpush2.bf16.msra.mxu1 %v6455_v4  ;;  %v6401_v3 = vcombine.low %v372_v50, %v376_v51  ;;  %v484_v4 = vld [vmem:[%s13138_s1 + $0x3d0] sm:$0xff]  ;;  %v6492_v50 = vcombine.high %v461_v41, %v465_v42  ;;  %v453_v51 = vld [vmem:[%s13138_s1 + $0x2d8] sm:$0xff]  ;;  %v6482_v60 = vcombine.high %v452_v46, %v456_v47 }
  0x4e   : > { %1719 = vmatprep.subr.bf16.mxu0 %v6450_v5  ;;  %1912 = vmatprep.subr.bf16.mxu1 %v6452_v7  ;;  %v488_v5 = vld [vmem:[%s13138_s1 + $0x3f0] sm:$0xff]  ;;  %v6403_v7 = vcombine.low %v373_v55, %v377_v56  ;;  %v6481_v1 = vcombine.low %v452_v46, %v456_v47 }
  0x4f   : > { %v444_v55 = vld [vmem:[%s13138_s1 + $0x290] sm:$0xff] }
  0x50   : > { %1366 = vmatmul.mubr.bf16.vlgmr.msra.gmra.mxu0 %v7716_v6  ;;  %1559 = vmatmul.mubr.bf16.vlgmr.msra.gmra.mxu1 %v7716_v6  ;;  %v448_v56 = vld [vmem:[%s13138_s1 + $0x2b0] sm:$0xff] }
  0x51   : > { %1720 = vmatpush1.bf16.msra.mxu0 %v6449_v13  ;;  %1913 = vmatpush1.bf16.msra.mxu1 %v6451_v16  ;;  %v7852_v13 = vld [vmem:[%s7592_s14 + $0x40] ss:$8 sps:$4 sm:$0xff]   ;;  %v480_v16 = vld [vmem:[%s13138_s1 + $0x3b0] sm:$0xff] }
  0x52   : > { %1375 = vmatprep.mubr.bf16.mxu0 %v7722_v9  ;;  %1568 = vmatprep.mubr.bf16.mxu1 %v7722_v9  ;;  %v6506_v29 = vcombine.high %v476_v15, %v480_v16  ;;  %v8005_v41 = vld [vmem:[%s7592_s14 + $0xb4] ss:$8 sps:$4 sm:$0xff]   ;;  %v8012_v42 = vld [vmem:[%s7592_s14 + $0xb0] ss:$8 sps:$4 sm:$0xff]  }
  0x53   : > { %1721 = vmatprep.subr.bf16.mxu0 %v6442_v19  ;;  %1914 = vmatprep.subr.bf16.mxu1 %v6444_v20  ;;  %v6514_v19 = vcombine.high %v484_v4, %v488_v5  ;;  %v477_v20 = vld [vmem:[%s13138_s1 + $0x398] sm:$0xff] }
  0x54   : > { %v8025_v46 = vld [vmem:[%s7592_s14 + $0xd4] ss:$8 sps:$4 sm:$0xff]   ;;  %v8032_v47 = vld [vmem:[%s7592_s14 + $0xd0] ss:$8 sps:$4 sm:$0xff]  }
  0x55   : > { %1722 = vmatpush1.bf16.msra.mxu0 %v6441_v21  ;;  %1915 = vmatpush1.bf16.msra.mxu1 %v6443_v23  ;;  %v481_v21 = vld [vmem:[%s13138_s1 + $0x3b8] sm:$0xff]  ;;  %v6516_v23 = vcombine.high %v485_v11, %v489_v12 }
  0x56   : > { %1723 = vmatprep.subr.bf16.mxu0 %v6434_v24  ;;  %1916 = vmatprep.subr.bf16.mxu1 %v6436_v28  ;;  %v6513_v24 = vcombine.low %v484_v4, %v488_v5  ;;  %v6515_v28 = vcombine.low %v485_v11, %v489_v12  ;;  %v6508_v30 = vcombine.high %v477_v20, %v481_v21  ;;  %v436_v5 = vld [vmem:[%s13138_s1 + $0x250] sm:$0xff] }
  0x57   : > { %v6507_v38 = vcombine.low %v477_v20, %v481_v21  ;;  %v6473_v11 = vcombine.low %v444_v55, %v448_v56  ;;  %v7963_v20 = vld [vmem:[%s7592_s14 + $0x84] ss:$8 sps:$4 sm:$0xff]   ;;  %v429_v21 = vld [vmem:[%s13138_s1 + $0x218] sm:$0xff] }
  0x58   : > { %1376 = vmatmul.mubr.bf16.gmra.mxu0 %v7749_v22  ;;  %1569 = vmatmul.mubr.bf16.gmra.mxu1 %v7749_v22 }
  0x59   : > { %1385 = vmatprep.mubr.bf16.mxu0 %v7759_v27  ;;  %1578 = vmatprep.mubr.bf16.mxu1 %v7759_v27 }
  0x5a   : > { %1724 = vmatpush1.bf16.msra.mxu0 %v6433_v31  ;;  %1917 = vmatpush1.bf16.msra.mxu1 %v6435_v34  ;;  %v469_v31 = vld [vmem:[%s13138_s1 + $0x358] sm:$0xff]  ;;  %v6505_v34 = vcombine.low %v476_v15, %v480_v16 }
  0x5b   : > { %1725 = vmatprep.subr.bf16.mxu0 %v6426_v35  ;;  %1918 = vmatprep.subr.bf16.mxu1 %v6428_v36  ;;  %v460_v35 = vld [vmem:[%s13138_s1 + $0x310] sm:$0xff] }
  0x5c   : > { %v464_v36 = vld [vmem:[%s13138_s1 + $0x330] sm:$0xff] }
  0x5d   : > { %v7954_v15 = vld [vmem:[%s7592_s14 + $0x70] ss:$8 sps:$4 sm:$0xff]  }
  0x5e   : > { %1726 = vmatpush1.bf16.msra.mxu0 %v6425_v40  ;;  %1919 = vmatpush1.bf16.msra.mxu1 %v6427_v44  ;;  %v6498_v40 = vcombine.high %v468_v25, %v472_v26  ;;  %v6500_v44 = vcombine.high %v469_v31, %v473_v32 }
  0x5f   : > { %1727 = vmatprep.subr.bf16.mxu0 %v6418_v45  ;;  %1920 = vmatprep.subr.bf16.mxu1 %v6420_v48  ;;  %v6497_v45 = vcombine.low %v468_v25, %v472_v26  ;;  %v6499_v48 = vcombine.low %v469_v31, %v473_v32  ;;  %v6723_v31 = vld [vmem:[%s13140_s3 + $0x74] ss:$8 sps:$4 sm:$0xff]   ;;  %v7979_v32 = vld [vmem:[%s7592_s14 + $0x80] ss:$8 sps:$4 sm:$0xff]  }
  0x60   : > { %1386 = vmatmul.mubr.bf16.gmra.mxu0 %v7784_v39  ;;  %1579 = vmatmul.mubr.bf16.gmra.mxu1 %v7784_v39 }
  0x61   : > { %1395 = vmatprep.mubr.bf16.mxu0 %v7793_v43  ;;  %1588 = vmatprep.mubr.bf16.mxu1 %v7793_v43 }
  0x62   : > { %1728 = vmatpush1.bf16.msra.mxu0 %v6417_v49  ;;  %1921 = vmatpush1.bf16.msra.mxu1 %v6419_v52  ;;  %v6490_v49 = vcombine.high %v460_v35, %v464_v36  ;;  %v457_v52 = vld [vmem:[%s13138_s1 + $0x2f8] sm:$0xff] }
  0x63   : > { %1729 = vmatprep.subr.bf16.mxu0 %v6410_v53  ;;  %1922 = vmatprep.subr.bf16.mxu1 %v6412_v54  ;;  %v7920_v53 = vld [vmem:[%s7592_s14 + $0x60] ss:$8 sps:$4 sm:$0xff]   ;;  %v6489_v54 = vcombine.low %v460_v35, %v464_v36  ;;  %v6484_v0 = vcombine.high %v453_v51, %v457_v52  ;;  %v7985_v35 = vld [vmem:[%s7592_s14 + $0x94] ss:$8 sps:$4 sm:$0xff]   ;;  %v7992_v36 = vld [vmem:[%s7592_s14 + $0x90] ss:$8 sps:$4 sm:$0xff]  }
  0x66   : > { %1730 = vmatpush1.bf16.msra.mxu0 %v6409_v58  ;;  %1923 = vmatpush1.bf16.msra.mxu1 %v6411_v62  ;;  %v7929_v58 = vld [vmem:[%s7592_s14 + $0x74] ss:$8 sps:$4 sm:$0xff]  }
  0x67   : > { %1731 = vmatprep.subr.bf16.mxu0 %v6402_v63  ;;  %1924 = vmatprep.subr.bf16.mxu1 %v6404_v2  ;;  %v445_v62 = vld [vmem:[%s13138_s1 + $0x298] sm:$0xff]  ;;  %v6483_v2 = vcombine.low %v453_v51, %v457_v52  ;;  %v7425_v52 = vld [vmem:[%s7592_s14 + $0x4] ss:$8 sps:$4 sm:$0xff]  }
  0x68   : > { %1396 = vmatmul.mubr.bf16.gmra.mxu0 %v7818_v57  ;;  %1589 = vmatmul.mubr.bf16.gmra.mxu1 %v7818_v57  ;;  %v449_v63 = vld [vmem:[%s13138_s1 + $0x2b8] sm:$0xff] }
  0x69   : > { %1405 = vmatprep.mubr.bf16.mxu0 %v7827_v61  ;;  %1598 = vmatprep.mubr.bf16.mxu1 %v7827_v61  ;;  %v6476_v4 = vcombine.high %v445_v62, %v449_v63  ;;  %v6475_v12 = vcombine.low %v445_v62, %v449_v63  ;;  %v8052_v51 = vld [vmem:[%s7592_s14 + $0xf0] ss:$8 sps:$4 sm:$0xff]   ;;  %v6730_v62 = vld [vmem:[%s13140_s3 + $0x160] ss:$8 sps:$4 sm:$0xff]   ;;  %v6735_v63 = vld [vmem:[%s13140_s3 + $0x54] ss:$8 sps:$4 sm:$0xff]  }
  0x6a   : > { %1732 = vmatpush1.bf16.msra.mxu0 %v6401_v3  ;;  %1925 = vmatpush1.bf16.msra.mxu1 %v6403_v7  ;;  %v6474_v3 = vcombine.high %v444_v55, %v448_v56  ;;  %v440_v7 = vld [vmem:[%s13138_s1 + $0x270] sm:$0xff]  ;;  %v6729_v56 = vld [vmem:[%s13140_s3 + $0x64] ss:$8 sps:$4 sm:$0xff]  }
  0x6b   : > { %1733 = vmatprep.subr.bf16.mxu0 %v6394_v8  ;;  %1926 = vmatprep.subr.bf16.mxu1 %v6396_v10  ;;  %v437_v8 = vld [vmem:[%s13138_s1 + $0x258] sm:$0xff] }
  0x6c   : > { %v441_v10 = vld [vmem:[%s13138_s1 + $0x278] sm:$0xff] }
  0x6d   : > { %v6468_v16 = vcombine.high %v437_v8, %v441_v10  ;;  %v6467_v25 = vcombine.low %v437_v8, %v441_v10  ;;  %v6724_v55 = vld [vmem:[%s13140_s3 + $0x170] ss:$8 sps:$4 sm:$0xff]   ;;  %v6753_v8 = vld [vmem:[%s13140_s3 + $0x24] ss:$8 sps:$4 sm:$0xff]  }
  0x6e   : > { %1734 = vmatpush1.bf16.msra.mxu0 %v6393_v14  ;;  %1927 = vmatpush1.bf16.msra.mxu1 %v6395_v18  ;;  %v6466_v14 = vcombine.high %v436_v5, %v440_v7  ;;  %v428_v18 = vld [vmem:[%s13138_s1 + $0x210] sm:$0xff]  ;;  %v6756_v10 = vld [vmem:[%s13140_s3 + $0x124] ss:$8 sps:$4 sm:$0xff]  }
  0x6f   : > { %1735 = vmatprep.subr.bf16.mxu0 %v6514_v19  ;;  %1928 = vmatprep.subr.bf16.mxu1 %v6516_v23  ;;  %v432_v19 = vld [vmem:[%s13138_s1 + $0x230] sm:$0xff]  ;;  %v433_v23 = vld [vmem:[%s13138_s1 + $0x238] sm:$0xff] }
  0x70   : > { %1406 = vmatmul.mubr.bf16.gmra.mxu0 %v7852_v13  ;;  %1599 = vmatmul.mubr.bf16.gmra.mxu1 %v7852_v13  ;;  %v6458_v26 = vcombine.high %v428_v18, %v432_v19 }
  0x71   : > { %1415 = vmatprep.mubr.bf16.mxu0 %v7861_v17  ;;  %1608 = vmatprep.mubr.bf16.mxu1 %v7861_v17 }
  0x72   : > { %1736 = vmatpush2.bf16.msra.mxu0 %v6513_v24  ;;  %1929 = vmatpush2.bf16.msra.mxu1 %v6515_v28  ;;  %v6465_v24 = vcombine.low %v436_v5, %v440_v7  ;;  %v6460_v28 = vcombine.high %v429_v21, %v433_v23  ;;  %v6747_v5 = vld [vmem:[%s13140_s3 + $0x34] ss:$8 sps:$4 sm:$0xff]   ;;  %v6748_v7 = vld [vmem:[%s13140_s3 + $0x130] ss:$8 sps:$4 sm:$0xff]  }
  0x73   : > { %1737 = vmatprep.subr.bf16.mxu0 %v6506_v29  ;;  %1930 = vmatprep.subr.bf16.mxu1 %v6508_v30  ;;  %v6457_v29 = vcombine.low %v428_v18, %v432_v19  ;;  %v6459_v30 = vcombine.low %v429_v21, %v433_v23  ;;  %v6765_v18 = vld [vmem:[%s13140_s3 + $0x4] ss:$8 sps:$4 sm:$0xff]   ;;  %v6763_v21 = vld [vmem:[%s13140_s3] ss:$8 sps:$4 sm:$0xff]  }
  0x74   : > { %v6768_v19 = vld [vmem:[%s13140_s3 + $0x104] ss:$8 sps:$4 sm:$0xff]   ;;  %v6766_v23 = vld [vmem:[%s13140_s3 + $0x100] ss:$8 sps:$4 sm:$0xff]  }
  0x76   : > { %1738 = vmatpush2.bf16.msra.mxu0 %v6505_v34  ;;  %1931 = vmatpush2.bf16.msra.mxu1 %v6507_v38  ;;  %v6726_v34 = vld [vmem:[%s13140_s3 + $0x174] ss:$8 sps:$4 sm:$0xff]   ;;  %v7995_v38 = vld [vmem:[%s7592_s14 + $0xa4] ss:$8 sps:$4 sm:$0xff]  }
  0x77   : > { %1739 = vmatprep.subr.bf16.mxu0 %v6498_v40  ;;  %1932 = vmatprep.subr.bf16.mxu1 %v6500_v44  ;;  %v8002_v40 = vld [vmem:[%s7592_s14 + $0xa0] ss:$8 sps:$4 sm:$0xff]   ;;  %v8015_v44 = vld [vmem:[%s7592_s14 + $0xc4] ss:$8 sps:$4 sm:$0xff]  }
  0x78   : > { %1416 = vmatmul.mubr.bf16.gmra.mxu0 %v7886_v33  ;;  %1609 = vmatmul.mubr.bf16.gmra.mxu1 %v7886_v33 }
  0x79   : > { %1425 = vmatprep.mubr.bf16.mxu0 %v7895_v37  ;;  %1618 = vmatprep.mubr.bf16.mxu1 %v7895_v37 }
  0x7a   : > { %1740 = vmatpush2.bf16.msra.mxu0 %v6497_v45  ;;  %1933 = vmatpush2.bf16.msra.mxu1 %v6499_v48  ;;  %v8022_v45 = vld [vmem:[%s7592_s14 + $0xc0] ss:$8 sps:$4 sm:$0xff]   ;;  %v8035_v48 = vld [vmem:[%s7592_s14 + $0xe4] ss:$8 sps:$4 sm:$0xff]  }
  0x7b   : > { %1741 = vmatprep.subr.bf16.mxu0 %v6490_v49  ;;  %1934 = vmatprep.subr.bf16.mxu1 %v6492_v50  ;;  %v8042_v49 = vld [vmem:[%s7592_s14 + $0xe0] ss:$8 sps:$4 sm:$0xff]   ;;  %v8045_v50 = vld [vmem:[%s7592_s14 + $0xf4] ss:$8 sps:$4 sm:$0xff]   ;;  %s12890_s14 = scalar_lea.vmem %s13142_s5, %s6648_s30 }
  0x7e   : > { %1742 = vmatpush2.bf16.msra.mxu0 %v6489_v54  ;;  %1935 = vmatpush2.bf16.msra.mxu1 %v6491_v59  ;;  %v6721_v54 = vld [vmem:[%s13140_s3 + $0x70] ss:$8 sps:$4 sm:$0xff]   ;;  %v6732_v59 = vld [vmem:[%s13140_s3 + $0x164] ss:$8 sps:$4 sm:$0xff]  }
  0x7f   : > { %1743 = vmatprep.subr.bf16.mxu0 %v6482_v60  ;;  %1936 = vmatprep.subr.bf16.mxu1 %v6484_v0  ;;  %v6727_v60 = vld [vmem:[%s13140_s3 + $0x60] ss:$8 sps:$4 sm:$0xff]   ;;  %v6733_v0 = vld [vmem:[%s13140_s3 + $0x50] ss:$8 sps:$4 sm:$0xff]  }
  0x80   : > { %1426 = vmatmul.mubr.bf16.gmra.mxu0 %v7920_v53  ;;  %1619 = vmatmul.mubr.bf16.gmra.mxu1 %v7920_v53 }
  0x81   : > { %1435 = vmatprep.mubr.bf16.mxu0 %v7929_v58  ;;  %1628 = vmatprep.mubr.bf16.mxu1 %v7929_v58 }
  0x82   : > { %1744 = vmatpush2.bf16.msra.mxu0 %v6481_v1  ;;  %1937 = vmatpush2.bf16.msra.mxu1 %v6483_v2  ;;  %v6736_v1 = vld [vmem:[%s13140_s3 + $0x150] ss:$8 sps:$4 sm:$0xff]   ;;  %v6744_v2 = vld [vmem:[%s13140_s3 + $0x144] ss:$8 sps:$4 sm:$0xff]  }
  0x83   : > { %1745 = vmatprep.subr.bf16.mxu0 %v6474_v3  ;;  %1938 = vmatprep.subr.bf16.mxu1 %v6476_v4  ;;  %v6739_v3 = vld [vmem:[%s13140_s3 + $0x40] ss:$8 sps:$4 sm:$0xff]  }
  0x84   : > { %v6742_v4 = vld [vmem:[%s13140_s3 + $0x140] ss:$8 sps:$4 sm:$0xff]  }
  0x86   : > { %1746 = vmatpush2.bf16.msra.mxu0 %v6473_v11  ;;  %1939 = vmatpush2.bf16.msra.mxu1 %v6475_v12  ;;  %v6751_v11 = vld [vmem:[%s13140_s3 + $0x20] ss:$8 sps:$4 sm:$0xff]  }
  0x87   : > { %1747 = vmatprep.subr.bf16.mxu0 %v6466_v14  ;;  %1940 = vmatprep.subr.bf16.mxu1 %v6468_v16  ;;  %v6754_v12 = vld [vmem:[%s13140_s3 + $0x120] ss:$8 sps:$4 sm:$0xff]   ;;  %v6759_v14 = vld [vmem:[%s13140_s3 + $0x14] ss:$8 sps:$4 sm:$0xff]   ;;  %v6760_v16 = vld [vmem:[%s13140_s3 + $0x110] ss:$8 sps:$4 sm:$0xff]  }
  0x88   : > { %1436 = vmatmul.mubr.bf16.gmra.mxu0 %v7954_v15  ;;  %1629 = vmatmul.mubr.bf16.gmra.mxu1 %v7954_v15 }
  0x89   : > { %1445 = vmatprep.mubr.bf16.mxu0 %v7963_v20  ;;  %1638 = vmatprep.mubr.bf16.mxu1 %v7963_v20 }
  0x8a   : > { %1748 = vmatpush2.bf16.msra.mxu0 %v6465_v24  ;;  %1941 = vmatpush2.bf16.msra.mxu1 %v6467_v25  ;;  %v6771_v24 = vld [vmem:[%s13140_s3 + $0xf4] ss:$8 sps:$4 sm:$0xff]   ;;  %v6772_v25 = vld [vmem:[%s13140_s3 + $0x1f0] ss:$8 sps:$4 sm:$0xff]  }
  0x8b   : > { %1749 = vmatprep.subr.bf16.mxu0 %v6458_v26  ;;  %1942 = vmatprep.subr.bf16.mxu1 %v6460_v28  ;;  %v6777_v26 = vld [vmem:[%s13140_s3 + $0xe4] ss:$8 sps:$4 sm:$0xff]  }
  0x8c   : > { %v6780_v28 = vld [vmem:[%s13140_s3 + $0x1e4] ss:$8 sps:$4 sm:$0xff]  }
  0x8e   : > { %1750 = vmatpush2.bf16.msra.mxu0 %v6457_v29  ;;  %1943 = vmatpush2.bf16.msra.mxu1 %v6459_v30  ;;  %v6775_v29 = vld [vmem:[%s13140_s3 + $0xe0] ss:$8 sps:$4 sm:$0xff]  }
  0x8f   : > { %5374 = vmatprep.subr.bf16.mxu0 %v6723_v31  ;;  %5567 = vmatprep.subr.bf16.mxu1 %v6726_v34  ;;  %v6778_v30 = vld [vmem:[%s13140_s3 + $0x1e0] ss:$8 sps:$4 sm:$0xff]   ;;  %v6783_v31 = vld [vmem:[%s13140_s3 + $0xd4] ss:$8 sps:$4 sm:$0xff]   ;;  %v6784_v34 = vld [vmem:[%s13140_s3 + $0x1d0] ss:$8 sps:$4 sm:$0xff]  }
  0x90   : > { %1446 = vmatmul.mubr.bf16.gmra.mxu0 %v7979_v32  ;;  %1639 = vmatmul.mubr.bf16.gmra.mxu1 %v7979_v32 }
  0x91   : > { %1455 = vmatprep.mubr.bf16.mxu0 %v7985_v35  ;;  %1648 = vmatprep.mubr.bf16.mxu1 %v7985_v35 }
  0x98   : > { %1456 = vmatmul.mubr.bf16.gmra.mxu0 %v7992_v36  ;;  %1649 = vmatmul.mubr.bf16.gmra.mxu1 %v7992_v36 }
  0x99   : > { %1465 = vmatprep.mubr.bf16.mxu0 %v7995_v38  ;;  %1658 = vmatprep.mubr.bf16.mxu1 %v7995_v38 }
  0xa0   : > { %1466 = vmatmul.mubr.bf16.gmra.mxu0 %v8002_v40  ;;  %1659 = vmatmul.mubr.bf16.gmra.mxu1 %v8002_v40 }
  0xa1   : > { %1475 = vmatprep.mubr.bf16.mxu0 %v8005_v41  ;;  %1668 = vmatprep.mubr.bf16.mxu1 %v8005_v41 }
  0xa8   : > { %1476 = vmatmul.mubr.bf16.gmra.mxu0 %v8012_v42  ;;  %1669 = vmatmul.mubr.bf16.gmra.mxu1 %v8012_v42 }
  0xa9   : > { %1485 = vmatprep.mubr.bf16.mxu0 %v8015_v44  ;;  %1678 = vmatprep.mubr.bf16.mxu1 %v8015_v44 }
  0xb0   : > { %1486 = vmatmul.mubr.bf16.gmra.mxu0 %v8022_v45  ;;  %1679 = vmatmul.mubr.bf16.gmra.mxu1 %v8022_v45 }
  0xb1   : > { %1495 = vmatprep.mubr.bf16.mxu0 %v8025_v46  ;;  %1688 = vmatprep.mubr.bf16.mxu1 %v8025_v46 }
  0xb8   : > { %1496 = vmatmul.mubr.bf16.gmra.mxu0 %v8032_v47  ;;  %1689 = vmatmul.mubr.bf16.gmra.mxu1 %v8032_v47 }
  0xb9   : > { %1505 = vmatprep.mubr.bf16.mxu0 %v8035_v48  ;;  %1698 = vmatprep.mubr.bf16.mxu1 %v8035_v48 }
  0xc0   : > { %1506 = vmatmul.mubr.bf16.gmra.mxu0 %v8042_v49  ;;  %1699 = vmatmul.mubr.bf16.gmra.mxu1 %v8042_v49 }
  0xc1   : > { %1515 = vmatprep.mubr.bf16.mxu0 %v8045_v50  ;;  %1708 = vmatprep.mubr.bf16.mxu1 %v8045_v50 }
  0xc8   : > { %1516 = vmatmul.mubr.bf16.gmra.mxu0 %v8052_v51  ;;  %1709 = vmatmul.mubr.bf16.gmra.mxu1 %v8052_v51 }
  0xc9   : > { %1751 = vmatprep.mubr.bf16.mxu0 %v7425_v52  ;;  %1944 = vmatprep.mubr.bf16.mxu1 %v7425_v52  ;;  %v6789_v52 = vld [vmem:[%s13140_s3 + $0xc4] ss:$8 sps:$4 sm:$0xff]  }
  0xd0   : > { %1752 = vmatmul.mubr.bf16.vlgmr.msra.gmra.mxu0 %v7716_v6  ;;  %1945 = vmatmul.mubr.bf16.vlgmr.msra.gmra.mxu1 %v7716_v6  ;;  %v6738_v6 = vld [vmem:[%s13140_s3 + $0x154] ss:$8 sps:$4 sm:$0xff]  }
  0xd1   : > { %5375 = vmatpush1.bf16.msra.mxu0 %v6721_v54  ;;  %5568 = vmatpush1.bf16.msra.mxu1 %v6724_v55  ;;  %v6792_v54 = vld [vmem:[%s13140_s3 + $0x1c4] ss:$8 sps:$4 sm:$0xff]   ;;  %v6787_v55 = vld [vmem:[%s13140_s3 + $0xc0] ss:$8 sps:$4 sm:$0xff]  }
  0xd2   : > { %1761 = vmatprep.mubr.bf16.mxu0 %v7722_v9  ;;  %1954 = vmatprep.mubr.bf16.mxu1 %v7722_v9  ;;  %v6741_v9 = vld [vmem:[%s13140_s3 + $0x44] ss:$8 sps:$4 sm:$0xff]  }
  0xd3   : > { %5376 = vmatprep.subr.bf16.mxu0 %v6729_v56  ;;  %5569 = vmatprep.subr.bf16.mxu1 %v6732_v59  ;;  %v6790_v56 = vld [vmem:[%s13140_s3 + $0x1c0] ss:$8 sps:$4 sm:$0xff]   ;;  %v6795_v59 = vld [vmem:[%s13140_s3 + $0xb4] ss:$8 sps:$4 sm:$0xff]  }
  0xd5   : > { %5377 = vmatpush1.bf16.msra.mxu0 %v6727_v60  ;;  %5570 = vmatpush1.bf16.msra.mxu1 %v6730_v62  ;;  %v6796_v60 = vld [vmem:[%s13140_s3 + $0x1b0] ss:$8 sps:$4 sm:$0xff]   ;;  %v6801_v62 = vld [vmem:[%s13140_s3 + $0xa4] ss:$8 sps:$4 sm:$0xff]  }
  0xd6   : > { %5378 = vmatprep.subr.bf16.mxu0 %v6735_v63  ;;  %5571 = vmatprep.subr.bf16.mxu1 %v6738_v6  ;;  %v6804_v63 = vld [vmem:[%s13140_s3 + $0x1a4] ss:$8 sps:$4 sm:$0xff]   ;;  %v251_v6 = vlaneseq }
  0xd8   : > { %1762 = vmatmul.mubr.bf16.gmra.mxu0 %v7749_v22  ;;  %1955 = vmatmul.mubr.bf16.gmra.mxu1 %v7749_v22  ;;  %v6750_v22 = vld [vmem:[%s13140_s3 + $0x134] ss:$8 sps:$4 sm:$0xff]  }
  0xd9   : > { %1771 = vmatprep.mubr.bf16.mxu0 %v7759_v27  ;;  %1964 = vmatprep.mubr.bf16.mxu1 %v7759_v27  ;;  %v6745_v27 = vld [vmem:[%s13140_s3 + $0x30] ss:$8 sps:$4 sm:$0xff]  }
  0xda   : > { %5379 = vmatpush1.bf16.msra.mxu0 %v6733_v0  ;;  %5572 = vmatpush1.bf16.msra.mxu1 %v6736_v1  ;;  %v6799_v0 = vld [vmem:[%s13140_s3 + $0xa0] ss:$8 sps:$4 sm:$0xff]  }
  0xdb   : > { %5380 = vmatprep.subr.bf16.mxu0 %v6741_v9  ;;  %5573 = vmatprep.subr.bf16.mxu1 %v6744_v2  ;;  %v6802_v1 = vld [vmem:[%s13140_s3 + $0x1a0] ss:$8 sps:$4 sm:$0xff]   ;;  %v8253_v9 = vshrl.u32 %v251_v6, 7  ;;  %v6805_v2 = vld [vmem:[%s13140_s3 + $0x90] ss:$8 sps:$4 sm:$0xff]  }
  0xdd   : > { %13479 = vst [vmem:[#allocation2_spill] sm:$0xff] %v8253_v9 }
  0xde   : > { %5381 = vmatpush1.bf16.msra.mxu0 %v6739_v3  ;;  %5574 = vmatpush1.bf16.msra.mxu1 %v6742_v4  ;;  %v6808_v3 = vld [vmem:[%s13140_s3 + $0x190] ss:$8 sps:$4 sm:$0xff]   ;;  %v6813_v4 = vld [vmem:[%s13140_s3 + $0x84] ss:$8 sps:$4 sm:$0xff]  }
  0xdf   : > { %5382 = vmatprep.subr.bf16.mxu0 %v6747_v5  ;;  %5575 = vmatprep.subr.bf16.mxu1 %v6750_v22  ;;  %v6816_v5 = vld [vmem:[%s13140_s3 + $0x184] ss:$8 sps:$4 sm:$0xff]   ;;  %v13144_v22 = vsub.s32 0, %v8253_v9 }
  0xe0   : > { %1772 = vmatmul.mubr.bf16.gmra.mxu0 %v7784_v39  ;;  %1965 = vmatmul.mubr.bf16.gmra.mxu1 %v7784_v39  ;;  %v6762_v39 = vld [vmem:[%s13140_s3 + $0x114] ss:$8 sps:$4 sm:$0xff]  }
  0xe1   : > { %1781 = vmatprep.mubr.bf16.mxu0 %v7793_v43  ;;  %1974 = vmatprep.mubr.bf16.mxu1 %v7793_v43  ;;  %v6757_v43 = vld [vmem:[%s13140_s3 + $0x10] ss:$8 sps:$4 sm:$0xff]  }
  0xe2   : > { %5383 = vmatpush1.bf16.msra.mxu0 %v6745_v27  ;;  %5576 = vmatpush1.bf16.msra.mxu1 %v6748_v7  ;;  %v491_v27 = vld [vmem:[%s13139_s2] sm:$0xff]  ;;  %v503_v7 = vsub.s32 2, %v8253_v9 }
  0xe3   : > { %5384 = vmatprep.subr.bf16.mxu0 %v6753_v8  ;;  %5577 = vmatprep.subr.bf16.mxu1 %v6756_v10  ;;  %v6811_v8 = vld [vmem:[%s13140_s3 + $0x80] ss:$8 sps:$4 sm:$0xff]   ;;  %v8287_v10 = vrot.slane %v491_v27, %v13144_v22 }
  0xe6   : > { %5385 = vmatpush1.bf16.msra.mxu0 %v6751_v11  ;;  %5578 = vmatpush1.bf16.msra.mxu1 %v6754_v12  ;;  %v8289_v11 = vrot.slane %v491_v27, %v503_v7 }
  0xe7   : > { %5386 = vmatprep.subr.bf16.mxu0 %v6759_v14  ;;  %5579 = vmatprep.subr.bf16.mxu1 %v6762_v39 }
  0xe8   : > { %1782 = vmatmul.mubr.bf16.gmra.mxu0 %v7818_v57  ;;  %1975 = vmatmul.mubr.bf16.gmra.mxu1 %v7818_v57  ;;  %v6774_v57 = vld [vmem:[%s13140_s3 + $0x1f4] ss:$8 sps:$4 sm:$0xff]  }
  0xe9   : > { %1791 = vmatprep.mubr.bf16.mxu0 %v7827_v61  ;;  %1984 = vmatprep.mubr.bf16.mxu1 %v7827_v61  ;;  %v6769_v61 = vld [vmem:[%s13140_s3 + $0xf0] ss:$8 sps:$4 sm:$0xff]  }
  0xea   : > { %5387 = vmatpush1.bf16.msra.mxu0 %v6757_v43  ;;  %5580 = vmatpush1.bf16.msra.mxu1 %v6760_v16  ;;  %v6822_v43 = vld [vmem:[%s13140_s3 + $0x374] ss:$8 sps:$4 sm:$0xff]  }
  0xeb   : > { %5388 = vmatprep.subr.bf16.mxu0 %v6765_v18  ;;  %5581 = vmatprep.subr.bf16.mxu1 %v6768_v19 }
  0xee   : > { %5389 = vmatpush1.bf16.msra.mxu0 %v6763_v21  ;;  %5582 = vmatpush1.bf16.msra.mxu1 %v6766_v23 }
  0xef   : > { %5390 = vmatprep.subr.bf16.mxu0 %v6771_v24  ;;  %5583 = vmatprep.subr.bf16.mxu1 %v6774_v57 }
  0xf0   : > { %1792 = vmatmul.mubr.bf16.gmra.mxu0 %v7852_v13  ;;  %1985 = vmatmul.mubr.bf16.gmra.mxu1 %v7852_v13  ;;  %v6786_v13 = vld [vmem:[%s13140_s3 + $0x1d4] ss:$8 sps:$4 sm:$0xff]  }
  0xf1   : > { %1801 = vmatprep.mubr.bf16.mxu0 %v7861_v17  ;;  %1994 = vmatprep.mubr.bf16.mxu1 %v7861_v17  ;;  %v6781_v17 = vld [vmem:[%s13140_s3 + $0xd0] ss:$8 sps:$4 sm:$0xff]  }
  0xf2   : > { %5391 = vmatpush2.bf16.msra.mxu0 %v6769_v61  ;;  %5584 = vmatpush2.bf16.msra.mxu1 %v6772_v25 }
  0xf3   : > { %5392 = vmatprep.subr.bf16.mxu0 %v6777_v26  ;;  %5585 = vmatprep.subr.bf16.mxu1 %v6780_v28 }
  0xf6   : > { %5393 = vmatpush2.bf16.msra.mxu0 %v6775_v29  ;;  %5586 = vmatpush2.bf16.msra.mxu1 %v6778_v30 }
  0xf7   : > { %5394 = vmatprep.subr.bf16.mxu0 %v6783_v31  ;;  %5587 = vmatprep.subr.bf16.mxu1 %v6786_v13 }
  0xf8   : > { %1802 = vmatmul.mubr.bf16.gmra.mxu0 %v7886_v33  ;;  %1995 = vmatmul.mubr.bf16.gmra.mxu1 %v7886_v33  ;;  %v6798_v33 = vld [vmem:[%s13140_s3 + $0x1b4] ss:$8 sps:$4 sm:$0xff]  }
  0xf9   : > { %1811 = vmatprep.mubr.bf16.mxu0 %v7895_v37  ;;  %2004 = vmatprep.mubr.bf16.mxu1 %v7895_v37  ;;  %v6793_v37 = vld [vmem:[%s13140_s3 + $0xb0] ss:$8 sps:$4 sm:$0xff]  }
  0xfa   : > { %5395 = vmatpush2.bf16.msra.mxu0 %v6781_v17  ;;  %5588 = vmatpush2.bf16.msra.mxu1 %v6784_v34  ;;  %v13143_v17 = vsub.s32 1, %v8253_v9  ;;  %v507_v34 = vsub.s32 3, %v8253_v9 }
  0xfb   : > { %5396 = vmatprep.subr.bf16.mxu0 %v6789_v52  ;;  %5589 = vmatprep.subr.bf16.mxu1 %v6792_v54 }
  0xfc   : > { %v8329_v6 = vrot.slane %v491_v27, %v507_v34 }
  0xfe   : > { %5397 = vmatpush2.bf16.msra.mxu0 %v6787_v55  ;;  %5590 = vmatpush2.bf16.msra.mxu1 %v6790_v56 }
  0xff   : > { %5398 = vmatprep.subr.bf16.mxu0 %v6795_v59  ;;  %5591 = vmatprep.subr.bf16.mxu1 %v6798_v33 }
 0x100   : > { %1812 = vmatmul.mubr.bf16.gmra.mxu0 %v7920_v53  ;;  %2005 = vmatmul.mubr.bf16.gmra.mxu1 %v7920_v53  ;;  %v6807_v53 = vld [vmem:[%s13140_s3 + $0x94] ss:$8 sps:$4 sm:$0xff]  }
 0x101   : > { %1821 = vmatprep.mubr.bf16.mxu0 %v7929_v58  ;;  %2014 = vmatprep.mubr.bf16.mxu1 %v7929_v58  ;;  %v6810_v58 = vld [vmem:[%s13140_s3 + $0x194] ss:$8 sps:$4 sm:$0xff]  }
 0x102   : > { %5399 = vmatpush2.bf16.msra.mxu0 %v6793_v37  ;;  %5592 = vmatpush2.bf16.msra.mxu1 %v6796_v60 }
 0x103   : > { %5400 = vmatprep.subr.bf16.mxu0 %v6801_v62  ;;  %5593 = vmatprep.subr.bf16.mxu1 %v6804_v63 }
 0x106   : > { %5401 = vmatpush2.bf16.msra.mxu0 %v6799_v0  ;;  %5594 = vmatpush2.bf16.msra.mxu1 %v6802_v1 }
 0x107   : > { %5402 = vmatprep.subr.bf16.mxu0 %v6807_v53  ;;  %5595 = vmatprep.subr.bf16.mxu1 %v6810_v58 }
 0x108   : > { %1822 = vmatmul.mubr.bf16.gmra.mxu0 %v7954_v15  ;;  %2015 = vmatmul.mubr.bf16.gmra.mxu1 %v7954_v15  ;;  %v6814_v15 = vld [vmem:[%s13140_s3 + $0x180] ss:$8 sps:$4 sm:$0xff]  }
 0x109   : > { %1831 = vmatprep.mubr.bf16.mxu0 %v7963_v20  ;;  %2024 = vmatprep.mubr.bf16.mxu1 %v7963_v20  ;;  %v6819_v20 = vld [vmem:[%s13140_s3 + $0x274] ss:$8 sps:$4 sm:$0xff]  }
 0x10a   : > { %5403 = vmatpush2.bf16.msra.mxu0 %v6805_v2  ;;  %5596 = vmatpush2.bf16.msra.mxu1 %v6808_v3 }
 0x10b   : > { %5404 = vmatprep.subr.bf16.mxu0 %v6813_v4  ;;  %5597 = vmatprep.subr.bf16.mxu1 %v6816_v5 }
 0x10e   : > { %5405 = vmatpush2.bf16.msra.mxu0 %v6811_v8  ;;  %5598 = vmatpush2.bf16.msra.mxu1 %v6814_v15 }
 0x10f   : > { %5760 = vmatprep.subr.bf16.mxu0 %v6819_v20  ;;  %5953 = vmatprep.subr.bf16.mxu1 %v6822_v43 }
 0x110   : > { %v1367_v12 = vpop.f32.mrf.mxu0  ;;  %1832 = vmatmul.mubr.bf16.gmra.mxu0 %v7979_v32  ;;  %v1560_v39 = vpop.f32.mrf.mxu1  ;;  %2025 = vmatmul.mubr.bf16.gmra.mxu1 %v7979_v32 }
 0x111   : > { %v1368_v14 = vadd.f32 %v1367_v12, %v8287_v10  ;;  %1841 = vmatprep.mubr.bf16.mxu0 %v7985_v35  ;;  %v8299_v16 = vadd.f32 %v1560_v39, %v8289_v11  ;;  %2034 = vmatprep.mubr.bf16.mxu1 %v7985_v35 }
 0x112   : > { %v1369_v18 = vpop.f32.mrf.mxu0  ;;  %v1562_v21 = vpop.f32.mrf.mxu1 }
 0x113   : > { %v2361_v19 = vmul.f32 0.044715, %v1368_v14  ;;  %v2363_v23 = vmul.f32 0.044715, %v8299_v16  ;;  %v8343_v8 = vadd.f32 %v1562_v21, %v8329_v6  ;;  %v8351_v39 = vmul.f32 0.5, %v1368_v14 }
 0x114   : > { %v1371_v24 = vpop.f32.mrf.mxu0  ;;  %v1564_v61 = vpop.f32.mrf.mxu1 }
 0x115   : > { %v2617_v57 = vmul.f32 %v2361_v19, %v1368_v14  ;;  %v8304_v32 = vadd.f32 %v1371_v24, %v8287_v10  ;;  %v8307_v25 = vadd.f32 %v1564_v61, %v8289_v11  ;;  %v2619_v28 = vmul.f32 %v2363_v23, %v8299_v16 }
 0x116   : > { %v1373_v26 = vpop.f32.mrf.mxu0  ;;  %v1566_v35 = vpop.f32.mrf.mxu1 }
 0x117   : > { %v2369_v29 = vmul.f32 0.044715, %v8304_v32  ;;  %v2873_v30 = vmul.f32 %v2617_v57, %v1368_v14  ;;  %v2371_v31 = vmul.f32 0.044715, %v8307_v25  ;;  %v2875_v56 = vmul.f32 %v2619_v28, %v8299_v16 }
 0x118   : > { %v1377_v13 = vpop.f32.mrf.mxu0  ;;  %1842 = vmatmul.mubr.bf16.gmra.mxu0 %v7992_v36  ;;  %v1570_v54 = vpop.f32.mrf.mxu1  ;;  %2035 = vmatmul.mubr.bf16.gmra.mxu1 %v7992_v36  ;;  %v8327_v36 = vrot.slane %v491_v27, %v13143_v17 }
 0x119   : > { %v2625_v52 = vmul.f32 %v2369_v29, %v8304_v32  ;;  %1851 = vmatprep.mubr.bf16.mxu0 %v7995_v38  ;;  %v2627_v59 = vmul.f32 %v2371_v31, %v8307_v25  ;;  %2044 = vmatprep.mubr.bf16.mxu1 %v7995_v38  ;;  %v3129_v37 = vadd.f32 %v2873_v30, %v1368_v14  ;;  %v2364_v14 = vmul.f32 0.044715, %v8343_v8 }
 0x11a   : > { %v1379_v55 = vpop.f32.mrf.mxu0  ;;  %v1572_v33 = vpop.f32.mrf.mxu1  ;;  %v8323_v62 = vadd.f32 %v1377_v13, %v8287_v10  ;;  %v8332_v0 = vadd.f32 %v1570_v54, %v8289_v11  ;;  %v3131_v38 = vadd.f32 %v2875_v56, %v8299_v16  ;;  %v8340_v27 = vadd.f32 %v1369_v18, %v8327_v36 }
 0x11b   : > { %v2881_v60 = vmul.f32 %v2625_v52, %v8304_v32  ;;  %v2883_v58 = vmul.f32 %v2627_v59, %v8307_v25  ;;  %v3385_v3 = vmul.f32 0.7978846, %v3129_v37  ;;  %v8374_v30 = vmul.f32 0.5, %v8299_v16 }
 0x11c   : > { %13480 = vst [vmem:[#allocation3_spill] sm:$0xff] %v8323_v62  ;;  %v1381_v63 = vpop.f32.mrf.mxu0  ;;  %13481 = vst [vmem:[#allocation4_spill] sm:$0xff] %v8332_v0  ;;  %v1574_v1 = vpop.f32.mrf.mxu1  ;;  %v2377_v5 = vmul.f32 0.044715, %v8323_v62  ;;  %v2379_v15 = vmul.f32 0.044715, %v8332_v0  ;;  %v8380_v31 = vadd.f32 %v1379_v55, %v8327_v36  ;;  %v8388_v54 = vadd.f32 %v1572_v33, %v8329_v6 }
 0x11d   : > { %v3137_v4 = vadd.f32 %v2881_v60, %v8304_v32  ;;  %v3387_v43 = vmul.f32 0.7978846, %v3131_v38  ;;  %v3139_v18 = vadd.f32 %v2883_v58, %v8307_v25  ;;  %v8355_v19 = vadd.f32 %v1381_v63, %v8287_v10 }
 0x11e   : > { %v1383_v53 = vpop.f32.mrf.mxu0  ;;  %v1576_v2 = vpop.f32.mrf.mxu1  ;;  %6913 = vtanh.f32 %v3385_v3  ;;  %v2633_v24 = vmul.f32 %v2377_v5, %v8323_v62  ;;  %v2635_v61 = vmul.f32 %v2379_v15, %v8332_v0  ;;  %v8369_v28 = vadd.f32 %v1574_v1, %v8289_v11  ;;  %13486 = vst [vmem:[#allocation9_spill] sm:$0xff] %v8388_v54 }
 0x11f   : > { %13482 = vst [vmem:[#allocation5_spill] sm:$0xff] %v8355_v19  ;;  %v3393_v23 = vmul.f32 0.7978846, %v3137_v4  ;;  %v8385_v34 = vmul.f32 0.5, %v8340_v27  ;;  %6915 = vtanh.f32 %v3387_v43  ;;  %v3395_v52 = vmul.f32 0.7978846, %v3139_v18 }
 0x120   : > { %v1387_v7 = vpop.f32.mrf.mxu0  ;;  %1852 = vmatmul.mubr.bf16.gmra.mxu0 %v8002_v40  ;;  %v1580_v20 = vpop.f32.mrf.mxu1  ;;  %2045 = vmatmul.mubr.bf16.gmra.mxu1 %v8002_v40  ;;  %v8360_v40 = vadd.f32 %v1373_v26, %v8327_v36  ;;  %13483 = vst [vmem:[#allocation6_spill] sm:$0xff] %v8369_v28  ;;  %v8377_v26 = vadd.f32 %v1566_v35, %v8329_v6  ;;  %v2385_v56 = vmul.f32 0.044715, %v8355_v19  ;;  %v8399_v37 = vmul.f32 0.5, %v8343_v8 }
 0x121   : > { %1861 = vmatprep.mubr.bf16.mxu0 %v8005_v41  ;;  %2054 = vmatprep.mubr.bf16.mxu1 %v8005_v41  ;;  %v2362_v41 = vmul.f32 0.044715, %v8340_v27  ;;  %13485 = vst [vmem:[#allocation8_spill] sm:$0xff] %v8385_v34  ;;  %6917 = vtanh.f32 %v3393_v23  ;;  %v2889_v55 = vmul.f32 %v2633_v24, %v8323_v62  ;;  %v2620_v33 = vmul.f32 %v2364_v14, %v8343_v8 }
 0x122   : > { %v8348_v12 = vpop.f32.mrf.mxu0  ;;  %v8357_v21 = vpop.f32.mrf.mxu1  ;;  %13484 = vst [vmem:[#allocation7_spill] sm:$0xff] %v8377_v26  ;;  %v2370_v35 = vmul.f32 0.044715, %v8360_v40  ;;  %13487 = vst [vmem:[#allocation10_spill] sm:$0xff] %v8399_v37  ;;  %v2891_v63 = vmul.f32 %v2635_v61, %v8332_v0  ;;  %v2387_v1 = vmul.f32 0.044715, %v8369_v28  ;;  %v8412_v4 = vadd.f32 %v1383_v53, %v8327_v36 }
 0x123   : > { %v2618_v60 = vmul.f32 %v2362_v41, %v8340_v27  ;;  %v2372_v58 = vmul.f32 0.044715, %v8377_v26  ;;  %v2378_v3 = vmul.f32 0.044715, %v8380_v31  ;;  %v8415_v5 = vadd.f32 %v1387_v7, %v8287_v10 }
 0x124   : > { %v8363_v57 = vpop.f32.mrf.mxu0  ;;  %v8371_v29 = vpop.f32.mrf.mxu1  ;;  %6919 = vtanh.f32 %v3395_v52  ;;  %v2380_v43 = vmul.f32 0.044715, %v8388_v54  ;;  %v8423_v18 = vadd.f32 %v1576_v2, %v8329_v6  ;;  %v8428_v53 = vmul.f32 0.5, %v8304_v32 }
 0x125   : > { %13488 = vst [vmem:[#allocation11_spill] sm:$0xff] %v8415_v5  ;;  %v2626_v7 = vmul.f32 %v2370_v35, %v8360_v40  ;;  %v3145_v24 = vadd.f32 %v2889_v55, %v8323_v62  ;;  %v8433_v41 = vadd.f32 %v1580_v20, %v8289_v11  ;;  %v8438_v14 = vmul.f32 %v2618_v60, %v8340_v27 }
 0x126   : > { %v8382_v13 = vpop.f32.mrf.mxu0  ;;  %v8391_v16 = vpop.f32.mrf.mxu1  ;;  %v8441_v2 = vmul.f32 0.5, %v8307_v25  ;;  %v3147_v61 = vadd.f32 %v2891_v63, %v8332_v0  ;;  %v2643_v32 = vmul.f32 %v2387_v1, %v8369_v28  ;;  %v2628_v20 = vmul.f32 %v2372_v58, %v8377_v26 }
 0x127   : > { %13489 = vst [vmem:[#allocation12_spill] sm:$0xff] %v8433_v41  ;;  %v2386_v35 = vmul.f32 0.044715, %v8412_v4  ;;  %v2393_v55 = vmul.f32 0.044715, %v8415_v5  ;;  %v2634_v25 = vmul.f32 %v2378_v3, %v8380_v31  ;;  %v2636_v17 = vmul.f32 %v2380_v43, %v8388_v54 }
 0x128   : > { %v8395_v59 = vpop.f32.mrf.mxu0  ;;  %1862 = vmatmul.mubr.bf16.gmra.mxu0 %v8012_v42  ;;  %v8405_v38 = vpop.f32.mrf.mxu1  ;;  %2055 = vmatmul.mubr.bf16.gmra.mxu1 %v8012_v42  ;;  %v2641_v42 = vmul.f32 %v2385_v56, %v8355_v19  ;;  %v8448_v56 = vmul.f32 %v2620_v33, %v8343_v8  ;;  %v2388_v1 = vmul.f32 0.044715, %v8423_v18  ;;  %v8462_v33 = vmul.f32 %v2626_v7, %v8360_v40 }
 0x129   : > { %1871 = vmatprep.mubr.bf16.mxu0 %v8015_v44  ;;  %2064 = vmatprep.mubr.bf16.mxu1 %v8015_v44  ;;  %v3401_v58 = vmul.f32 0.7978846, %v3145_v24  ;;  %v2395_v9 = vmul.f32 0.044715, %v8433_v41  ;;  %v8467_v0 = vadd.f32 %v8348_v12, %v8327_v36  ;;  %v3403_v43 = vmul.f32 0.7978846, %v3147_v61 }
 0x12a   : > { %v8417_v15 = vpop.f32.mrf.mxu0  ;;  %v8425_v23 = vpop.f32.mrf.mxu1  ;;  %13490 = vst [vmem:[#allocation13_spill] sm:$0xff] %v8448_v56  ;;  %v2897_v63 = vmul.f32 %v2641_v42, %v8355_v19  ;;  %v2899_v42 = vmul.f32 %v2643_v32, %v8369_v28  ;;  %v8475_v37 = vadd.f32 %v8357_v21, %v8329_v6  ;;  %v8479_v7 = vadd.f32 %v8363_v57, %v8287_v10 }
 0x12b   : > { %v6914_v3 = vpop.eup %6913  ;;  %v8486_v12 = vmul.f32 %v2628_v20, %v8377_v26  ;;  %v2642_v61 = vmul.f32 %v2386_v35, %v8412_v4  ;;  %v2649_v32 = vmul.f32 %v2393_v55, %v8415_v5  ;;  %v8492_v21 = vadd.f32 %v8371_v29, %v8289_v11 }
 0x12c   : > { %v8435_v44 = vpop.f32.mrf.mxu0  ;;  %v8445_v52 = vpop.f32.mrf.mxu1  ;;  %13491 = vst [vmem:[#allocation14_spill] sm:$0xff] %v8475_v37  ;;  %13492 = vst [vmem:[#allocation15_spill] sm:$0xff] %v8479_v7  ;;  %v8498_v57 = vmul.f32 %v2634_v25, %v8380_v31  ;;  %v3153_v20 = vadd.f32 %v2897_v63, %v8355_v19  ;;  %v2644_v35 = vmul.f32 %v2388_v1, %v8423_v18  ;;  %v3897_v55 = vadd.f32 1.0, %v6914_v3 }
 0x12d   : > { %13493 = vst [vmem:[#allocation16_spill] sm:$0xff] %v8486_v12  ;;  %13494 = vst [vmem:[#allocation17_spill] sm:$0xff] %v8492_v21  ;;  %v6916_v12 = vpop.eup %6915  ;;  %6921 = vtanh.f32 %v3401_v58  ;;  %v2651_v29 = vmul.f32 %v2395_v9, %v8433_v41  ;;  %v2394_v26 = vmul.f32 0.044715, %v8467_v0  ;;  %v2396_v25 = vmul.f32 0.044715, %v8475_v37 }
 0x12e   : > { %v8453_v60 = vpop.f32.mrf.mxu0  ;;  %v8459_v22 = vpop.f32.mrf.mxu1  ;;  %6923 = vtanh.f32 %v3403_v43  ;;  %v8513_v63 = vmul.f32 %v2642_v61, %v8412_v4  ;;  %v2905_v1 = vmul.f32 %v2649_v32, %v8415_v5  ;;  %v2403_v58 = vmul.f32 0.044715, %v8492_v21 }
 0x12f   : > { %v6918_v56 = vpop.eup %6917  ;;  %v8519_v9 = vadd.f32 %v8395_v59, %v8287_v10  ;;  %v3899_v43 = vadd.f32 1.0, %v6916_v12  ;;  %v8528_v19 = vadd.f32 %v8405_v38, %v8289_v11  ;;  %v8531_v32 = vmul.f32 %v3897_v55, %v8351_v39 }
 0x130   : > { %v8469_v62 = vpop.f32.mrf.mxu0  ;;  %1872 = vmatmul.mubr.bf16.gmra.mxu0 %v8022_v45  ;;  %v8481_v24 = vpop.f32.mrf.mxu1  ;;  %2065 = vmatmul.mubr.bf16.gmra.mxu1 %v8022_v45  ;;  %v8501_v45 = vmul.f32 %v2636_v17, %v8388_v54  ;;  %v2401_v17 = vmul.f32 0.044715, %v8479_v7  ;;  %13496 = vst [vmem:[#allocation19_spill] sm:$0xff] %v8513_v63  ;;  %v3905_v54 = vadd.f32 1.0, %v6918_v56  ;;  %v2907_v63 = vmul.f32 %v2651_v29, %v8433_v41 }
 0x131   : > { %1881 = vmatprep.mubr.bf16.mxu0 %v8025_v46  ;;  %2074 = vmatprep.mubr.bf16.mxu1 %v8025_v46  ;;  %v3155_v46 = vadd.f32 %v2899_v42, %v8369_v28  ;;  %13497 = vst [vmem:[#allocation20_spill] sm:$0xff] %v8519_v9  ;;  %v3409_v42 = vmul.f32 0.7978846, %v3153_v20  ;;  %v8524_v28 = vmul.f32 %v2644_v35, %v8423_v18  ;;  %13499 = vst [vmem:[#allocation22_spill] sm:$0xff] %v8528_v19  ;;  %v6920_v61 = vpop.eup %6919 }
 0x132   : > { %v8494_v34 = vpop.f32.mrf.mxu0  ;;  %13495 = vst [vmem:[#allocation18_spill] sm:$0xff] %v8501_v45  ;;  %v8510_v45 = vpop.f32.mrf.mxu1  ;;  %v2650_v59 = vmul.f32 %v2394_v26, %v8467_v0  ;;  %v2652_v20 = vmul.f32 %v2396_v25, %v8475_v37  ;;  %v2657_v35 = vmul.f32 %v2401_v17, %v8479_v7  ;;  %v8540_v38 = vadd.f32 %v8382_v13, %v8327_v36 }
 0x133   : > { %13498 = vst [vmem:[#allocation21_spill] sm:$0xff] %v8524_v28  ;;  %v3411_v12 = vmul.f32 0.7978846, %v3155_v46  ;;  %v3161_v39 = vadd.f32 %v2905_v1, %v8415_v5  ;;  %v2659_v26 = vmul.f32 %v2403_v58, %v8492_v21  ;;  %v8550_v56 = vadd.f32 %v8391_v16, %v8329_v6 }
 0x134   : > { %v8521_v3 = vpop.f32.mrf.mxu0  ;;  %v8542_v28 = vpop.f32.mrf.mxu1  ;;  %v2409_v55 = vmul.f32 0.044715, %v8519_v9  ;;  %v3907_v13 = vadd.f32 1.0, %v6920_v61  ;;  %6925 = vtanh.f32 %v3409_v42  ;;  %v8559_v46 = vadd.f32 %v8435_v44, %v8287_v10 }
 0x135   : > { %13500 = vst [vmem:[#allocation23_spill] sm:$0xff] %v8550_v56  ;;  %v8562_v25 = vmul.f32 %v3899_v43, %v8374_v30  ;;  %v8565_v16 = vmul.f32 %v3905_v54, %v8428_v53  ;;  %v3163_v17 = vadd.f32 %v2907_v63, %v8433_v41  ;;  %v8570_v1 = vadd.f32 %v8445_v52, %v8289_v11 }
 0x136   : > { %v8553_v29 = vpop.f32.mrf.mxu0  ;;  %13501 = vst [vmem:[#allocation24_spill] sm:$0xff] %v8559_v46  ;;  %v8576_v58 = vmul.f32 %v2652_v20, %v8475_v37  ;;  %v2913_v44 = vmul.f32 %v2657_v35, %v8479_v7  ;;  %v2402_v30 = vmul.f32 0.044715, %v8540_v38  ;;  %v8580_v43 = vpop.f32.mrf.mxu1  ;;  %v3417_v54 = vmul.f32 0.7978846, %v3161_v39 }
 0x137   : > { %13502 = vst [vmem:[#allocation25_spill] sm:$0xff] %v8570_v1  ;;  %v2915_v53 = vmul.f32 %v2659_v26, %v8492_v21  ;;  %v2404_v63 = vmul.f32 0.044715, %v8550_v56  ;;  %v2665_v52 = vmul.f32 %v2409_v55, %v8519_v9  ;;  %v8586_v61 = vmul.f32 %v3907_v13, %v8441_v2 }
 0x138   : > { %1882 = vmatmul.mubr.bf16.gmra.mxu0 %v8032_v47  ;;  %2075 = vmatmul.mubr.bf16.gmra.mxu1 %v8032_v47  ;;  %v2411_v47 = vmul.f32 0.044715, %v8528_v19  ;;  %13503 = vst [vmem:[#allocation26_spill] sm:$0xff] %v8576_v58  ;;  %v1417_v42 = vpop.f32.mrf.mxu0  ;;  %v8591_v20 = vadd.f32 %v8417_v15, %v8327_v36  ;;  %v2417_v35 = vmul.f32 0.044715, %v8559_v46  ;;  %v8598_v41 = vadd.f32 %v8425_v23, %v8329_v6 }
 0x139   : > { %1891 = vmatprep.mubr.bf16.mxu0 %v8035_v48  ;;  %2084 = vmatprep.mubr.bf16.mxu1 %v8035_v48  ;;  %v8573_v48 = vmul.f32 %v2650_v59, %v8467_v0  ;;  %v3419_v26 = vmul.f32 0.7978846, %v3163_v17  ;;  %v2419_v55 = vmul.f32 0.044715, %v8570_v1  ;;  %6927 = vtanh.f32 %v3411_v12  ;;  %v1610_v17 = vpop.f32.mrf.mxu1 }
 0x13a   : > { %v2667_v59 = vmul.f32 %v2411_v47, %v8528_v19  ;;  %13504 = vst [vmem:[#allocation27_spill] sm:$0xff] %v8591_v20  ;;  %13505 = vst [vmem:[#allocation28_spill] sm:$0xff] %v8598_v41  ;;  %v8602_v2 = vpop.eup %6921  ;;  %v3169_v15 = vadd.f32 %v2913_v44, %v8479_v7  ;;  %v2658_v13 = vmul.f32 %v2402_v30, %v8540_v38  ;;  %6929 = vtanh.f32 %v3417_v54  ;;  %v8617_v7 = vpop.f32.mrf.mxu0 }
 0x13b   : > { %v8608_v47 = vadd.f32 %v8469_v62, %v8287_v10  ;;  %v8612_v23 = vpop.eup %6923  ;;  %v3171_v39 = vadd.f32 %v2915_v53, %v8492_v21  ;;  %v2660_v12 = vmul.f32 %v2404_v63, %v8550_v56  ;;  %v2921_v44 = vmul.f32 %v2665_v52, %v8519_v9 }
 0x13c   : > { %v2410_v30 = vmul.f32 0.044715, %v8591_v20  ;;  %v2673_v5 = vmul.f32 %v2417_v35, %v8559_v46  ;;  %6931 = vtanh.f32 %v3419_v26  ;;  %v2412_v54 = vmul.f32 0.044715, %v8598_v41  ;;  %v8639_v35 = vpop.f32.mrf.mxu1 }
 0x13d   : > { %13506 = vst [vmem:[#allocation29_spill] sm:$0xff] %v8608_v47  ;;  %v2675_v53 = vmul.f32 %v2419_v55, %v8570_v1  ;;  %v8629_v63 = vadd.f32 %v8481_v24, %v8289_v11  ;;  %v3425_v52 = vmul.f32 0.7978846, %v3169_v15  ;;  %v2425_v62 = vmul.f32 0.044715, %v8608_v47  ;;  %v1421_v15 = vpop.f32.mrf.mxu0 }
 0x13e   : > { %v3427_v26 = vmul.f32 0.7978846, %v3171_v39  ;;  %v8642_v21 = vmul.f32 %v2660_v12, %v8550_v56  ;;  %v3177_v55 = vadd.f32 %v2921_v44, %v8519_v9  ;;  %v8647_v24 = vadd.f32 %v8459_v22, %v8329_v6 }
 0x13f   : > { %13507 = vst [vmem:[#allocation30_spill] sm:$0xff] %v8629_v63  ;;  %v2929_v58 = vmul.f32 %v2673_v5, %v8559_v46  ;;  %v8654_v37 = vadd.f32 %v8521_v3, %v8287_v10  ;;  %v2668_v12 = vmul.f32 %v2412_v54, %v8598_v41  ;;  %v2931_v44 = vmul.f32 %v2675_v53, %v8570_v1 }
 0x140   : > { %1892 = vmatmul.mubr.bf16.gmra.mxu0 %v8042_v49  ;;  %2085 = vmatmul.mubr.bf16.gmra.mxu1 %v8042_v49  ;;  %v2923_v49 = vmul.f32 %v2667_v59, %v8528_v19  ;;  %v8636_v59 = vadd.f32 %v8453_v60, %v8327_v36  ;;  %13510 = vst [vmem:[#allocation33_spill] sm:$0xff] %v8642_v21  ;;  %13511 = vst [vmem:[#allocation34_spill] sm:$0xff] %v8647_v24  ;;  %v2427_v22 = vmul.f32 0.044715, %v8629_v63 }
 0x141   : > { %1901 = vmatprep.mubr.bf16.mxu0 %v8045_v50  ;;  %2094 = vmatprep.mubr.bf16.mxu1 %v8045_v50  ;;  %v8632_v50 = vmul.f32 %v2658_v13, %v8540_v38  ;;  %v2666_v60 = vmul.f32 %v2410_v30, %v8591_v20  ;;  %13512 = vst [vmem:[#allocation35_spill] sm:$0xff] %v8654_v37  ;;  %v8656_v39 = vpop.eup %6925  ;;  %6933 = vtanh.f32 %v3425_v52  ;;  %v1614_v30 = vpop.f32.mrf.mxu1  ;;  %v3433_v54 = vmul.f32 0.7978846, %v3177_v55 }
 0x142   : > { %13509 = vst [vmem:[#allocation32_spill] sm:$0xff] %v8636_v59  ;;  %v3179_v13 = vadd.f32 %v2923_v49, %v8528_v19  ;;  %v8663_v9 = vadd.f32 %v8542_v28, %v8289_v11  ;;  %v2418_v5 = vmul.f32 0.044715, %v8636_v59  ;;  %v2681_v3 = vmul.f32 %v2425_v62, %v8608_v47  ;;  %v8677_v19 = vpop.f32.mrf.mxu0 }
 0x143   : > { %13508 = vst [vmem:[#allocation31_spill] sm:$0xff] %v8632_v50  ;;  %v8669_v49 = vadd.f32 %v1417_v42, %v8287_v10  ;;  %6935 = vtanh.f32 %v3427_v26  ;;  %v2420_v53 = vmul.f32 0.044715, %v8647_v24  ;;  %v8675_v28 = vadd.f32 %v8494_v34, %v8327_v36 }
 0x144   : > { %13513 = vst [vmem:[#allocation36_spill] sm:$0xff] %v8663_v9  ;;  %v3435_v52 = vmul.f32 0.7978846, %v3179_v13  ;;  %v8680_v21 = vmul.f32 %v2666_v60, %v8591_v20  ;;  %v3185_v42 = vadd.f32 %v2929_v58, %v8559_v46  ;;  %v2433_v62 = vmul.f32 0.044715, %v8654_v37  ;;  %v8696_v46 = vpop.f32.mrf.mxu1 }
 0x145   : > { %13514 = vst [vmem:[#allocation37_spill] sm:$0xff] %v8669_v49  ;;  %13515 = vst [vmem:[#allocation38_spill] sm:$0xff] %v8675_v28  ;;  %v2683_v26 = vmul.f32 %v2427_v22, %v8629_v63  ;;  %v2435_v55 = vmul.f32 0.044715, %v8663_v9  ;;  %v8688_v56 = vadd.f32 %v1610_v17, %v8289_v11  ;;  %v8691_v34 = vmul.f32 %v2668_v12, %v8598_v41 }
 0x146   : > { %13516 = vst [vmem:[#allocation39_spill] sm:$0xff] %v8680_v21  ;;  %v2674_v13 = vmul.f32 %v2418_v5, %v8636_v59  ;;  %v2937_v60 = vmul.f32 %v2681_v3, %v8608_v47  ;;  %v2441_v58 = vmul.f32 0.044715, %v8669_v49  ;;  %v8698_v21 = vpop.eup %6927  ;;  %6937 = vtanh.f32 %v3433_v54 }
 0x147   : > { %13517 = vst [vmem:[#allocation40_spill] sm:$0xff] %v8688_v56  ;;  %13518 = vst [vmem:[#allocation41_spill] sm:$0xff] %v8691_v34  ;;  %v2426_v22 = vmul.f32 0.044715, %v8675_v28  ;;  %v2443_v17 = vmul.f32 0.044715, %v8688_v56  ;;  %v8703_v12 = vpop.eup %6929  ;;  %v8707_v5 = vadd.f32 %v8510_v45, %v8329_v6  ;;  %v2689_v3 = vmul.f32 %v2433_v62, %v8654_v37  ;;  %v1620_v62 = vpop.f32.mrf.mxu1 }
 0x148   : > { %1902 = vmatmul.mubr.bf16.gmra.mxu0 %v8052_v51  ;;  %2095 = vmatmul.mubr.bf16.gmra.mxu1 %v8052_v51  ;;  %v3187_v51 = vadd.f32 %v2931_v44, %v8570_v1  ;;  %v2676_v44 = vmul.f32 %v2420_v53, %v8647_v24  ;;  %v1427_v1 = vpop.f32.mrf.mxu0  ;;  %13519 = vst [vmem:[#allocation42_spill] sm:$0xff] %v8703_v12  ;;  %v3441_v34 = vmul.f32 0.7978846, %v3185_v42  ;;  %6939 = vtanh.f32 %v3435_v52 }
 0x149   : > { %13520 = vst [vmem:[#allocation43_spill] sm:$0xff] %v8707_v5  ;;  %v8711_v41 = vadd.f32 %v1421_v15, %v8287_v10  ;;  %v2939_v53 = vmul.f32 %v2683_v26, %v8629_v63  ;;  %v2691_v20 = vmul.f32 %v2435_v55, %v8663_v9  ;;  %v8715_v50 = vpop.eup %6931  ;;  %v8718_v12 = vmul.f32 %v2674_v13, %v8636_v59 }
 0x14a   : > { %v3443_v54 = vmul.f32 0.7978846, %v3187_v51  ;;  %v3193_v42 = vadd.f32 %v2937_v60, %v8608_v47  ;;  %v8723_v45 = vadd.f32 %v8553_v29, %v8327_v36  ;;  %v2697_v15 = vmul.f32 %v2441_v58, %v8669_v49  ;;  %v8735_v13 = vpop.f32.mrf.mxu0 }
 0x14b   : > { %13521 = vst [vmem:[#allocation44_spill] sm:$0xff] %v8711_v41  ;;  %13522 = vst [vmem:[#allocation45_spill] sm:$0xff] %v8718_v12  ;;  %v8727_v52 = vmul.f32 %v2676_v44, %v8647_v24  ;;  %v2682_v51 = vmul.f32 %v2426_v22, %v8675_v28  ;;  %v8732_v26 = vadd.f32 %v8580_v43, %v8329_v6  ;;  %6941 = vtanh.f32 %v3441_v34 }
 0x14c   : > { %13523 = vst [vmem:[#allocation46_spill] sm:$0xff] %v8723_v45  ;;  %v2699_v55 = vmul.f32 %v2443_v17, %v8688_v56  ;;  %v2428_v29 = vmul.f32 0.044715, %v8707_v5  ;;  %v2945_v60 = vmul.f32 %v2689_v3, %v8654_v37  ;;  %v2449_v58 = vmul.f32 0.044715, %v8711_v41  ;;  %v8751_v3 = vpop.f32.mrf.mxu1 }
 0x14d   : > { %13524 = vst [vmem:[#allocation47_spill] sm:$0xff] %v8727_v52  ;;  %13525 = vst [vmem:[#allocation48_spill] sm:$0xff] %v8732_v26  ;;  %6943 = vtanh.f32 %v3443_v54  ;;  %v3195_v44 = vadd.f32 %v2939_v53, %v8629_v63  ;;  %v2947_v22 = vmul.f32 %v2691_v20, %v8663_v9  ;;  %v8744_v43 = vadd.f32 %v8617_v7, %v8327_v36 }
 0x14e   : > { %v3449_v47 = vmul.f32 0.7978846, %v3193_v42  ;;  %v2434_v17 = vmul.f32 0.044715, %v8723_v45  ;;  %v2953_v34 = vmul.f32 %v2697_v15, %v8669_v49  ;;  %v8749_v52 = vadd.f32 %v1614_v30, %v8289_v11  ;;  %v8753_v24 = vpop.eup %6933  ;;  %v1431_v42 = vpop.f32.mrf.mxu0 }
 0x14f   : > { %13526 = vst [vmem:[#allocation49_spill] sm:$0xff] %v8744_v43  ;;  %v8756_v54 = vmul.f32 %v2682_v51, %v8675_v28  ;;  %v2436_v20 = vmul.f32 0.044715, %v8732_v26  ;;  %v2955_v7 = vmul.f32 %v2699_v55, %v8688_v56  ;;  %v8762_v53 = vadd.f32 %v8639_v35, %v8329_v6 }
 0x150   : > { %13527 = vst [vmem:[#allocation50_spill] sm:$0xff] %v8749_v52  ;;  %v8764_v15 = vpop.eup %6935  ;;  %v2684_v30 = vmul.f32 %v2428_v29, %v8707_v5  ;;  %v3201_v63 = vadd.f32 %v2945_v60, %v8654_v37  ;;  %v2705_v12 = vmul.f32 %v2449_v58, %v8711_v41  ;;  %v8770_v51 = vadd.f32 %v1427_v1, %v8287_v10  ;;  %v1624_v37 = vpop.f32.mrf.mxu1 }
 0x151   : > { %13528 = vst [vmem:[#allocation51_spill] sm:$0xff] %v8756_v54  ;;  %13529 = vst [vmem:[#allocation52_spill] sm:$0xff] %v8762_v53  ;;  %v3451_v54 = vmul.f32 0.7978846, %v3195_v44  ;;  %v3203_v28 = vadd.f32 %v2947_v22, %v8663_v9  ;;  %v2442_v55 = vmul.f32 0.044715, %v8744_v43  ;;  %v8775_v35 = vadd.f32 %v1620_v62, %v8289_v11  ;;  %v8787_v62 = vpop.f32.mrf.mxu0 }
 0x152   : > { %13530 = vst [vmem:[#allocation53_spill] sm:$0xff] %v8764_v15  ;;  %13531 = vst [vmem:[#allocation54_spill] sm:$0xff] %v8770_v51  ;;  %6945 = vtanh.f32 %v3449_v47  ;;  %v2690_v59 = vmul.f32 %v2434_v17, %v8723_v45  ;;  %v3209_v29 = vadd.f32 %v2953_v34, %v8669_v49  ;;  %v2451_v60 = vmul.f32 0.044715, %v8749_v52 }
 0x153   : > { %13532 = vst [vmem:[#allocation55_spill] sm:$0xff] %v8775_v35  ;;  %v2692_v58 = vmul.f32 %v2436_v20, %v8732_v26  ;;  %v3211_v1 = vadd.f32 %v2955_v7, %v8688_v56  ;;  %v2444_v44 = vmul.f32 0.044715, %v8762_v53  ;;  %v8785_v22 = vadd.f32 %v8677_v19, %v8327_v36  ;;  %v8789_v47 = vpop.eup %6937 }
 0x154   : > { %13534 = vst [vmem:[#allocation57_spill] sm:$0xff] %v8789_v47  ;;  %v8792_v17 = vmul.f32 %v2684_v30, %v8707_v5  ;;  %v3457_v34 = vmul.f32 0.7978846, %v3201_v63  ;;  %v2961_v49 = vmul.f32 %v2705_v12, %v8711_v41  ;;  %v2457_v20 = vmul.f32 0.044715, %v8770_v51  ;;  %v8808_v12 = vpop.f32.mrf.mxu1  ;;  %v1437_v5 = vpop.f32.mrf.mxu0 }
 0x155   : > { %13533 = vst [vmem:[#allocation56_spill] sm:$0xff] %v8785_v22  ;;  %6947 = vtanh.f32 %v3451_v54  ;;  %v3459_v7 = vmul.f32 0.7978846, %v3203_v28  ;;  %v2698_v56 = vmul.f32 %v2442_v55, %v8744_v43  ;;  %v2459_v9 = vmul.f32 0.044715, %v8775_v35  ;;  %v8798_v19 = vpop.eup %6939 }
 0x156   : > { %13535 = vst [vmem:[#allocation58_spill] sm:$0xff] %v8792_v17  ;;  %13536 = vst [vmem:[#allocation59_spill] sm:$0xff] %v8798_v19  ;;  %v8801_v15 = vmul.f32 %v2690_v59, %v8723_v45  ;;  %v3465_v47 = vmul.f32 0.7978846, %v3209_v29  ;;  %v2707_v30 = vmul.f32 %v2451_v60, %v8749_v52  ;;  %v8806_v63 = vadd.f32 %v8696_v46, %v8329_v6 }
 0x157   : > { %v8811_v28 = vmul.f32 %v2692_v58, %v8732_v26  ;;  %v3467_v54 = vmul.f32 0.7978846, %v3211_v1  ;;  %v2700_v55 = vmul.f32 %v2444_v44, %v8762_v53  ;;  %v2450_v17 = vmul.f32 0.044715, %v8785_v22 }
 0x158   : > { %13537 = vst [vmem:[#allocation60_spill] sm:$0xff] %v8801_v15  ;;  %13538 = vst [vmem:[#allocation61_spill] sm:$0xff] %v8806_v63  ;;  %6949 = vtanh.f32 %v3457_v34  ;;  %v3217_v59 = vadd.f32 %v2961_v49, %v8711_v41  ;;  %v2713_v29 = vmul.f32 %v2457_v20, %v8770_v51  ;;  %v8818_v60 = vadd.f32 %v1431_v42, %v8287_v10  ;;  %v8820_v46 = vpop.eup %6941  ;;  %v1630_v20 = vpop.f32.mrf.mxu1 }
 0x159   : > { %13539 = vst [vmem:[#allocation62_spill] sm:$0xff] %v8811_v28  ;;  %6951 = vtanh.f32 %v3459_v7  ;;  %v8823_v58 = vmul.f32 %v2698_v56, %v8744_v43  ;;  %v2715_v1 = vmul.f32 %v2459_v9, %v8775_v35  ;;  %v8827_v44 = vadd.f32 %v1624_v37, %v8289_v11  ;;  %v8848_v41 = vpop.f32.mrf.mxu0  ;;  %v13550_v43 = vld [vmem:[#allocation13_spill] sm:$0xff] }
 0x15a   : > { %13540 = vst [vmem:[#allocation63_spill] sm:$0xff] %v8818_v60  ;;  %v8829_v28 = vpop.eup %6943  ;;  %6953 = vtanh.f32 %v3465_v47  ;;  %v2963_v49 = vmul.f32 %v2707_v30, %v8749_v52  ;;  %v2452_v34 = vmul.f32 0.044715, %v8806_v63  ;;  %v8834_v42 = vadd.f32 %v1437_v5, %v8287_v10 }
 0x15b   : > { %13541 = vst [vmem:[#allocation64_spill] sm:$0xff] %v8823_v58  ;;  %13542 = vst [vmem:[#allocation65_spill] sm:$0xff] %v8827_v44  ;;  %6955 = vtanh.f32 %v3467_v54  ;;  %v8837_v56 = vmul.f32 %v2700_v55, %v8762_v53  ;;  %v2706_v9 = vmul.f32 %v2450_v17, %v8785_v22  ;;  %v8842_v37 = vadd.f32 %v8735_v13, %v8327_v36  ;;  %v1441_v15 = vpop.f32.mrf.mxu0 }
 0x15c   : > { %13543 = vst [vmem:[#allocation66_spill] sm:$0xff] %v8829_v28  ;;  %13544 = vst [vmem:[#allocation67_spill] sm:$0xff] %v8834_v42  ;;  %v3473_v7 = vmul.f32 0.7978846, %v3217_v59  ;;  %v2969_v47 = vmul.f32 %v2713_v29, %v8770_v51  ;;  %v2465_v30 = vmul.f32 0.044715, %v8818_v60  ;;  %v3130_v5 = vadd.f32 %v8438_v14, %v8340_v27  ;;  %v1632_v14 = vpop.f32.mrf.mxu1 }
 0x15d   : > { %13545 = vst [vmem:[#allocation68_spill] sm:$0xff] %v8837_v56  ;;  %13546 = vst [vmem:[#allocation69_spill] sm:$0xff] %v8842_v37  ;;  %v2971_v54 = vmul.f32 %v2715_v1, %v8775_v35  ;;  %v8853_v55 = vadd.f32 %v8751_v3, %v8329_v6  ;;  %v2467_v17 = vmul.f32 0.044715, %v8827_v44  ;;  %v3138_v13 = vadd.f32 %v8462_v33, %v8360_v40 }
 0x15e   : > { %v3219_v59 = vadd.f32 %v2963_v49, %v8749_v52  ;;  %v2708_v29 = vmul.f32 %v2452_v34, %v8806_v63  ;;  %v2473_v56 = vmul.f32 0.044715, %v8834_v42  ;;  %v3386_v27 = vmul.f32 0.7978846, %v3130_v5  ;;  %v13551_v34 = vld [vmem:[#allocation7_spill] sm:$0xff]  ;;  %v13552_v52 = vld [vmem:[#allocation16_spill] sm:$0xff] }
 0x15f   : > { %13547 = vst [vmem:[#allocation70_spill] sm:$0xff] %v8853_v55  ;;  %v8861_v53 = vpop.eup %6945  ;;  %v2458_v1 = vmul.f32 0.044715, %v8842_v37  ;;  %v8865_v3 = vadd.f32 %v1630_v20, %v8289_v11  ;;  %v3394_v58 = vmul.f32 0.7978846, %v3138_v13  ;;  %v3132_v26 = vadd.f32 %v13550_v43, %v8343_v8 }
 0x160   : > { %13548 = vst [vmem:[#allocation71_spill] sm:$0xff] %v8861_v53  ;;  %6957 = vtanh.f32 %v3473_v7  ;;  %v3225_v33 = vadd.f32 %v2969_v47, %v8770_v51  ;;  %v2721_v49 = vmul.f32 %v2465_v30, %v8818_v60  ;;  %v3140_v5 = vadd.f32 %v13552_v52, %v13551_v34  ;;  %v1634_v47 = vpop.f32.mrf.mxu1 }
 0x161   : > { %13549 = vst [vmem:[#allocation72_spill] sm:$0xff] %v8865_v3  ;;  %v3227_v53 = vadd.f32 %v2971_v54, %v8775_v35  ;;  %v2460_v45 = vmul.f32 0.044715, %v8853_v55  ;;  %v2723_v20 = vmul.f32 %v2467_v17, %v8827_v44  ;;  %v3388_v28 = vmul.f32 0.7978846, %v3132_v26 }
 0x162   : > { %v8876_v13 = vpop.eup %6947  ;;  %v8880_v8 = vadd.f32 %v8787_v62, %v8327_v36  ;;  %v2729_v43 = vmul.f32 %v2473_v56, %v8834_v42  ;;  %6959 = vtanh.f32 %v3386_v27  ;;  %v3396_v7 = vmul.f32 0.7978846, %v3140_v5  ;;  %v8893_v56 = vpop.f32.mrf.mxu0 }
 0x163   : > { %13553 = vst [vmem:[#allocation13_spill] sm:$0xff] %v8876_v13  ;;  %v3475_v52 = vmul.f32 0.7978846, %v3219_v59  ;;  %v2714_v30 = vmul.f32 %v2458_v1, %v8842_v37  ;;  %v2475_v54 = vmul.f32 0.044715, %v8865_v3  ;;  %6961 = vtanh.f32 %v3394_v58 }
 0x164   : > { %13554 = vst [vmem:[#allocation7_spill] sm:$0xff] %v8880_v8  ;;  %v3481_v35 = vmul.f32 0.7978846, %v3225_v33  ;;  %v2977_v26 = vmul.f32 %v2721_v49, %v8818_v60  ;;  %v8888_v17 = vadd.f32 %v8808_v12, %v8329_v6  ;;  %v8891_v62 = vadd.f32 %v1441_v15, %v8287_v10 }
 0x165   : > { %v8895_v27 = vpop.eup %6949  ;;  %v2716_v59 = vmul.f32 %v2460_v45, %v8853_v55  ;;  %v2979_v1 = vmul.f32 %v2723_v20, %v8827_v44  ;;  %6963 = vtanh.f32 %v3388_v28  ;;  %v8900_v58 = vadd.f32 %v1634_v47, %v8289_v11  ;;  %v8915_v20 = vpop.f32.mrf.mxu1 }
 0x166   : > { %13555 = vst [vmem:[#allocation16_spill] sm:$0xff] %v8888_v17  ;;  %13556 = vst [vmem:[#allocation73_spill] sm:$0xff] %v8891_v62  ;;  %v8902_v33 = vpop.eup %6951  ;;  %v3483_v49 = vmul.f32 0.7978846, %v3227_v53  ;;  %v2466_v12 = vmul.f32 0.044715, %v8880_v8  ;;  %v2985_v15 = vmul.f32 %v2729_v43, %v8834_v42  ;;  %6965 = vtanh.f32 %v3396_v7 }
 0x167   : > { %13557 = vst [vmem:[#allocation74_spill] sm:$0xff] %v8895_v27  ;;  %13558 = vst [vmem:[#allocation75_spill] sm:$0xff] %v8900_v58  ;;  %v8906_v5 = vpop.eup %6953  ;;  %6967 = vtanh.f32 %v3475_v52  ;;  %v8909_v51 = vmul.f32 %v2706_v9, %v8785_v22  ;;  %v8912_v45 = vmul.f32 %v2708_v29, %v8806_v63  ;;  %v2731_v28 = vmul.f32 %v2475_v54, %v8865_v3  ;;  %v1447_v9 = vpop.f32.mrf.mxu0  ;;  %v13571_v63 = vld [vmem:[#allocation9_spill] sm:$0xff]  ;;  %v13577_v22 = vld [vmem:[#allocation8_spill] sm:$0xff] }
 0x168   : > { %13559 = vst [vmem:[#allocation76_spill] sm:$0xff] %v8902_v33  ;;  %13560 = vst [vmem:[#allocation77_spill] sm:$0xff] %v8906_v5  ;;  %v8917_v47 = vpop.eup %6955  ;;  %v8920_v53 = vmul.f32 %v2714_v30, %v8842_v37  ;;  %v3233_v43 = vadd.f32 %v2977_v26, %v8818_v60  ;;  %v2468_v7 = vmul.f32 0.044715, %v8888_v17  ;;  %v2481_v52 = vmul.f32 0.044715, %v8891_v62 }
 0x169   : > { %13561 = vst [vmem:[#allocation78_spill] sm:$0xff] %v8909_v51  ;;  %13562 = vst [vmem:[#allocation79_spill] sm:$0xff] %v8912_v45  ;;  %6969 = vtanh.f32 %v3481_v35  ;;  %v8926_v29 = vmul.f32 %v2716_v59, %v8853_v55  ;;  %v3235_v54 = vadd.f32 %v2979_v1, %v8827_v44  ;;  %v2483_v5 = vmul.f32 0.044715, %v8900_v58  ;;  %v1640_v59 = vpop.f32.mrf.mxu1  ;;  %v13568_v44 = vld [vmem:[#allocation19_spill] sm:$0xff] }
 0x16a   : > { %13563 = vst [vmem:[#allocation80_spill] sm:$0xff] %v8917_v47  ;;  %13564 = vst [vmem:[#allocation81_spill] sm:$0xff] %v8920_v53  ;;  %6971 = vtanh.f32 %v3483_v49  ;;  %v2722_v47 = vmul.f32 %v2466_v12, %v8880_v8  ;;  %v3241_v30 = vadd.f32 %v2985_v15, %v8834_v42  ;;  %v8934_v26 = vadd.f32 %v8848_v41, %v8327_v36  ;;  %v8947_v42 = vpop.f32.mrf.mxu0 }
 0x16b   : > { %13565 = vst [vmem:[#allocation82_spill] sm:$0xff] %v8926_v29  ;;  %v2987_v60 = vmul.f32 %v2731_v28, %v8865_v3  ;;  %v8938_v35 = vadd.f32 %v1632_v14, %v8329_v6  ;;  %v3146_v1 = vadd.f32 %v8498_v57, %v8380_v31  ;;  %v3154_v49 = vadd.f32 %v13568_v44, %v8412_v4 }
 0x16c   : > { %13566 = vst [vmem:[#allocation83_spill] sm:$0xff] %v8934_v26  ;;  %v3489_v29 = vmul.f32 0.7978846, %v3233_v43  ;;  %v2724_v12 = vmul.f32 %v2468_v7, %v8888_v17  ;;  %v2114_v15 = vmul.f32 0.5, %v8360_v40  ;;  %v2737_v41 = vmul.f32 %v2481_v52, %v8891_v62 }
 0x16d   : > { %13567 = vst [vmem:[#allocation84_spill] sm:$0xff] %v8938_v35  ;;  %v8949_v28 = vpop.eup %6957  ;;  %v3491_v14 = vmul.f32 0.7978846, %v3235_v54  ;;  %v2116_v55 = vmul.f32 0.5, %v13551_v34  ;;  %v2739_v53 = vmul.f32 %v2483_v5, %v8900_v58  ;;  %v3402_v57 = vmul.f32 0.7978846, %v3146_v1  ;;  %v8963_v5 = vpop.f32.mrf.mxu1 }
 0x16e   : > { %13569 = vst [vmem:[#allocation19_spill] sm:$0xff] %v8949_v28  ;;  %v8954_v37 = vmul.f32 %v2722_v47, %v8880_v8  ;;  %v3497_v44 = vmul.f32 0.7978846, %v3241_v30  ;;  %v2474_v43 = vmul.f32 0.044715, %v8934_v26  ;;  %v3243_v52 = vadd.f32 %v2987_v60, %v8865_v3  ;;  %v13572_v28 = vld [vmem:[#allocation18_spill] sm:$0xff]  ;;  %v1451_v60 = vpop.f32.mrf.mxu0 }
 0x16f   : > { %v3410_v7 = vmul.f32 0.7978846, %v3154_v49  ;;  %v6960_v40 = vpop.eup %6959  ;;  %v2476_v45 = vmul.f32 0.044715, %v8938_v35  ;;  %v3148_v54 = vadd.f32 %v13572_v28, %v13571_v63  ;;  %v13573_v34 = vld [vmem:[#allocation21_spill] sm:$0xff]  ;;  %v2993_v30 = vmul.f32 %v2737_v41, %v8891_v62 }
 0x170   : > { %13570 = vst [vmem:[#allocation85_spill] sm:$0xff] %v8954_v37  ;;  %v3156_v13 = vadd.f32 %v13573_v34, %v8423_v18  ;;  %v6962_v1 = vpop.eup %6961  ;;  %v3898_v47 = vadd.f32 1.0, %v6960_v40  ;;  %v8967_v37 = vadd.f32 %v1447_v9, %v8287_v10  ;;  %v8970_v49 = vadd.f32 %v1640_v59, %v8289_v11 }
 0x171   : > { %v3906_v3 = vadd.f32 1.0, %v6962_v1  ;;  %v2995_v8 = vmul.f32 %v2739_v53, %v8900_v58  ;;  %6973 = vtanh.f32 %v3402_v57  ;;  %v3404_v28 = vmul.f32 0.7978846, %v3148_v54  ;;  %v1644_v1 = vpop.f32.mrf.mxu1 }
 0x172   : > { %13574 = vst [vmem:[#allocation9_spill] sm:$0xff] %v8967_v37  ;;  %13575 = vst [vmem:[#allocation18_spill] sm:$0xff] %v8970_v49  ;;  %v6964_v51 = vpop.eup %6963  ;;  %v2730_v34 = vmul.f32 %v2474_v43, %v8934_v26  ;;  %v8976_v40 = vadd.f32 %v8893_v56, %v8327_v36  ;;  %6975 = vtanh.f32 %v3410_v7  ;;  %v3412_v41 = vmul.f32 0.7978846, %v3156_v13  ;;  %v8986_v56 = vpop.f32.mrf.mxu0 }
 0x173   : > { %v6966_v9 = vpop.eup %6965  ;;  %v4154_v33 = vmul.f32 %v3898_v47, %v13577_v22  ;;  %v4162_v59 = vmul.f32 %v3906_v3, %v2114_v15  ;;  %v3900_v27 = vadd.f32 1.0, %v6964_v51  ;;  %6977 = vtanh.f32 %v3404_v28  ;;  %v6817_v3 = vld [vmem:[%s13140_s3 + $0x270] ss:$8 sps:$4 sm:$0xff]   ;;  %v13581_v47 = vld [vmem:[#allocation10_spill] sm:$0xff] }
 0x174   : > { %13576 = vst [vmem:[#allocation21_spill] sm:$0xff] %v8976_v40  ;;  %v8979_v19 = vpop.eup %6967  ;;  %v3908_v53 = vadd.f32 1.0, %v6966_v9  ;;  %v2489_v57 = vmul.f32 0.044715, %v8967_v37  ;;  %v2491_v43 = vmul.f32 0.044715, %v8970_v49  ;;  %v8984_v54 = vadd.f32 %v1451_v60, %v8287_v10 }
 0x175   : > { %13578 = vst [vmem:[#allocation8_spill] sm:$0xff] %v8979_v19  ;;  %v3499_v13 = vmul.f32 0.7978846, %v3243_v52  ;;  %v4474_v7 = vpack.c.bf16 %v4162_v59, %v4154_v33  ;;  %v3249_v22 = vadd.f32 %v2993_v30, %v8891_v62  ;;  %v3251_v51 = vadd.f32 %v2995_v8, %v8900_v58  ;;  %v6825_v33 = vld [vmem:[%s13140_s3 + $0x264] ss:$8 sps:$4 sm:$0xff]  }
 0x176   : > { %13579 = vst [vmem:[#allocation86_spill] sm:$0xff] %v8984_v54  ;;  %v8993_v15 = vpop.eup %6969  ;;  %v4156_v28 = vmul.f32 %v3900_v27, %v13581_v47  ;;  %v4164_v9 = vmul.f32 %v3908_v53, %v2116_v55  ;;  %6979 = vtanh.f32 %v3412_v41  ;;  %v2497_v60 = vmul.f32 0.044715, %v8984_v54  ;;  %v9010_v55 = vpop.f32.mrf.mxu1  ;;  %v13700_v19 = vld [vmem:[#allocation79_spill] sm:$0xff] }
 0x177   : > { %13580 = vst [vmem:[#allocation87_spill] sm:$0xff] %v8993_v15  ;;  %v9000_v52 = vpop.eup %6971  ;;  %6981 = vtanh.f32 %v3489_v29  ;;  %v9003_v8 = vmul.f32 %v2724_v12, %v8888_v17  ;;  %5406 = vmatprep.mubr.bf16.mxu0 %v4474_v7  ;;  %v2482_v30 = vmul.f32 0.044715, %v8976_v40  ;;  %v9008_v27 = vadd.f32 %v8915_v20, %v8329_v6  ;;  %v6820_v12 = vld [vmem:[%s13140_s3 + $0x370] ss:$8 sps:$4 sm:$0xff]   ;;  %v1457_v7 = vpop.f32.mrf.mxu0 }
 0x178   : > { %13582 = vst [vmem:[#allocation10_spill] sm:$0xff] %v9000_v52  ;;  %6983 = vtanh.f32 %v3491_v14  ;;  %v4476_v41 = vpack.c.bf16 %v4164_v9, %v4156_v28  ;;  %v2745_v59 = vmul.f32 %v2489_v57, %v8967_v37  ;;  %v2747_v53 = vmul.f32 %v2491_v43, %v8970_v49  ;;  %v6823_v57 = vld [vmem:[%s13140_s3 + $0x260] ss:$8 sps:$4 sm:$0xff]   ;;  %v13697_v17 = vld [vmem:[#allocation52_spill] sm:$0xff] }
 0x179   : > { %13583 = vst [vmem:[#allocation88_spill] sm:$0xff] %v9003_v8  ;;  %13584 = vst [vmem:[#allocation89_spill] sm:$0xff] %v9008_v27  ;;  %v13585_v29 = vpack.c.bf16 %v8565_v16, %v8531_v32  ;;  %6985 = vtanh.f32 %v3497_v44  ;;  %v9021_v20 = vmul.f32 %v2476_v45, %v8938_v35  ;;  %v3505_v47 = vmul.f32 0.7978846, %v3249_v22  ;;  %v6828_v45 = vld [vmem:[%s13140_s3 + $0x364] ss:$8 sps:$4 sm:$0xff]  }
 0x17a   : > { %v9024_v14 = vadd.f32 %v1644_v1, %v8289_v11  ;;  %6987 = vtanh.f32 %v3499_v13  ;;  %5599 = vmatprep.mubr.bf16.mxu1 %v4476_v41  ;;  %v9030_v32 = vmul.f32 %v2730_v34, %v8934_v26  ;;  %v3507_v16 = vmul.f32 0.7978846, %v3251_v51  ;;  %v6831_v1 = vld [vmem:[%s13140_s3 + $0x254] ss:$8 sps:$4 sm:$0xff]  }
 0x17b   : > { %5407 = vmatmul.mubr.bf16.vlgmr.msra.gmra.mxu0 %v13585_v29  ;;  %v2753_v44 = vmul.f32 %v2497_v60, %v8984_v54  ;;  %v9040_v43 = vmul.f32 %v2482_v30, %v8976_v40  ;;  %v9043_v13 = vmul.f32 0.044715, %v9008_v27  ;;  %v13588_v34 = vpack.c.bf16 %v8586_v61, %v8562_v25  ;;  %v6826_v25 = vld [vmem:[%s13140_s3 + $0x360] ss:$8 sps:$4 sm:$0xff]  }
 0x17c   : > { %5761 = vmatpush1.bf16.msra.mxu0 %v6817_v3  ;;  %13586 = vst [vmem:[#allocation90_spill] sm:$0xff] %v9024_v14  ;;  %13587 = vst [vmem:[#allocation91_spill] sm:$0xff] %v9030_v32  ;;  %v2122_v22 = vmul.f32 0.5, %v8380_v31  ;;  %v9050_v51 = vadd.f32 %v1457_v7, %v8287_v10  ;;  %v1650_v3 = vpop.f32.mrf.mxu1  ;;  %v3001_v28 = vmul.f32 %v2745_v59, %v8967_v37  ;;  %v2130_v60 = vmul.f32 0.5, %v8412_v4  ;;  %v6829_v31 = vld [vmem:[%s13140_s3 + $0x250] ss:$8 sps:$4 sm:$0xff]  }
 0x17d   : > { %5762 = vmatprep.subr.bf16.mxu0 %v6825_v33  ;;  %5600 = vmatmul.mubr.bf16.vlgmr.msra.gmra.mxu1 %v13588_v34  ;;  %v3003_v9 = vmul.f32 %v2747_v53, %v8970_v49  ;;  %v2124_v33 = vmul.f32 0.5, %v13571_v63  ;;  %6989 = vtanh.f32 %v3505_v47  ;;  %v9063_v61 = vmul.f32 0.5, %v8423_v18  ;;  %v6834_v63 = vld [vmem:[%s13140_s3 + $0x354] ss:$8 sps:$4 sm:$0xff]  }
 0x17e   : > { %13589 = vst [vmem:[#allocation92_spill] sm:$0xff] %v9050_v51  ;;  %5954 = vmatpush1.bf16.msra.mxu1 %v6820_v12  ;;  %v9067_v30 = vadd.f32 %v8947_v42, %v8327_v36  ;;  %v2499_v4 = vmul.f32 0.044715, %v9024_v14  ;;  %v6974_v41 = vpop.eup %6973  ;;  %6991 = vtanh.f32 %v3507_v16  ;;  %v3009_v59 = vmul.f32 %v2753_v44, %v8984_v54  ;;  %v6837_v42 = vld [vmem:[%s13140_s3 + $0x244] ss:$8 sps:$4 sm:$0xff]   ;;  %v13592_v47 = vld [vmem:[#allocation5_spill] sm:$0xff]  ;;  %v9129_v52 = vpop.f32.mrf.mxu1 }
 0x17f   : > { %v9075_v53 = vadd.f32 %v1650_v3, %v8289_v11  ;;  %v3921_v18 = vadd.f32 1.0, %v8656_v39  ;;  %5955 = vmatprep.subr.bf16.mxu1 %v6828_v45  ;;  %v6976_v29 = vpop.eup %6975  ;;  %v3914_v12 = vadd.f32 1.0, %v6974_v41  ;;  %v2505_v7 = vmul.f32 0.044715, %v9050_v51 }
 0x180   : > { %13590 = vst [vmem:[#allocation93_spill] sm:$0xff] %v9067_v30  ;;  %5763 = vmatpush1.bf16.msra.mxu0 %v6823_v57  ;;  %v2129_v57 = vmul.f32 0.5, %v13592_v47  ;;  %v3913_v16 = vadd.f32 1.0, %v8602_v2  ;;  %v6978_v44 = vpop.eup %6977  ;;  %v3257_v34 = vadd.f32 %v3001_v28, %v8967_v37  ;;  %v9086_v3 = vadd.f32 %v3003_v9, %v8970_v49  ;;  %v13594_v2 = vld [vmem:[#allocation3_spill] sm:$0xff] }
 0x181   : > { %13591 = vst [vmem:[#allocation94_spill] sm:$0xff] %v9075_v53  ;;  %5764 = vmatprep.subr.bf16.mxu0 %v6831_v1  ;;  %v3922_v39 = vadd.f32 1.0, %v6976_v29  ;;  %v9090_v45 = vadd.f32 %v8963_v5, %v8329_v6  ;;  %v6832_v1 = vld [vmem:[%s13140_s3 + $0x350] ss:$8 sps:$4 sm:$0xff]   ;;  %v3916_v41 = vadd.f32 1.0, %v6978_v44  ;;  %v2755_v47 = vmul.f32 %v2499_v4, %v9024_v14 }
 0x182   : > { %5956 = vmatpush1.bf16.msra.mxu1 %v6826_v25  ;;  %v2121_v58 = vmul.f32 0.5, %v13594_v2  ;;  %v4177_v62 = vmul.f32 %v3921_v18, %v2129_v57  ;;  %v6835_v28 = vld [vmem:[%s13140_s3 + $0x240] ss:$8 sps:$4 sm:$0xff]   ;;  %v6840_v5 = vld [vmem:[%s13140_s3 + $0x344] ss:$8 sps:$4 sm:$0xff]   ;;  %v4170_v9 = vmul.f32 %v3914_v12, %v2122_v22  ;;  %v9105_v29 = vadd.f32 %v8986_v56, %v8327_v36  ;;  %v9113_v2 = vpop.f32.mrf.mxu0 }
 0x183   : > { %13593 = vst [vmem:[#allocation5_spill] sm:$0xff] %v9090_v45  ;;  %5957 = vmatprep.subr.bf16.mxu1 %v6834_v63  ;;  %v4178_v25 = vmul.f32 %v3922_v39, %v2130_v60  ;;  %v2507_v4 = vmul.f32 0.044715, %v9075_v53  ;;  %v6980_v18 = vpop.eup %6979  ;;  %v2761_v63 = vmul.f32 %v2505_v7, %v9050_v51  ;;  %v3915_v44 = vadd.f32 1.0, %v8612_v23  ;;  %v6843_v22 = vld [vmem:[%s13140_s3 + $0x234] ss:$8 sps:$4 sm:$0xff]  }
 0x184   : > { %5765 = vmatpush1.bf16.msra.mxu0 %v6829_v31  ;;  %13595 = vst [vmem:[#allocation3_spill] sm:$0xff] %v9105_v29  ;;  %v9109_v31 = vadd.f32 %v3009_v59, %v8984_v54  ;;  %v4169_v57 = vmul.f32 %v3913_v16, %v2121_v58  ;;  %v9118_v56 = vpop.eup %6981  ;;  %v3924_v12 = vadd.f32 1.0, %v6980_v18  ;;  %v3923_v59 = vadd.f32 1.0, %v8698_v21  ;;  %v6838_v58 = vld [vmem:[%s13140_s3 + $0x340] ss:$8 sps:$4 sm:$0xff]   ;;  %v13599_v54 = vld [vmem:[#allocation4_spill] sm:$0xff] }
 0x185   : > { %5766 = vmatprep.subr.bf16.mxu0 %v6837_v42  ;;  %13596 = vst [vmem:[#allocation95_spill] sm:$0xff] %v9118_v56  ;;  %v4482_v60 = vpack.c.bf16 %v4178_v25, %v4170_v9  ;;  %v13597_v42 = vld [vmem:[#allocation6_spill] sm:$0xff]  ;;  %v9125_v23 = vpop.eup %6983  ;;  %v4172_v7 = vmul.f32 %v3916_v41, %v2124_v33  ;;  %v3011_v16 = vmul.f32 %v2755_v47, %v9024_v14  ;;  %v2123_v37 = vmul.f32 0.5, %v13599_v54  ;;  %v6841_v21 = vld [vmem:[%s13140_s3 + $0x230] ss:$8 sps:$4 sm:$0xff]   ;;  %v13601_v41 = vld [vmem:[#allocation31_spill] sm:$0xff] }
 0x186   : > { %v2131_v39 = vmul.f32 0.5, %v13597_v42  ;;  %5958 = vmatpush1.bf16.msra.mxu1 %v6832_v1  ;;  %13598 = vst [vmem:[#allocation6_spill] sm:$0xff] %v9125_v23  ;;  %v4481_v49 = vpack.c.bf16 %v4177_v62, %v4169_v57  ;;  %v6846_v1 = vld [vmem:[%s13140_s3 + $0x334] ss:$8 sps:$4 sm:$0xff]   ;;  %v9137_v9 = vpop.eup %6985  ;;  %v4180_v33 = vmul.f32 %v3924_v12, %v9063_v61  ;;  %v3162_v54 = vadd.f32 %v8573_v48, %v8467_v0  ;;  %v13603_v57 = vld [vmem:[#allocation14_spill] sm:$0xff]  ;;  %v13605_v61 = vld [vmem:[#allocation23_spill] sm:$0xff] }
 0x187   : > { %5959 = vmatprep.subr.bf16.mxu1 %v6840_v5  ;;  %13600 = vst [vmem:[#allocation4_spill] sm:$0xff] %v9137_v9  ;;  %5416 = vmatprep.mubr.bf16.mxu0 %v4482_v60  ;;  %v3170_v47 = vadd.f32 %v13601_v41, %v8540_v38  ;;  %v9147_v5 = vpop.eup %6987  ;;  %v3513_v25 = vmul.f32 0.7978846, %v3257_v34  ;;  %v4171_v18 = vmul.f32 %v3915_v44, %v2123_v37  ;;  %v13604_v60 = vld [vmem:[#allocation26_spill] sm:$0xff]  ;;  %v13606_v12 = vld [vmem:[#allocation33_spill] sm:$0xff] }
 0x188   : > { %5767 = vmatpush1.bf16.msra.mxu0 %v6835_v28  ;;  %v4179_v62 = vmul.f32 %v3923_v59, %v2131_v39  ;;  %v6849_v28 = vld [vmem:[%s13140_s3 + $0x224] ss:$8 sps:$4 sm:$0xff]   ;;  %13602 = vst [vmem:[#allocation31_spill] sm:$0xff] %v9147_v5  ;;  %v3164_v42 = vadd.f32 %v13604_v60, %v13603_v57  ;;  %v3172_v39 = vadd.f32 %v13606_v12, %v13605_v61  ;;  %v1461_v59 = vpop.f32.mrf.mxu0  ;;  %v6844_v48 = vld [vmem:[%s13140_s3 + $0x330] ss:$8 sps:$4 sm:$0xff]  }
 0x189   : > { %5417 = vmatmul.mubr.bf16.gmra.mxu0 %v4481_v49  ;;  %5768 = vmatprep.subr.bf16.mxu0 %v6843_v22  ;;  %v4484_v41 = vpack.c.bf16 %v4180_v33, %v4172_v7  ;;  %v2763_v9 = vmul.f32 %v2507_v4, %v9075_v53  ;;  %v3418_v32 = vmul.f32 0.7978846, %v3162_v54  ;;  %v3426_v5 = vmul.f32 0.7978846, %v3170_v47  ;;  %v6847_v37 = vld [vmem:[%s13140_s3 + $0x220] ss:$8 sps:$4 sm:$0xff]   ;;  %v1654_v22 = vpop.f32.mrf.mxu1 }
 0x18a   : > { %5960 = vmatpush1.bf16.msra.mxu1 %v6838_v58  ;;  %v3017_v49 = vmul.f32 %v2761_v63, %v9050_v51  ;;  %v4483_v34 = vpack.c.bf16 %v4179_v62, %v4171_v18  ;;  %v3420_v44 = vmul.f32 0.7978846, %v3164_v42  ;;  %v3428_v60 = vmul.f32 0.7978846, %v3172_v39  ;;  %v6852_v7 = vld [vmem:[%s13140_s3 + $0x324] ss:$8 sps:$4 sm:$0xff]   ;;  %v9164_v4 = vpop.eup %6989 }
 0x18b   : > { %5961 = vmatprep.subr.bf16.mxu1 %v6846_v1  ;;  %13607 = vst [vmem:[#allocation14_spill] sm:$0xff] %v9164_v4  ;;  %v2740_v58 = vmul.f32 %v9043_v13, %v9008_v27  ;;  %v3515_v33 = vmul.f32 0.7978846, %v9086_v3  ;;  %5609 = vmatprep.mubr.bf16.mxu1 %v4484_v41  ;;  %v2490_v63 = vmul.f32 0.044715, %v9067_v30  ;;  %6993 = vtanh.f32 %v3418_v32  ;;  %v9173_v1 = vpop.eup %6991  ;;  %v9181_v3 = vpop.f32.mrf.mxu0  ;;  %v13634_v23 = vld [vmem:[#allocation41_spill] sm:$0xff] }
 0x18c   : > { %5769 = vmatpush1.bf16.msra.mxu0 %v6841_v21  ;;  %v6855_v21 = vld [vmem:[%s13140_s3 + $0x214] ss:$8 sps:$4 sm:$0xff]   ;;  %13608 = vst [vmem:[#allocation26_spill] sm:$0xff] %v9173_v1  ;;  %v2492_v62 = vmul.f32 0.044715, %v9090_v45  ;;  %v3267_v54 = vadd.f32 %v3011_v16, %v9024_v14  ;;  %v9179_v13 = vadd.f32 %v9010_v55, %v8329_v6  ;;  %5610 = vmatmul.mubr.bf16.gmra.mxu1 %v4483_v34  ;;  %6995 = vtanh.f32 %v3426_v5 }
 0x18d   : > { %5770 = vmatprep.subr.bf16.mxu0 %v6849_v28  ;;  %v2498_v32 = vmul.f32 0.044715, %v9105_v29  ;;  %6997 = vtanh.f32 %v3420_v44  ;;  %v9185_v47 = vadd.f32 %v1461_v59, %v8287_v10  ;;  %v9188_v28 = vadd.f32 %v1654_v22, %v8289_v11  ;;  %v6850_v16 = vld [vmem:[%s13140_s3 + $0x320] ss:$8 sps:$4 sm:$0xff]   ;;  %v6853_v42 = vld [vmem:[%s13140_s3 + $0x210] ss:$8 sps:$4 sm:$0xff]  }
 0x18e   : > { %13609 = vst [vmem:[#allocation23_spill] sm:$0xff] %v9179_v13  ;;  %5962 = vmatpush1.bf16.msra.mxu1 %v6844_v48  ;;  %v3521_v55 = vmul.f32 0.7978846, %v9109_v31  ;;  %v3273_v5 = vadd.f32 %v3017_v49, %v9050_v51  ;;  %v3019_v18 = vmul.f32 %v2763_v9, %v9075_v53  ;;  %6999 = vtanh.f32 %v3428_v60  ;;  %v6858_v12 = vld [vmem:[%s13140_s3 + $0x314] ss:$8 sps:$4 sm:$0xff]  }
 0x18f   : > { %13610 = vst [vmem:[#allocation33_spill] sm:$0xff] %v9185_v47  ;;  %13611 = vst [vmem:[#allocation96_spill] sm:$0xff] %v9188_v28  ;;  %5963 = vmatprep.subr.bf16.mxu1 %v6852_v7  ;;  %v9204_v39 = vmul.f32 %v9021_v20, %v8938_v35  ;;  %v9208_v31 = vmul.f32 %v9040_v43, %v8976_v40  ;;  %v9211_v9 = vmul.f32 %v2740_v58, %v9008_v27  ;;  %v6861_v59 = vld [vmem:[%s13140_s3 + $0x204] ss:$8 sps:$4 sm:$0xff]   ;;  %v9224_v43 = vpop.f32.mrf.mxu1  ;;  %v6856_v60 = vld [vmem:[%s13140_s3 + $0x310] ss:$8 sps:$4 sm:$0xff]  }
 0x190   : > { %5771 = vmatpush1.bf16.msra.mxu0 %v6847_v37  ;;  %7001 = vtanh.f32 %v3513_v25  ;;  %v9217_v48 = vmul.f32 %v2490_v63, %v9067_v30  ;;  %v9219_v41 = vmul.f32 0.7978846, %v3267_v54  ;;  %v9222_v20 = vmul.f32 0.044715, %v9179_v13  ;;  %v1467_v37 = vpop.f32.mrf.mxu0  ;;  %v13617_v54 = vld [vmem:[#allocation42_spill] sm:$0xff]  ;;  %v13621_v51 = vld [vmem:[#allocation53_spill] sm:$0xff] }
 0x191   : > { %13612 = vst [vmem:[#allocation97_spill] sm:$0xff] %v9204_v39  ;;  %13613 = vst [vmem:[#allocation98_spill] sm:$0xff] %v9208_v31  ;;  %5772 = vmatprep.subr.bf16.mxu0 %v6855_v21  ;;  %7003 = vtanh.f32 %v3515_v33  ;;  %v9227_v49 = vmul.f32 %v2492_v62, %v9090_v45  ;;  %v9230_v25 = vmul.f32 %v2498_v32, %v9105_v29  ;;  %v2513_v34 = vmul.f32 0.044715, %v9185_v47  ;;  %v6859_v33 = vld [vmem:[%s13140_s3 + $0x200] ss:$8 sps:$4 sm:$0xff]  }
 0x192   : > { %13614 = vst [vmem:[#allocation99_spill] sm:$0xff] %v9211_v9  ;;  %v2515_v44 = vmul.f32 0.044715, %v9188_v28  ;;  %5964 = vmatpush1.bf16.msra.mxu1 %v6850_v16  ;;  %7005 = vtanh.f32 %v3521_v55  ;;  %v9237_v22 = vmul.f32 0.7978846, %v3273_v5  ;;  %v9240_v7 = vadd.f32 %v3019_v18, %v9075_v53  ;;  %v1660_v16 = vpop.f32.mrf.mxu1  ;;  %v13619_v55 = vld [vmem:[#allocation11_spill] sm:$0xff] }
 0x193   : > { %v2138_v58 = vmul.f32 0.5, %v8467_v0  ;;  %5965 = vmatprep.subr.bf16.mxu1 %v6858_v12  ;;  %v2146_v63 = vmul.f32 0.5, %v8540_v38  ;;  %v9249_v21 = vadd.f32 %v9113_v2, %v8327_v36  ;;  %v9252_v62 = vadd.f32 %v1467_v37, %v8287_v10  ;;  %v13620_v18 = vld [vmem:[#allocation15_spill] sm:$0xff]  ;;  %v13628_v35 = vld [vmem:[#allocation32_spill] sm:$0xff]  ;;  %v13629_v31 = vld [vmem:[#allocation45_spill] sm:$0xff] }
 0x194   : > { %5773 = vmatpush1.bf16.msra.mxu0 %v6853_v42  ;;  %v3929_v32 = vadd.f32 1.0, %v13617_v54  ;;  %v9257_v0 = vadd.f32 %v9129_v52, %v8329_v6  ;;  %v2137_v5 = vmul.f32 0.5, %v13619_v55  ;;  %v2145_v42 = vmul.f32 0.5, %v13620_v18 }
 0x195   : > { %13615 = vst [vmem:[#allocation100_spill] sm:$0xff] %v9249_v21  ;;  %13616 = vst [vmem:[#allocation101_spill] sm:$0xff] %v9252_v62  ;;  %5774 = vmatprep.subr.bf16.mxu0 %v6861_v59  ;;  %v3937_v38 = vadd.f32 1.0, %v8753_v24  ;;  %v2140_v2 = vmul.f32 0.5, %v13603_v57  ;;  %v2148_v12 = vmul.f32 0.5, %v13605_v61  ;;  %v2769_v37 = vmul.f32 %v2513_v34, %v9185_v47  ;;  %v13623_v57 = vld [vmem:[#allocation12_spill] sm:$0xff] }
 0x196   : > { %13618 = vst [vmem:[#allocation42_spill] sm:$0xff] %v9257_v0  ;;  %v2771_v54 = vmul.f32 %v2515_v44, %v9188_v28  ;;  %5966 = vmatpush1.bf16.msra.mxu1 %v6856_v60  ;;  %v4185_v59 = vmul.f32 %v3929_v32, %v2137_v5  ;;  %v3931_v52 = vadd.f32 1.0, %v8715_v50  ;;  %v3939_v14 = vadd.f32 1.0, %v13621_v51  ;;  %v13624_v61 = vld [vmem:[#allocation17_spill] sm:$0xff] }
 0x197   : > { %v4193_v53 = vmul.f32 %v3937_v38, %v2145_v42  ;;  %v2521_v55 = vmul.f32 0.044715, %v9252_v62  ;;  %v9270_v24 = vadd.f32 %v1660_v16, %v8289_v11  ;;  %v2139_v18 = vmul.f32 0.5, %v13623_v57  ;;  %v13626_v16 = vld [vmem:[#allocation27_spill] sm:$0xff]  ;;  %v9282_v57 = vpop.f32.mrf.mxu0 }
 0x198   : > { %5775 = vmatpush1.bf16.msra.mxu0 %v6859_v33  ;;  %v2147_v1 = vmul.f32 0.5, %v13624_v61  ;;  %v6994_v34 = vpop.eup %6993  ;;  %v2506_v44 = vmul.f32 0.044715, %v9249_v21  ;;  %v2508_v60 = vmul.f32 0.044715, %v9257_v0  ;;  %v9278_v50 = vadd.f32 %v9181_v3, %v8327_v36  ;;  %v13627_v38 = vld [vmem:[#allocation39_spill] sm:$0xff] }
 0x199   : > { %13622 = vst [vmem:[#allocation11_spill] sm:$0xff] %v9270_v24  ;;  %v4489_v51 = vpack.c.bf16 %v4193_v53, %v4185_v59  ;;  %v6996_v33 = vpop.eup %6995  ;;  %v3930_v32 = vadd.f32 1.0, %v6994_v34  ;;  %v4187_v5 = vmul.f32 %v3931_v52, %v2139_v18  ;;  %v3178_v4 = vadd.f32 %v13627_v38, %v13626_v16  ;;  %v1471_v56 = vpop.f32.mrf.mxu0 }
 0x19a   : > { %13625 = vst [vmem:[#allocation15_spill] sm:$0xff] %v9278_v50  ;;  %v4195_v42 = vmul.f32 %v3939_v14, %v2147_v1  ;;  %v6998_v61 = vpop.eup %6997  ;;  %v3938_v9 = vadd.f32 1.0, %v6996_v33  ;;  %v3025_v27 = vmul.f32 %v2769_v37, %v9185_v47  ;;  %v3027_v39 = vmul.f32 %v2771_v54, %v9188_v28 }
 0x19b   : > { %v3186_v3 = vadd.f32 %v13629_v31, %v13628_v35  ;;  %v7000_v40 = vpop.eup %6999  ;;  %v3932_v53 = vadd.f32 1.0, %v6998_v61  ;;  %v2777_v59 = vmul.f32 %v2521_v55, %v9252_v62  ;;  %v2523_v14 = vmul.f32 0.044715, %v9270_v24  ;;  %v13633_v61 = vld [vmem:[#allocation28_spill] sm:$0xff] }
 0x19c   : > { %v4491_v1 = vpack.c.bf16 %v4195_v42, %v4187_v5  ;;  %v4186_v18 = vmul.f32 %v3930_v32, %v2138_v58  ;;  %v4194_v34 = vmul.f32 %v3938_v9, %v2146_v63  ;;  %v3940_v38 = vadd.f32 1.0, %v7000_v40  ;;  %v13635_v42 = vld [vmem:[#allocation34_spill] sm:$0xff]  ;;  %v13636_v58 = vld [vmem:[#allocation47_spill] sm:$0xff] }
 0x19d   : > { %v9290_v52 = vpop.eup %7001  ;;  %v3434_v33 = vmul.f32 0.7978846, %v3178_v4  ;;  %v4188_v37 = vmul.f32 %v3932_v53, %v2140_v2  ;;  %v9296_v54 = vadd.f32 %v9224_v43, %v8329_v6  ;;  %v3442_v31 = vmul.f32 0.7978846, %v3186_v3  ;;  %v9306_v2 = vpop.f32.mrf.mxu1  ;;  %v6862_v53 = vld [vmem:[%s13140_s3 + $0x300] ss:$8 sps:$4 sm:$0xff]  }
 0x19e   : > { %13630 = vst [vmem:[#allocation53_spill] sm:$0xff] %v9290_v52  ;;  %v9292_v26 = vpop.eup %7003  ;;  %v3180_v55 = vadd.f32 %v13634_v23, %v13633_v61  ;;  %v4490_v15 = vpack.c.bf16 %v4194_v34, %v4186_v18  ;;  %v4196_v5 = vmul.f32 %v3940_v38, %v2148_v12  ;;  %v3188_v9 = vadd.f32 %v13636_v58, %v13635_v42 }
 0x19f   : > { %13631 = vst [vmem:[#allocation12_spill] sm:$0xff] %v9292_v26  ;;  %13632 = vst [vmem:[#allocation17_spill] sm:$0xff] %v9296_v54  ;;  %7007 = vtanh.f32 %v3434_v33  ;;  %v9302_v40 = vpop.eup %7005  ;;  %v3281_v4 = vadd.f32 %v3025_v27, %v9185_v47  ;;  %v3283_v63 = vadd.f32 %v3027_v39, %v9188_v28  ;;  %v3033_v23 = vmul.f32 %v2777_v59, %v9252_v62  ;;  %v6864_v27 = vld [vmem:[%s13140_s3 + $0x304] ss:$8 sps:$4 sm:$0xff]   ;;  %v9320_v59 = vpop.f32.mrf.mxu0 }
 0x1a0   : > { %13637 = vst [vmem:[#allocation27_spill] sm:$0xff] %v9302_v40  ;;  %7009 = vtanh.f32 %v3442_v31  ;;  %v3436_v43 = vmul.f32 0.7978846, %v3180_v55  ;;  %5426 = vmatprep.mubr.bf16.mxu0 %v4490_v15  ;;  %v4492_v32 = vpack.c.bf16 %v4196_v5, %v4188_v37  ;;  %v2779_v12 = vmul.f32 %v2523_v14, %v9270_v24  ;;  %5967 = vmatprep.subr.bf16.mxu1 %v6864_v27  ;;  %v1664_v33 = vpop.f32.mrf.mxu1  ;;  %v13690_v40 = vld [vmem:[#allocation30_spill] sm:$0xff] }
 0x1a1   : > { %v3444_v3 = vmul.f32 0.7978846, %v3188_v9  ;;  %v2756_v39 = vmul.f32 %v9222_v20, %v9179_v13  ;;  %v3531_v18 = vmul.f32 0.7978846, %v9240_v7  ;;  %v2514_v15 = vmul.f32 0.044715, %v9278_v50  ;;  %5427 = vmatmul.mubr.bf16.gmra.mxu0 %v4489_v51  ;;  %5968 = vmatpush1.bf16.msra.mxu1 %v6862_v53 }
 0x1a2   : > { %7011 = vtanh.f32 %v3436_v43  ;;  %5619 = vmatprep.mubr.bf16.mxu1 %v4492_v32  ;;  %v2762_v14 = vmul.f32 %v2506_v44, %v9249_v21  ;;  %v2764_v34 = vmul.f32 %v2508_v60, %v9257_v0  ;;  %v2516_v38 = vmul.f32 0.044715, %v9296_v54 }
 0x1a3   : > { %7013 = vtanh.f32 %v3444_v3  ;;  %v9327_v20 = vmul.f32 %v9217_v48, %v9067_v30  ;;  %v9331_v7 = vmul.f32 %v9227_v49, %v9090_v45  ;;  %v3537_v51 = vmul.f32 0.7978846, %v3281_v4  ;;  %5620 = vmatmul.mubr.bf16.gmra.mxu1 %v4491_v1  ;;  %v1477_v1 = vpop.f32.mrf.mxu0  ;;  %v9364_v4 = vpop.f32.mrf.mxu1  ;;  %v13649_v3 = vld [vmem:[#allocation57_spill] sm:$0xff] }
 0x1a4   : > { %7015 = vtanh.f32 %v9219_v41  ;;  %v3539_v44 = vmul.f32 0.7978846, %v3283_v63  ;;  %v3289_v60 = vadd.f32 %v3033_v23, %v9252_v62  ;;  %v3035_v37 = vmul.f32 %v2779_v12, %v9270_v24  ;;  %v13648_v12 = vld [vmem:[#allocation24_spill] sm:$0xff] }
 0x1a5   : > { %13638 = vst [vmem:[#allocation39_spill] sm:$0xff] %v9327_v20  ;;  %13639 = vst [vmem:[#allocation32_spill] sm:$0xff] %v9331_v7  ;;  %7017 = vtanh.f32 %v9237_v22  ;;  %v9339_v48 = vmul.f32 %v9230_v25, %v9105_v29  ;;  %v9342_v49 = vmul.f32 %v2756_v39, %v9179_v13  ;;  %v9345_v41 = vmul.f32 %v2514_v15, %v9278_v50 }
 0x1a6   : > { %7019 = vtanh.f32 %v3531_v18  ;;  %v9348_v22 = vmul.f32 %v2762_v14, %v9249_v21  ;;  %v9351_v31 = vmul.f32 %v2764_v34, %v9257_v0  ;;  %v9354_v55 = vmul.f32 %v2516_v38, %v9296_v54  ;;  %v1670_v38 = vpop.f32.mrf.mxu1  ;;  %v13662_v0 = vld [vmem:[#allocation46_spill] sm:$0xff] }
 0x1a7   : > { %13640 = vst [vmem:[#allocation45_spill] sm:$0xff] %v9339_v48  ;;  %13641 = vst [vmem:[#allocation28_spill] sm:$0xff] %v9342_v49  ;;  %v9357_v25 = vadd.f32 %v1471_v56, %v8287_v10  ;;  %7021 = vtanh.f32 %v3537_v51  ;;  %v2154_v5 = vmul.f32 0.5, %v13626_v16  ;;  %v2162_v58 = vmul.f32 0.5, %v13628_v35  ;;  %v13647_v56 = vld [vmem:[#allocation20_spill] sm:$0xff] }
 0x1a8   : > { %13642 = vst [vmem:[#allocation41_spill] sm:$0xff] %v9348_v22  ;;  %13643 = vst [vmem:[#allocation34_spill] sm:$0xff] %v9351_v31  ;;  %v9362_v9 = vadd.f32 %v1664_v33, %v8289_v11  ;;  %7023 = vtanh.f32 %v3539_v44  ;;  %v9366_v63 = vmul.f32 0.7978846, %v3289_v60  ;;  %v9369_v43 = vadd.f32 %v3035_v37, %v9270_v24  ;;  %v13651_v44 = vld [vmem:[#allocation59_spill] sm:$0xff]  ;;  %v13663_v22 = vld [vmem:[#allocation60_spill] sm:$0xff] }
 0x1a9   : > { %13644 = vst [vmem:[#allocation47_spill] sm:$0xff] %v9357_v25  ;;  %v9372_v32 = vadd.f32 %v1477_v1, %v8287_v10  ;;  %v2153_v23 = vmul.f32 0.5, %v13647_v56  ;;  %v2161_v16 = vmul.f32 0.5, %v13648_v12  ;;  %v3945_v35 = vadd.f32 1.0, %v13649_v3  ;;  %v13652_v1 = vld [vmem:[#allocation22_spill] sm:$0xff]  ;;  %v13653_v56 = vld [vmem:[#allocation25_spill] sm:$0xff] }
 0x1aa   : > { %13645 = vst [vmem:[#allocation102_spill] sm:$0xff] %v9362_v9  ;;  %v3953_v53 = vadd.f32 1.0, %v8820_v46  ;;  %v2156_v27 = vmul.f32 0.5, %v13633_v61  ;;  %v2164_v39 = vmul.f32 0.5, %v13635_v42  ;;  %v9382_v18 = vadd.f32 %v9282_v57, %v8327_v36  ;;  %v13654_v12 = vld [vmem:[#allocation66_spill] sm:$0xff]  ;;  %v9390_v57 = vpop.f32.mrf.mxu0  ;;  %v13691_v49 = vld [vmem:[#allocation56_spill] sm:$0xff] }
 0x1ab   : > { %13646 = vst [vmem:[#allocation103_spill] sm:$0xff] %v9372_v32  ;;  %v2529_v15 = vmul.f32 0.044715, %v9357_v25  ;;  %v2531_v34 = vmul.f32 0.044715, %v9362_v9  ;;  %v4201_v51 = vmul.f32 %v3945_v35, %v2153_v23  ;;  %v3947_v60 = vadd.f32 1.0, %v13651_v44 }
 0x1ac   : > { %13650 = vst [vmem:[#allocation20_spill] sm:$0xff] %v9382_v18  ;;  %v7008_v14 = vpop.eup %7007  ;;  %v4209_v33 = vmul.f32 %v3953_v53, %v2161_v16  ;;  %v2155_v61 = vmul.f32 0.5, %v13652_v1  ;;  %v2163_v42 = vmul.f32 0.5, %v13653_v56  ;;  %v3955_v3 = vadd.f32 1.0, %v13654_v12  ;;  %v6865_v56 = vld [vmem:[%s13140_s3 + $0x2f0] ss:$8 sps:$4 sm:$0xff]   ;;  %v1481_v31 = vpop.f32.mrf.mxu0 }
 0x1ad   : > { %v7010_v37 = vpop.eup %7009  ;;  %v3946_v46 = vadd.f32 1.0, %v7008_v14  ;;  %v9394_v62 = vadd.f32 %v9306_v2, %v8329_v6  ;;  %v2537_v23 = vmul.f32 0.044715, %v9372_v32  ;;  %v2522_v53 = vmul.f32 0.044715, %v9382_v18 }
 0x1ae   : > { %v3954_v24 = vadd.f32 1.0, %v7010_v37  ;;  %v4497_v16 = vpack.c.bf16 %v4209_v33, %v4201_v51  ;;  %v2785_v14 = vmul.f32 %v2529_v15, %v9357_v25  ;;  %v4203_v44 = vmul.f32 %v3947_v60, %v2155_v61  ;;  %v6867_v37 = vld [vmem:[%s13140_s3 + $0x2f4] ss:$8 sps:$4 sm:$0xff]   ;;  %v9408_v33 = vpop.f32.mrf.mxu1 }
 0x1af   : > { %13655 = vst [vmem:[#allocation24_spill] sm:$0xff] %v9394_v62  ;;  %v7012_v35 = vpop.eup %7011  ;;  %v4211_v1 = vmul.f32 %v3955_v3, %v2163_v42  ;;  %v4202_v12 = vmul.f32 %v3946_v46, %v2154_v5  ;;  %v9406_v51 = vadd.f32 %v1670_v38, %v8289_v11  ;;  %v2787_v61 = vmul.f32 %v2531_v34, %v9362_v9  ;;  %v13660_v38 = vld [vmem:[#allocation38_spill] sm:$0xff]  ;;  %v13661_v46 = vld [vmem:[#allocation51_spill] sm:$0xff] }
 0x1b0   : > { %v7014_v2 = vpop.eup %7013  ;;  %v4210_v28 = vmul.f32 %v3954_v24, %v2162_v58  ;;  %v3948_v47 = vadd.f32 1.0, %v7012_v35  ;;  %v9415_v42 = vadd.f32 %v9320_v59, %v8327_v36  ;;  %5776 = vmatprep.subr.bf16.mxu0 %v6867_v37  ;;  %v2793_v58 = vmul.f32 %v2537_v23, %v9372_v32  ;;  %v13666_v37 = vld [vmem:[#allocation58_spill] sm:$0xff] }
 0x1b1   : > { %13656 = vst [vmem:[#allocation57_spill] sm:$0xff] %v9406_v51  ;;  %v9410_v15 = vpop.eup %7015  ;;  %v3956_v60 = vadd.f32 1.0, %v7014_v2  ;;  %v4499_v3 = vpack.c.bf16 %v4211_v1, %v4203_v44  ;;  %v3194_v35 = vadd.f32 %v13661_v46, %v13660_v38  ;;  %v3202_v2 = vadd.f32 %v13663_v22, %v13662_v0  ;;  %5777 = vmatpush2.bf16.msra.mxu0 %v6865_v56  ;;  %v13665_v1 = vld [vmem:[#allocation43_spill] sm:$0xff]  ;;  %v13668_v46 = vld [vmem:[#allocation62_spill] sm:$0xff] }
 0x1b2   : > { %13657 = vst [vmem:[#allocation59_spill] sm:$0xff] %v9410_v15  ;;  %13658 = vst [vmem:[#allocation22_spill] sm:$0xff] %v9415_v42  ;;  %v9417_v5 = vpop.eup %7017  ;;  %v4498_v24 = vpack.c.bf16 %v4210_v28, %v4202_v12  ;;  %v4204_v21 = vmul.f32 %v3948_v47, %v2156_v27  ;;  %v3041_v44 = vmul.f32 %v2785_v14, %v9357_v25  ;;  %v2539_v28 = vmul.f32 0.044715, %v9406_v51  ;;  %v1674_v15 = vpop.f32.mrf.mxu1 }
 0x1b3   : > { %13659 = vst [vmem:[#allocation25_spill] sm:$0xff] %v9417_v5  ;;  %v9424_v34 = vpop.eup %7019  ;;  %v4212_v59 = vmul.f32 %v3956_v60, %v2164_v39  ;;  %v3196_v26 = vadd.f32 %v13666_v37, %v13665_v1  ;;  %v3450_v23 = vmul.f32 0.7978846, %v3194_v35  ;;  %v3458_v12 = vmul.f32 0.7978846, %v3202_v2  ;;  %v13667_v5 = vld [vmem:[#allocation48_spill] sm:$0xff]  ;;  %v1483_v14 = vpop.f32.mrf.mxu0 }
 0x1b4   : > { %13664 = vst [vmem:[#allocation66_spill] sm:$0xff] %v9424_v34  ;;  %5436 = vmatprep.mubr.bf16.mxu0 %v4498_v24  ;;  %v3204_v52 = vadd.f32 %v13668_v46, %v13667_v5  ;;  %v9432_v22 = vpop.eup %7021  ;;  %v3043_v47 = vmul.f32 %v2787_v61, %v9362_v9  ;;  %v9437_v27 = vadd.f32 %v9364_v4, %v8329_v6  ;;  %v2524_v61 = vmul.f32 0.044715, %v9394_v62 }
 0x1b5   : > { %13669 = vst [vmem:[#allocation38_spill] sm:$0xff] %v9432_v22  ;;  %v4500_v56 = vpack.c.bf16 %v4212_v59, %v4204_v21  ;;  %5437 = vmatmul.mubr.bf16.gmra.mxu0 %v4497_v16  ;;  %v3452_v39 = vmul.f32 0.7978846, %v3196_v26  ;;  %v9439_v60 = vpop.eup %7023  ;;  %v3049_v24 = vmul.f32 %v2793_v58, %v9372_v32  ;;  %7025 = vtanh.f32 %v3450_v23  ;;  %v6868_v26 = vld [vmem:[%s13140_s3 + $0x3f0] ss:$8 sps:$4 sm:$0xff]  }
 0x1b6   : > { %13670 = vst [vmem:[#allocation51_spill] sm:$0xff] %v9437_v27  ;;  %13671 = vst [vmem:[#allocation46_spill] sm:$0xff] %v9439_v60  ;;  %v3460_v35 = vmul.f32 0.7978846, %v3204_v52  ;;  %v9443_v2 = vadd.f32 %v1481_v31, %v8287_v10  ;;  %v3547_v21 = vmul.f32 0.7978846, %v9369_v43  ;;  %7027 = vtanh.f32 %v3458_v12  ;;  %v1676_v43 = vpop.f32.mrf.mxu1 }
 0x1b7   : > { %5629 = vmatprep.mubr.bf16.mxu1 %v4500_v56  ;;  %v9448_v4 = vadd.f32 %v1674_v15, %v8289_v11  ;;  %v9455_v16 = vmul.f32 %v9345_v41, %v9278_v50  ;;  %v3297_v52 = vadd.f32 %v3041_v44, %v9357_v25  ;;  %v2795_v31 = vmul.f32 %v2539_v28, %v9406_v51  ;;  %v6870_v15 = vld [vmem:[%s13140_s3 + $0x3f4] ss:$8 sps:$4 sm:$0xff]   ;;  %v1487_v41 = vpop.f32.mrf.mxu0 }
 0x1b8   : > { %13672 = vst [vmem:[#allocation60_spill] sm:$0xff] %v9443_v2  ;;  %5630 = vmatmul.mubr.bf16.gmra.mxu1 %v4499_v3  ;;  %7029 = vtanh.f32 %v3452_v39  ;;  %v2778_v58 = vmul.f32 %v2522_v53, %v9382_v18  ;;  %v3299_v59 = vadd.f32 %v3043_v47, %v9362_v9  ;;  %v2530_v37 = vmul.f32 0.044715, %v9415_v42  ;;  %5969 = vmatprep.subr.bf16.mxu1 %v6870_v15  ;;  %v1680_v39 = vpop.f32.mrf.mxu1  ;;  %v13685_v9 = vld [vmem:[#allocation29_spill] sm:$0xff] }
 0x1b9   : > { %13673 = vst [vmem:[#allocation43_spill] sm:$0xff] %v9448_v4  ;;  %13674 = vst [vmem:[#allocation58_spill] sm:$0xff] %v9455_v16  ;;  %7031 = vtanh.f32 %v3460_v35  ;;  %v2532_v44 = vmul.f32 0.044715, %v9437_v27  ;;  %v3305_v3 = vadd.f32 %v3049_v24, %v9372_v32  ;;  %v2545_v28 = vmul.f32 0.044715, %v9443_v2  ;;  %5970 = vmatpush2.bf16.msra.mxu1 %v6868_v26 }
 0x1ba   : > { %7033 = vtanh.f32 %v9366_v63  ;;  %v9471_v23 = vmul.f32 %v9354_v55, %v9296_v54  ;;  %v9474_v53 = vmul.f32 %v2524_v61, %v9394_v62  ;;  %v2547_v12 = vmul.f32 0.044715, %v9448_v4  ;;  %v13688_v22 = vld [vmem:[#allocation49_spill] sm:$0xff] }
 0x1bb   : > { %7035 = vtanh.f32 %v3547_v21  ;;  %v3553_v46 = vmul.f32 0.7978846, %v3297_v52  ;;  %v3051_v63 = vmul.f32 %v2795_v31, %v9406_v51  ;;  %v9480_v56 = vadd.f32 %v9390_v57, %v8327_v36 }
 0x1bc   : > { %13675 = vst [vmem:[#allocation48_spill] sm:$0xff] %v9471_v23  ;;  %v9483_v47 = vadd.f32 %v1487_v41, %v8287_v10  ;;  %v9486_v55 = vmul.f32 %v2778_v58, %v9382_v18  ;;  %v3555_v24 = vmul.f32 0.7978846, %v3299_v59  ;;  %v9489_v35 = vmul.f32 %v2530_v37, %v9415_v42  ;;  %v9540_v18 = vpop.f32.mrf.mxu1  ;;  %v13689_v23 = vld [vmem:[#allocation64_spill] sm:$0xff] }
 0x1bd   : > { %13676 = vst [vmem:[#allocation62_spill] sm:$0xff] %v9480_v56  ;;  %v9493_v21 = vadd.f32 %v9408_v33, %v8329_v6  ;;  %v9496_v61 = vmul.f32 %v2532_v44, %v9437_v27  ;;  %v9498_v57 = vmul.f32 0.7978846, %v3305_v3  ;;  %v2170_v26 = vmul.f32 0.5, %v13660_v38  ;;  %v6871_v38 = vld [vmem:[%s13140_s3 + $0x2e0] ss:$8 sps:$4 sm:$0xff]  }
 0x1be   : > { %13677 = vst [vmem:[#allocation104_spill] sm:$0xff] %v9483_v47  ;;  %13678 = vst [vmem:[#allocation105_spill] sm:$0xff] %v9486_v55  ;;  %v2801_v52 = vmul.f32 %v2545_v28, %v9443_v2  ;;  %v2178_v31 = vmul.f32 0.5, %v13662_v0  ;;  %v2172_v15 = vmul.f32 0.5, %v13665_v1  ;;  %v2803_v58 = vmul.f32 %v2547_v12, %v9448_v4  ;;  %v13681_v44 = vld [vmem:[#allocation71_spill] sm:$0xff] }
 0x1bf   : > { %13679 = vst [vmem:[#allocation106_spill] sm:$0xff] %v9493_v21  ;;  %v9506_v59 = vadd.f32 %v1680_v39, %v8289_v11  ;;  %7037 = vtanh.f32 %v3553_v46  ;;  %v3307_v33 = vadd.f32 %v3051_v63, %v9406_v51  ;;  %v9510_v37 = vmul.f32 0.044715, %v9480_v56  ;;  %v6873_v28 = vld [vmem:[%s13140_s3 + $0x2e4] ss:$8 sps:$4 sm:$0xff]  }
 0x1c0   : > { %v2553_v41 = vmul.f32 0.044715, %v9483_v47  ;;  %7039 = vtanh.f32 %v3555_v24  ;;  %v2180_v0 = vmul.f32 0.5, %v13667_v5  ;;  %v9518_v1 = vmul.f32 0.044715, %v9493_v21  ;;  %v13684_v39 = vld [vmem:[#allocation74_spill] sm:$0xff]  ;;  %v9532_v5 = vpop.f32.mrf.mxu0  ;;  %5778 = vmatprep.subr.bf16.mxu0 %v6873_v28 }
 0x1c1   : > { %13680 = vst [vmem:[#allocation107_spill] sm:$0xff] %v9506_v59  ;;  %v3961_v3 = vadd.f32 1.0, %v13681_v44  ;;  %v3057_v12 = vmul.f32 %v2801_v52, %v9443_v2  ;;  %v9526_v46 = vadd.f32 %v1483_v14, %v8327_v36  ;;  %v9529_v63 = vadd.f32 %v1676_v43, %v8329_v6  ;;  %v13686_v55 = vld [vmem:[#allocation35_spill] sm:$0xff]  ;;  %5779 = vmatpush2.bf16.msra.mxu0 %v6871_v38 }
 0x1c2   : > { %v3969_v24 = vadd.f32 1.0, %v13684_v39  ;;  %v7026_v51 = vpop.eup %7025  ;;  %v9535_v32 = vmul.f32 %v2803_v58, %v9448_v4  ;;  %v2555_v44 = vmul.f32 0.044715, %v9506_v59  ;;  %v2169_v25 = vmul.f32 0.5, %v13685_v9  ;;  %v13687_v39 = vld [vmem:[#allocation76_spill] sm:$0xff] }
 0x1c3   : > { %13682 = vst [vmem:[#allocation71_spill] sm:$0xff] %v9526_v46  ;;  %13683 = vst [vmem:[#allocation108_spill] sm:$0xff] %v9529_v63  ;;  %v2177_v52 = vmul.f32 0.5, %v13686_v55  ;;  %v7028_v14 = vpop.eup %7027  ;;  %v3962_v43 = vadd.f32 1.0, %v7026_v51  ;;  %v2809_v60 = vmul.f32 %v2553_v41, %v9483_v47  ;;  %v3971_v34 = vadd.f32 1.0, %v13687_v39  ;;  %v13692_v55 = vld [vmem:[#allocation78_spill] sm:$0xff]  ;;  %v1491_v39 = vpop.f32.mrf.mxu0 }
 0x1c4   : > { %v3210_v54 = vadd.f32 %v13689_v23, %v13688_v22  ;;  %v3970_v16 = vadd.f32 1.0, %v7028_v14  ;;  %v4217_v50 = vmul.f32 %v3961_v3, %v2169_v25  ;;  %v2171_v9 = vmul.f32 0.5, %v13690_v40  ;;  %v13693_v51 = vld [vmem:[#allocation36_spill] sm:$0xff]  ;;  %v13694_v41 = vld [vmem:[#allocation13_spill] sm:$0xff]  ;;  %v1684_v25 = vpop.f32.mrf.mxu1 }
 0x1c5   : > { %v7030_v58 = vpop.eup %7029  ;;  %v3218_v13 = vadd.f32 %v13692_v55, %v13691_v49  ;;  %v4225_v45 = vmul.f32 %v3969_v24, %v2177_v52  ;;  %v2179_v48 = vmul.f32 0.5, %v13693_v51  ;;  %v3963_v29 = vadd.f32 1.0, %v13694_v41  ;;  %v13699_v41 = vld [vmem:[#allocation61_spill] sm:$0xff] }
 0x1c6   : > { %v7032_v7 = vpop.eup %7031  ;;  %v3964_v28 = vadd.f32 1.0, %v7030_v58  ;;  %v4218_v23 = vmul.f32 %v3962_v43, %v2170_v26  ;;  %v4226_v38 = vmul.f32 %v3970_v16, %v2178_v31  ;;  %v3466_v14 = vmul.f32 0.7978846, %v3210_v54  ;;  %v13698_v58 = vld [vmem:[#allocation68_spill] sm:$0xff]  ;;  %v9559_v54 = vpop.f32.mrf.mxu0 }
 0x1c7   : > { %v9551_v20 = vpop.eup %7033  ;;  %v3972_v30 = vadd.f32 1.0, %v7032_v7  ;;  %v4227_v8 = vmul.f32 %v3971_v34, %v2179_v48  ;;  %v3474_v55 = vmul.f32 0.7978846, %v3218_v13  ;;  %v3212_v24 = vadd.f32 %v13698_v58, %v13697_v17  ;;  %v1686_v34 = vpop.f32.mrf.mxu1 }
 0x1c8   : > { %13695 = vst [vmem:[#allocation74_spill] sm:$0xff] %v9551_v20  ;;  %v9553_v3 = vpop.eup %7035  ;;  %v4220_v40 = vmul.f32 %v3964_v28, %v2172_v15  ;;  %v4506_v52 = vpack.c.bf16 %v4226_v38, %v4218_v23  ;;  %7041 = vtanh.f32 %v3466_v14  ;;  %v3220_v49 = vadd.f32 %v13700_v19, %v13699_v41  ;;  %v6879_v28 = vld [vmem:[%s13140_s3 + $0x2d4] ss:$8 sps:$4 sm:$0xff]  }
 0x1c9   : > { %13696 = vst [vmem:[#allocation29_spill] sm:$0xff] %v9553_v3  ;;  %v4228_v51 = vmul.f32 %v3972_v30, %v2180_v0  ;;  %v4505_v20 = vpack.c.bf16 %v4225_v45, %v4217_v50  ;;  %v4219_v26 = vmul.f32 %v3963_v29, %v2171_v9  ;;  %7043 = vtanh.f32 %v3474_v55  ;;  %v6877_v9 = vld [vmem:[%s13140_s3 + $0x2d0] ss:$8 sps:$4 sm:$0xff]   ;;  %5780 = vmatprep.subr.bf16.mxu0 %v6879_v28 }
 0x1ca   : > { %v3468_v7 = vmul.f32 0.7978846, %v3212_v24  ;;  %v3563_v16 = vmul.f32 0.7978846, %v3307_v33  ;;  %5446 = vmatprep.mubr.bf16.mxu0 %v4506_v52  ;;  %v3313_v13 = vadd.f32 %v3057_v12, %v9443_v2  ;;  %v3476_v48 = vmul.f32 0.7978846, %v3220_v49  ;;  %v1497_v33 = vpop.f32.mrf.mxu0  ;;  %v1690_v12 = vpop.f32.mrf.mxu1  ;;  %5781 = vmatpush2.bf16.msra.mxu0 %v6877_v9 }
 0x1cb   : > { %v4508_v31 = vpack.c.bf16 %v4228_v51, %v4220_v40  ;;  %v3065_v15 = vmul.f32 %v2809_v60, %v9483_v47  ;;  %v2811_v30 = vmul.f32 %v2555_v44, %v9506_v59  ;;  %5447 = vmatmul.mubr.bf16.gmra.mxu0 %v4505_v20  ;;  %v4507_v0 = vpack.c.bf16 %v4227_v8, %v4219_v26  ;;  %v13713_v52 = vld [vmem:[#allocation56_spill] sm:$0xff]  ;;  %v13722_v2 = vld [vmem:[#allocation50_spill] sm:$0xff] }
 0x1cc   : > { %7045 = vtanh.f32 %v3468_v7  ;;  %v9564_v19 = vpop.eup %7037  ;;  %v2794_v45 = vmul.f32 %v9510_v37, %v9480_v56  ;;  %v2796_v29 = vmul.f32 %v9518_v1, %v9493_v21  ;;  %v2546_v50 = vmul.f32 0.044715, %v9526_v46  ;;  %v9639_v7 = vpop.f32.mrf.mxu0 }
 0x1cd   : > { %13701 = vst [vmem:[#allocation35_spill] sm:$0xff] %v9564_v19  ;;  %5639 = vmatprep.mubr.bf16.mxu1 %v4508_v31  ;;  %7047 = vtanh.f32 %v3476_v48  ;;  %v9571_v49 = vpop.eup %7039  ;;  %v9575_v60 = vmul.f32 %v9474_v53, %v9394_v62  ;;  %v3315_v8 = vadd.f32 %v9535_v32, %v9448_v4  ;;  %v2548_v20 = vmul.f32 0.044715, %v9529_v63  ;;  %v6876_v32 = vld [vmem:[%s13140_s3 + $0x3e4] ss:$8 sps:$4 sm:$0xff]   ;;  %v13733_v62 = vld [vmem:[#allocation16_spill] sm:$0xff] }
 0x1ce   : > { %13702 = vst [vmem:[#allocation76_spill] sm:$0xff] %v9571_v49  ;;  %7049 = vtanh.f32 %v9498_v57  ;;  %5640 = vmatmul.mubr.bf16.gmra.mxu1 %v4507_v0  ;;  %v9583_v37 = vmul.f32 %v9489_v35, %v9415_v42  ;;  %v9587_v1 = vmul.f32 %v9496_v61, %v9437_v27  ;;  %v3569_v53 = vmul.f32 0.7978846, %v3313_v13  ;;  %v6874_v57 = vld [vmem:[%s13140_s3 + $0x3e0] ss:$8 sps:$4 sm:$0xff]   ;;  %5971 = vmatprep.subr.bf16.mxu1 %v6876_v32  ;;  %v13725_v49 = vld [vmem:[#allocation40_spill] sm:$0xff] }
 0x1cf   : > { %13703 = vst [vmem:[#allocation49_spill] sm:$0xff] %v9575_v60  ;;  %7051 = vtanh.f32 %v3563_v16  ;;  %v3321_v44 = vadd.f32 %v3065_v15, %v9483_v47  ;;  %v3067_v35 = vmul.f32 %v2811_v30, %v9506_v59  ;;  %v9598_v43 = vadd.f32 %v1491_v39, %v8287_v10  ;;  %5972 = vmatpush2.bf16.msra.mxu1 %v6874_v57  ;;  %v9641_v16 = vpop.f32.mrf.mxu1  ;;  %v13715_v30 = vld [vmem:[#allocation19_spill] sm:$0xff]  ;;  %v13719_v57 = vld [vmem:[#allocation77_spill] sm:$0xff] }
 0x1d0   : > { %13704 = vst [vmem:[#allocation64_spill] sm:$0xff] %v9583_v37  ;;  %13705 = vst [vmem:[#allocation30_spill] sm:$0xff] %v9587_v1  ;;  %v9601_v61 = vadd.f32 %v1684_v25, %v8289_v11  ;;  %v9610_v23 = vmul.f32 %v2794_v45, %v9480_v56  ;;  %v9613_v38 = vmul.f32 %v2796_v29, %v9493_v21  ;;  %v9621_v25 = vmul.f32 0.7978846, %v3315_v8  ;;  %v13721_v47 = vld [vmem:[#allocation37_spill] sm:$0xff]  ;;  %v13723_v56 = vld [vmem:[#allocation80_spill] sm:$0xff] }
 0x1d1   : > { %13706 = vst [vmem:[#allocation78_spill] sm:$0xff] %v9598_v43  ;;  %v9616_v39 = vmul.f32 %v2546_v50, %v9526_v46  ;;  %v9619_v14 = vadd.f32 %v1497_v33, %v8287_v10  ;;  %v9624_v40 = vmul.f32 %v2548_v20, %v9529_v63  ;;  %v9628_v55 = vadd.f32 %v9532_v5, %v8327_v36 }
 0x1d2   : > { %13707 = vst [vmem:[#allocation36_spill] sm:$0xff] %v9601_v61  ;;  %13708 = vst [vmem:[#allocation13_spill] sm:$0xff] %v9610_v23  ;;  %v9632_v58 = vadd.f32 %v9540_v18, %v8329_v6  ;;  %7053 = vtanh.f32 %v3569_v53  ;;  %v2186_v24 = vmul.f32 0.5, %v13688_v22  ;;  %v2194_v51 = vmul.f32 0.5, %v13713_v52  ;;  %v13718_v53 = vld [vmem:[#allocation44_spill] sm:$0xff] }
 0x1d3   : > { %13709 = vst [vmem:[#allocation52_spill] sm:$0xff] %v9613_v38  ;;  %13710 = vst [vmem:[#allocation68_spill] sm:$0xff] %v9619_v14  ;;  %v9637_v26 = vadd.f32 %v1690_v12, %v8289_v11  ;;  %v9643_v5 = vmul.f32 0.7978846, %v3321_v44  ;;  %v9646_v18 = vadd.f32 %v3067_v35, %v9506_v59  ;;  %v2561_v31 = vmul.f32 0.044715, %v9598_v43  ;;  %v1501_v44 = vpop.f32.mrf.mxu0  ;;  %v1694_v35 = vpop.f32.mrf.mxu1 }
 0x1d4   : > { %13711 = vst [vmem:[#allocation61_spill] sm:$0xff] %v9628_v55  ;;  %13712 = vst [vmem:[#allocation79_spill] sm:$0xff] %v9632_v58  ;;  %v2563_v13 = vmul.f32 0.044715, %v9601_v61  ;;  %v2188_v22 = vmul.f32 0.5, %v13697_v17  ;;  %v2196_v48 = vmul.f32 0.5, %v13699_v41  ;;  %v9662_v8 = vadd.f32 %v9559_v54, %v8327_v36 }
 0x1d5   : > { %13714 = vst [vmem:[#allocation56_spill] sm:$0xff] %v9637_v26  ;;  %v2569_v15 = vmul.f32 0.044715, %v9619_v14  ;;  %v3985_v0 = vadd.f32 1.0, %v13715_v30  ;;  %v7042_v45 = vpop.eup %7041  ;;  %v9655_v29 = vmul.f32 0.044715, %v9628_v55  ;;  %v9665_v20 = vadd.f32 %v1686_v34, %v8329_v6 }
 0x1d6   : > { %v9658_v50 = vmul.f32 0.044715, %v9632_v58  ;;  %13716 = vst [vmem:[#allocation19_spill] sm:$0xff] %v9662_v8  ;;  %v7044_v17 = vpop.eup %7043  ;;  %v3978_v41 = vadd.f32 1.0, %v7042_v45  ;;  %v2571_v33 = vmul.f32 0.044715, %v9637_v26  ;;  %v2817_v28 = vmul.f32 %v2561_v31, %v9598_v43 }
 0x1d7   : > { %13717 = vst [vmem:[#allocation109_spill] sm:$0xff] %v9665_v20  ;;  %v2193_v12 = vmul.f32 0.5, %v13718_v53  ;;  %v3977_v32 = vadd.f32 1.0, %v13719_v57  ;;  %v3986_v9 = vadd.f32 1.0, %v7044_v17  ;;  %v2819_v52 = vmul.f32 %v2563_v13, %v9601_v61  ;;  %v13720_v54 = vld [vmem:[#allocation8_spill] sm:$0xff] }
 0x1d8   : > { %v3987_v30 = vadd.f32 1.0, %v13720_v54  ;;  %v2825_v34 = vmul.f32 %v2569_v15, %v9619_v14  ;;  %v2185_v45 = vmul.f32 0.5, %v13721_v47  ;;  %v2195_v38 = vmul.f32 0.5, %v13722_v2  ;;  %v9681_v15 = vpop.f32.mrf.mxu0  ;;  %v9683_v47 = vpop.f32.mrf.mxu1 }
 0x1d9   : > { %v7046_v59 = vpop.eup %7045  ;;  %v4241_v4 = vmul.f32 %v3985_v0, %v2193_v12  ;;  %v4234_v21 = vmul.f32 %v3978_v41, %v2186_v24  ;;  %v4242_v57 = vmul.f32 %v3986_v9, %v2194_v51  ;;  %v3979_v17 = vadd.f32 1.0, %v13723_v56  ;;  %v13727_v51 = vld [vmem:[#allocation69_spill] sm:$0xff]  ;;  %v13729_v56 = vld [vmem:[#allocation7_spill] sm:$0xff] }
 0x1da   : > { %v7048_v53 = vpop.eup %7047  ;;  %v3980_v23 = vadd.f32 1.0, %v7046_v59  ;;  %v2827_v13 = vmul.f32 %v2571_v33, %v9637_v26  ;;  %v4233_v54 = vmul.f32 %v3977_v32, %v2185_v45  ;;  %v2187_v19 = vmul.f32 0.5, %v13725_v49  ;;  %v13728_v59 = vld [vmem:[#allocation81_spill] sm:$0xff]  ;;  %v13731_v32 = vld [vmem:[#allocation70_spill] sm:$0xff] }
 0x1db   : > { %v9677_v3 = vpop.eup %7049  ;;  %v3988_v31 = vadd.f32 1.0, %v7048_v53  ;;  %v4514_v2 = vpack.c.bf16 %v4242_v57, %v4234_v21  ;;  %v4243_v24 = vmul.f32 %v3987_v30, %v2195_v38  ;;  %v3226_v41 = vadd.f32 %v13728_v59, %v13727_v51  ;;  %v13730_v12 = vld [vmem:[#allocation85_spill] sm:$0xff]  ;;  %v13732_v45 = vld [vmem:[#allocation82_spill] sm:$0xff] }
 0x1dc   : > { %13724 = vst [vmem:[#allocation44_spill] sm:$0xff] %v9677_v3  ;;  %v9685_v0 = vpop.eup %7051  ;;  %v3234_v9 = vadd.f32 %v13730_v12, %v13729_v56  ;;  %v4236_v53 = vmul.f32 %v3980_v23, %v2188_v22  ;;  %v4513_v33 = vpack.c.bf16 %v4241_v4, %v4233_v54  ;;  %v3228_v49 = vadd.f32 %v13732_v45, %v13731_v32  ;;  %v1507_v23 = vpop.f32.mrf.mxu0  ;;  %v6883_v12 = vld [vmem:[%s13140_s3 + $0x2c0] ss:$8 sps:$4 sm:$0xff]  }
 0x1dd   : > { %13726 = vst [vmem:[#allocation77_spill] sm:$0xff] %v9685_v0  ;;  %v4244_v3 = vmul.f32 %v3988_v31, %v2196_v48  ;;  %5456 = vmatprep.mubr.bf16.mxu0 %v4514_v2  ;;  %v4235_v1 = vmul.f32 %v3979_v17, %v2187_v19  ;;  %v3482_v27 = vmul.f32 0.7978846, %v3226_v41  ;;  %v13734_v0 = vld [vmem:[#allocation88_spill] sm:$0xff]  ;;  %v3073_v30 = vmul.f32 %v2817_v28, %v9598_v43  ;;  %v1700_v4 = vpop.f32.mrf.mxu1 }
 0x1de   : > { %v3490_v60 = vmul.f32 0.7978846, %v3234_v9  ;;  %v3236_v21 = vadd.f32 %v13734_v0, %v13733_v62  ;;  %5457 = vmatmul.mubr.bf16.gmra.mxu0 %v4513_v33  ;;  %v3484_v57 = vmul.f32 0.7978846, %v3228_v49  ;;  %v9697_v59 = vadd.f32 %v1501_v44, %v8287_v10  ;;  %v6880_v2 = vld [vmem:[%s13140_s3 + $0x3d0] ss:$8 sps:$4 sm:$0xff]  }
 0x1df   : > { %v4516_v38 = vpack.c.bf16 %v4244_v3, %v4236_v53  ;;  %v9699_v22 = vpop.eup %7053  ;;  %v4515_v48 = vpack.c.bf16 %v4243_v24, %v4235_v1  ;;  %7055 = vtanh.f32 %v3482_v27  ;;  %v9702_v17 = vadd.f32 %v1694_v35, %v8289_v11 }
 0x1e0   : > { %13735 = vst [vmem:[#allocation8_spill] sm:$0xff] %v9697_v59  ;;  %13736 = vst [vmem:[#allocation37_spill] sm:$0xff] %v9699_v22  ;;  %v3492_v19 = vmul.f32 0.7978846, %v3236_v21  ;;  %v3075_v3 = vmul.f32 %v2819_v52, %v9601_v61  ;;  %v3081_v28 = vmul.f32 %v2825_v34, %v9619_v14  ;;  %7057 = vtanh.f32 %v3490_v60  ;;  %v9718_v52 = vpop.f32.mrf.mxu0  ;;  %v9720_v34 = vpop.f32.mrf.mxu1  ;;  %v6885_v21 = vld [vmem:[%s13140_s3 + $0x2c4] ss:$8 sps:$4 sm:$0xff]  }
 0x1e1   : > { %13737 = vst [vmem:[#allocation50_spill] sm:$0xff] %v9702_v17  ;;  %5649 = vmatprep.mubr.bf16.mxu1 %v4516_v38  ;;  %v2577_v31 = vmul.f32 0.044715, %v9697_v59  ;;  %v9709_v44 = vmul.f32 %v9616_v39, %v9526_v46  ;;  %v3579_v54 = vmul.f32 0.7978846, %v9646_v18  ;;  %v3083_v27 = vmul.f32 %v2827_v13, %v9637_v26  ;;  %5782 = vmatprep.subr.bf16.mxu0 %v6885_v21 }
 0x1e2   : > { %5650 = vmatmul.mubr.bf16.gmra.mxu1 %v4515_v48  ;;  %7059 = vtanh.f32 %v3484_v57  ;;  %v2810_v1 = vmul.f32 %v9655_v29, %v9628_v55  ;;  %v2812_v35 = vmul.f32 %v9658_v50, %v9632_v58  ;;  %v2562_v60 = vmul.f32 0.044715, %v9662_v8  ;;  %v9760_v45 = vpop.f32.mrf.mxu0  ;;  %v9762_v49 = vpop.f32.mrf.mxu1  ;;  %5783 = vmatpush2.bf16.msra.mxu0 %v6883_v12 }
 0x1e3   : > { %13738 = vst [vmem:[#allocation80_spill] sm:$0xff] %v9709_v44  ;;  %7061 = vtanh.f32 %v3492_v19  ;;  %v3329_v39 = vadd.f32 %v3073_v30, %v9598_v43  ;;  %v2564_v18 = vmul.f32 0.044715, %v9665_v20  ;;  %v2579_v13 = vmul.f32 0.044715, %v9702_v17  ;;  %v13761_v44 = vld [vmem:[#allocation10_spill] sm:$0xff] }
 0x1e4   : > { %7063 = vtanh.f32 %v9621_v25  ;;  %v3331_v29 = vadd.f32 %v3075_v3, %v9601_v61  ;;  %v3337_v50 = vadd.f32 %v3081_v28, %v9619_v14  ;;  %v2833_v0 = vmul.f32 %v2577_v31, %v9697_v59  ;;  %v6882_v25 = vld [vmem:[%s13140_s3 + $0x3d4] ss:$8 sps:$4 sm:$0xff]   ;;  %v13754_v61 = vld [vmem:[#allocation83_spill] sm:$0xff] }
 0x1e5   : > { %7065 = vtanh.f32 %v9643_v5  ;;  %v9738_v24 = vmul.f32 %v9624_v40, %v9529_v63  ;;  %v3339_v5 = vadd.f32 %v3083_v27, %v9637_v26  ;;  %v9742_v41 = vadd.f32 %v1507_v23, %v8287_v10  ;;  %5973 = vmatprep.subr.bf16.mxu1 %v6882_v25  ;;  %v13760_v63 = vld [vmem:[#allocation65_spill] sm:$0xff] }
 0x1e6   : > { %7067 = vtanh.f32 %v3579_v54  ;;  %v9748_v9 = vmul.f32 %v2810_v1, %v9628_v55  ;;  %v9751_v53 = vmul.f32 %v2812_v35, %v9632_v58  ;;  %v9754_v33 = vmul.f32 %v2562_v60, %v9662_v8  ;;  %5974 = vmatpush2.bf16.msra.mxu1 %v6880_v2  ;;  %v13746_v60 = vld [vmem:[#allocation87_spill] sm:$0xff]  ;;  %v13751_v2 = vld [vmem:[#allocation54_spill] sm:$0xff] }
 0x1e7   : > { %13739 = vst [vmem:[#allocation40_spill] sm:$0xff] %v9738_v24  ;;  %13740 = vst [vmem:[#allocation69_spill] sm:$0xff] %v9742_v41  ;;  %v9758_v40 = vadd.f32 %v9639_v7, %v8327_v36  ;;  %v9767_v38 = vmul.f32 0.7978846, %v3329_v39  ;;  %v9770_v30 = vmul.f32 %v2564_v18, %v9665_v20  ;;  %v9774_v57 = vadd.f32 %v9641_v16, %v8329_v6  ;;  %v9796_v18 = vpop.f32.mrf.mxu1  ;;  %v13758_v55 = vld [vmem:[#allocation98_spill] sm:$0xff] }
 0x1e8   : > { %13741 = vst [vmem:[#allocation81_spill] sm:$0xff] %v9748_v9  ;;  %13742 = vst [vmem:[#allocation7_spill] sm:$0xff] %v9751_v53  ;;  %v2835_v7 = vmul.f32 %v2579_v13, %v9702_v17  ;;  %v9777_v23 = vmul.f32 0.7978846, %v3331_v29  ;;  %v9779_v48 = vmul.f32 0.7978846, %v3337_v50  ;;  %v3089_v19 = vmul.f32 %v2833_v0, %v9697_v59 }
 0x1e9   : > { %13743 = vst [vmem:[#allocation85_spill] sm:$0xff] %v9758_v40  ;;  %13744 = vst [vmem:[#allocation70_spill] sm:$0xff] %v9774_v57  ;;  %v9783_v3 = vadd.f32 %v1700_v4, %v8289_v11  ;;  %v9785_v28 = vmul.f32 0.7978846, %v3339_v5  ;;  %v2202_v31 = vmul.f32 0.5, %v13727_v51  ;;  %v2210_v16 = vmul.f32 0.5, %v13729_v56  ;;  %v9794_v4 = vpop.f32.mrf.mxu0 }
 0x1ea   : > { %v2585_v54 = vmul.f32 0.044715, %v9742_v41  ;;  %v2204_v27 = vmul.f32 0.5, %v13731_v32  ;;  %v2212_v1 = vmul.f32 0.5, %v13733_v62  ;;  %v2570_v35 = vmul.f32 0.044715, %v9758_v40 }
 0x1eb   : > { %13745 = vst [vmem:[#allocation82_spill] sm:$0xff] %v9783_v3  ;;  %v3993_v39 = vadd.f32 1.0, %v13746_v60  ;;  %13747 = vst [vmem:[#allocation16_spill] sm:$0xff] %v9794_v4  ;;  %v9799_v13 = vmul.f32 0.044715, %v9774_v57  ;;  %v3091_v51 = vmul.f32 %v2835_v7, %v9702_v17  ;;  %v9804_v56 = vadd.f32 %v9681_v15, %v8327_v36  ;;  %v13750_v32 = vld [vmem:[#allocation95_spill] sm:$0xff] }
 0x1ec   : > { %13748 = vst [vmem:[#allocation88_spill] sm:$0xff] %v9796_v18  ;;  %v4001_v29 = vadd.f32 1.0, %v13750_v32  ;;  %v7056_v62 = vpop.eup %7055  ;;  %v3345_v50 = vadd.f32 %v3089_v19, %v9697_v59  ;;  %v2587_v0 = vmul.f32 0.044715, %v9783_v3  ;;  %v2201_v25 = vmul.f32 0.5, %v13751_v2  ;;  %v13752_v5 = vld [vmem:[#allocation63_spill] sm:$0xff]  ;;  %v9818_v2 = vpop.f32.mrf.mxu0 }
 0x1ed   : > { %13749 = vst [vmem:[#allocation87_spill] sm:$0xff] %v9804_v56  ;;  %v2209_v12 = vmul.f32 0.5, %v13752_v5  ;;  %v7058_v21 = vpop.eup %7057  ;;  %v3994_v60 = vadd.f32 1.0, %v7056_v62  ;;  %v2841_v26 = vmul.f32 %v2585_v54, %v9742_v41  ;;  %v13753_v7 = vld [vmem:[#allocation6_spill] sm:$0xff]  ;;  %v13755_v15 = vld [vmem:[#allocation91_spill] sm:$0xff]  ;;  %v13757_v59 = vld [vmem:[#allocation21_spill] sm:$0xff]  ;;  %v9820_v5 = vpop.f32.mrf.mxu1 }
 0x1ee   : > { %v4003_v14 = vadd.f32 1.0, %v13753_v7  ;;  %v3242_v43 = vadd.f32 %v13755_v15, %v13754_v61  ;;  %v4002_v32 = vadd.f32 1.0, %v7058_v21  ;;  %v4249_v58 = vmul.f32 %v3993_v39, %v2201_v25  ;;  %v13756_v9 = vld [vmem:[#allocation55_spill] sm:$0xff]  ;;  %13759 = vst [vmem:[#allocation95_spill] sm:$0xff] %v9820_v5  ;;  %v13764_v4 = vld [vmem:[#allocation84_spill] sm:$0xff]  ;;  %v13765_v5 = vld [vmem:[#allocation97_spill] sm:$0xff] }
 0x1ef   : > { %v7060_v53 = vpop.eup %7059  ;;  %v2203_v19 = vmul.f32 0.5, %v13756_v9  ;;  %v3250_v22 = vadd.f32 %v13758_v55, %v13757_v59  ;;  %v4257_v54 = vmul.f32 %v4001_v29, %v2209_v12  ;;  %v2211_v7 = vmul.f32 0.5, %v13760_v63  ;;  %v13768_v12 = vld [vmem:[#allocation99_spill] sm:$0xff] }
 0x1f0   : > { %v7062_v62 = vpop.eup %7061  ;;  %v3996_v24 = vadd.f32 1.0, %v7060_v53  ;;  %v3995_v46 = vadd.f32 1.0, %v13761_v44  ;;  %v4250_v21 = vmul.f32 %v3994_v60, %v2202_v31  ;;  %v4258_v39 = vmul.f32 %v4002_v32, %v2210_v16  ;;  %v13767_v44 = vld [vmem:[#allocation89_spill] sm:$0xff]  ;;  %v9834_v31 = vpop.f32.mrf.mxu0 }
 0x1f1   : > { %v9824_v15 = vpop.eup %7063  ;;  %v4004_v25 = vadd.f32 1.0, %v7062_v62  ;;  %v3498_v9 = vmul.f32 0.7978846, %v3242_v43  ;;  %v4259_v42 = vmul.f32 %v4003_v14, %v2211_v7  ;;  %v3506_v18 = vmul.f32 0.7978846, %v3250_v22  ;;  %v9836_v16 = vpop.f32.mrf.mxu1 }
 0x1f2   : > { %13762 = vst [vmem:[#allocation54_spill] sm:$0xff] %v9824_v15  ;;  %v9826_v37 = vpop.eup %7065  ;;  %v4252_v55 = vmul.f32 %v3996_v24, %v2204_v27  ;;  %v3244_v59 = vadd.f32 %v13765_v5, %v13764_v4  ;;  %v4522_v29 = vpack.c.bf16 %v4258_v39, %v4250_v21  ;;  %v3252_v15 = vadd.f32 %v13768_v12, %v13767_v44  ;;  %v6889_v7 = vld [vmem:[%s13140_s3 + $0x2b0] ss:$8 sps:$4 sm:$0xff]  }
 0x1f3   : > { %13763 = vst [vmem:[#allocation63_spill] sm:$0xff] %v9826_v37  ;;  %v9830_v53 = vpop.eup %7067  ;;  %v4260_v63 = vmul.f32 %v4004_v25, %v2212_v1  ;;  %7069 = vtanh.f32 %v3498_v9  ;;  %v4521_v43 = vpack.c.bf16 %v4257_v54, %v4249_v58  ;;  %v4251_v60 = vmul.f32 %v3995_v46, %v2203_v19 }
 0x1f4   : > { %13766 = vst [vmem:[#allocation6_spill] sm:$0xff] %v9830_v53  ;;  %7071 = vtanh.f32 %v3506_v18  ;;  %v3500_v14 = vmul.f32 0.7978846, %v3244_v59  ;;  %5466 = vmatprep.mubr.bf16.mxu0 %v4522_v29  ;;  %v3347_v24 = vadd.f32 %v3091_v51, %v9702_v17  ;;  %v3508_v27 = vmul.f32 0.7978846, %v3252_v15  ;;  %v9856_v51 = vpop.f32.mrf.mxu1 }
 0x1f5   : > { %v4524_v22 = vpack.c.bf16 %v4260_v63, %v4252_v55  ;;  %v9841_v1 = vadd.f32 %v9760_v45, %v8287_v10  ;;  %v2843_v32 = vmul.f32 %v2587_v0, %v9783_v3  ;;  %5467 = vmatmul.mubr.bf16.gmra.mxu0 %v4521_v43  ;;  %v4523_v5 = vpack.c.bf16 %v4259_v42, %v4251_v60  ;;  %v9854_v45 = vpop.f32.mrf.mxu0 }
 0x1f6   : > { %7073 = vtanh.f32 %v3500_v14  ;;  %v9846_v58 = vadd.f32 %v9762_v49, %v8289_v11  ;;  %v2826_v46 = vmul.f32 %v2570_v35, %v9758_v40  ;;  %v9851_v59 = vadd.f32 %v9683_v47, %v8329_v6  ;;  %v9891_v54 = vpop.f32.mrf.mxu1 }
 0x1f7   : > { %13769 = vst [vmem:[#allocation83_spill] sm:$0xff] %v9841_v1  ;;  %5659 = vmatprep.mubr.bf16.mxu1 %v4524_v22  ;;  %v3097_v18 = vmul.f32 %v2841_v26, %v9742_v41  ;;  %7075 = vtanh.f32 %v3508_v27  ;;  %v9861_v42 = vmul.f32 %v9754_v33, %v9662_v8  ;;  %v2828_v49 = vmul.f32 %v9799_v13, %v9774_v57  ;;  %v6886_v13 = vld [vmem:[%s13140_s3 + $0x3c0] ss:$8 sps:$4 sm:$0xff]   ;;  %v9889_v62 = vpop.f32.mrf.mxu0 }
 0x1f8   : > { %13770 = vst [vmem:[#allocation91_spill] sm:$0xff] %v9846_v58  ;;  %13771 = vst [vmem:[#allocation55_spill] sm:$0xff] %v9851_v59  ;;  %7077 = vtanh.f32 %v9767_v38  ;;  %v3601_v35 = vmul.f32 0.7978846, %v3345_v50  ;;  %5660 = vmatmul.mubr.bf16.gmra.mxu1 %v4523_v5  ;;  %v3603_v47 = vmul.f32 0.7978846, %v3347_v24  ;;  %v9870_v19 = vmul.f32 %v9770_v30, %v9665_v20  ;;  %v9934_v27 = vpop.f32.mrf.mxu1 }
 0x1f9   : > { %13772 = vst [vmem:[#allocation98_spill] sm:$0xff] %v9861_v42  ;;  %7079 = vtanh.f32 %v9777_v23  ;;  %v2578_v26 = vmul.f32 0.044715, %v9804_v56  ;;  %v2593_v0 = vmul.f32 0.044715, %v9841_v1  ;;  %v3099_v33 = vmul.f32 %v2843_v32, %v9783_v3  ;;  %v9932_v24 = vpop.f32.mrf.mxu0  ;;  %v13795_v20 = vld [vmem:[#allocation39_spill] sm:$0xff] }
 0x1fa   : > { %13773 = vst [vmem:[#allocation65_spill] sm:$0xff] %v9870_v19  ;;  %7081 = vtanh.f32 %v9779_v48  ;;  %v2595_v38 = vmul.f32 0.044715, %v9846_v58  ;;  %v6888_v23 = vld [vmem:[%s13140_s3 + $0x3c4] ss:$8 sps:$4 sm:$0xff]   ;;  %v9883_v50 = vmul.f32 %v2826_v46, %v9758_v40  ;;  %v3353_v48 = vadd.f32 %v3097_v18, %v9742_v41  ;;  %v13794_v19 = vld [vmem:[#allocation93_spill] sm:$0xff] }
 0x1fb   : > { %7083 = vtanh.f32 %v9785_v28  ;;  %v9886_v30 = vmul.f32 0.044715, %v9851_v59  ;;  %v6891_v28 = vld [vmem:[%s13140_s3 + $0x2b4] ss:$8 sps:$4 sm:$0xff]   ;;  %v9900_v15 = vmul.f32 %v2828_v49, %v9774_v57  ;;  %v9904_v21 = vadd.f32 %v9718_v52, %v8327_v36  ;;  %5975 = vmatprep.subr.bf16.mxu1 %v6888_v23  ;;  %v9956_v17 = vpop.f32.mrf.mxu0  ;;  %v13790_v57 = vld [vmem:[#allocation31_spill] sm:$0xff] }
 0x1fc   : > { %13774 = vst [vmem:[#allocation10_spill] sm:$0xff] %v9883_v50  ;;  %7085 = vtanh.f32 %v3601_v35  ;;  %v9908_v39 = vadd.f32 %v9720_v34, %v8329_v6  ;;  %v9911_v25 = vmul.f32 %v2578_v26, %v9804_v56  ;;  %v2218_v9 = vmul.f32 0.5, %v13754_v61  ;;  %5976 = vmatpush2.bf16.msra.mxu1 %v6886_v13  ;;  %v13779_v52 = vld [vmem:[#allocation21_spill] sm:$0xff]  ;;  %5784 = vmatprep.subr.bf16.mxu0 %v6891_v28  ;;  %v13780_v61 = vld [vmem:[#allocation95_spill] sm:$0xff] }
 0x1fd   : > { %13775 = vst [vmem:[#allocation84_spill] sm:$0xff] %v9900_v15  ;;  %13776 = vst [vmem:[#allocation97_spill] sm:$0xff] %v9904_v21  ;;  %7087 = vtanh.f32 %v3603_v47  ;;  %v9916_v55 = vadd.f32 %v9818_v2, %v8287_v10  ;;  %v9919_v29 = vadd.f32 %v3099_v33, %v9783_v3  ;;  %v2226_v63 = vmul.f32 0.5, %v13779_v52  ;;  %v13782_v2 = vld [vmem:[#allocation14_spill] sm:$0xff]  ;;  %5785 = vmatpush2.bf16.msra.mxu0 %v6889_v7 }
 0x1fe   : > { %13777 = vst [vmem:[#allocation89_spill] sm:$0xff] %v9908_v39  ;;  %v2849_v34 = vmul.f32 %v2593_v0, %v9841_v1  ;;  %v2851_v12 = vmul.f32 %v2595_v38, %v9846_v58  ;;  %v9924_v43 = vmul.f32 0.7978846, %v3353_v48  ;;  %v2220_v60 = vmul.f32 0.5, %v13764_v4  ;;  %v13783_v4 = vld [vmem:[#allocation16_spill] sm:$0xff]  ;;  %v13785_v0 = vld [vmem:[#allocation73_spill] sm:$0xff] }
 0x1ff   : > { %13778 = vst [vmem:[#allocation99_spill] sm:$0xff] %v9916_v55  ;;  %v9929_v14 = vadd.f32 %v13780_v61, %v8289_v11  ;;  %v4017_v22 = vadd.f32 1.0, %v13782_v2  ;;  %v2228_v5 = vmul.f32 0.5, %v13767_v44  ;;  %v9938_v46 = vmul.f32 0.044715, %v9904_v21  ;;  %v13786_v38 = vld [vmem:[#allocation4_spill] sm:$0xff] }
 0x200   : > { %v7070_v32 = vpop.eup %7069  ;;  %v9941_v18 = vmul.f32 0.044715, %v9908_v39  ;;  %v9945_v49 = vadd.f32 %v13783_v4, %v8327_v36  ;;  %v2601_v26 = vmul.f32 0.044715, %v9916_v55  ;;  %v2225_v33 = vmul.f32 0.5, %v13785_v0  ;;  %v13787_v7 = vld [vmem:[#allocation26_spill] sm:$0xff]  ;;  %v9958_v0 = vpop.f32.mrf.mxu1 }
 0x201   : > { %13781 = vst [vmem:[#allocation21_spill] sm:$0xff] %v9929_v14  ;;  %v7072_v35 = vpop.eup %7071  ;;  %v4010_v47 = vadd.f32 1.0, %v7070_v32  ;;  %v4009_v13 = vadd.f32 1.0, %v13786_v38  ;;  %v3105_v44 = vmul.f32 %v2849_v34, %v9841_v1  ;;  %v3107_v48 = vmul.f32 %v2851_v12, %v9846_v58  ;;  %v13788_v2 = vld [vmem:[#allocation67_spill] sm:$0xff] }
 0x202   : > { %13784 = vst [vmem:[#allocation95_spill] sm:$0xff] %v9945_v49  ;;  %v4018_v23 = vadd.f32 1.0, %v7072_v35  ;;  %v4019_v28 = vadd.f32 1.0, %v13787_v7  ;;  %v2603_v61 = vmul.f32 0.044715, %v9929_v14  ;;  %v2217_v4 = vmul.f32 0.5, %v13788_v2 }
 0x203   : > { %v7074_v52 = vpop.eup %7073  ;;  %v4273_v3 = vmul.f32 %v4017_v22, %v2225_v33  ;;  %v13789_v32 = vld [vmem:[#allocation75_spill] sm:$0xff]  ;;  %v4266_v35 = vmul.f32 %v4010_v47, %v2218_v9  ;;  %v4011_v12 = vadd.f32 1.0, %v13790_v57  ;;  %v2857_v50 = vmul.f32 %v2601_v26, %v9916_v55  ;;  %v13792_v2 = vld [vmem:[#allocation72_spill] sm:$0xff] }
 0x204   : > { %v2227_v41 = vmul.f32 0.5, %v13789_v32  ;;  %v7076_v38 = vpop.eup %7075  ;;  %v4274_v15 = vmul.f32 %v4018_v23, %v2226_v63  ;;  %v4012_v34 = vadd.f32 1.0, %v7074_v52  ;;  %v4265_v40 = vmul.f32 %v4009_v13, %v2217_v4  ;;  %v13796_v9 = vld [vmem:[#allocation3_spill] sm:$0xff]  ;;  %v13797_v63 = vld [vmem:[#allocation45_spill] sm:$0xff]  ;;  %v13800_v26 = vld [vmem:[#allocation32_spill] sm:$0xff]  ;;  %v9975_v4 = vpop.f32.mrf.mxu0 }
 0x205   : > { %v9961_v53 = vpop.eup %7077  ;;  %v4020_v7 = vadd.f32 1.0, %v7076_v38  ;;  %v2219_v22 = vmul.f32 0.5, %v13792_v2  ;;  %v3258_v42 = vadd.f32 %v13795_v20, %v13794_v19  ;;  %v3266_v47 = vadd.f32 %v13797_v63, %v13796_v9  ;;  %v9977_v2 = vpop.f32.mrf.mxu1  ;;  %v13803_v63 = vld [vmem:[#allocation28_spill] sm:$0xff] }
 0x206   : > { %13791 = vst [vmem:[#allocation14_spill] sm:$0xff] %v9961_v53  ;;  %v9965_v33 = vpop.eup %7079  ;;  %v4530_v32 = vpack.c.bf16 %v4274_v15, %v4266_v35  ;;  %v4275_v37 = vmul.f32 %v4019_v28, %v2227_v41  ;;  %v4268_v57 = vmul.f32 %v4012_v34, %v2220_v60  ;;  %v4529_v38 = vpack.c.bf16 %v4273_v3, %v4265_v40  ;;  %v13799_v53 = vld [vmem:[#allocation5_spill] sm:$0xff]  ;;  %v13802_v35 = vld [vmem:[#allocation23_spill] sm:$0xff]  ;;  %v13805_v3 = vld [vmem:[#allocation88_spill] sm:$0xff] }
 0x207   : > { %13793 = vst [vmem:[#allocation16_spill] sm:$0xff] %v9965_v33  ;;  %v9971_v23 = vpop.eup %7081  ;;  %v4276_v52 = vmul.f32 %v4020_v7, %v2228_v5  ;;  %v3260_v13 = vadd.f32 %v13800_v26, %v13799_v53  ;;  %v4267_v41 = vmul.f32 %v4011_v12, %v2219_v22  ;;  %v3514_v20 = vmul.f32 0.7978846, %v3258_v42  ;;  %v13811_v26 = vld [vmem:[#allocation2_spill] sm:$0xff] }
 0x208   : > { %13798 = vst [vmem:[#allocation73_spill] sm:$0xff] %v9971_v23  ;;  %v9979_v15 = vpop.eup %7083  ;;  %5476 = vmatprep.mubr.bf16.mxu0 %v4530_v32  ;;  %v3522_v28 = vmul.f32 0.7978846, %v3266_v47  ;;  %v3268_v33 = vadd.f32 %v13803_v63, %v13802_v35  ;;  %v3361_v40 = vadd.f32 %v3105_v44, %v9841_v1  ;;  %v9988_v5 = vadd.f32 %v13805_v3, %v8329_v6  ;;  %v10039_v3 = vld [vmem:[%s13139_s2] sm:$0xff] }
 0x209   : > { %13801 = vst [vmem:[#allocation4_spill] sm:$0xff] %v9979_v15  ;;  %v9983_v23 = vpop.eup %7085  ;;  %v4532_v60 = vpack.c.bf16 %v4276_v52, %v4268_v57  ;;  %5477 = vmatmul.mubr.bf16.gmra.mxu0 %v4529_v38  ;;  %v3516_v34 = vmul.f32 0.7978846, %v3260_v13  ;;  %v3363_v12 = vadd.f32 %v3107_v48, %v9846_v58  ;;  %v4531_v42 = vpack.c.bf16 %v4275_v37, %v4267_v41  ;;  %v9997_v57 = vpop.f32.mrf.mxu0 }
 0x20a   : > { %13804 = vst [vmem:[#allocation26_spill] sm:$0xff] %v9983_v23  ;;  %13806 = vst [vmem:[#allocation67_spill] sm:$0xff] %v9988_v5  ;;  %v9990_v7 = vpop.eup %7087  ;;  %7089 = vtanh.f32 %v3514_v20  ;;  %v3524_v22 = vmul.f32 0.7978846, %v3268_v33  ;;  %v2836_v32 = vmul.f32 %v9886_v30, %v9851_v59  ;;  %v3611_v47 = vmul.f32 0.7978846, %v9919_v29  ;;  %v9999_v52 = vpop.f32.mrf.mxu1 }
 0x20b   : > { %13807 = vst [vmem:[#allocation75_spill] sm:$0xff] %v9990_v7  ;;  %5669 = vmatprep.mubr.bf16.mxu1 %v4532_v60  ;;  %v2859_v44 = vmul.f32 %v2603_v61, %v9929_v14  ;;  %7091 = vtanh.f32 %v3522_v28  ;;  %13808 = vst [vmem:[#allocation31_spill] sm:$0xff] %v9997_v57  ;;  %v2842_v38 = vmul.f32 %v9938_v46, %v9904_v21  ;;  %v2594_v29 = vmul.f32 0.044715, %v9945_v49  ;;  %v10019_v41 = vpop.f32.mrf.mxu0  ;;  %v6894_v28 = vld [vmem:[%s13140_s3 + $0x3b4] ss:$8 sps:$4 sm:$0xff]  }
 0x20c   : > { %13809 = vst [vmem:[#allocation72_spill] sm:$0xff] %v9999_v52  ;;  %v2844_v37 = vmul.f32 %v9941_v18, %v9908_v39  ;;  %v3113_v48 = vmul.f32 %v2857_v50, %v9916_v55  ;;  %5670 = vmatmul.mubr.bf16.gmra.mxu1 %v4531_v42  ;;  %7093 = vtanh.f32 %v3516_v34  ;;  %v10008_v30 = vmul.f32 %v9911_v25, %v9804_v56  ;;  %v10021_v20 = vpop.f32.mrf.mxu1  ;;  %v6897_v42 = vld [vmem:[%s13140_s3 + $0x2a4] ss:$8 sps:$4 sm:$0xff]  }
 0x20d   : > { %v2596_v61 = vmul.f32 0.044715, %v9988_v5  ;;  %7095 = vtanh.f32 %v3524_v22  ;;  %v3617_v33 = vmul.f32 0.7978846, %v3361_v40  ;;  %v3619_v46 = vmul.f32 0.7978846, %v3363_v12  ;;  %5977 = vmatprep.subr.bf16.mxu1 %v6894_v28  ;;  %5786 = vmatprep.subr.bf16.mxu0 %v6897_v42 }
 0x20e   : > { %13810 = vst [vmem:[#allocation93_spill] sm:$0xff] %v10008_v30  ;;  %7097 = vtanh.f32 %v9924_v43  ;;  %v511_v13 = vsub.s32 4, %v13811_v26  ;;  %v10015_v18 = vmul.f32 %v2836_v32, %v9851_v59  ;;  %v3115_v50 = vmul.f32 %v2859_v44, %v9929_v14  ;;  %13813 = vst [vmem:[#allocation3_spill] sm:$0xff] %v10021_v20  ;;  %v6892_v43 = vld [vmem:[%s13140_s3 + $0x3b0] ss:$8 sps:$4 sm:$0xff]  }
 0x20f   : > { %7099 = vtanh.f32 %v3611_v47  ;;  %v519_v25 = vsub.s32 6, %v13811_v26  ;;  %v10030_v63 = vmul.f32 %v2842_v38, %v9904_v21  ;;  %v10033_v60 = vmul.f32 %v2844_v37, %v9908_v39  ;;  %v6895_v12 = vld [vmem:[%s13140_s3 + $0x2a0] ss:$8 sps:$4 sm:$0xff]   ;;  %5978 = vmatpush2.bf16.msra.mxu1 %v6892_v43  ;;  %v13824_v28 = vld [vmem:[#allocation9_spill] sm:$0xff]  ;;  %v13831_v21 = vld [vmem:[#allocation12_spill] sm:$0xff] }
 0x210   : > { %13812 = vst [vmem:[#allocation39_spill] sm:$0xff] %v10015_v18  ;;  %v3369_v40 = vadd.f32 %v3113_v48, %v9916_v55  ;;  %v10042_v34 = vrot.slane %v10039_v3, %v511_v13  ;;  %v10051_v22 = vmul.f32 %v2594_v29, %v9945_v49  ;;  %v10055_v32 = vadd.f32 %v9834_v31, %v8327_v36  ;;  %v13822_v13 = vld [vmem:[#allocation27_spill] sm:$0xff]  ;;  %v13830_v39 = vld [vmem:[#allocation18_spill] sm:$0xff]  ;;  %v13834_v30 = vld [vmem:[#allocation41_spill] sm:$0xff] }
 0x211   : > { %13814 = vst [vmem:[#allocation45_spill] sm:$0xff] %v10030_v63  ;;  %13815 = vst [vmem:[#allocation5_spill] sm:$0xff] %v10033_v60  ;;  %v10059_v47 = vadd.f32 %v9836_v16, %v8329_v6  ;;  %v10062_v44 = vrot.slane %v10039_v3, %v519_v25  ;;  %7101 = vtanh.f32 %v3617_v33  ;;  %v10065_v38 = vmul.f32 %v2596_v61, %v9988_v5 }
 0x212   : > { %13816 = vst [vmem:[#allocation32_spill] sm:$0xff] %v10055_v32  ;;  %v10069_v37 = vadd.f32 %v9854_v45, %v8287_v10  ;;  %v10073_v31 = vadd.f32 %v9932_v24, %v10042_v34  ;;  %7103 = vtanh.f32 %v3619_v46  ;;  %v10076_v16 = vadd.f32 %v3115_v50, %v9929_v14  ;;  %v10086_v10 = vpop.f32.mrf.mxu0  ;;  %v10088_v45 = vpop.f32.mrf.mxu1  ;;  %5787 = vmatpush2.bf16.msra.mxu0 %v6895_v12  ;;  %v13825_v12 = vld [vmem:[#allocation86_spill] sm:$0xff]  ;;  %v13826_v14 = vld [vmem:[#allocation59_spill] sm:$0xff] }
 0x213   : > { %13817 = vst [vmem:[#allocation23_spill] sm:$0xff] %v10059_v47  ;;  %v10080_v48 = vadd.f32 %v9856_v51, %v8289_v11  ;;  %v10084_v29 = vadd.f32 %v9934_v27, %v10062_v44  ;;  %13820 = vst [vmem:[#allocation110_spill] sm:$0xff] %v10086_v10  ;;  %v10090_v24 = vmul.f32 0.7978846, %v3369_v40  ;;  %v2234_v61 = vmul.f32 0.5, %v13794_v19  ;;  %v13835_v10 = vld [vmem:[#allocation15_spill] sm:$0xff] }
 0x214   : > { %13818 = vst [vmem:[#allocation28_spill] sm:$0xff] %v10069_v37  ;;  %13821 = vst [vmem:[#allocation111_spill] sm:$0xff] %v10088_v45  ;;  %v2242_v33 = vmul.f32 0.5, %v13796_v9  ;;  %v2236_v46 = vmul.f32 0.5, %v13799_v53  ;;  %v2244_v11 = vmul.f32 0.5, %v13802_v35  ;;  %v4033_v50 = vadd.f32 1.0, %v13822_v13  ;;  %v10114_v13 = vpop.f32.mrf.mxu0  ;;  %v10116_v58 = vpop.f32.mrf.mxu1 }
 0x215   : > { %13819 = vst [vmem:[#allocation88_spill] sm:$0xff] %v10080_v48  ;;  %v10097_v51 = vmul.f32 0.044715, %v10055_v32  ;;  %v10100_v27 = vmul.f32 0.044715, %v10059_v47  ;;  %v10106_v43 = vadd.f32 %v9889_v62, %v8327_v36  ;;  %v2233_v40 = vmul.f32 0.5, %v13824_v28 }
 0x216   : > { %v2609_v25 = vmul.f32 0.044715, %v10069_v37  ;;  %v2365_v19 = vmul.f32 0.044715, %v10073_v31  ;;  %v2367_v53 = vmul.f32 0.044715, %v10084_v29 }
 0x217   : > { %13823 = vst [vmem:[#allocation27_spill] sm:$0xff] %v10106_v43  ;;  %v7090_v9 = vpop.eup %7089  ;;  %v2611_v35 = vmul.f32 0.044715, %v10080_v48  ;;  %v2241_v42 = vmul.f32 0.5, %v13825_v12  ;;  %v4035_v55 = vadd.f32 1.0, %v13826_v14  ;;  %13827 = vst [vmem:[#allocation9_spill] sm:$0xff] %v10114_v13 }
 0x218   : > { %13828 = vst [vmem:[#allocation86_spill] sm:$0xff] %v10116_v58  ;;  %v7092_v1 = vpop.eup %7091  ;;  %v4026_v36 = vadd.f32 1.0, %v7090_v9  ;;  %v13829_v62 = vld [vmem:[#allocation53_spill] sm:$0xff]  ;;  %v2235_v63 = vmul.f32 0.5, %v13830_v39  ;;  %v4027_v15 = vadd.f32 1.0, %v13831_v21  ;;  %v13832_v28 = vld [vmem:[#allocation90_spill] sm:$0xff]  ;;  %v2621_v45 = vmul.f32 %v2365_v19, %v10073_v31 }
 0x219   : > { %v4025_v60 = vadd.f32 1.0, %v13829_v62  ;;  %v7094_v7 = vpop.eup %7093  ;;  %v4034_v23 = vadd.f32 1.0, %v7092_v1  ;;  %v4289_v18 = vmul.f32 %v4033_v50, %v2241_v42  ;;  %v2243_v59 = vmul.f32 0.5, %v13832_v28  ;;  %v13833_v12 = vld [vmem:[#allocation100_spill] sm:$0xff]  ;;  %v13836_v62 = vld [vmem:[#allocation58_spill] sm:$0xff]  ;;  %v10130_v42 = vpop.f32.mrf.mxu0 }
 0x21a   : > { %v3274_v14 = vadd.f32 %v13834_v30, %v13833_v12  ;;  %v7096_v56 = vpop.eup %7095  ;;  %v4028_v8 = vadd.f32 1.0, %v7094_v7  ;;  %v2623_v9 = vmul.f32 %v2367_v53, %v10084_v29  ;;  %v3282_v58 = vadd.f32 %v13836_v62, %v13835_v10  ;;  %v10132_v28 = vpop.f32.mrf.mxu1 }
 0x21b   : > { %v10128_v39 = vpop.eup %7097  ;;  %v4282_v21 = vmul.f32 %v4026_v36, %v2234_v61  ;;  %v4290_v13 = vmul.f32 %v4034_v23, %v2242_v33  ;;  %v4036_v1 = vadd.f32 1.0, %v7096_v56  ;;  %v4291_v50 = vmul.f32 %v4035_v55, %v2243_v59  ;;  %v13840_v59 = vld [vmem:[#allocation42_spill] sm:$0xff]  ;;  %v13842_v33 = vld [vmem:[#allocation17_spill] sm:$0xff]  ;;  %v13843_v36 = vld [vmem:[#allocation48_spill] sm:$0xff] }
 0x21c   : > { %13837 = vst [vmem:[#allocation59_spill] sm:$0xff] %v10128_v39  ;;  %v10134_v30 = vpop.eup %7099  ;;  %v2865_v7 = vmul.f32 %v2609_v25, %v10069_v37  ;;  %v4281_v19 = vmul.f32 %v4025_v60, %v2233_v40  ;;  %v4283_v20 = vmul.f32 %v4027_v15, %v2235_v63  ;;  %v3530_v53 = vmul.f32 0.7978846, %v3274_v14  ;;  %v13841_v55 = vld [vmem:[#allocation34_spill] sm:$0xff]  ;;  %v10149_v60 = vpop.f32.mrf.mxu0 }
 0x21d   : > { %13838 = vst [vmem:[#allocation53_spill] sm:$0xff] %v10134_v30  ;;  %v4538_v52 = vpack.c.bf16 %v4290_v13, %v4282_v21  ;;  %v4284_v57 = vmul.f32 %v4028_v8, %v2236_v46  ;;  %v4292_v62 = vmul.f32 %v4036_v1, %v2244_v11  ;;  %v3538_v10 = vmul.f32 0.7978846, %v3282_v58 }
 0x21e   : > { %v10139_v23 = vadd.f32 %v9891_v54, %v8329_v6  ;;  %v4537_v56 = vpack.c.bf16 %v4289_v18, %v4281_v19  ;;  %v3276_v61 = vadd.f32 %v13841_v55, %v13840_v59  ;;  %v3284_v30 = vadd.f32 %v13843_v36, %v13842_v33  ;;  %v10145_v39 = vpop.eup %7101  ;;  %v10151_v6 = vpop.f32.mrf.mxu1 }
 0x21f   : > { %13844 = vst [vmem:[#allocation12_spill] sm:$0xff] %v10145_v39  ;;  %5486 = vmatprep.mubr.bf16.mxu0 %v4538_v52  ;;  %v4540_v15 = vpack.c.bf16 %v4292_v62, %v4284_v57  ;;  %v2877_v63 = vmul.f32 %v2621_v45, %v10073_v31  ;;  %v2879_v8 = vmul.f32 %v2623_v9, %v10084_v29  ;;  %v10153_v54 = vpop.eup %7103  ;;  %7105 = vtanh.f32 %v3530_v53  ;;  %v13873_v39 = vld [vmem:[#allocation66_spill] sm:$0xff] }
 0x220   : > { %13839 = vst [vmem:[#allocation18_spill] sm:$0xff] %v10139_v23  ;;  %v4539_v58 = vpack.c.bf16 %v4291_v50, %v4283_v20  ;;  %13845 = vst [vmem:[#allocation90_spill] sm:$0xff] %v10153_v54  ;;  %5487 = vmatmul.mubr.bf16.gmra.mxu0 %v4537_v56  ;;  %v3532_v18 = vmul.f32 0.7978846, %v3276_v61  ;;  %v3540_v46 = vmul.f32 0.7978846, %v3284_v30  ;;  %v10157_v11 = vadd.f32 %v9975_v4, %v10042_v34 }
 0x221   : > { %5679 = vmatprep.mubr.bf16.mxu1 %v4540_v15  ;;  %v3121_v57 = vmul.f32 %v2865_v7, %v10069_v37  ;;  %v2867_v52 = vmul.f32 %v2611_v35, %v10080_v48  ;;  %v2610_v20 = vmul.f32 0.044715, %v10106_v43  ;;  %7107 = vtanh.f32 %v3538_v10  ;;  %v10171_v35 = vpop.f32.mrf.mxu0  ;;  %v10173_v10 = vpop.f32.mrf.mxu1  ;;  %v6903_v15 = vld [vmem:[%s13140_s3 + $0x294] ss:$8 sps:$4 sm:$0xff]  }
 0x222   : > { %5680 = vmatmul.mubr.bf16.gmra.mxu1 %v4539_v58  ;;  %7109 = vtanh.f32 %v3532_v18  ;;  %v515_v45 = vsub.s32 5, %v13811_v26  ;;  %v523_v25 = vsub.s32 7, %v13811_v26  ;;  %v2373_v40 = vmul.f32 0.044715, %v10157_v11  ;;  %13847 = vst [vmem:[#allocation41_spill] sm:$0xff] %v10173_v10  ;;  %5788 = vmatprep.subr.bf16.mxu0 %v6903_v15  ;;  %v13865_v15 = vld [vmem:[#allocation33_spill] sm:$0xff] }
 0x223   : > { %v10167_v4 = vmul.f32 %v10051_v22, %v9945_v49  ;;  %v3627_v13 = vmul.f32 0.7978846, %v10076_v16  ;;  %v3133_v14 = vadd.f32 %v2877_v63, %v10073_v31  ;;  %7111 = vtanh.f32 %v3540_v46  ;;  %v6898_v22 = vld [vmem:[%s13140_s3 + $0x3a0] ss:$8 sps:$4 sm:$0xff]   ;;  %v6900_v16 = vld [vmem:[%s13140_s3 + $0x3a4] ss:$8 sps:$4 sm:$0xff]   ;;  %v10210_v36 = vpop.f32.mrf.mxu0 }
 0x224   : > { %7113 = vtanh.f32 %v10090_v24  ;;  %v2858_v9 = vmul.f32 %v10097_v51, %v10055_v32  ;;  %v3135_v21 = vadd.f32 %v2879_v8, %v10084_v29  ;;  %v2629_v1 = vmul.f32 %v2373_v40, %v10157_v11  ;;  %5979 = vmatprep.subr.bf16.mxu1 %v6900_v16  ;;  %v13872_v54 = vld [vmem:[#allocation96_spill] sm:$0xff] }
 0x225   : > { %13846 = vst [vmem:[#allocation100_spill] sm:$0xff] %v10167_v4  ;;  %v2860_v50 = vmul.f32 %v10100_v27, %v10059_v47  ;;  %v3123_v24 = vmul.f32 %v2867_v52, %v10080_v48  ;;  %v2866_v30 = vmul.f32 %v2610_v20, %v10106_v43  ;;  %v2612_v51 = vmul.f32 0.044715, %v10139_v23  ;;  %v6901_v27 = vld [vmem:[%s13140_s3 + $0x290] ss:$8 sps:$4 sm:$0xff]   ;;  %5980 = vmatpush2.bf16.msra.mxu1 %v6898_v22  ;;  %v13859_v22 = vld [vmem:[#allocation31_spill] sm:$0xff] }
 0x226   : > { %v3377_v7 = vadd.f32 %v3121_v57, %v10069_v37  ;;  %v10193_v19 = vrot.slane %v10039_v3, %v515_v45  ;;  %v10196_v53 = vrot.slane %v10039_v3, %v523_v25  ;;  %v2885_v62 = vmul.f32 %v2629_v1, %v10157_v11  ;;  %v10212_v3 = vpop.f32.mrf.mxu1  ;;  %5789 = vmatpush2.bf16.msra.mxu0 %v6901_v27  ;;  %v13856_v25 = vld [vmem:[#allocation15_spill] sm:$0xff] }
 0x227   : > { %v10204_v56 = vmul.f32 %v10065_v38, %v9988_v5  ;;  %7115 = vtanh.f32 %v3627_v13  ;;  %v3389_v55 = vmul.f32 0.7978846, %v3133_v14  ;;  %v10208_v61 = vadd.f32 %v9977_v2, %v10062_v44  ;;  %v13874_v5 = vld [vmem:[#allocation46_spill] sm:$0xff] }
 0x228   : > { %13848 = vst [vmem:[#allocation58_spill] sm:$0xff] %v10196_v53  ;;  %v10218_v63 = vmul.f32 %v2858_v9, %v10055_v32  ;;  %v3391_v38 = vmul.f32 0.7978846, %v3135_v21  ;;  %v3141_v8 = vadd.f32 %v2885_v62, %v10157_v11  ;;  %v10223_v58 = vadd.f32 %v10019_v41, %v10042_v34  ;;  %v10251_v9 = vpop.f32.mrf.mxu0  ;;  %v10253_v21 = vpop.f32.mrf.mxu1 }
 0x229   : > { %13849 = vst [vmem:[#allocation42_spill] sm:$0xff] %v10204_v56  ;;  %v10226_v2 = vmul.f32 %v2860_v50, %v10059_v47  ;;  %v10229_v18 = vadd.f32 %v3123_v24, %v10080_v48  ;;  %v10232_v46 = vmul.f32 %v2866_v30, %v10106_v43  ;;  %v10235_v57 = vmul.f32 %v2612_v51, %v10139_v23  ;;  %v13861_v50 = vld [vmem:[#allocation72_spill] sm:$0xff]  ;;  %v13863_v24 = vld [vmem:[#allocation25_spill] sm:$0xff]  ;;  %v13864_v51 = vld [vmem:[#allocation38_spill] sm:$0xff] }
 0x22a   : > { %13850 = vst [vmem:[#allocation34_spill] sm:$0xff] %v10218_v63  ;;  %13851 = vst [vmem:[#allocation17_spill] sm:$0xff] %v10223_v58  ;;  %v10237_v52 = vmul.f32 0.7978846, %v3377_v7  ;;  %v2250_v20 = vmul.f32 0.5, %v13833_v12  ;;  %v10242_v41 = vadd.f32 %v9956_v17, %v10193_v19  ;;  %v10246_v45 = vadd.f32 %v9958_v0, %v10196_v53  ;;  %v10280_v48 = vpop.f32.mrf.mxu0 }
 0x22b   : > { %13852 = vst [vmem:[#allocation48_spill] sm:$0xff] %v10226_v2  ;;  %13853 = vst [vmem:[#allocation112_spill] sm:$0xff] %v10232_v46  ;;  %7117 = vtanh.f32 %v3389_v55  ;;  %v2258_v40 = vmul.f32 0.5, %v13856_v25  ;;  %v2252_v13 = vmul.f32 0.5, %v13840_v59  ;;  %v2375_v14 = vmul.f32 0.044715, %v10208_v61 }
 0x22c   : > { %13854 = vst [vmem:[#allocation113_spill] sm:$0xff] %v10242_v41  ;;  %13855 = vst [vmem:[#allocation114_spill] sm:$0xff] %v10246_v45  ;;  %7119 = vtanh.f32 %v3391_v38  ;;  %v2260_v17 = vmul.f32 0.5, %v13842_v33  ;;  %v3397_v12 = vmul.f32 0.7978846, %v3141_v8  ;;  %v7106_v0 = vpop.eup %7105  ;;  %v10259_v16 = vadd.f32 %v13859_v22, %v10193_v19 }
 0x22d   : > { %13857 = vst [vmem:[#allocation15_spill] sm:$0xff] %v10251_v9  ;;  %13858 = vst [vmem:[#allocation115_spill] sm:$0xff] %v10253_v21  ;;  %v2381_v1 = vmul.f32 0.044715, %v10223_v58  ;;  %v10263_v59 = vadd.f32 %v13861_v50, %v10196_v53  ;;  %v4041_v30 = vadd.f32 1.0, %v13863_v24  ;;  %v4049_v7 = vadd.f32 1.0, %v13864_v51 }
 0x22e   : > { %13860 = vst [vmem:[#allocation31_spill] sm:$0xff] %v10259_v16  ;;  %v7108_v62 = vpop.eup %7107  ;;  %v4042_v27 = vadd.f32 1.0, %v7106_v0  ;;  %v10268_v33 = vmul.f32 0.044715, %v10242_v41  ;;  %v10271_v55 = vmul.f32 0.044715, %v10246_v45  ;;  %v2631_v22 = vmul.f32 %v2375_v14, %v10208_v61  ;;  %v10282_v0 = vpop.f32.mrf.mxu1 }
 0x22f   : > { %13862 = vst [vmem:[#allocation72_spill] sm:$0xff] %v10263_v59  ;;  %v2257_v38 = vmul.f32 0.5, %v13865_v15  ;;  %v7110_v8 = vpop.eup %7109  ;;  %v4050_v25 = vadd.f32 1.0, %v7108_v62  ;;  %v13866_v50 = vld [vmem:[#allocation3_spill] sm:$0xff]  ;;  %v13868_v24 = vld [vmem:[#allocation92_spill] sm:$0xff]  ;;  %13869 = vst [vmem:[#allocation38_spill] sm:$0xff] %v10282_v0  ;;  %7121 = vtanh.f32 %v3397_v12  ;;  %v2637_v47 = vmul.f32 %v2381_v1, %v10223_v58  ;;  %v10291_v1 = vpop.f32.mrf.mxu0 }
 0x230   : > { %v10277_v26 = vadd.f32 %v13866_v50, %v10062_v44  ;;  %v2249_v51 = vmul.f32 0.5, %v13868_v24  ;;  %v7112_v37 = vpop.eup %7111  ;;  %v4044_v2 = vadd.f32 1.0, %v7110_v8  ;;  %v4298_v62 = vmul.f32 %v4042_v27, %v2250_v20  ;;  %v13871_v50 = vld [vmem:[#allocation94_spill] sm:$0xff]  ;;  %13875 = vst [vmem:[#allocation3_spill] sm:$0xff] %v10291_v1  ;;  %v13879_v27 = vld [vmem:[#allocation105_spill] sm:$0xff] }
 0x231   : > { %v4305_v15 = vmul.f32 %v4049_v7, %v2257_v38  ;;  %v10285_v46 = vpop.eup %7113  ;;  %v4306_v14 = vmul.f32 %v4050_v25, %v2258_v40  ;;  %v4052_v43 = vadd.f32 1.0, %v7112_v37  ;;  %v2251_v32 = vmul.f32 0.5, %v13871_v50  ;;  %v10293_v7 = vpop.f32.mrf.mxu1  ;;  %v13881_v25 = vld [vmem:[#allocation64_spill] sm:$0xff] }
 0x232   : > { %13867 = vst [vmem:[#allocation25_spill] sm:$0xff] %v10277_v26  ;;  %13870 = vst [vmem:[#allocation33_spill] sm:$0xff] %v10285_v46  ;;  %v4297_v63 = vmul.f32 %v4041_v30, %v2249_v51  ;;  %v2259_v24 = vmul.f32 0.5, %v13872_v54  ;;  %v4043_v56 = vadd.f32 1.0, %v13873_v39  ;;  %v4051_v4 = vadd.f32 1.0, %v13874_v5  ;;  %v13878_v30 = vld [vmem:[#allocation20_spill] sm:$0xff]  ;;  %v10310_v50 = vpop.f32.mrf.mxu0 }
 0x233   : > { %v4546_v49 = vpack.c.bf16 %v4306_v14, %v4298_v62  ;;  %v4300_v8 = vmul.f32 %v4044_v2, %v2252_v13  ;;  %v4308_v12 = vmul.f32 %v4052_v43, %v2260_v17  ;;  %13876 = vst [vmem:[#allocation92_spill] sm:$0xff] %v10293_v7  ;;  %v3290_v38 = vadd.f32 %v13879_v27, %v13878_v30  ;;  %v13880_v54 = vld [vmem:[#allocation22_spill] sm:$0xff]  ;;  %v13883_v13 = vld [vmem:[#allocation49_spill] sm:$0xff] }
 0x234   : > { %v4545_v21 = vpack.c.bf16 %v4305_v15, %v4297_v63  ;;  %v10295_v20 = vpop.eup %7115  ;;  %v4299_v37 = vmul.f32 %v4043_v56, %v2251_v32  ;;  %v4307_v40 = vmul.f32 %v4051_v4, %v2259_v24  ;;  %v3298_v39 = vadd.f32 %v13881_v25, %v13880_v54  ;;  %v13882_v63 = vld [vmem:[#allocation24_spill] sm:$0xff]  ;;  %v13884_v4 = vld [vmem:[#allocation51_spill] sm:$0xff]  ;;  %v13885_v56 = vld [vmem:[#allocation30_spill] sm:$0xff]  ;;  %13886 = vst [vmem:[#allocation96_spill] sm:$0xff] %v10310_v50  ;;  %v10312_v24 = vpop.f32.mrf.mxu1 }
 0x235   : > { %13877 = vst [vmem:[#allocation94_spill] sm:$0xff] %v10295_v20  ;;  %5496 = vmatprep.mubr.bf16.mxu0 %v4546_v49  ;;  %v4548_v5 = vpack.c.bf16 %v4308_v12, %v4300_v8  ;;  %v2887_v2 = vmul.f32 %v2631_v22, %v10208_v61  ;;  %v2383_v43 = vmul.f32 0.044715, %v10277_v26  ;;  %v3292_v17 = vadd.f32 %v13883_v13, %v13882_v63  ;;  %v10333_v13 = vpop.f32.mrf.mxu0  ;;  %v13917_v20 = vld [vmem:[#allocation76_spill] sm:$0xff]  ;;  %v13924_v7 = vld [vmem:[#allocation13_spill] sm:$0xff]  ;;  %v13926_v50 = vld [vmem:[#allocation71_spill] sm:$0xff] }
 0x236   : > { %5497 = vmatmul.mubr.bf16.gmra.mxu0 %v4545_v21  ;;  %v4547_v51 = vpack.c.bf16 %v4307_v40, %v4299_v37  ;;  %v3546_v15 = vmul.f32 0.7978846, %v3290_v38  ;;  %v3554_v32 = vmul.f32 0.7978846, %v3298_v39  ;;  %v3300_v62 = vadd.f32 %v13885_v56, %v13884_v4  ;;  %13887 = vst [vmem:[#allocation66_spill] sm:$0xff] %v10312_v24  ;;  %v13888_v38 = vld [vmem:[#allocation9_spill] sm:$0xff] }
 0x237   : > { %7123 = vtanh.f32 %v10237_v52  ;;  %5689 = vmatprep.mubr.bf16.mxu1 %v4548_v5  ;;  %v2374_v49 = vmul.f32 0.044715, %v10259_v16  ;;  %v2376_v14 = vmul.f32 0.044715, %v10263_v59  ;;  %v3548_v22 = vmul.f32 0.7978846, %v3292_v17  ;;  %v10335_v17 = vpop.f32.mrf.mxu1 }
 0x238   : > { %v7118_v8 = vpop.eup %7117  ;;  %v3635_v21 = vmul.f32 0.7978846, %v10229_v18  ;;  %v2893_v12 = vmul.f32 %v2637_v47, %v10223_v58  ;;  %5690 = vmatmul.mubr.bf16.gmra.mxu1 %v4547_v51  ;;  %7125 = vtanh.f32 %v3546_v15  ;;  %v3556_v37 = vmul.f32 0.7978846, %v3300_v62  ;;  %13891 = vst [vmem:[#allocation105_spill] sm:$0xff] %v10333_v13  ;;  %13892 = vst [vmem:[#allocation22_spill] sm:$0xff] %v10335_v17 }
 0x239   : > { %v7120_v40 = vpop.eup %7119  ;;  %v3143_v52 = vadd.f32 %v2887_v2, %v10208_v61  ;;  %v2639_v27 = vmul.f32 %v2383_v43, %v10277_v26  ;;  %7127 = vtanh.f32 %v3554_v32  ;;  %v10320_v25 = vadd.f32 %v13888_v38, %v10042_v34  ;;  %v13893_v51 = vld [vmem:[#allocation86_spill] sm:$0xff] }
 0x23a   : > { %v10324_v39 = vmul.f32 %v10235_v57, %v10139_v23  ;;  %v2622_v47 = vmul.f32 %v10268_v33, %v10242_v41  ;;  %v2624_v18 = vmul.f32 %v10271_v55, %v10246_v45  ;;  %7129 = vtanh.f32 %v3548_v22  ;;  %v6904_v57 = vld [vmem:[%s13140_s3 + $0x390] ss:$8 sps:$4 sm:$0xff]   ;;  %v6906_v33 = vld [vmem:[%s13140_s3 + $0x394] ss:$8 sps:$4 sm:$0xff]   ;;  %v6907_v32 = vld [vmem:[%s13140_s3 + $0x280] ss:$8 sps:$4 sm:$0xff]  }
 0x23b   : > { %13889 = vst [vmem:[#allocation46_spill] sm:$0xff] %v10320_v25  ;;  %v2109_v5 = vmul.f32 0.5, %v10073_v31  ;;  %v2630_v2 = vmul.f32 %v2374_v49, %v10259_v16  ;;  %v2632_v43 = vmul.f32 %v2376_v14, %v10263_v59  ;;  %7131 = vtanh.f32 %v3556_v37  ;;  %v6909_v56 = vld [vmem:[%s13140_s3 + $0x284] ss:$8 sps:$4 sm:$0xff]   ;;  %5981 = vmatprep.subr.bf16.mxu1 %v6906_v33 }
 0x23c   : > { %13890 = vst [vmem:[#allocation20_spill] sm:$0xff] %v10324_v39  ;;  %7133 = vtanh.f32 %v3635_v21  ;;  %v10344_v31 = vmul.f32 0.5, %v10084_v29  ;;  %v3149_v55 = vadd.f32 %v2893_v12, %v10223_v58  ;;  %v10349_v15 = vadd.f32 %v13893_v51, %v10062_v44  ;;  %v7122_v62 = vpop.eup %7121  ;;  %5982 = vmatpush2.bf16.msra.mxu1 %v6904_v57  ;;  %5790 = vmatprep.subr.bf16.mxu0 %v6909_v56 }
 0x23d   : > { %v10358_v49 = vmul.f32 0.5, %v10157_v11  ;;  %v3399_v29 = vmul.f32 0.7978846, %v3143_v52  ;;  %v2895_v14 = vmul.f32 %v2639_v27, %v10277_v26  ;;  %v2389_v22 = vmul.f32 0.044715, %v10320_v25  ;;  %5791 = vmatpush2.bf16.msra.mxu0 %v6907_v32 }
 0x23e   : > { %13894 = vst [vmem:[#allocation64_spill] sm:$0xff] %v10349_v15  ;;  %v3901_v21 = vadd.f32 1.0, %v7118_v8  ;;  %v10363_v12 = vmul.f32 %v2622_v47, %v10242_v41  ;;  %v10366_v37 = vmul.f32 %v2624_v18, %v10246_v45  ;;  %v10369_v38 = vmul.f32 0.5, %v10208_v61  ;;  %v13899_v8 = vld [vmem:[#allocation110_spill] sm:$0xff]  ;;  %v10383_v47 = vpop.f32.mrf.mxu0  ;;  %v10385_v18 = vpop.f32.mrf.mxu1 }
 0x23f   : > { %v10371_v51 = vadd.f32 1.0, %v7120_v40  ;;  %v10374_v11 = vmul.f32 %v2630_v2, %v10259_v16  ;;  %v10377_v52 = vmul.f32 %v2632_v43, %v10263_v59  ;;  %v10381_v27 = vadd.f32 %v13899_v8, %v10193_v19  ;;  %13901 = vst [vmem:[#allocation86_spill] sm:$0xff] %v10383_v47  ;;  %13902 = vst [vmem:[#allocation110_spill] sm:$0xff] %v10385_v18  ;;  %v13903_v40 = vld [vmem:[#allocation111_spill] sm:$0xff]  ;;  %v13915_v16 = vld [vmem:[#allocation101_spill] sm:$0xff] }
 0x240   : > { %13895 = vst [vmem:[#allocation24_spill] sm:$0xff] %v10363_v12  ;;  %13896 = vst [vmem:[#allocation49_spill] sm:$0xff] %v10366_v37  ;;  %v10387_v61 = vmul.f32 0.7978846, %v3149_v55  ;;  %v10391_v57 = vadd.f32 %v13903_v40, %v10196_v53  ;;  %v2391_v2 = vmul.f32 0.044715, %v10349_v15  ;;  %v10396_v43 = vadd.f32 %v10130_v42, %v10193_v19 }
 0x241   : > { %13897 = vst [vmem:[#allocation51_spill] sm:$0xff] %v10374_v11  ;;  %13898 = vst [vmem:[#allocation30_spill] sm:$0xff] %v10377_v52  ;;  %7135 = vtanh.f32 %v3399_v29  ;;  %v10399_v33 = vadd.f32 %v2895_v14, %v10277_v26  ;;  %v2645_v8 = vmul.f32 %v2389_v22, %v10320_v25  ;;  %v10404_v55 = vadd.f32 %v10149_v60, %v10042_v34  ;;  %v13909_v22 = vld [vmem:[#allocation35_spill] sm:$0xff]  ;;  %v10420_v26 = vpop.f32.mrf.mxu0  ;;  %v13916_v41 = vld [vmem:[#allocation74_spill] sm:$0xff] }
 0x242   : > { %13900 = vst [vmem:[#allocation9_spill] sm:$0xff] %v10381_v27  ;;  %13904 = vst [vmem:[#allocation111_spill] sm:$0xff] %v10391_v57  ;;  %v10406_v56 = vmul.f32 %v3901_v21, %v2109_v5  ;;  %v2266_v40 = vmul.f32 0.5, %v13878_v30  ;;  %v2274_v58 = vmul.f32 0.5, %v13880_v54  ;;  %v2268_v42 = vmul.f32 0.5, %v13882_v63  ;;  %v10422_v5 = vpop.f32.mrf.mxu1  ;;  %v13914_v37 = vld [vmem:[#allocation47_spill] sm:$0xff] }
 0x243   : > { %13905 = vst [vmem:[#allocation116_spill] sm:$0xff] %v10396_v43  ;;  %13906 = vst [vmem:[#allocation117_spill] sm:$0xff] %v10404_v55  ;;  %v2276_v32 = vmul.f32 0.5, %v13884_v4  ;;  %v10413_v29 = vmul.f32 0.044715, %v10381_v27  ;;  %v10417_v14 = vadd.f32 %v10151_v6, %v10062_v44  ;;  %v4065_v60 = vadd.f32 1.0, %v13909_v22 }
 0x244   : > { %13907 = vst [vmem:[#allocation118_spill] sm:$0xff] %v10406_v56  ;;  %13910 = vst [vmem:[#allocation35_spill] sm:$0xff] %v10420_v26  ;;  %v10424_v30 = vpop.eup %7123  ;;  %v10426_v54 = vadd.f32 1.0, %v7122_v62  ;;  %v10429_v63 = vmul.f32 0.044715, %v10391_v57  ;;  %v2647_v4 = vmul.f32 %v2391_v2, %v10349_v15  ;;  %v2901_v52 = vmul.f32 %v2645_v8, %v10320_v25  ;;  %v10447_v26 = vpop.f32.mrf.mxu0 }
 0x245   : > { %13908 = vst [vmem:[#allocation119_spill] sm:$0xff] %v10417_v14  ;;  %13911 = vst [vmem:[#allocation120_spill] sm:$0xff] %v10422_v5  ;;  %v10433_v21 = vmul.f32 0.044715, %v10396_v43  ;;  %v7126_v6 = vpop.eup %7125  ;;  %v10438_v22 = vadd.f32 %v10132_v28, %v10196_v53  ;;  %v2397_v59 = vmul.f32 0.044715, %v10404_v55  ;;  %v10449_v17 = vpop.f32.mrf.mxu1 }
 0x246   : > { %13912 = vst [vmem:[#allocation121_spill] sm:$0xff] %v10424_v30  ;;  %v2273_v62 = vmul.f32 0.5, %v13914_v37  ;;  %v7128_v45 = vpop.eup %7127  ;;  %v4058_v11 = vadd.f32 1.0, %v7126_v6  ;;  %v2265_v12 = vmul.f32 0.5, %v13915_v16  ;;  %v4057_v2 = vadd.f32 1.0, %v13916_v41  ;;  %v13918_v5 = vld [vmem:[#allocation11_spill] sm:$0xff]  ;;  %v10461_v53 = vpop.f32.mrf.mxu0 }
 0x247   : > { %13913 = vst [vmem:[#allocation122_spill] sm:$0xff] %v10438_v22  ;;  %v4067_v46 = vadd.f32 1.0, %v13917_v20  ;;  %v7130_v30 = vpop.eup %7129  ;;  %v4066_v39 = vadd.f32 1.0, %v7128_v45  ;;  %v2399_v8 = vmul.f32 0.044715, %v10417_v14  ;;  %v2267_v28 = vmul.f32 0.5, %v13918_v5 }
 0x248   : > { %v4321_v23 = vmul.f32 %v4065_v60, %v2273_v62  ;;  %13919 = vst [vmem:[#allocation47_spill] sm:$0xff] %v10447_v26  ;;  %13920 = vst [vmem:[#allocation101_spill] sm:$0xff] %v10449_v17  ;;  %v7132_v37 = vpop.eup %7131  ;;  %v4060_v18 = vadd.f32 1.0, %v7130_v30  ;;  %v13921_v6 = vld [vmem:[#allocation102_spill] sm:$0xff]  ;;  %v13922_v16 = vld [vmem:[#allocation29_spill] sm:$0xff]  ;;  %v4314_v45 = vmul.f32 %v4058_v11, %v2266_v40  ;;  %v2653_v5 = vmul.f32 %v2397_v59, %v10404_v55 }
 0x249   : > { %v2275_v47 = vmul.f32 0.5, %v13921_v6  ;;  %v4059_v13 = vadd.f32 1.0, %v13922_v16  ;;  %v13923_v41 = vld [vmem:[#allocation62_spill] sm:$0xff]  ;;  %v10455_v1 = vpop.eup %7133  ;;  %v4322_v24 = vmul.f32 %v4066_v39, %v2274_v58  ;;  %v4068_v60 = vadd.f32 1.0, %v7132_v37  ;;  %v13927_v17 = vld [vmem:[#allocation80_spill] sm:$0xff] }
 0x24a   : > { %v3306_v20 = vadd.f32 %v13924_v7, %v13923_v41  ;;  %13925 = vst [vmem:[#allocation74_spill] sm:$0xff] %v10455_v1  ;;  %v4313_v62 = vmul.f32 %v4057_v2, %v2265_v12  ;;  %v3314_v9 = vadd.f32 %v13927_v17, %v13926_v50  ;;  %v4316_v6 = vmul.f32 %v4060_v18, %v2268_v42  ;;  %v10463_v7 = vpop.f32.mrf.mxu1  ;;  %v13929_v40 = vld [vmem:[#allocation106_spill] sm:$0xff]  ;;  %v13930_v59 = vld [vmem:[#allocation52_spill] sm:$0xff] }
 0x24b   : > { %v4323_v26 = vmul.f32 %v4067_v46, %v2275_v47  ;;  %v4554_v0 = vpack.c.bf16 %v4322_v24, %v4314_v45  ;;  %v4324_v10 = vmul.f32 %v4068_v60, %v2276_v32  ;;  %v2655_v16 = vmul.f32 %v2399_v8, %v10417_v14  ;;  %13928 = vst [vmem:[#allocation76_spill] sm:$0xff] %v10463_v7  ;;  %v13931_v24 = vld [vmem:[#allocation108_spill] sm:$0xff] }
 0x24c   : > { %v3562_v30 = vmul.f32 0.7978846, %v3306_v20  ;;  %v4553_v11 = vpack.c.bf16 %v4321_v23, %v4313_v62  ;;  %v4315_v58 = vmul.f32 %v4059_v13, %v2267_v28  ;;  %v3570_v39 = vmul.f32 0.7978846, %v3314_v9  ;;  %v13932_v47 = vld [vmem:[#allocation40_spill] sm:$0xff]  ;;  %v10486_v8 = vpop.f32.mrf.mxu1 }
 0x24d   : > { %v3308_v12 = vadd.f32 %v13930_v59, %v13929_v40  ;;  %5506 = vmatprep.mubr.bf16.mxu0 %v4554_v0  ;;  %v4556_v46 = vpack.c.bf16 %v4324_v10, %v4316_v6  ;;  %v2903_v17 = vmul.f32 %v2647_v4, %v10349_v15  ;;  %v3316_v18 = vadd.f32 %v13932_v47, %v13931_v24  ;;  %v6910_v9 = vld [vmem:[%s13140_s3 + $0x380] ss:$8 sps:$4 sm:$0xff]   ;;  %v6912_v10 = vld [vmem:[%s13140_s3 + $0x384] ss:$8 sps:$4 sm:$0xff]   ;;  %v14024_v7 = vld [vmem:[#allocation84_spill] sm:$0xff] }
 0x24e   : > { %7137 = vtanh.f32 %v3562_v30  ;;  %v7136_v42 = vpop.eup %7135  ;;  %v3157_v32 = vadd.f32 %v2901_v52, %v10320_v25  ;;  %5507 = vmatmul.mubr.bf16.gmra.mxu0 %v4553_v11  ;;  %v4555_v2 = vpack.c.bf16 %v4323_v26, %v4315_v58  ;;  %v3407_v0 = vmul.f32 0.7978846, %v10399_v33  ;;  %v10484_v52 = vpop.f32.mrf.mxu0  ;;  %5983 = vmatprep.subr.bf16.mxu1 %v6912_v10  ;;  %v13960_v6 = vld [vmem:[#allocation103_spill] sm:$0xff] }
 0x24f   : > { %7139 = vtanh.f32 %v3570_v39  ;;  %v3564_v23 = vmul.f32 0.7978846, %v3308_v12  ;;  %5699 = vmatprep.mubr.bf16.mxu1 %v4556_v46  ;;  %v2638_v13 = vmul.f32 %v10413_v29, %v10381_v27  ;;  %v3572_v4 = vmul.f32 0.7978846, %v3316_v18  ;;  %5984 = vmatpush2.bf16.msra.mxu1 %v6910_v9  ;;  %v10512_v62 = vpop.f32.mrf.mxu1 }
 0x250   : > { %v10482_v26 = vadd.f32 %v10210_v36, %v10042_v34  ;;  %v2640_v28 = vmul.f32 %v10429_v63, %v10391_v57  ;;  %v2909_v37 = vmul.f32 %v2653_v5, %v10404_v55  ;;  %v2911_v33 = vmul.f32 %v2655_v16, %v10417_v14  ;;  %5700 = vmatmul.mubr.bf16.gmra.mxu1 %v4555_v2 }
 0x251   : > { %7141 = vtanh.f32 %v3564_v23  ;;  %v10494_v29 = vmul.f32 %v10426_v54, %v10358_v49  ;;  %v3911_v36 = vadd.f32 1.0, %v7136_v42  ;;  %v2646_v20 = vmul.f32 %v10433_v21, %v10396_v43  ;;  %v10510_v21 = vpop.f32.mrf.mxu0  ;;  %13938 = vst [vmem:[#allocation71_spill] sm:$0xff] %v10512_v62  ;;  %v10549_v47 = vpop.f32.mrf.mxu1  ;;  %v13948_v23 = vld [vmem:[#allocation58_spill] sm:$0xff] }
 0x252   : > { %13933 = vst [vmem:[#allocation11_spill] sm:$0xff] %v10482_v26  ;;  %7143 = vtanh.f32 %v3572_v4  ;;  %v3413_v63 = vmul.f32 0.7978846, %v3157_v32  ;;  %v3159_v45 = vadd.f32 %v2903_v17, %v10349_v15  ;;  %v2392_v60 = vmul.f32 0.044715, %v10438_v22  ;;  %13937 = vst [vmem:[#allocation13_spill] sm:$0xff] %v10510_v21 }
 0x253   : > { %13934 = vst [vmem:[#allocation102_spill] sm:$0xff] %v10494_v29  ;;  %7145 = vtanh.f32 %v10387_v61  ;;  %v10503_v5 = vmul.f32 %v10371_v51, %v10344_v31  ;;  %v2405_v49 = vmul.f32 0.044715, %v10482_v26  ;;  %v10508_v54 = vadd.f32 %v10212_v3, %v10062_v44  ;;  %13946 = vst [vmem:[#allocation125_spill] sm:$0xff] %v10549_v47  ;;  %v14020_v21 = vld [vmem:[#allocation93_spill] sm:$0xff] }
 0x254   : > { %7147 = vtanh.f32 %v3407_v0  ;;  %v10515_v61 = vmul.f32 %v2638_v13, %v10381_v27  ;;  %v10518_v30 = vmul.f32 %v2640_v28, %v10391_v57  ;;  %v3165_v31 = vadd.f32 %v2909_v37, %v10404_v55  ;;  %v13951_v0 = vld [vmem:[#allocation38_spill] sm:$0xff]  ;;  %v13961_v55 = vld [vmem:[#allocation77_spill] sm:$0xff] }
 0x255   : > { %13935 = vst [vmem:[#allocation29_spill] sm:$0xff] %v10503_v5  ;;  %13936 = vst [vmem:[#allocation62_spill] sm:$0xff] %v10508_v54  ;;  %v3167_v51 = vadd.f32 %v2911_v33, %v10417_v14  ;;  %v10525_v3 = vmul.f32 %v3911_v36, %v10369_v38  ;;  %v10528_v16 = vmul.f32 %v2646_v20, %v10396_v43  ;;  %7149 = vtanh.f32 %v3413_v63  ;;  %v13955_v33 = vld [vmem:[#allocation60_spill] sm:$0xff] }
 0x256   : > { %13939 = vst [vmem:[#allocation80_spill] sm:$0xff] %v10515_v61  ;;  %13940 = vst [vmem:[#allocation106_spill] sm:$0xff] %v10518_v30  ;;  %v10532_v11 = vadd.f32 %v10280_v48, %v10042_v34  ;;  %v10534_v58 = vmul.f32 0.7978846, %v3159_v45  ;;  %v10537_v39 = vmul.f32 %v2392_v60, %v10438_v22  ;;  %v10541_v59 = vadd.f32 %v10171_v35, %v10193_v19  ;;  %v10547_v48 = vpop.f32.mrf.mxu0  ;;  %v13947_v35 = vld [vmem:[#allocation37_spill] sm:$0xff]  ;;  %v13956_v36 = vld [vmem:[#allocation44_spill] sm:$0xff] }
 0x257   : > { %13941 = vst [vmem:[#allocation52_spill] sm:$0xff] %v10525_v3  ;;  %13942 = vst [vmem:[#allocation108_spill] sm:$0xff] %v10528_v16  ;;  %v2282_v38 = vmul.f32 0.5, %v13923_v41  ;;  %v2290_v12 = vmul.f32 0.5, %v13926_v50  ;;  %v2661_v46 = vmul.f32 %v2405_v49, %v10482_v26  ;;  %v2407_v17 = vmul.f32 0.044715, %v10508_v54 }
 0x258   : > { %13943 = vst [vmem:[#allocation40_spill] sm:$0xff] %v10532_v11  ;;  %13944 = vst [vmem:[#allocation123_spill] sm:$0xff] %v10541_v59  ;;  %v10551_v18 = vmul.f32 0.7978846, %v3165_v31  ;;  %v10553_v42 = vmul.f32 0.7978846, %v3167_v51  ;;  %v10565_v13 = vadd.f32 %v13951_v0, %v10062_v44 }
 0x259   : > { %13945 = vst [vmem:[#allocation124_spill] sm:$0xff] %v10547_v48  ;;  %v2284_v32 = vmul.f32 0.5, %v13929_v40  ;;  %v4081_v2 = vadd.f32 1.0, %v13947_v35  ;;  %v2292_v41 = vmul.f32 0.5, %v13931_v24  ;;  %v13949_v50 = vld [vmem:[#allocation41_spill] sm:$0xff]  ;;  %v13953_v40 = vld [vmem:[#allocation15_spill] sm:$0xff]  ;;  %v2917_v60 = vmul.f32 %v2661_v46, %v10482_v26  ;;  %v10579_v35 = vpop.f32.mrf.mxu0 }
 0x25a   : > { %v10560_v9 = vadd.f32 %v13949_v50, %v13948_v23  ;;  %v2413_v10 = vmul.f32 0.044715, %v10532_v11  ;;  %13952 = vst [vmem:[#allocation58_spill] sm:$0xff] %v10565_v13  ;;  %v10568_v28 = vmul.f32 0.044715, %v10541_v59  ;;  %v10572_v37 = vadd.f32 %v13953_v40, %v10193_v19  ;;  %v13957_v31 = vld [vmem:[#allocation54_spill] sm:$0xff]  ;;  %v10581_v50 = vpop.f32.mrf.mxu1 }
 0x25b   : > { %v7138_v4 = vpop.eup %7137  ;;  %v2289_v24 = vmul.f32 0.5, %v13955_v33  ;;  %v4073_v20 = vadd.f32 1.0, %v13956_v36  ;;  %v2663_v49 = vmul.f32 %v2407_v17, %v10508_v54  ;;  %v4083_v51 = vadd.f32 1.0, %v13957_v31  ;;  %13958 = vst [vmem:[#allocation38_spill] sm:$0xff] %v10579_v35  ;;  %13959 = vst [vmem:[#allocation15_spill] sm:$0xff] %v10581_v50  ;;  %v13962_v46 = vld [vmem:[#allocation57_spill] sm:$0xff]  ;;  %v10595_v1 = vpop.f32.mrf.mxu0 }
 0x25c   : > { %13950 = vst [vmem:[#allocation37_spill] sm:$0xff] %v10560_v9  ;;  %13954 = vst [vmem:[#allocation41_spill] sm:$0xff] %v10572_v37  ;;  %v7140_v63 = vpop.eup %7139  ;;  %v4074_v45 = vadd.f32 1.0, %v7138_v4  ;;  %v2281_v40 = vmul.f32 0.5, %v13960_v6  ;;  %v4075_v33 = vadd.f32 1.0, %v13961_v55  ;;  %v2669_v36 = vmul.f32 %v2413_v10, %v10532_v11  ;;  %v13963_v17 = vld [vmem:[#allocation43_spill] sm:$0xff] }
 0x25d   : > { %v4082_v0 = vadd.f32 1.0, %v7140_v63  ;;  %v4337_v14 = vmul.f32 %v4081_v2, %v2289_v24  ;;  %v2415_v4 = vmul.f32 0.044715, %v10565_v13  ;;  %v2283_v25 = vmul.f32 0.5, %v13962_v46  ;;  %v13965_v24 = vld [vmem:[#allocation61_spill] sm:$0xff]  ;;  %v13967_v61 = vld [vmem:[#allocation19_spill] sm:$0xff]  ;;  %v10597_v46 = vpop.f32.mrf.mxu1 }
 0x25e   : > { %v7142_v15 = vpop.eup %7141  ;;  %v2291_v56 = vmul.f32 0.5, %v13963_v17  ;;  %v4330_v29 = vmul.f32 %v4074_v45, %v2282_v38  ;;  %v4329_v16 = vmul.f32 %v4073_v20, %v2281_v40  ;;  %v13966_v55 = vld [vmem:[#allocation81_spill] sm:$0xff]  ;;  %v13968_v10 = vld [vmem:[#allocation98_spill] sm:$0xff]  ;;  %13969 = vst [vmem:[#allocation44_spill] sm:$0xff] %v10595_v1  ;;  %13970 = vst [vmem:[#allocation54_spill] sm:$0xff] %v10597_v46 }
 0x25f   : > { %v7144_v31 = vpop.eup %7143  ;;  %v4338_v30 = vmul.f32 %v4082_v0, %v2290_v12  ;;  %v4076_v57 = vadd.f32 1.0, %v7142_v15  ;;  %v3322_v43 = vadd.f32 %v13966_v55, %v13965_v24  ;;  %v3330_v27 = vadd.f32 %v13968_v10, %v13967_v61  ;;  %v14015_v35 = vld [vmem:[#allocation6_spill] sm:$0xff] }
 0x260   : > { %v10589_v63 = vpop.eup %7145  ;;  %v4084_v6 = vadd.f32 1.0, %v7144_v31  ;;  %v4339_v2 = vmul.f32 %v4083_v51, %v2291_v56  ;;  %v4561_v15 = vpack.c.bf16 %v4337_v14, %v4329_v16  ;;  %v4331_v20 = vmul.f32 %v4075_v33, %v2283_v25  ;;  %v13972_v56 = vld [vmem:[#allocation79_spill] sm:$0xff]  ;;  %v10615_v16 = vpop.f32.mrf.mxu1  ;;  %v13983_v33 = vld [vmem:[#allocation66_spill] sm:$0xff] }
 0x261   : > { %13964 = vst [vmem:[#allocation60_spill] sm:$0xff] %v10589_v63  ;;  %v10599_v17 = vpop.eup %7147  ;;  %v4562_v38 = vpack.c.bf16 %v4338_v30, %v4330_v29  ;;  %v4332_v12 = vmul.f32 %v4076_v57, %v2284_v32  ;;  %v3578_v0 = vmul.f32 0.7978846, %v3322_v43  ;;  %v3586_v40 = vmul.f32 0.7978846, %v3330_v27  ;;  %v13973_v51 = vld [vmem:[#allocation7_spill] sm:$0xff]  ;;  %v10613_v30 = vpop.f32.mrf.mxu0 }
 0x262   : > { %13971 = vst [vmem:[#allocation103_spill] sm:$0xff] %v10599_v17  ;;  %v4340_v45 = vmul.f32 %v4084_v6, %v2292_v41  ;;  %v3324_v31 = vadd.f32 %v13973_v51, %v13972_v56  ;;  %v2400_v55 = vmul.f32 0.044715, %v10560_v9  ;;  %v2919_v10 = vmul.f32 %v2663_v49, %v10508_v54  ;;  %v13974_v63 = vld [vmem:[#allocation115_spill] sm:$0xff]  ;;  %v13976_v17 = vld [vmem:[#allocation109_spill] sm:$0xff]  ;;  %v10611_v14 = vpop.eup %7149  ;;  %13979 = vst [vmem:[#allocation43_spill] sm:$0xff] %v10613_v30 }
 0x263   : > { %5516 = vmatprep.mubr.bf16.mxu0 %v4562_v38  ;;  %v10607_v50 = vadd.f32 %v13974_v63, %v13948_v23  ;;  %v13977_v29 = vld [vmem:[#allocation65_spill] sm:$0xff]  ;;  %13978 = vst [vmem:[#allocation57_spill] sm:$0xff] %v10611_v14  ;;  %v4563_v27 = vpack.c.bf16 %v4339_v2, %v4331_v20  ;;  %7151 = vtanh.f32 %v3578_v0  ;;  %13980 = vst [vmem:[#allocation61_spill] sm:$0xff] %v10615_v16  ;;  %v13981_v41 = vld [vmem:[#allocation96_spill] sm:$0xff]  ;;  %v2406_v20 = vmul.f32 0.044715, %v10572_v37  ;;  %v10639_v0 = vpop.f32.mrf.mxu1 }
 0x264   : > { %v3332_v57 = vadd.f32 %v13977_v29, %v13976_v17  ;;  %v4564_v25 = vpack.c.bf16 %v4340_v45, %v4332_v12  ;;  %5517 = vmatmul.mubr.bf16.gmra.mxu0 %v4561_v15  ;;  %v3580_v43 = vmul.f32 0.7978846, %v3324_v31  ;;  %7153 = vtanh.f32 %v3586_v40  ;;  %13986 = vst [vmem:[#allocation79_spill] sm:$0xff] %v10639_v0  ;;  %v14009_v14 = vld [vmem:[#allocation16_spill] sm:$0xff]  ;;  %v14013_v16 = vld [vmem:[#allocation10_spill] sm:$0xff] }
 0x265   : > { %13975 = vst [vmem:[#allocation77_spill] sm:$0xff] %v10607_v50  ;;  %v10619_v49 = vadd.f32 %v13981_v41, %v10042_v34  ;;  %v10623_v63 = vadd.f32 %v13983_v33, %v10062_v44  ;;  %v3173_v6 = vadd.f32 %v2917_v60, %v10482_v26  ;;  %v2925_v2 = vmul.f32 %v2669_v36, %v10532_v11 }
 0x266   : > { %v3588_v32 = vmul.f32 0.7978846, %v3332_v57  ;;  %5709 = vmatprep.mubr.bf16.mxu1 %v4564_v25  ;;  %v2671_v38 = vmul.f32 %v2415_v4, %v10565_v13  ;;  %7155 = vtanh.f32 %v3580_v43  ;;  %v2654_v12 = vmul.f32 %v10568_v28, %v10541_v59  ;;  %v10637_v4 = vpop.f32.mrf.mxu0 }
 0x267   : > { %13982 = vst [vmem:[#allocation81_spill] sm:$0xff] %v10619_v49  ;;  %13984 = vst [vmem:[#allocation19_spill] sm:$0xff] %v10623_v63  ;;  %v2656_v15 = vmul.f32 %v2400_v55, %v10560_v9  ;;  %5710 = vmatmul.mubr.bf16.gmra.mxu1 %v4563_v27  ;;  %v3175_v60 = vadd.f32 %v2919_v10, %v10508_v54  ;;  %v2408_v36 = vmul.f32 0.044715, %v10607_v50  ;;  %v2421_v40 = vmul.f32 0.044715, %v10619_v49 }
 0x268   : > { %7157 = vtanh.f32 %v3588_v32  ;;  %13985 = vst [vmem:[#allocation98_spill] sm:$0xff] %v10637_v4  ;;  %v10643_v28 = vmul.f32 %v10537_v39, %v10438_v22  ;;  %v2423_v51 = vmul.f32 0.044715, %v10623_v63  ;;  %v3181_v31 = vadd.f32 %v2925_v2, %v10532_v11  ;;  %v13992_v27 = vld [vmem:[#allocation92_spill] sm:$0xff]  ;;  %v13994_v32 = vld [vmem:[#allocation105_spill] sm:$0xff]  ;;  %v10677_v33 = vpop.f32.mrf.mxu0 }
 0x269   : > { %7159 = vtanh.f32 %v10534_v58  ;;  %v3429_v58 = vmul.f32 0.7978846, %v3173_v6  ;;  %v2927_v55 = vmul.f32 %v2671_v38, %v10565_v13  ;;  %v10652_v10 = vmul.f32 %v2654_v12, %v10541_v59  ;;  %v10679_v6 = vpop.f32.mrf.mxu1  ;;  %v13998_v12 = vld [vmem:[#allocation86_spill] sm:$0xff]  ;;  %v14010_v22 = vld [vmem:[#allocation104_spill] sm:$0xff] }
 0x26a   : > { %13987 = vst [vmem:[#allocation7_spill] sm:$0xff] %v10643_v28  ;;  %7161 = vtanh.f32 %v10551_v18  ;;  %v10655_v29 = vmul.f32 %v2656_v15, %v10560_v9  ;;  %v10658_v39 = vmul.f32 %v2406_v20, %v10572_v37  ;;  %v13990_v18 = vld [vmem:[#allocation3_spill] sm:$0xff]  ;;  %v10664_v25 = vmul.f32 0.7978846, %v3175_v60  ;;  %13997 = vst [vmem:[#allocation92_spill] sm:$0xff] %v10679_v6  ;;  %v14000_v20 = vld [vmem:[#allocation110_spill] sm:$0xff] }
 0x26b   : > { %7163 = vtanh.f32 %v10553_v42  ;;  %13988 = vst [vmem:[#allocation115_spill] sm:$0xff] %v10652_v10  ;;  %v10662_v57 = vadd.f32 %v13990_v18, %v10193_v19  ;;  %v10667_v42 = vmul.f32 %v2408_v36, %v10607_v50  ;;  %v10671_v43 = vadd.f32 %v13992_v27, %v13948_v23  ;;  %13996 = vst [vmem:[#allocation3_spill] sm:$0xff] %v10677_v33  ;;  %v14007_v9 = vld [vmem:[#allocation78_spill] sm:$0xff]  ;;  %v14011_v6 = vld [vmem:[#allocation107_spill] sm:$0xff] }
 0x26c   : > { %13989 = vst [vmem:[#allocation109_spill] sm:$0xff] %v10655_v29  ;;  %v10675_v41 = vadd.f32 %v13994_v32, %v10193_v19  ;;  %v2677_v2 = vmul.f32 %v2421_v40, %v10619_v49  ;;  %v2679_v38 = vmul.f32 %v2423_v51, %v10623_v63  ;;  %v10685_v15 = vadd.f32 %v13998_v12, %v10042_v34  ;;  %v14014_v4 = vld [vmem:[#allocation36_spill] sm:$0xff] }
 0x26d   : > { %13991 = vst [vmem:[#allocation65_spill] sm:$0xff] %v10662_v57  ;;  %13993 = vst [vmem:[#allocation96_spill] sm:$0xff] %v10671_v43  ;;  %v10689_v60 = vadd.f32 %v14000_v20, %v10062_v44  ;;  %7165 = vtanh.f32 %v3429_v58  ;;  %v10691_v36 = vmul.f32 0.7978846, %v3181_v31  ;;  %v10694_v18 = vadd.f32 %v2927_v55, %v10565_v13  ;;  %v14002_v31 = vld [vmem:[#allocation22_spill] sm:$0xff] }
 0x26e   : > { %13995 = vst [vmem:[#allocation66_spill] sm:$0xff] %v10675_v41  ;;  %13999 = vst [vmem:[#allocation105_spill] sm:$0xff] %v10685_v15  ;;  %v2298_v27 = vmul.f32 0.5, %v13965_v24  ;;  %v2306_v40 = vmul.f32 0.5, %v13967_v61  ;;  %v2300_v51 = vmul.f32 0.5, %v13972_v56  ;;  %v2308_v32 = vmul.f32 0.5, %v13976_v17  ;;  %v10714_v61 = vpop.f32.mrf.mxu0  ;;  %v10716_v56 = vpop.f32.mrf.mxu1 }
 0x26f   : > { %14001 = vst [vmem:[#allocation86_spill] sm:$0xff] %v10689_v60  ;;  %v10701_v12 = vmul.f32 0.044715, %v10662_v57  ;;  %v10704_v20 = vmul.f32 0.044715, %v10671_v43  ;;  %v10711_v55 = vadd.f32 %v14002_v31, %v13948_v23  ;;  %v14004_v24 = vld [vmem:[#allocation14_spill] sm:$0xff]  ;;  %v10719_v13 = vmul.f32 %v2677_v2, %v10619_v49 }
 0x270   : > { %v10707_v58 = vmul.f32 0.044715, %v10675_v41  ;;  %v4097_v45 = vadd.f32 1.0, %v14004_v24  ;;  %14005 = vst [vmem:[#allocation22_spill] sm:$0xff] %v10714_v61  ;;  %14006 = vst [vmem:[#allocation14_spill] sm:$0xff] %v10716_v56  ;;  %v7152_v17 = vpop.eup %7151  ;;  %v10722_v11 = vmul.f32 %v2679_v38, %v10623_v63  ;;  %v2305_v10 = vmul.f32 0.5, %v14007_v9  ;;  %v10735_v62 = vpop.f32.mrf.mxu0 }
 0x271   : > { %14003 = vst [vmem:[#allocation110_spill] sm:$0xff] %v10711_v55  ;;  %v2429_v54 = vmul.f32 0.044715, %v10685_v15  ;;  %v2431_v26 = vmul.f32 0.044715, %v10689_v60  ;;  %v7154_v29 = vpop.eup %7153  ;;  %v4090_v31 = vadd.f32 1.0, %v7152_v17 }
 0x272   : > { %v14008_v24 = vld [vmem:[#allocation63_spill] sm:$0xff]  ;;  %v4099_v5 = vadd.f32 1.0, %v14009_v14  ;;  %v4098_v28 = vadd.f32 1.0, %v7154_v29  ;;  %v2297_v2 = vmul.f32 0.5, %v14010_v22  ;;  %v2299_v33 = vmul.f32 0.5, %v14011_v6  ;;  %v14012_v38 = vld [vmem:[#allocation85_spill] sm:$0xff] }
 0x273   : > { %v4089_v59 = vadd.f32 1.0, %v14008_v24  ;;  %v7156_v3 = vpop.eup %7155  ;;  %v3338_v30 = vadd.f32 %v14013_v16, %v14012_v38  ;;  %v4353_v0 = vmul.f32 %v4097_v45, %v2305_v10  ;;  %v2307_v17 = vmul.f32 0.5, %v14014_v4  ;;  %14016 = vst [vmem:[#allocation78_spill] sm:$0xff] %v10735_v62  ;;  %v10737_v24 = vpop.f32.mrf.mxu1  ;;  %v14019_v6 = vld [vmem:[#allocation87_spill] sm:$0xff] }
 0x274   : > { %v4092_v61 = vadd.f32 1.0, %v7156_v3  ;;  %v4091_v9 = vadd.f32 1.0, %v14015_v35  ;;  %14017 = vst [vmem:[#allocation63_spill] sm:$0xff] %v10737_v24  ;;  %v4346_v29 = vmul.f32 %v4090_v31, %v2298_v27  ;;  %v4354_v22 = vmul.f32 %v4098_v28, %v2306_v40  ;;  %v14023_v24 = vld [vmem:[#allocation70_spill] sm:$0xff]  ;;  %v14025_v40 = vld [vmem:[#allocation55_spill] sm:$0xff]  ;;  %v10751_v31 = vpop.f32.mrf.mxu0 }
 0x275   : > { %v7158_v56 = vpop.eup %7157  ;;  %v3346_v1 = vadd.f32 %v14020_v21, %v14019_v6  ;;  %v4345_v45 = vmul.f32 %v4089_v59, %v2297_v2  ;;  %v4355_v10 = vmul.f32 %v4099_v5, %v2307_v17  ;;  %v3594_v4 = vmul.f32 0.7978846, %v3338_v30 }
 0x276   : > { %v10739_v14 = vpop.eup %7159  ;;  %v4100_v46 = vadd.f32 1.0, %v7158_v56  ;;  %v4348_v3 = vmul.f32 %v4092_v61, %v2300_v51  ;;  %v4570_v35 = vpack.c.bf16 %v4354_v22, %v4346_v29  ;;  %v4347_v28 = vmul.f32 %v4091_v9, %v2299_v33  ;;  %v14026_v56 = vld [vmem:[#allocation39_spill] sm:$0xff]  ;;  %v10753_v51 = vpop.f32.mrf.mxu1 }
 0x277   : > { %14018 = vst [vmem:[#allocation16_spill] sm:$0xff] %v10739_v14  ;;  %v10743_v16 = vpop.eup %7161  ;;  %v3602_v48 = vmul.f32 0.7978846, %v3346_v1  ;;  %v3340_v14 = vadd.f32 %v14024_v7, %v14023_v24  ;;  %v4569_v27 = vpack.c.bf16 %v4353_v0, %v4345_v45  ;;  %7167 = vtanh.f32 %v3594_v4  ;;  %v14027_v0 = vld [vmem:[#allocation47_spill] sm:$0xff] }
 0x278   : > { %14021 = vst [vmem:[#allocation104_spill] sm:$0xff] %v10743_v16  ;;  %v10745_v47 = vpop.eup %7163  ;;  %v4356_v62 = vmul.f32 %v4100_v46, %v2308_v32  ;;  %v3348_v21 = vadd.f32 %v14026_v56, %v14025_v40  ;;  %5526 = vmatprep.mubr.bf16.mxu0 %v4570_v35  ;;  %v2685_v59 = vmul.f32 %v2429_v54, %v10685_v15  ;;  %v3439_v61 = vmul.f32 0.7978846, %v10694_v18  ;;  %v14030_v54 = vld [vmem:[#allocation101_spill] sm:$0xff]  ;;  %v10775_v18 = vpop.f32.mrf.mxu0  ;;  %v14040_v56 = vld [vmem:[#allocation120_spill] sm:$0xff] }
 0x279   : > { %14022 = vst [vmem:[#allocation107_spill] sm:$0xff] %v10745_v47  ;;  %7169 = vtanh.f32 %v3602_v48  ;;  %v3596_v46 = vmul.f32 0.7978846, %v3340_v14  ;;  %v2687_v1 = vmul.f32 %v2431_v26, %v10689_v60  ;;  %5527 = vmatmul.mubr.bf16.gmra.mxu0 %v4569_v27  ;;  %v4571_v7 = vpack.c.bf16 %v4355_v10, %v4347_v28  ;;  %v10777_v9 = vpop.f32.mrf.mxu1  ;;  %v14038_v27 = vld [vmem:[#allocation35_spill] sm:$0xff]  ;;  %v14053_v47 = vld [vmem:[#allocation50_spill] sm:$0xff]  ;;  %v14060_v16 = vld [vmem:[#allocation45_spill] sm:$0xff] }
 0x27a   : > { %v4572_v5 = vpack.c.bf16 %v4356_v62, %v4348_v3  ;;  %v3604_v30 = vmul.f32 0.7978846, %v3348_v21  ;;  %v10759_v33 = vadd.f32 %v14027_v0, %v10042_v34  ;;  %v10761_v32 = vpop.eup %7165  ;;  %v2670_v62 = vmul.f32 %v10701_v12, %v10662_v57  ;;  %v14042_v0 = vld [vmem:[#allocation26_spill] sm:$0xff] }
 0x27b   : > { %14029 = vst [vmem:[#allocation10_spill] sm:$0xff] %v10761_v32  ;;  %7171 = vtanh.f32 %v3596_v46  ;;  %v10768_v48 = vadd.f32 %v14030_v54, %v10062_v44  ;;  %v2672_v26 = vmul.f32 %v10704_v20, %v10671_v43  ;;  %v2678_v2 = vmul.f32 %v10707_v58, %v10675_v41  ;;  %v10815_v10 = vpop.f32.mrf.mxu1  ;;  %v14059_v32 = vld [vmem:[#allocation97_spill] sm:$0xff] }
 0x27c   : > { %14028 = vst [vmem:[#allocation85_spill] sm:$0xff] %v10759_v33  ;;  %5719 = vmatprep.mubr.bf16.mxu1 %v4572_v5  ;;  %v2424_v17 = vmul.f32 0.044715, %v10711_v55  ;;  %7173 = vtanh.f32 %v3604_v30  ;;  %v10782_v12 = vmul.f32 %v10658_v39, %v10572_v37  ;;  %v3189_v20 = vadd.f32 %v10719_v13, %v10619_v49  ;;  %v14052_v49 = vld [vmem:[#allocation75_spill] sm:$0xff] }
 0x27d   : > { %14031 = vst [vmem:[#allocation36_spill] sm:$0xff] %v10768_v48  ;;  %5720 = vmatmul.mubr.bf16.gmra.mxu1 %v4571_v7  ;;  %7175 = vtanh.f32 %v10664_v25  ;;  %v3191_v58 = vadd.f32 %v10722_v11, %v10623_v63  ;;  %v2941_v14 = vmul.f32 %v2685_v59, %v10685_v15  ;;  %v2943_v29 = vmul.f32 %v2687_v1, %v10689_v60 }
 0x27e   : > { %14032 = vst [vmem:[#allocation6_spill] sm:$0xff] %v10782_v12  ;;  %7177 = vtanh.f32 %v10691_v36  ;;  %v2437_v22 = vmul.f32 0.044715, %v10759_v33  ;;  %v10794_v25 = vmul.f32 %v10667_v42, %v10607_v50  ;;  %v10797_v39 = vmul.f32 %v2670_v62, %v10662_v57  ;;  %v10813_v42 = vpop.f32.mrf.mxu0  ;;  %v14058_v57 = vld [vmem:[#allocation56_spill] sm:$0xff] }
 0x27f   : > { %7179 = vtanh.f32 %v3439_v61  ;;  %v2439_v13 = vmul.f32 0.044715, %v10768_v48  ;;  %v10801_v11 = vmul.f32 %v2672_v26, %v10671_v43  ;;  %v10804_v36 = vmul.f32 %v2678_v2, %v10675_v41  ;;  %v14044_v2 = vld [vmem:[#allocation73_spill] sm:$0xff] }
 0x280   : > { %14033 = vst [vmem:[#allocation87_spill] sm:$0xff] %v10794_v25  ;;  %14034 = vst [vmem:[#allocation93_spill] sm:$0xff] %v10797_v39  ;;  %v10807_v3 = vmul.f32 %v2424_v17, %v10711_v55  ;;  %v10811_v45 = vadd.f32 %v10484_v52, %v10042_v34  ;;  %v10817_v4 = vmul.f32 0.7978846, %v3189_v20  ;;  %v10819_v35 = vmul.f32 0.7978846, %v3191_v58  ;;  %v10848_v17 = vpop.f32.mrf.mxu0  ;;  %v10850_v20 = vpop.f32.mrf.mxu1 }
 0x281   : > { %14035 = vst [vmem:[#allocation70_spill] sm:$0xff] %v10801_v11  ;;  %14036 = vst [vmem:[#allocation84_spill] sm:$0xff] %v10804_v36  ;;  %v10823_v28 = vadd.f32 %v14038_v27, %v10193_v19  ;;  %v10827_v21 = vadd.f32 %v14040_v56, %v13948_v23  ;;  %v10830_v5 = vadd.f32 %v2941_v14, %v10685_v15  ;;  %v2314_v59 = vmul.f32 0.5, %v14012_v38  ;;  %v14048_v14 = vld [vmem:[#allocation8_spill] sm:$0xff] }
 0x282   : > { %14037 = vst [vmem:[#allocation55_spill] sm:$0xff] %v10811_v45  ;;  %v10833_v52 = vadd.f32 %v2943_v29, %v10689_v60  ;;  %v2693_v46 = vmul.f32 %v2437_v22, %v10759_v33  ;;  %v2322_v1 = vmul.f32 0.5, %v14019_v6  ;;  %v2316_v7 = vmul.f32 0.5, %v14023_v24  ;;  %14045 = vst [vmem:[#allocation35_spill] sm:$0xff] %v10848_v17  ;;  %v14049_v27 = vld [vmem:[#allocation76_spill] sm:$0xff]  ;;  %v10874_v36 = vpop.f32.mrf.mxu0 }
 0x283   : > { %14039 = vst [vmem:[#allocation39_spill] sm:$0xff] %v10823_v28  ;;  %14041 = vst [vmem:[#allocation47_spill] sm:$0xff] %v10827_v21  ;;  %v2695_v30 = vmul.f32 %v2439_v13, %v10768_v48  ;;  %v4113_v61 = vadd.f32 1.0, %v14042_v0  ;;  %v2324_v62 = vmul.f32 0.5, %v14025_v40  ;;  %v2445_v54 = vmul.f32 0.044715, %v10811_v45 }
 0x284   : > { %v10845_v26 = vadd.f32 %v10486_v8, %v10062_v44  ;;  %v4105_v38 = vadd.f32 1.0, %v14044_v2  ;;  %14046 = vst [vmem:[#allocation120_spill] sm:$0xff] %v10850_v20  ;;  %v7168_v6 = vpop.eup %7167  ;;  %v10853_v24 = vmul.f32 0.044715, %v10823_v28  ;;  %v10856_v58 = vmul.f32 0.044715, %v10827_v21 }
 0x285   : > { %v10860_v40 = vadd.f32 %v10461_v53, %v10193_v19  ;;  %v2321_v8 = vmul.f32 0.5, %v14048_v14  ;;  %v4106_v22 = vadd.f32 1.0, %v7168_v6  ;;  %v2949_v13 = vmul.f32 %v2693_v46, %v10759_v33  ;;  %v14051_v0 = vld [vmem:[#allocation68_spill] sm:$0xff]  ;;  %14054 = vst [vmem:[#allocation8_spill] sm:$0xff] %v10874_v36 }
 0x286   : > { %14043 = vst [vmem:[#allocation101_spill] sm:$0xff] %v10845_v26  ;;  %v7170_v29 = vpop.eup %7169  ;;  %v10866_v56 = vadd.f32 %v14049_v27, %v13948_v23  ;;  %v2313_v2 = vmul.f32 0.5, %v14051_v0  ;;  %v2951_v15 = vmul.f32 %v2695_v30, %v10768_v48  ;;  %v4115_v11 = vadd.f32 1.0, %v14052_v49  ;;  %v10876_v27 = vpop.f32.mrf.mxu1  ;;  %v14056_v30 = vld [vmem:[#allocation4_spill] sm:$0xff] }
 0x287   : > { %14047 = vst [vmem:[#allocation26_spill] sm:$0xff] %v10860_v40  ;;  %v4114_v60 = vadd.f32 1.0, %v7170_v29  ;;  %v4369_v63 = vmul.f32 %v4113_v61, %v2321_v8  ;;  %v2701_v43 = vmul.f32 %v2445_v54, %v10811_v45  ;;  %v2447_v14 = vmul.f32 0.044715, %v10845_v26  ;;  %14055 = vst [vmem:[#allocation76_spill] sm:$0xff] %v10876_v27  ;;  %v10892_v27 = vpop.f32.mrf.mxu0  ;;  %v14166_v36 = vld [vmem:[#allocation72_spill] sm:$0xff] }
 0x288   : > { %14050 = vst [vmem:[#allocation73_spill] sm:$0xff] %v10866_v56  ;;  %v7172_v53 = vpop.eup %7171  ;;  %v4361_v6 = vmul.f32 %v4105_v38, %v2313_v2  ;;  %v2323_v46 = vmul.f32 0.5, %v14053_v47  ;;  %v4362_v0 = vmul.f32 %v4106_v22, %v2314_v59  ;;  %v4107_v61 = vadd.f32 1.0, %v14056_v30  ;;  %v14061_v2 = vld [vmem:[#allocation95_spill] sm:$0xff]  ;;  %v14062_v47 = vld [vmem:[#allocation100_spill] sm:$0xff]  ;;  %14067 = vst [vmem:[#allocation4_spill] sm:$0xff] %v10892_v27 }
 0x289   : > { %v7174_v41 = vpop.eup %7173  ;;  %v4370_v29 = vmul.f32 %v4114_v60, %v2322_v1  ;;  %v4108_v39 = vadd.f32 1.0, %v7172_v53  ;;  %v2315_v54 = vmul.f32 0.5, %v14058_v57  ;;  %v3354_v38 = vadd.f32 %v14060_v16, %v14059_v32  ;;  %v10894_v16 = vpop.f32.mrf.mxu1 }
 0x28a   : > { %v10879_v8 = vpop.eup %7175  ;;  %v4116_v49 = vadd.f32 1.0, %v7174_v41  ;;  %v3362_v25 = vadd.f32 %v14062_v47, %v14061_v2  ;;  %v4577_v59 = vpack.c.bf16 %v4369_v63, %v4361_v6  ;;  %v4371_v60 = vmul.f32 %v4115_v11, %v2323_v46  ;;  %v14065_v41 = vld [vmem:[#allocation89_spill] sm:$0xff]  ;;  %14068 = vst [vmem:[#allocation56_spill] sm:$0xff] %v10894_v16  ;;  %v14071_v11 = vld [vmem:[#allocation124_spill] sm:$0xff] }
 0x28b   : > { %14057 = vst [vmem:[#allocation68_spill] sm:$0xff] %v10879_v8  ;;  %v10886_v50 = vpop.eup %7177  ;;  %v4578_v12 = vpack.c.bf16 %v4370_v29, %v4362_v0  ;;  %v4364_v37 = vmul.f32 %v4108_v39, %v2316_v7  ;;  %v3610_v53 = vmul.f32 0.7978846, %v3354_v38  ;;  %v14066_v8 = vld [vmem:[#allocation5_spill] sm:$0xff]  ;;  %v3205_v47 = vadd.f32 %v2949_v13, %v10759_v33  ;;  %v14069_v0 = vld [vmem:[#allocation67_spill] sm:$0xff]  ;;  %v14070_v39 = vld [vmem:[#allocation42_spill] sm:$0xff] }
 0x28c   : > { %14063 = vst [vmem:[#allocation75_spill] sm:$0xff] %v10886_v50  ;;  %v10888_v1 = vpop.eup %7179  ;;  %v4372_v22 = vmul.f32 %v4116_v49, %v2324_v62  ;;  %v3618_v30 = vmul.f32 0.7978846, %v3362_v25  ;;  %v3356_v57 = vadd.f32 %v14066_v8, %v14065_v41  ;;  %v4363_v50 = vmul.f32 %v4107_v61, %v2315_v54  ;;  %v10911_v49 = vpop.f32.mrf.mxu0 }
 0x28d   : > { %14064 = vst [vmem:[#allocation50_spill] sm:$0xff] %v10888_v1  ;;  %5536 = vmatprep.mubr.bf16.mxu0 %v4578_v12  ;;  %v3364_v63 = vadd.f32 %v14070_v39, %v14069_v0  ;;  %v10901_v7 = vadd.f32 %v14071_v11, %v10042_v34  ;;  %v2703_v25 = vmul.f32 %v2447_v14, %v10845_v26  ;;  %7181 = vtanh.f32 %v3610_v53  ;;  %v14073_v12 = vld [vmem:[#allocation125_spill] sm:$0xff]  ;;  %v10913_v14 = vpop.f32.mrf.mxu1 }
 0x28e   : > { %v4580_v62 = vpack.c.bf16 %v4372_v22, %v4364_v37  ;;  %5537 = vmatmul.mubr.bf16.gmra.mxu0 %v4577_v59  ;;  %v3612_v6 = vmul.f32 0.7978846, %v3356_v57  ;;  %v4579_v46 = vpack.c.bf16 %v4371_v60, %v4363_v50  ;;  %7183 = vtanh.f32 %v3618_v30  ;;  %14075 = vst [vmem:[#allocation95_spill] sm:$0xff] %v10911_v49  ;;  %14076 = vst [vmem:[#allocation100_spill] sm:$0xff] %v10913_v14  ;;  %v10933_v22 = vpop.f32.mrf.mxu0  ;;  %v14082_v57 = vld [vmem:[#allocation44_spill] sm:$0xff]  ;;  %v14084_v11 = vld [vmem:[#allocation13_spill] sm:$0xff] }
 0x28f   : > { %14072 = vst [vmem:[#allocation97_spill] sm:$0xff] %v10901_v7  ;;  %v3620_v29 = vmul.f32 0.7978846, %v3364_v63  ;;  %v10906_v13 = vadd.f32 %v14073_v12, %v10062_v44  ;;  %v3453_v61 = vmul.f32 0.7978846, %v10830_v5  ;;  %v2957_v8 = vmul.f32 %v2701_v43, %v10811_v45  ;;  %14078 = vst [vmem:[#allocation5_spill] sm:$0xff] %v10933_v22  ;;  %v10935_v53 = vpop.f32.mrf.mxu1 }
 0x290   : > { %5729 = vmatprep.mubr.bf16.mxu1 %v4580_v62  ;;  %7185 = vtanh.f32 %v3612_v6  ;;  %v2453_v37 = vmul.f32 0.044715, %v10901_v7  ;;  %v3455_v50 = vmul.f32 0.7978846, %v10833_v52  ;;  %v2686_v54 = vmul.f32 %v10853_v24, %v10823_v28  ;;  %14079 = vst [vmem:[#allocation67_spill] sm:$0xff] %v10935_v53  ;;  %v14103_v53 = vld [vmem:[#allocation32_spill] sm:$0xff] }
 0x291   : > { %14074 = vst [vmem:[#allocation45_spill] sm:$0xff] %v10906_v13  ;;  %v2688_v38 = vmul.f32 %v10856_v58, %v10827_v21  ;;  %5730 = vmatmul.mubr.bf16.gmra.mxu1 %v4579_v46  ;;  %7187 = vtanh.f32 %v3620_v29  ;;  %v3207_v43 = vadd.f32 %v2951_v15, %v10768_v48  ;;  %v2438_v5 = vmul.f32 0.044715, %v10860_v40  ;;  %v14086_v46 = vld [vmem:[#allocation54_spill] sm:$0xff]  ;;  %v14109_v14 = vld [vmem:[#allocation112_spill] sm:$0xff] }
 0x292   : > { %7189 = vtanh.f32 %v10817_v4  ;;  %v2440_v59 = vmul.f32 0.044715, %v10866_v56  ;;  %v3461_v60 = vmul.f32 0.7978846, %v3205_v47  ;;  %v2959_v52 = vmul.f32 %v2703_v25, %v10845_v26 }
 0x293   : > { %7191 = vtanh.f32 %v10819_v35  ;;  %v2455_v24 = vmul.f32 0.044715, %v10906_v13  ;;  %v10929_v58 = vmul.f32 %v10807_v3, %v10711_v55  ;;  %v3213_v4 = vadd.f32 %v2957_v8, %v10811_v45  ;;  %v14102_v55 = vld [vmem:[#allocation82_spill] sm:$0xff] }
 0x294   : > { %7193 = vtanh.f32 %v3453_v61  ;;  %v2709_v15 = vmul.f32 %v2453_v37, %v10901_v7  ;;  %v10938_v35 = vmul.f32 %v2686_v54, %v10823_v28  ;;  %v10941_v30 = vmul.f32 %v2688_v38, %v10827_v21  ;;  %v10974_v54 = vpop.f32.mrf.mxu1 }
 0x295   : > { %14077 = vst [vmem:[#allocation89_spill] sm:$0xff] %v10929_v58  ;;  %7195 = vtanh.f32 %v3455_v50  ;;  %v10945_v3 = vadd.f32 %v14082_v57, %v10042_v34  ;;  %v10947_v47 = vmul.f32 0.7978846, %v3207_v43  ;;  %v10950_v39 = vmul.f32 %v2438_v5, %v10860_v40  ;;  %v10972_v50 = vpop.f32.mrf.mxu0  ;;  %14089 = vst [vmem:[#allocation126_spill] sm:$0xff] %v10974_v54  ;;  %v14090_v5 = vld [vmem:[#allocation71_spill] sm:$0xff] }
 0x296   : > { %14080 = vst [vmem:[#allocation42_spill] sm:$0xff] %v10938_v35  ;;  %14081 = vst [vmem:[#allocation124_spill] sm:$0xff] %v10941_v30  ;;  %v10953_v63 = vmul.f32 %v2440_v59, %v10866_v56  ;;  %v10957_v62 = vadd.f32 %v14084_v11, %v10193_v19  ;;  %7197 = vtanh.f32 %v3461_v60  ;;  %v10960_v25 = vadd.f32 %v2959_v52, %v10845_v26  ;;  %v14097_v26 = vld [vmem:[#allocation83_spill] sm:$0xff] }
 0x297   : > { %14083 = vst [vmem:[#allocation125_spill] sm:$0xff] %v10945_v3  ;;  %v2711_v6 = vmul.f32 %v2455_v24, %v10906_v13  ;;  %v10965_v29 = vadd.f32 %v14086_v46, %v10062_v44  ;;  %v10967_v12 = vmul.f32 0.7978846, %v3213_v4  ;;  %v2330_v61 = vmul.f32 0.5, %v14059_v32  ;;  %14088 = vst [vmem:[#allocation54_spill] sm:$0xff] %v10972_v50  ;;  %v14093_v24 = vld [vmem:[#allocation15_spill] sm:$0xff]  ;;  %v11004_v28 = vpop.f32.mrf.mxu0 }
 0x298   : > { %14085 = vst [vmem:[#allocation44_spill] sm:$0xff] %v10957_v62  ;;  %v2338_v8 = vmul.f32 0.5, %v14061_v2  ;;  %v2965_v37 = vmul.f32 %v2709_v15, %v10901_v7  ;;  %v2332_v38 = vmul.f32 0.5, %v14065_v41  ;;  %v2340_v43 = vmul.f32 0.5, %v14069_v0  ;;  %v14092_v2 = vld [vmem:[#allocation38_spill] sm:$0xff]  ;;  %v14095_v41 = vld [vmem:[#allocation12_spill] sm:$0xff] }
 0x299   : > { %14087 = vst [vmem:[#allocation13_spill] sm:$0xff] %v10965_v29  ;;  %v10980_v59 = vadd.f32 %v14090_v5, %v13948_v23  ;;  %v2461_v60 = vmul.f32 0.044715, %v10945_v3  ;;  %v10984_v32 = vmul.f32 0.044715, %v10957_v62  ;;  %v10988_v52 = vadd.f32 %v14092_v2, %v10193_v19  ;;  %v14096_v46 = vld [vmem:[#allocation69_spill] sm:$0xff] }
 0x29a   : > { %v10992_v4 = vadd.f32 %v14093_v24, %v13948_v23  ;;  %v4129_v15 = vadd.f32 1.0, %v14095_v41  ;;  %v7182_v0 = vpop.eup %7181  ;;  %v10996_v57 = vmul.f32 %v2711_v6, %v10906_v13  ;;  %v2463_v11 = vmul.f32 0.044715, %v10965_v29  ;;  %v14098_v30 = vld [vmem:[#allocation59_spill] sm:$0xff]  ;;  %v14099_v24 = vld [vmem:[#allocation90_spill] sm:$0xff]  ;;  %14100 = vst [vmem:[#allocation15_spill] sm:$0xff] %v11004_v28  ;;  %v11006_v41 = vpop.f32.mrf.mxu1 }
 0x29b   : > { %14091 = vst [vmem:[#allocation71_spill] sm:$0xff] %v10980_v59  ;;  %v2329_v5 = vmul.f32 0.5, %v14096_v46  ;;  %v2337_v45 = vmul.f32 0.5, %v14097_v26  ;;  %v7184_v48 = vpop.eup %7183  ;;  %v4122_v33 = vadd.f32 1.0, %v7182_v0  ;;  %v3221_v2 = vadd.f32 %v2965_v37, %v10901_v7  ;;  %14101 = vst [vmem:[#allocation12_spill] sm:$0xff] %v11006_v41  ;;  %v14104_v26 = vld [vmem:[#allocation34_spill] sm:$0xff] }
 0x29c   : > { %14094 = vst [vmem:[#allocation38_spill] sm:$0xff] %v10992_v4  ;;  %v4121_v21 = vadd.f32 1.0, %v14098_v30  ;;  %v4131_v35 = vadd.f32 1.0, %v14099_v24  ;;  %v4130_v1 = vadd.f32 1.0, %v7184_v48  ;;  %v2717_v58 = vmul.f32 %v2461_v60, %v10945_v3  ;;  %v14105_v7 = vld [vmem:[#allocation91_spill] sm:$0xff]  ;;  %v14106_v50 = vld [vmem:[#allocation53_spill] sm:$0xff] }
 0x29d   : > { %v7186_v6 = vpop.eup %7185  ;;  %v2331_v46 = vmul.f32 0.5, %v14102_v55  ;;  %v3370_v22 = vadd.f32 %v14104_v26, %v14103_v53  ;;  %v4385_v37 = vmul.f32 %v4129_v15, %v2337_v45  ;;  %v2339_v30 = vmul.f32 0.5, %v14105_v7  ;;  %v14108_v48 = vld [vmem:[#allocation27_spill] sm:$0xff]  ;;  %v11022_v45 = vpop.f32.mrf.mxu1 }
 0x29e   : > { %v7188_v0 = vpop.eup %7187  ;;  %v4124_v54 = vadd.f32 1.0, %v7186_v6  ;;  %v4123_v24 = vadd.f32 1.0, %v14106_v50  ;;  %v4378_v28 = vmul.f32 %v4122_v33, %v2330_v61  ;;  %v4386_v41 = vmul.f32 %v4130_v1, %v2338_v8  ;;  %v11020_v6 = vpop.f32.mrf.mxu0  ;;  %14112 = vst [vmem:[#allocation90_spill] sm:$0xff] %v11022_v45  ;;  %v14114_v1 = vld [vmem:[#allocation23_spill] sm:$0xff]  ;;  %v14115_v61 = vld [vmem:[#allocation48_spill] sm:$0xff] }
 0x29f   : > { %v11014_v16 = vpop.eup %7189  ;;  %v4132_v27 = vadd.f32 1.0, %v7188_v0  ;;  %v3378_v60 = vadd.f32 %v14109_v14, %v14108_v48  ;;  %v4377_v20 = vmul.f32 %v4121_v21, %v2329_v5  ;;  %v4387_v26 = vmul.f32 %v4131_v35, %v2339_v30  ;;  %14111 = vst [vmem:[#allocation59_spill] sm:$0xff] %v11020_v6  ;;  %v14117_v21 = vld [vmem:[#allocation18_spill] sm:$0xff]  ;;  %v14118_v35 = vld [vmem:[#allocation20_spill] sm:$0xff]  ;;  %v14159_v45 = vld [vmem:[#allocation51_spill] sm:$0xff] }
 0x2a0   : > { %14107 = vst [vmem:[#allocation69_spill] sm:$0xff] %v11014_v16  ;;  %v11018_v49 = vpop.eup %7191  ;;  %v4380_v55 = vmul.f32 %v4124_v54, %v2332_v38  ;;  %v3626_v17 = vmul.f32 0.7978846, %v3370_v22  ;;  %v4586_v50 = vpack.c.bf16 %v4386_v41, %v4378_v28  ;;  %v3372_v8 = vadd.f32 %v14115_v61, %v14114_v1 }
 0x2a1   : > { %14110 = vst [vmem:[#allocation83_spill] sm:$0xff] %v11018_v49  ;;  %v11024_v7 = vpop.eup %7193  ;;  %v4388_v15 = vmul.f32 %v4132_v27, %v2340_v43  ;;  %v3634_v33 = vmul.f32 0.7978846, %v3378_v60  ;;  %v4585_v14 = vpack.c.bf16 %v4385_v37, %v4377_v20  ;;  %v4379_v49 = vmul.f32 %v4123_v24, %v2331_v46  ;;  %v14120_v20 = vld [vmem:[#allocation98_spill] sm:$0xff]  ;;  %v11042_v37 = vpop.f32.mrf.mxu1  ;;  %v14124_v24 = vld [vmem:[#allocation79_spill] sm:$0xff] }
 0x2a2   : > { %14113 = vst [vmem:[#allocation82_spill] sm:$0xff] %v11024_v7  ;;  %v11028_v0 = vpop.eup %7195  ;;  %7199 = vtanh.f32 %v3626_v17  ;;  %v3380_v22 = vadd.f32 %v14118_v35, %v14117_v21  ;;  %5546 = vmatprep.mubr.bf16.mxu0 %v4586_v50  ;;  %v2719_v38 = vmul.f32 %v2463_v11, %v10965_v29  ;;  %v3628_v5 = vmul.f32 0.7978846, %v3372_v8  ;;  %v11040_v17 = vpop.f32.mrf.mxu0  ;;  %14123 = vst [vmem:[#allocation27_spill] sm:$0xff] %v11042_v37 }
 0x2a3   : > { %14116 = vst [vmem:[#allocation32_spill] sm:$0xff] %v11028_v0  ;;  %v4588_v54 = vpack.c.bf16 %v4388_v15, %v4380_v55  ;;  %7201 = vtanh.f32 %v3634_v33  ;;  %v11033_v28 = vpop.eup %7197  ;;  %v2973_v27 = vmul.f32 %v2717_v58, %v10945_v3  ;;  %5547 = vmatmul.mubr.bf16.gmra.mxu0 %v4585_v14  ;;  %v4587_v43 = vpack.c.bf16 %v4387_v26, %v4379_v49  ;;  %v11067_v61 = vpop.f32.mrf.mxu1  ;;  %v14131_v14 = vld [vmem:[#allocation22_spill] sm:$0xff] }
 0x2a4   : > { %14119 = vst [vmem:[#allocation34_spill] sm:$0xff] %v11033_v28  ;;  %v3636_v41 = vmul.f32 0.7978846, %v3380_v22  ;;  %v11038_v46 = vadd.f32 %v14120_v20, %v10042_v34  ;;  %14122 = vst [vmem:[#allocation53_spill] sm:$0xff] %v11040_v17  ;;  %v3471_v30 = vmul.f32 0.7978846, %v10960_v25  ;;  %7203 = vtanh.f32 %v3628_v5  ;;  %v11065_v33 = vpop.f32.mrf.mxu0 }
 0x2a5   : > { %5739 = vmatprep.mubr.bf16.mxu1 %v4588_v54  ;;  %v2448_v11 = vmul.f32 0.044715, %v10980_v59  ;;  %v11048_v58 = vadd.f32 %v14124_v24, %v10062_v44  ;;  %v11052_v49 = vmul.f32 %v10950_v39, %v10860_v40  ;;  %v2702_v60 = vmul.f32 %v10984_v32, %v10957_v62  ;;  %14127 = vst [vmem:[#allocation48_spill] sm:$0xff] %v11065_v33  ;;  %v14133_v22 = vld [vmem:[#allocation14_spill] sm:$0xff]  ;;  %v14135_v5 = vld [vmem:[#allocation43_spill] sm:$0xff]  ;;  %v11109_v24 = vpop.f32.mrf.mxu1 }
 0x2a6   : > { %14121 = vst [vmem:[#allocation91_spill] sm:$0xff] %v11038_v46  ;;  %v2454_v55 = vmul.f32 0.044715, %v10988_v52  ;;  %5740 = vmatmul.mubr.bf16.gmra.mxu1 %v4587_v43  ;;  %7205 = vtanh.f32 %v3636_v41  ;;  %v3477_v25 = vmul.f32 0.7978846, %v3221_v2  ;;  %v3223_v26 = vadd.f32 %v10996_v57, %v10906_v13  ;;  %14128 = vst [vmem:[#allocation18_spill] sm:$0xff] %v11067_v61 }
 0x2a7   : > { %14125 = vst [vmem:[#allocation112_spill] sm:$0xff] %v11048_v58  ;;  %14126 = vst [vmem:[#allocation23_spill] sm:$0xff] %v11052_v49  ;;  %7207 = vtanh.f32 %v10947_v47  ;;  %v2456_v50 = vmul.f32 0.044715, %v10992_v4  ;;  %v3229_v39 = vadd.f32 %v2973_v27, %v10945_v3  ;;  %v2975_v15 = vmul.f32 %v2719_v38, %v10965_v29  ;;  %v14157_v61 = vld [vmem:[#allocation24_spill] sm:$0xff] }
 0x2a8   : > { %7209 = vtanh.f32 %v10967_v12  ;;  %v2469_v32 = vmul.f32 0.044715, %v11038_v46  ;;  %v11071_v47 = vmul.f32 %v10953_v63, %v10866_v56  ;;  %v11074_v57 = vmul.f32 %v2448_v11, %v10980_v59  ;;  %v11107_v11 = vpop.f32.mrf.mxu0  ;;  %14138 = vst [vmem:[#allocation127_spill] sm:$0xff] %v11109_v24  ;;  %v14151_v56 = vld [vmem:[#allocation74_spill] sm:$0xff] }
 0x2a9   : > { %7211 = vtanh.f32 %v3471_v30  ;;  %v2471_v12 = vmul.f32 0.044715, %v11048_v58  ;;  %v11078_v2 = vmul.f32 %v2702_v60, %v10957_v62  ;;  %v11081_v8 = vmul.f32 %v2454_v55, %v10988_v52  ;;  %14137 = vst [vmem:[#allocation43_spill] sm:$0xff] %v11107_v11  ;;  %v14148_v62 = vld [vmem:[#allocation99_spill] sm:$0xff] }
 0x2aa   : > { %14129 = vst [vmem:[#allocation20_spill] sm:$0xff] %v11071_v47  ;;  %v11085_v35 = vadd.f32 %v14131_v14, %v10042_v34  ;;  %v11089_v63 = vadd.f32 %v14133_v22, %v10062_v44  ;;  %7213 = vtanh.f32 %v3477_v25  ;;  %v11091_v54 = vmul.f32 0.7978846, %v3223_v26  ;;  %v14139_v26 = vld [vmem:[#allocation121_spill] sm:$0xff]  ;;  %v11135_v7 = vpop.f32.mrf.mxu0 }
 0x2ab   : > { %14130 = vst [vmem:[#allocation98_spill] sm:$0xff] %v11078_v2  ;;  %v11094_v38 = vmul.f32 %v2456_v50, %v10992_v4  ;;  %v11098_v27 = vadd.f32 %v14135_v5, %v10193_v19  ;;  %v11100_v43 = vmul.f32 0.7978846, %v3229_v39  ;;  %v11103_v41 = vadd.f32 %v2975_v15, %v10965_v29  ;;  %v14140_v14 = vld [vmem:[#allocation33_spill] sm:$0xff]  ;;  %v14146_v2 = vld [vmem:[#allocation92_spill] sm:$0xff] }
 0x2ac   : > { %14132 = vst [vmem:[#allocation79_spill] sm:$0xff] %v11085_v35  ;;  %14134 = vst [vmem:[#allocation22_spill] sm:$0xff] %v11089_v63  ;;  %v2346_v20 = vmul.f32 0.5, %v14103_v53  ;;  %v2725_v30 = vmul.f32 %v2469_v32, %v11038_v46  ;;  %v2354_v60 = vmul.f32 0.5, %v14108_v48  ;;  %v2348_v55 = vmul.f32 0.5, %v14114_v1  ;;  %v14141_v29 = vld [vmem:[#allocation61_spill] sm:$0xff] }
 0x2ad   : > { %14136 = vst [vmem:[#allocation14_spill] sm:$0xff] %v11098_v27  ;;  %v2727_v25 = vmul.f32 %v2471_v12, %v11048_v58  ;;  %v4145_v50 = vadd.f32 1.0, %v14139_v26  ;;  %v2356_v39 = vmul.f32 0.5, %v14117_v21  ;;  %v2477_v15 = vmul.f32 0.044715, %v11085_v35  ;;  %v14143_v1 = vld [vmem:[#allocation3_spill] sm:$0xff] }
 0x2ae   : > { %v2479_v53 = vmul.f32 0.044715, %v11089_v63  ;;  %v4137_v32 = vadd.f32 1.0, %v14140_v14  ;;  %v2462_v5 = vmul.f32 0.044715, %v11098_v27  ;;  %v11122_v48 = vadd.f32 %v14141_v29, %v13948_v23  ;;  %v14145_v26 = vld [vmem:[#allocation28_spill] sm:$0xff]  ;;  %v11137_v29 = vpop.f32.mrf.mxu1 }
 0x2af   : > { %v7200_v22 = vpop.eup %7199  ;;  %v11126_v12 = vadd.f32 %v14143_v1, %v10193_v19  ;;  %v2353_v3 = vmul.f32 0.5, %v14145_v26  ;;  %v2981_v0 = vmul.f32 %v2725_v30, %v11038_v46  ;;  %v11132_v14 = vadd.f32 %v14146_v2, %v13948_v23  ;;  %14149 = vst [vmem:[#allocation3_spill] sm:$0xff] %v11135_v7  ;;  %14150 = vst [vmem:[#allocation28_spill] sm:$0xff] %v11137_v29  ;;  %v14152_v2 = vld [vmem:[#allocation88_spill] sm:$0xff]  ;;  %v14153_v7 = vld [vmem:[#allocation94_spill] sm:$0xff] }
 0x2b0   : > { %14142 = vst [vmem:[#allocation121_spill] sm:$0xff] %v11122_v48  ;;  %v7202_v21 = vpop.eup %7201  ;;  %v4138_v13 = vadd.f32 1.0, %v7200_v22  ;;  %v2345_v28 = vmul.f32 0.5, %v14148_v62  ;;  %v2983_v1 = vmul.f32 %v2727_v25, %v11048_v58  ;;  %v4147_v26 = vadd.f32 1.0, %v14151_v56  ;;  %v14156_v56 = vld [vmem:[#allocation113_spill] sm:$0xff] }
 0x2b1   : > { %14144 = vst [vmem:[#allocation33_spill] sm:$0xff] %v11126_v12  ;;  %14147 = vst [vmem:[#allocation61_spill] sm:$0xff] %v11132_v14  ;;  %v4146_v24 = vadd.f32 1.0, %v7202_v21  ;;  %v4401_v47 = vmul.f32 %v4145_v50, %v2353_v3  ;;  %v7204_v49 = vpop.eup %7203  ;;  %v2733_v22 = vmul.f32 %v2477_v15, %v11085_v35  ;;  %v2735_v30 = vmul.f32 %v2479_v53, %v11089_v63  ;;  %v14155_v3 = vld [vmem:[#allocation21_spill] sm:$0xff]  ;;  %v14158_v15 = vld [vmem:[#allocation31_spill] sm:$0xff] }
 0x2b2   : > { %v4393_v40 = vmul.f32 %v4137_v32, %v2345_v28  ;;  %v2355_v11 = vmul.f32 0.5, %v14152_v2  ;;  %v4394_v62 = vmul.f32 %v4138_v13, %v2346_v20  ;;  %v4140_v17 = vadd.f32 1.0, %v7204_v49  ;;  %v11152_v28 = vpop.f32.mrf.mxu0  ;;  %v11154_v32 = vpop.f32.mrf.mxu1 }
 0x2b3   : > { %v7206_v16 = vpop.eup %7205  ;;  %v4402_v37 = vmul.f32 %v4146_v24, %v2354_v60  ;;  %v4139_v29 = vadd.f32 1.0, %v14153_v7  ;;  %v2347_v50 = vmul.f32 0.5, %v14155_v3  ;;  %v3134_v33 = vadd.f32 %v14157_v61, %v14156_v56  ;;  %14160 = vst [vmem:[#allocation99_spill] sm:$0xff] %v11152_v28  ;;  %14161 = vst [vmem:[#allocation74_spill] sm:$0xff] %v11154_v32  ;;  %v14165_v61 = vld [vmem:[#allocation49_spill] sm:$0xff] }
 0x2b4   : > { %v11145_v21 = vpop.eup %7207  ;;  %v4148_v25 = vadd.f32 1.0, %v7206_v16  ;;  %v3142_v53 = vadd.f32 %v14159_v45, %v14158_v15  ;;  %v4396_v20 = vmul.f32 %v4140_v17, %v2348_v55  ;;  %v4593_v7 = vpack.c.bf16 %v4401_v47, %v4393_v40  ;;  %v11171_v55 = vpop.f32.mrf.mxu1 }
 0x2b5   : > { %14154 = vst [vmem:[#allocation92_spill] sm:$0xff] %v11145_v21  ;;  %v11156_v13 = vpop.eup %7209  ;;  %v4594_v49 = vpack.c.bf16 %v4402_v37, %v4394_v62  ;;  %v4403_v24 = vmul.f32 %v4147_v26, %v2355_v11  ;;  %v3390_v2 = vmul.f32 0.7978846, %v3134_v33  ;;  %v14164_v21 = vld [vmem:[#allocation114_spill] sm:$0xff]  ;;  %v3237_v45 = vadd.f32 %v2981_v0, %v11038_v46  ;;  %v11169_v11 = vpop.f32.mrf.mxu0 }
 0x2b6   : > { %14162 = vst [vmem:[#allocation88_spill] sm:$0xff] %v11156_v13  ;;  %v11158_v60 = vpop.eup %7211  ;;  %v4404_v16 = vmul.f32 %v4148_v25, %v2356_v39  ;;  %v3398_v3 = vmul.f32 0.7978846, %v3142_v53  ;;  %v3136_v6 = vadd.f32 %v14165_v61, %v14164_v21  ;;  %v3239_v28 = vadd.f32 %v2983_v1, %v11048_v58  ;;  %v14167_v13 = vld [vmem:[#allocation30_spill] sm:$0xff] }
 0x2b7   : > { %14163 = vst [vmem:[#allocation94_spill] sm:$0xff] %v11158_v60  ;;  %5556 = vmatprep.mubr.bf16.mxu0 %v4594_v49  ;;  %v4395_v32 = vmul.f32 %v4139_v29, %v2347_v50  ;;  %v3144_v37 = vadd.f32 %v14167_v13, %v14166_v36  ;;  %v11166_v17 = vpop.eup %7213  ;;  %v2989_v47 = vmul.f32 %v2733_v22, %v11085_v35  ;;  %7215 = vtanh.f32 %v3390_v2  ;;  %v11185_v53 = vpop.f32.mrf.mxu0  ;;  %v14176_v2 = vld [vmem:[#allocation63_spill] sm:$0xff] }
 0x2b8   : > { %14168 = vst [vmem:[#allocation21_spill] sm:$0xff] %v11166_v17  ;;  %v4596_v40 = vpack.c.bf16 %v4404_v16, %v4396_v20  ;;  %5557 = vmatmul.mubr.bf16.gmra.mxu0 %v4593_v7  ;;  %v3392_v33 = vmul.f32 0.7978846, %v3136_v6  ;;  %v3487_v0 = vmul.f32 0.7978846, %v11103_v41  ;;  %7217 = vtanh.f32 %v3398_v3  ;;  %v14174_v20 = vld [vmem:[#allocation78_spill] sm:$0xff] }
 0x2b9   : > { %v4595_v39 = vpack.c.bf16 %v4403_v24, %v4395_v32  ;;  %v3400_v29 = vmul.f32 0.7978846, %v3144_v37  ;;  %v2718_v1 = vmul.f32 %v2462_v5, %v11098_v27  ;;  %v2464_v26 = vmul.f32 0.044715, %v11122_v48  ;;  %v11224_v24 = vpop.f32.mrf.mxu0  ;;  %v14179_v37 = vld [vmem:[#allocation80_spill] sm:$0xff] }
 0x2ba   : > { %5749 = vmatprep.mubr.bf16.mxu1 %v4596_v40  ;;  %v2991_v62 = vmul.f32 %v2735_v30, %v11089_v63  ;;  %7219 = vtanh.f32 %v3392_v33  ;;  %v3493_v22 = vmul.f32 0.7978846, %v3237_v45  ;;  %v2470_v6 = vmul.f32 0.044715, %v11126_v12  ;;  %v11187_v30 = vpop.f32.mrf.mxu1  ;;  %v14178_v45 = vld [vmem:[#allocation9_spill] sm:$0xff]  ;;  %v14181_v33 = vld [vmem:[#allocation108_spill] sm:$0xff] }
 0x2bb   : > { %5750 = vmatmul.mubr.bf16.gmra.mxu1 %v4595_v39  ;;  %7221 = vtanh.f32 %v3400_v29  ;;  %v11180_v25 = vadd.f32 %v10751_v31, %v10042_v34  ;;  %v3495_v41 = vmul.f32 0.7978846, %v3239_v28  ;;  %v2472_v50 = vmul.f32 0.044715, %v11132_v14 }
 0x2bc   : > { %7223 = vtanh.f32 %v11091_v54  ;;  %v3245_v5 = vadd.f32 %v2989_v47, %v11085_v35  ;;  %v11191_v32 = vmul.f32 %v11074_v57, %v10980_v59  ;;  %v11195_v13 = vmul.f32 %v11081_v8, %v10988_v52  ;;  %v11226_v16 = vpop.f32.mrf.mxu1  ;;  %v14180_v47 = vld [vmem:[#allocation116_spill] sm:$0xff] }
 0x2bd   : > { %14169 = vst [vmem:[#allocation113_spill] sm:$0xff] %v11180_v25  ;;  %7225 = vtanh.f32 %v11100_v43  ;;  %v11200_v31 = vadd.f32 %v10753_v51, %v10062_v44  ;;  %v11204_v54 = vmul.f32 %v11094_v38, %v10992_v4  ;;  %v11207_v28 = vmul.f32 %v2464_v26, %v11122_v48 }
 0x2be   : > { %14170 = vst [vmem:[#allocation24_spill] sm:$0xff] %v11191_v32  ;;  %7227 = vtanh.f32 %v3487_v0  ;;  %v3247_v57 = vadd.f32 %v2991_v62, %v11089_v63  ;;  %v11211_v49 = vmul.f32 %v2718_v1, %v11098_v27  ;;  %v11214_v8 = vmul.f32 %v2470_v6, %v11126_v12 }
 0x2bf   : > { %14171 = vst [vmem:[#allocation31_spill] sm:$0xff] %v11200_v31  ;;  %14172 = vst [vmem:[#allocation51_spill] sm:$0xff] %v11204_v54  ;;  %7229 = vtanh.f32 %v3493_v22  ;;  %v2485_v51 = vmul.f32 0.044715, %v11180_v25  ;;  %v11218_v43 = vmul.f32 %v2472_v50, %v11132_v14  ;;  %v3501_v38 = vmul.f32 0.7978846, %v3245_v5 }
 0x2c0   : > { %14173 = vst [vmem:[#allocation114_spill] sm:$0xff] %v11211_v49  ;;  %7231 = vtanh.f32 %v3495_v41  ;;  %v11222_v7 = vadd.f32 %v14174_v20, %v10193_v19  ;;  %v11230_v3 = vadd.f32 %v14176_v2, %v13948_v23  ;;  %v2487_v61 = vmul.f32 0.044715, %v11200_v31  ;;  %v14188_v20 = vld [vmem:[#allocation7_spill] sm:$0xff]  ;;  %v11259_v2 = vpop.f32.mrf.mxu0 }
 0x2c1   : > { %v3150_v40 = vadd.f32 %v14179_v37, %v14178_v45  ;;  %v3158_v0 = vadd.f32 %v14181_v33, %v14180_v47  ;;  %v11237_v39 = vmul.f32 0.7978846, %v3247_v57  ;;  %v2110_v29 = vmul.f32 0.5, %v14156_v56  ;;  %v14185_v56 = vld [vmem:[#allocation111_spill] sm:$0xff]  ;;  %14189 = vst [vmem:[#allocation9_spill] sm:$0xff] %v11259_v2 }
 0x2c2   : > { %14175 = vst [vmem:[#allocation49_spill] sm:$0xff] %v11222_v7  ;;  %14177 = vst [vmem:[#allocation72_spill] sm:$0xff] %v11230_v3  ;;  %v2118_v1 = vmul.f32 0.5, %v14158_v15  ;;  %v2112_v26 = vmul.f32 0.5, %v14164_v21  ;;  %v2741_v62 = vmul.f32 %v2485_v51, %v11180_v25  ;;  %v11245_v22 = vadd.f32 %v10775_v18, %v10193_v19  ;;  %v14186_v15 = vld [vmem:[#allocation106_spill] sm:$0xff]  ;;  %v11261_v18 = vpop.f32.mrf.mxu1  ;;  %v11275_v17 = vpop.f32.mrf.mxu0 }
 0x2c3   : > { %v3406_v6 = vmul.f32 0.7978846, %v3150_v40  ;;  %v3414_v41 = vmul.f32 0.7978846, %v3158_v0  ;;  %v11249_v50 = vadd.f32 %v10813_v42, %v10042_v34  ;;  %v11253_v5 = vadd.f32 %v10815_v10, %v10062_v44  ;;  %v14187_v21 = vld [vmem:[#allocation122_spill] sm:$0xff]  ;;  %14190 = vst [vmem:[#allocation80_spill] sm:$0xff] %v11261_v18 }
 0x2c4   : > { %14182 = vst [vmem:[#allocation30_spill] sm:$0xff] %v11245_v22  ;;  %v3152_v57 = vadd.f32 %v14186_v15, %v14185_v56  ;;  %v3160_v51 = vadd.f32 %v14188_v20, %v14187_v21  ;;  %v7216_v37 = vpop.eup %7215  ;;  %v2120_v40 = vmul.f32 0.5, %v14166_v36  ;;  %v2478_v42 = vmul.f32 0.044715, %v11222_v7  ;;  %14192 = vst [vmem:[#allocation108_spill] sm:$0xff] %v11275_v17 }
 0x2c5   : > { %14183 = vst [vmem:[#allocation78_spill] sm:$0xff] %v11249_v50  ;;  %14184 = vst [vmem:[#allocation63_spill] sm:$0xff] %v11253_v5  ;;  %v2480_v33 = vmul.f32 0.044715, %v11230_v3  ;;  %v2743_v10 = vmul.f32 %v2487_v61, %v11200_v31  ;;  %v7218_v0 = vpop.eup %7217  ;;  %v3902_v63 = vadd.f32 1.0, %v7216_v37  ;;  %v11269_v15 = vadd.f32 %v10777_v9, %v13948_v23  ;;  %v11277_v9 = vpop.f32.mrf.mxu1 }
 0x2c6   : > { %7233 = vtanh.f32 %v3406_v6  ;;  %v3408_v20 = vmul.f32 0.7978846, %v3152_v57  ;;  %v3910_v58 = vadd.f32 1.0, %v7218_v0  ;;  %v2486_v46 = vmul.f32 0.044715, %v11245_v22  ;;  %14193 = vst [vmem:[#allocation111_spill] sm:$0xff] %v11277_v9 }
 0x2c7   : > { %14191 = vst [vmem:[#allocation116_spill] sm:$0xff] %v11269_v15  ;;  %v7220_v35 = vpop.eup %7219  ;;  %7235 = vtanh.f32 %v3414_v41  ;;  %v3416_v36 = vmul.f32 0.7978846, %v3160_v51  ;;  %v2997_v60 = vmul.f32 %v2741_v62, %v11180_v25  ;;  %v2493_v61 = vmul.f32 0.044715, %v11249_v50 }
 0x2c8   : > { %v7222_v49 = vpop.eup %7221  ;;  %v3904_v27 = vadd.f32 1.0, %v7220_v35  ;;  %v2495_v37 = vmul.f32 0.044715, %v11253_v5  ;;  %v4158_v57 = vmul.f32 %v3902_v63, %v2110_v29  ;;  %v4166_v0 = vmul.f32 %v3910_v58, %v2118_v1  ;;  %v11294_v1 = vpop.f32.mrf.mxu0 }
 0x2c9   : > { %v11279_v6 = vpop.eup %7223  ;;  %v3912_v18 = vadd.f32 1.0, %v7222_v49  ;;  %v2999_v41 = vmul.f32 %v2743_v10, %v11200_v31  ;;  %v2734_v35 = vmul.f32 %v2478_v42, %v11222_v7  ;;  %v2736_v62 = vmul.f32 %v2480_v33, %v11230_v3  ;;  %14198 = vst [vmem:[#allocation129_spill] sm:$0xff] %v11294_v1  ;;  %v11296_v42 = vpop.f32.mrf.mxu1  ;;  %v14289_v1 = vld [vmem:[#allocation107_spill] sm:$0xff] }
 0x2ca   : > { %14194 = vst [vmem:[#allocation106_spill] sm:$0xff] %v11279_v6  ;;  %v11282_v51 = vpop.eup %7225  ;;  %v2488_v2 = vmul.f32 0.044715, %v11269_v15  ;;  %7237 = vtanh.f32 %v3408_v20  ;;  %v4478_v17 = vpack.c.bf16 %v4166_v0, %v4158_v57  ;;  %v4160_v9 = vmul.f32 %v3904_v27, %v2112_v26  ;;  %14199 = vst [vmem:[#allocation130_spill] sm:$0xff] %v11296_v42  ;;  %v14213_v57 = vld [vmem:[#allocation29_spill] sm:$0xff]  ;;  %v14288_v42 = vld [vmem:[#allocation62_spill] sm:$0xff] }
 0x2cb   : > { %14195 = vst [vmem:[#allocation122_spill] sm:$0xff] %v11282_v51  ;;  %v11287_v54 = vpop.eup %7227  ;;  %v4168_v4 = vmul.f32 %v3912_v18, %v2120_v40  ;;  %7239 = vtanh.f32 %v3416_v36  ;;  %v2742_v58 = vmul.f32 %v2486_v46, %v11245_v22  ;;  %v2749_v49 = vmul.f32 %v2493_v61, %v11249_v50 }
 0x2cc   : > { %14196 = vst [vmem:[#allocation7_spill] sm:$0xff] %v11287_v54  ;;  %v11289_v63 = vpop.eup %7229  ;;  %7241 = vtanh.f32 %v3501_v38  ;;  %v2751_v29 = vmul.f32 %v2495_v37, %v11253_v5  ;;  %5792 = vmatprep.mubr.bf16.mxu0 %v4478_v17  ;;  %v3253_v27 = vadd.f32 %v2997_v60, %v11180_v25  ;;  %v3255_v26 = vadd.f32 %v2999_v41, %v11200_v31  ;;  %v14201_v38 = vld [vmem:[#allocation8_spill] sm:$0xff]  ;;  %v14207_v60 = vld [vmem:[#allocation118_spill] sm:$0xff] }
 0x2cd   : > { %14197 = vst [vmem:[#allocation128_spill] sm:$0xff] %v11289_v63  ;;  %v11298_v33 = vpop.eup %7231  ;;  %v4480_v10 = vpack.c.bf16 %v4168_v4, %v4160_v9  ;;  %v11304_v18 = vadd.f32 %v14201_v38, %v10042_v34  ;;  %v11308_v46 = vmul.f32 %v11207_v28, %v11122_v48  ;;  %v11312_v40 = vmul.f32 %v11214_v8, %v11126_v12  ;;  %v14206_v4 = vld [vmem:[#allocation102_spill] sm:$0xff]  ;;  %v14212_v9 = vld [vmem:[#allocation52_spill] sm:$0xff] }
 0x2ce   : > { %14200 = vst [vmem:[#allocation131_spill] sm:$0xff] %v11298_v33  ;;  %v11316_v17 = vmul.f32 %v11218_v43, %v11132_v14  ;;  %7243 = vtanh.f32 %v11237_v39  ;;  %v14208_v20 = vpack.c.bf16 %v14206_v4, %v14207_v60  ;;  %v11323_v36 = vmul.f32 %v2734_v35, %v11222_v7  ;;  %v11341_v35 = vpop.f32.mrf.mxu0  ;;  %v14223_v60 = vld [vmem:[#allocation95_spill] sm:$0xff] }
 0x2cf   : > { %14202 = vst [vmem:[#allocation8_spill] sm:$0xff] %v11304_v18  ;;  %14203 = vst [vmem:[#allocation132_spill] sm:$0xff] %v11308_v46  ;;  %5985 = vmatprep.mubr.bf16.mxu1 %v4480_v10  ;;  %v11326_v28 = vmul.f32 %v2736_v62, %v11230_v3  ;;  %v11329_v8 = vmul.f32 %v2488_v2, %v11269_v15  ;;  %v2126_v61 = vmul.f32 0.5, %v14178_v45  ;;  %v2134_v41 = vmul.f32 0.5, %v14180_v47  ;;  %v11343_v62 = vpop.f32.mrf.mxu1  ;;  %v14221_v47 = vld [vmem:[#allocation76_spill] sm:$0xff] }
 0x2d0   : > { %14204 = vst [vmem:[#allocation133_spill] sm:$0xff] %v11312_v40  ;;  %14205 = vst [vmem:[#allocation134_spill] sm:$0xff] %v11316_v17  ;;  %5793 = vmatmul.mubr.bf16.vlgmr.msra.gmra.mxu0 %v14208_v20  ;;  %v11333_v43 = vmul.f32 %v2742_v58, %v11245_v22  ;;  %v3005_v39 = vmul.f32 %v2749_v49, %v11249_v50  ;;  %v3007_v37 = vmul.f32 %v2751_v29, %v11253_v5  ;;  %v14217_v58 = vld [vmem:[#allocation35_spill] sm:$0xff]  ;;  %v14219_v29 = vld [vmem:[#allocation120_spill] sm:$0xff] }
 0x2d1   : > { %14209 = vst [vmem:[#allocation102_spill] sm:$0xff] %v11323_v36  ;;  %14210 = vst [vmem:[#allocation118_spill] sm:$0xff] %v11326_v28  ;;  %v14214_v0 = vpack.c.bf16 %v14212_v9, %v14213_v57  ;;  %v11345_v2 = vmul.f32 0.7978846, %v3253_v27  ;;  %v11347_v45 = vmul.f32 0.7978846, %v3255_v26  ;;  %v11351_v10 = vadd.f32 %v14217_v58, %v10193_v19 }
 0x2d2   : > { %14211 = vst [vmem:[#allocation135_spill] sm:$0xff] %v11333_v43  ;;  %14215 = vst [vmem:[#allocation52_spill] sm:$0xff] %v11341_v35  ;;  %v2501_v49 = vmul.f32 0.044715, %v11304_v18  ;;  %v11356_v38 = vadd.f32 %v14219_v29, %v13948_v23  ;;  %v11360_v4 = vadd.f32 %v14221_v47, %v10062_v44  ;;  %v11364_v27 = vadd.f32 %v14223_v60, %v10042_v34  ;;  %v14225_v26 = vld [vmem:[#allocation57_spill] sm:$0xff]  ;;  %v14226_v58 = vld [vmem:[#allocation100_spill] sm:$0xff]  ;;  %v11381_v43 = vpop.f32.mrf.mxu0 }
 0x2d3   : > { %5986 = vmatmul.mubr.bf16.vlgmr.msra.gmra.mxu1 %v14214_v0  ;;  %14216 = vst [vmem:[#allocation29_spill] sm:$0xff] %v11343_v62  ;;  %14218 = vst [vmem:[#allocation35_spill] sm:$0xff] %v11351_v10  ;;  %v3925_v20 = vadd.f32 1.0, %v14225_v26  ;;  %v7234_v9 = vpop.eup %7233  ;;  %v2128_v57 = vmul.f32 0.5, %v14185_v56  ;;  %v2136_v0 = vmul.f32 0.5, %v14187_v21  ;;  %v11371_v31 = vadd.f32 %v14226_v58, %v10062_v44  ;;  %v14228_v29 = vld [vmem:[#allocation60_spill] sm:$0xff]  ;;  %v11383_v56 = vpop.f32.mrf.mxu1 }
 0x2d4   : > { %14220 = vst [vmem:[#allocation120_spill] sm:$0xff] %v11356_v38  ;;  %14222 = vst [vmem:[#allocation76_spill] sm:$0xff] %v11360_v4  ;;  %v3917_v25 = vadd.f32 1.0, %v14228_v29  ;;  %v7236_v28 = vpop.eup %7235  ;;  %v11375_v47 = vadd.f32 %v3005_v39, %v11249_v50  ;;  %v11378_v60 = vadd.f32 %v3007_v37, %v11253_v5  ;;  %v3918_v3 = vadd.f32 1.0, %v7234_v9  ;;  %v14229_v26 = vld [vmem:[#allocation46_spill] sm:$0xff]  ;;  %v14232_v22 = vld [vmem:[#allocation17_spill] sm:$0xff]  ;;  %v11399_v46 = vpop.f32.mrf.mxu0 }
 0x2d5   : > { %14224 = vst [vmem:[#allocation95_spill] sm:$0xff] %v11364_v27  ;;  %14227 = vst [vmem:[#allocation57_spill] sm:$0xff] %v11371_v31  ;;  %v2133_v54 = vmul.f32 0.5, %v14229_v26  ;;  %v3926_v21 = vadd.f32 1.0, %v7236_v28  ;;  %v11386_v58 = vmul.f32 0.044715, %v11351_v10  ;;  %v2757_v29 = vmul.f32 %v2501_v49, %v11304_v18  ;;  %v11401_v48 = vpop.f32.mrf.mxu1 }
 0x2d6   : > { %14230 = vst [vmem:[#allocation100_spill] sm:$0xff] %v11381_v43  ;;  %14231 = vst [vmem:[#allocation60_spill] sm:$0xff] %v11383_v56  ;;  %v2125_v36 = vmul.f32 0.5, %v14232_v22  ;;  %v11391_v39 = vmul.f32 0.044715, %v11356_v38  ;;  %v4174_v50 = vmul.f32 %v3918_v3, %v2126_v61  ;;  %v14233_v56 = vld [vmem:[#allocation64_spill] sm:$0xff] }
 0x2d7   : > { %v2503_v37 = vmul.f32 0.044715, %v11360_v4  ;;  %v2509_v9 = vmul.f32 0.044715, %v11364_v27  ;;  %v4181_v26 = vmul.f32 %v3925_v20, %v2133_v54  ;;  %v7238_v5 = vpop.eup %7237  ;;  %v4182_v7 = vmul.f32 %v3926_v21, %v2134_v41  ;;  %v14234_v43 = vld [vmem:[#allocation103_spill] sm:$0xff]  ;;  %v14235_v17 = vld [vmem:[#allocation16_spill] sm:$0xff] }
 0x2d8   : > { %v2511_v28 = vmul.f32 0.044715, %v11371_v31  ;;  %v4173_v33 = vmul.f32 %v3917_v25, %v2125_v36  ;;  %v7240_v63 = vpop.eup %7239  ;;  %v3920_v51 = vadd.f32 1.0, %v7238_v5  ;;  %v2135_v49 = vmul.f32 0.5, %v14233_v56  ;;  %14236 = vst [vmem:[#allocation46_spill] sm:$0xff] %v11399_v46  ;;  %14237 = vst [vmem:[#allocation17_spill] sm:$0xff] %v11401_v48 }
 0x2d9   : > { %v3919_v22 = vadd.f32 1.0, %v14234_v43  ;;  %v3927_v14 = vadd.f32 1.0, %v14235_v17  ;;  %v11403_v40 = vpop.eup %7241  ;;  %v4486_v54 = vpack.c.bf16 %v4182_v7, %v4174_v50  ;;  %v3928_v3 = vadd.f32 1.0, %v7240_v63  ;;  %v14239_v25 = vld [vmem:[#allocation4_spill] sm:$0xff]  ;;  %v14240_v43 = vld [vmem:[#allocation25_spill] sm:$0xff]  ;;  %v14243_v7 = vld [vmem:[#allocation115_spill] sm:$0xff] }
 0x2da   : > { %14238 = vst [vmem:[#allocation64_spill] sm:$0xff] %v11403_v40  ;;  %v3013_v61 = vmul.f32 %v2757_v29, %v11304_v18  ;;  %v11408_v36 = vadd.f32 %v14239_v25, %v10193_v19  ;;  %v2759_v5 = vmul.f32 %v2503_v37, %v11360_v4  ;;  %v4485_v41 = vpack.c.bf16 %v4181_v26, %v4173_v33  ;;  %v14242_v40 = vld [vmem:[#allocation123_spill] sm:$0xff]  ;;  %v14244_v63 = vld [vmem:[#allocation41_spill] sm:$0xff]  ;;  %v14245_v29 = vld [vmem:[#allocation6_spill] sm:$0xff] }
 0x2db   : > { %v2127_v20 = vmul.f32 0.5, %v14240_v43  ;;  %v4183_v17 = vmul.f32 %v3927_v14, %v2135_v49  ;;  %v11412_v56 = vpop.eup %7243  ;;  %5802 = vmatprep.mubr.bf16.mxu0 %v4486_v54  ;;  %v4176_v21 = vmul.f32 %v3920_v51, %v2128_v57  ;;  %v4184_v48 = vmul.f32 %v3928_v3, %v2136_v0  ;;  %v14246_v37 = vld [vmem:[#allocation37_spill] sm:$0xff]  ;;  %v11422_v49 = vpop.f32.mrf.mxu0  ;;  %v14251_v43 = vld [vmem:[#allocation87_spill] sm:$0xff] }
 0x2dc   : > { %14241 = vst [vmem:[#allocation103_spill] sm:$0xff] %v11412_v56  ;;  %v3166_v50 = vadd.f32 %v14243_v7, %v14242_v40  ;;  %v3174_v46 = vadd.f32 %v14245_v29, %v14244_v63  ;;  %v2765_v25 = vmul.f32 %v2509_v9, %v11364_v27  ;;  %v2767_v12 = vmul.f32 %v2511_v28, %v11371_v31  ;;  %v14247_v26 = vld [vmem:[#allocation109_spill] sm:$0xff]  ;;  %v11424_v54 = vpop.f32.mrf.mxu1  ;;  %v14252_v29 = vld [vmem:[#allocation56_spill] sm:$0xff] }
 0x2dd   : > { %5803 = vmatmul.mubr.bf16.gmra.mxu0 %v4485_v41  ;;  %v4175_v33 = vmul.f32 %v3919_v22, %v2127_v20  ;;  %v3168_v14 = vadd.f32 %v14247_v26, %v14246_v37  ;;  %14248 = vst [vmem:[#allocation16_spill] sm:$0xff] %v11422_v49  ;;  %14249 = vst [vmem:[#allocation4_spill] sm:$0xff] %v11424_v54  ;;  %v4488_v51 = vpack.c.bf16 %v4184_v48, %v4176_v21  ;;  %v14250_v3 = vld [vmem:[#allocation77_spill] sm:$0xff]  ;;  %v14254_v22 = vld [vmem:[#allocation54_spill] sm:$0xff] }
 0x2de   : > { %v3422_v57 = vmul.f32 0.7978846, %v3166_v50  ;;  %v3430_v0 = vmul.f32 0.7978846, %v3174_v46  ;;  %v3176_v7 = vadd.f32 %v14251_v43, %v14250_v3  ;;  %v11430_v9 = vadd.f32 %v14252_v29, %v13948_v23  ;;  %v14256_v46 = vld [vmem:[#allocation126_spill] sm:$0xff]  ;;  %v14282_v54 = vld [vmem:[#allocation68_spill] sm:$0xff] }
 0x2df   : > { %v4487_v28 = vpack.c.bf16 %v4183_v17, %v4175_v33  ;;  %v3424_v41 = vmul.f32 0.7978846, %v3168_v14  ;;  %v11434_v20 = vadd.f32 %v14254_v22, %v10042_v34  ;;  %5995 = vmatprep.mubr.bf16.mxu1 %v4488_v51  ;;  %v3269_v26 = vadd.f32 %v3013_v61, %v11304_v18  ;;  %v11444_v33 = vpop.f32.mrf.mxu0  ;;  %v11446_v14 = vpop.f32.mrf.mxu1  ;;  %v14263_v22 = vld [vmem:[#allocation59_spill] sm:$0xff]  ;;  %v14277_v18 = vld [vmem:[#allocation10_spill] sm:$0xff] }
 0x2e0   : > { %14253 = vst [vmem:[#allocation25_spill] sm:$0xff] %v11430_v9  ;;  %7245 = vtanh.f32 %v3422_v57  ;;  %v3432_v48 = vmul.f32 0.7978846, %v3176_v7  ;;  %v11439_v21 = vadd.f32 %v14256_v46, %v10062_v44  ;;  %v3015_v50 = vmul.f32 %v2759_v5, %v11360_v4  ;;  %14258 = vst [vmem:[#allocation41_spill] sm:$0xff] %v11444_v33  ;;  %v14285_v49 = vld [vmem:[#allocation119_spill] sm:$0xff] }
 0x2e1   : > { %14255 = vst [vmem:[#allocation123_spill] sm:$0xff] %v11434_v20  ;;  %v3021_v43 = vmul.f32 %v2765_v25, %v11364_v27  ;;  %5996 = vmatmul.mubr.bf16.gmra.mxu1 %v4487_v28  ;;  %7247 = vtanh.f32 %v3430_v0  ;;  %v2517_v17 = vmul.f32 0.044715, %v11434_v20  ;;  %14259 = vst [vmem:[#allocation6_spill] sm:$0xff] %v11446_v14  ;;  %v3517_v61 = vmul.f32 0.7978846, %v11375_v47  ;;  %v11463_v28 = vpop.f32.mrf.mxu0 }
 0x2e2   : > { %14257 = vst [vmem:[#allocation115_spill] sm:$0xff] %v11439_v21  ;;  %v3519_v51 = vmul.f32 0.7978846, %v11378_v60  ;;  %v3023_v57 = vmul.f32 %v2767_v12, %v11371_v31  ;;  %7249 = vtanh.f32 %v3424_v41  ;;  %v2750_v5 = vmul.f32 %v11386_v58, %v11351_v10  ;;  %14260 = vst [vmem:[#allocation37_spill] sm:$0xff] %v11463_v28  ;;  %v14286_v14 = vld [vmem:[#allocation66_spill] sm:$0xff] }
 0x2e3   : > { %v2752_v25 = vmul.f32 %v11391_v39, %v11356_v38  ;;  %v2502_v0 = vmul.f32 0.044715, %v11408_v36  ;;  %7251 = vtanh.f32 %v3432_v48  ;;  %v3525_v7 = vmul.f32 0.7978846, %v3269_v26  ;;  %v11465_v39 = vpop.f32.mrf.mxu1 }
 0x2e4   : > { %7253 = vtanh.f32 %v11345_v2  ;;  %v2504_v29 = vmul.f32 0.044715, %v11430_v9  ;;  %v2519_v47 = vmul.f32 0.044715, %v11439_v21  ;;  %v3271_v12 = vadd.f32 %v3015_v50, %v11360_v4  ;;  %14261 = vst [vmem:[#allocation109_spill] sm:$0xff] %v11465_v39  ;;  %v14267_v50 = vld [vmem:[#allocation5_spill] sm:$0xff] }
 0x2e5   : > { %7255 = vtanh.f32 %v11347_v45  ;;  %v3277_v60 = vadd.f32 %v3021_v43, %v11364_v27  ;;  %v2773_v58 = vmul.f32 %v2517_v17, %v11434_v20  ;;  %v11469_v2 = vmul.f32 %v11329_v8, %v11269_v15 }
 0x2e6   : > { %7257 = vtanh.f32 %v3517_v61  ;;  %v3279_v41 = vadd.f32 %v3023_v57, %v11371_v31  ;;  %v11474_v45 = vadd.f32 %v14263_v22, %v10042_v34  ;;  %v11477_v26 = vmul.f32 %v2750_v5, %v11351_v10  ;;  %v14269_v5 = vld [vmem:[#allocation90_spill] sm:$0xff]  ;;  %v14275_v31 = vld [vmem:[#allocation104_spill] sm:$0xff] }
 0x2e7   : > { %14262 = vst [vmem:[#allocation77_spill] sm:$0xff] %v11469_v2  ;;  %7259 = vtanh.f32 %v3519_v51  ;;  %v11480_v48 = vmul.f32 %v2752_v25, %v11356_v38  ;;  %v11483_v46 = vmul.f32 %v2502_v0, %v11408_v36  ;;  %v11486_v8 = vmul.f32 %v2504_v29, %v11430_v9  ;;  %v11502_v0 = vpop.f32.mrf.mxu0  ;;  %v14278_v38 = vld [vmem:[#allocation117_spill] sm:$0xff] }
 0x2e8   : > { %14264 = vst [vmem:[#allocation87_spill] sm:$0xff] %v11474_v45  ;;  %14265 = vst [vmem:[#allocation56_spill] sm:$0xff] %v11477_v26  ;;  %7261 = vtanh.f32 %v3525_v7  ;;  %v11490_v43 = vadd.f32 %v14267_v50, %v10193_v19  ;;  %v2775_v17 = vmul.f32 %v2519_v47, %v11439_v21  ;;  %v11493_v61 = vmul.f32 0.7978846, %v3271_v12  ;;  %v11504_v7 = vpop.f32.mrf.mxu1  ;;  %v14273_v50 = vld [vmem:[#allocation67_spill] sm:$0xff] }
 0x2e9   : > { %14266 = vst [vmem:[#allocation54_spill] sm:$0xff] %v11480_v48  ;;  %v11495_v51 = vmul.f32 0.7978846, %v3277_v60  ;;  %v3029_v57 = vmul.f32 %v2773_v58, %v11434_v20  ;;  %v11500_v25 = vadd.f32 %v14269_v5, %v10062_v44  ;;  %14271 = vst [vmem:[#allocation5_spill] sm:$0xff] %v11502_v0  ;;  %v11506_v29 = vmul.f32 0.7978846, %v3279_v41  ;;  %v11533_v56 = vpop.f32.mrf.mxu0 }
 0x2ea   : > { %14268 = vst [vmem:[#allocation126_spill] sm:$0xff] %v11490_v43  ;;  %14272 = vst [vmem:[#allocation90_spill] sm:$0xff] %v11504_v7  ;;  %v2142_v22 = vmul.f32 0.5, %v14242_v40  ;;  %v2150_v47 = vmul.f32 0.5, %v14244_v63  ;;  %v2525_v12 = vmul.f32 0.044715, %v11474_v45  ;;  %v11515_v5 = vadd.f32 %v14273_v50, %v13948_v23  ;;  %v11535_v39 = vpop.f32.mrf.mxu1 }
 0x2eb   : > { %14270 = vst [vmem:[#allocation59_spill] sm:$0xff] %v11500_v25  ;;  %v2144_v60 = vmul.f32 0.5, %v14246_v37  ;;  %v2152_v58 = vmul.f32 0.5, %v14250_v3  ;;  %v3933_v27 = vadd.f32 1.0, %v14275_v31  ;;  %v11519_v4 = vmul.f32 0.044715, %v11490_v43 }
 0x2ec   : > { %14274 = vst [vmem:[#allocation67_spill] sm:$0xff] %v11515_v5  ;;  %v3031_v41 = vmul.f32 %v2775_v17, %v11439_v21  ;;  %v14276_v40 = vld [vmem:[#allocation15_spill] sm:$0xff]  ;;  %v3941_v48 = vadd.f32 1.0, %v14277_v18  ;;  %v11528_v3 = vadd.f32 %v3029_v57, %v11434_v20  ;;  %v2527_v50 = vmul.f32 0.044715, %v11500_v25  ;;  %14280 = vst [vmem:[#allocation104_spill] sm:$0xff] %v11533_v56 }
 0x2ed   : > { %v11524_v63 = vadd.f32 %v14276_v40, %v10193_v19  ;;  %v7246_v37 = vpop.eup %7245  ;;  %v2141_v26 = vmul.f32 0.5, %v14278_v38  ;;  %v14279_v31 = vld [vmem:[#allocation11_spill] sm:$0xff]  ;;  %14281 = vst [vmem:[#allocation15_spill] sm:$0xff] %v11535_v39  ;;  %v2781_v40 = vmul.f32 %v2525_v12, %v11474_v45  ;;  %v3943_v18 = vadd.f32 1.0, %v14282_v54  ;;  %v14283_v7 = vld [vmem:[#allocation65_spill] sm:$0xff] }
 0x2ee   : > { %v2149_v10 = vmul.f32 0.5, %v14279_v31  ;;  %v7248_v17 = vpop.eup %7247  ;;  %v3934_v28 = vadd.f32 1.0, %v7246_v37  ;;  %v14284_v0 = vld [vmem:[#allocation93_spill] sm:$0xff]  ;;  %v2143_v38 = vmul.f32 0.5, %v14285_v49  ;;  %v14287_v31 = vld [vmem:[#allocation84_spill] sm:$0xff]  ;;  %v2151_v37 = vmul.f32 0.5, %v14288_v42 }
 0x2ef   : > { %v3182_v57 = vadd.f32 %v14284_v0, %v14283_v7  ;;  %v7250_v20 = vpop.eup %7249  ;;  %v3942_v2 = vadd.f32 1.0, %v7248_v17  ;;  %v4189_v15 = vmul.f32 %v3933_v27, %v2141_v26  ;;  %v3190_v33 = vadd.f32 %v14287_v31, %v14286_v14  ;;  %v11548_v17 = vpop.f32.mrf.mxu0 }
 0x2f0   : > { %v7252_v56 = vpop.eup %7251  ;;  %v3936_v6 = vadd.f32 1.0, %v7250_v20  ;;  %v4197_v39 = vmul.f32 %v3941_v48, %v2149_v10  ;;  %v3935_v12 = vadd.f32 1.0, %v14289_v1  ;;  %v4190_v54 = vmul.f32 %v3934_v28, %v2142_v22  ;;  %v11550_v27 = vpop.f32.mrf.mxu1  ;;  %v14292_v10 = vld [vmem:[#allocation96_spill] sm:$0xff]  ;;  %v14293_v48 = vld [vmem:[#allocation70_spill] sm:$0xff] }
 0x2f1   : > { %v11546_v62 = vpop.eup %7253  ;;  %v4198_v35 = vmul.f32 %v3942_v2, %v2150_v47  ;;  %v3944_v0 = vadd.f32 1.0, %v7252_v56  ;;  %v3438_v32 = vmul.f32 0.7978846, %v3182_v57  ;;  %v4199_v31 = vmul.f32 %v3943_v18, %v2151_v37  ;;  %v14295_v28 = vld [vmem:[#allocation110_spill] sm:$0xff]  ;;  %v14296_v56 = vld [vmem:[#allocation89_spill] sm:$0xff] }
 0x2f2   : > { %14290 = vst [vmem:[#allocation10_spill] sm:$0xff] %v11546_v62  ;;  %v11552_v49 = vpop.eup %7255  ;;  %v4192_v26 = vmul.f32 %v3936_v6, %v2144_v60  ;;  %v3446_v20 = vmul.f32 0.7978846, %v3190_v33  ;;  %v3184_v42 = vadd.f32 %v14293_v48, %v14292_v10  ;;  %v3192_v2 = vadd.f32 %v14296_v56, %v14295_v28 }
 0x2f3   : > { %14291 = vst [vmem:[#allocation117_spill] sm:$0xff] %v11552_v49  ;;  %v11556_v59 = vpop.eup %7257  ;;  %v4494_v1 = vpack.c.bf16 %v4198_v35, %v4190_v54  ;;  %v4200_v62 = vmul.f32 %v3944_v0, %v2152_v58  ;;  %7263 = vtanh.f32 %v3438_v32  ;;  %v4493_v47 = vpack.c.bf16 %v4197_v39, %v4189_v15  ;;  %v11566_v58 = vpop.f32.mrf.mxu0  ;;  %v14301_v39 = vld [vmem:[#allocation48_spill] sm:$0xff] }
 0x2f4   : > { %14294 = vst [vmem:[#allocation11_spill] sm:$0xff] %v11556_v59  ;;  %v11560_v22 = vpop.eup %7259  ;;  %v4191_v57 = vmul.f32 %v3935_v12, %v2143_v38  ;;  %7265 = vtanh.f32 %v3446_v20  ;;  %v3440_v49 = vmul.f32 0.7978846, %v3184_v42  ;;  %v2512_v60 = vmul.f32 0.044715, %v11515_v5  ;;  %14299 = vst [vmem:[#allocation93_spill] sm:$0xff] %v11566_v58  ;;  %v11568_v32 = vpop.f32.mrf.mxu1 }
 0x2f5   : > { %14297 = vst [vmem:[#allocation68_spill] sm:$0xff] %v11560_v22  ;;  %v11562_v6 = vpop.eup %7261  ;;  %5812 = vmatprep.mubr.bf16.mxu0 %v4494_v1  ;;  %v4496_v33 = vpack.c.bf16 %v4200_v62, %v4192_v26  ;;  %v3287_v18 = vadd.f32 %v3031_v41, %v11439_v21  ;;  %v3448_v35 = vmul.f32 0.7978846, %v3192_v2  ;;  %14300 = vst [vmem:[#allocation119_spill] sm:$0xff] %v11568_v32  ;;  %v2518_v62 = vmul.f32 0.044715, %v11524_v63  ;;  %v11589_v26 = vpop.f32.mrf.mxu0 }
 0x2f6   : > { %14298 = vst [vmem:[#allocation65_spill] sm:$0xff] %v11562_v6  ;;  %v2783_v37 = vmul.f32 %v2527_v50, %v11500_v25  ;;  %5813 = vmatmul.mubr.bf16.gmra.mxu0 %v4493_v47  ;;  %v4495_v15 = vpack.c.bf16 %v4199_v31, %v4191_v57  ;;  %7267 = vtanh.f32 %v3440_v49  ;;  %v11573_v38 = vadd.f32 %v14301_v39, %v10042_v34  ;;  %v14303_v12 = vld [vmem:[#allocation12_spill] sm:$0xff]  ;;  %v11591_v31 = vpop.f32.mrf.mxu1  ;;  %v14309_v20 = vld [vmem:[#allocation18_spill] sm:$0xff]  ;;  %v14311_v1 = vld [vmem:[#allocation3_spill] sm:$0xff] }
 0x2f7   : > { %6005 = vmatprep.mubr.bf16.mxu1 %v4496_v33  ;;  %v11578_v41 = vadd.f32 %v14303_v12, %v13948_v23  ;;  %v3037_v54 = vmul.f32 %v2781_v40, %v11474_v45  ;;  %7269 = vtanh.f32 %v3448_v35  ;;  %v11584_v50 = vmul.f32 %v11483_v46, %v11408_v36  ;;  %14306 = vst [vmem:[#allocation107_spill] sm:$0xff] %v11589_v26  ;;  %v14314_v2 = vld [vmem:[#allocation53_spill] sm:$0xff]  ;;  %v14316_v57 = vld [vmem:[#allocation27_spill] sm:$0xff] }
 0x2f8   : > { %14302 = vst [vmem:[#allocation66_spill] sm:$0xff] %v11573_v38  ;;  %7271 = vtanh.f32 %v11493_v61  ;;  %v2766_v0 = vmul.f32 %v11519_v4, %v11490_v43  ;;  %v3541_v49 = vmul.f32 0.7978846, %v11528_v3  ;;  %6006 = vmatmul.mubr.bf16.gmra.mxu1 %v4495_v15  ;;  %14307 = vst [vmem:[#allocation96_spill] sm:$0xff] %v11591_v31  ;;  %v11595_v40 = vmul.f32 %v11486_v8, %v11430_v9  ;;  %v14321_v15 = vld [vmem:[#allocation28_spill] sm:$0xff]  ;;  %v14328_v21 = vld [vmem:[#allocation75_spill] sm:$0xff] }
 0x2f9   : > { %14304 = vst [vmem:[#allocation84_spill] sm:$0xff] %v11578_v41  ;;  %14305 = vst [vmem:[#allocation62_spill] sm:$0xff] %v11584_v50  ;;  %7273 = vtanh.f32 %v11495_v51  ;;  %v2768_v61 = vmul.f32 %v2512_v60, %v11515_v5  ;;  %v3543_v46 = vmul.f32 0.7978846, %v3287_v18  ;;  %v3039_v4 = vmul.f32 %v2783_v37, %v11500_v25  ;;  %v11628_v60 = vpop.f32.mrf.mxu0  ;;  %v11630_v18 = vpop.f32.mrf.mxu1  ;;  %v14329_v6 = vld [vmem:[#allocation83_spill] sm:$0xff] }
 0x2fa   : > { %14308 = vst [vmem:[#allocation70_spill] sm:$0xff] %v11595_v40  ;;  %7275 = vtanh.f32 %v11506_v29  ;;  %v2533_v3 = vmul.f32 0.044715, %v11573_v38  ;;  %v11604_v48 = vadd.f32 %v14309_v20, %v10062_v44  ;;  %v11607_v42 = vmul.f32 %v2518_v62, %v11524_v63  ;;  %14318 = vst [vmem:[#allocation3_spill] sm:$0xff] %v11628_v60  ;;  %v14330_v60 = vld [vmem:[#allocation40_spill] sm:$0xff] }
 0x2fb   : > { %v11610_v8 = vmul.f32 0.044715, %v11578_v41  ;;  %v3293_v51 = vadd.f32 %v3037_v54, %v11474_v45  ;;  %v11615_v56 = vadd.f32 %v14311_v1, %v10042_v34  ;;  %v11618_v29 = vmul.f32 %v2766_v0, %v11490_v43  ;;  %14319 = vst [vmem:[#allocation53_spill] sm:$0xff] %v11630_v18  ;;  %v14327_v45 = vld [vmem:[#allocation81_spill] sm:$0xff] }
 0x2fc   : > { %14310 = vst [vmem:[#allocation110_spill] sm:$0xff] %v11604_v48  ;;  %7277 = vtanh.f32 %v3541_v49  ;;  %v11622_v47 = vadd.f32 %v14314_v2, %v10193_v19  ;;  %v11626_v33 = vadd.f32 %v14316_v57, %v13948_v23  ;;  %v11633_v35 = vmul.f32 %v2768_v61, %v11515_v5 }
 0x2fd   : > { %14312 = vst [vmem:[#allocation89_spill] sm:$0xff] %v11615_v56  ;;  %14313 = vst [vmem:[#allocation48_spill] sm:$0xff] %v11618_v29  ;;  %7279 = vtanh.f32 %v3543_v46  ;;  %v2158_v37 = vmul.f32 0.5, %v14283_v7  ;;  %v11638_v39 = vadd.f32 %v14321_v15, %v10062_v44  ;;  %v11641_v62 = vadd.f32 %v3039_v4, %v11500_v25  ;;  %v14323_v7 = vld [vmem:[#allocation69_spill] sm:$0xff] }
 0x2fe   : > { %14315 = vst [vmem:[#allocation12_spill] sm:$0xff] %v11622_v47  ;;  %14317 = vst [vmem:[#allocation18_spill] sm:$0xff] %v11626_v33  ;;  %v2166_v12 = vmul.f32 0.5, %v14286_v14  ;;  %v2789_v54 = vmul.f32 %v2533_v3, %v11573_v38  ;;  %v2535_v0 = vmul.f32 0.044715, %v11604_v48  ;;  %v2160_v61 = vmul.f32 0.5, %v14292_v10  ;;  %v11664_v10 = vpop.f32.mrf.mxu1 }
 0x2ff   : > { %14320 = vst [vmem:[#allocation27_spill] sm:$0xff] %v11633_v35  ;;  %14322 = vst [vmem:[#allocation28_spill] sm:$0xff] %v11638_v39  ;;  %v11646_v49 = vmul.f32 0.7978846, %v3293_v51  ;;  %v2541_v46 = vmul.f32 0.044715, %v11615_v56  ;;  %v11662_v51 = vpop.f32.mrf.mxu0 }
 0x300   : > { %v3957_v20 = vadd.f32 1.0, %v14323_v7  ;;  %v7264_v1 = vpop.eup %7263  ;;  %v2168_v2 = vmul.f32 0.5, %v14295_v28  ;;  %v11653_v4 = vmul.f32 0.044715, %v11622_v47  ;;  %v11656_v14 = vmul.f32 0.044715, %v11626_v33 }
 0x301   : > { %v14324_v3 = vld [vmem:[#allocation43_spill] sm:$0xff]  ;;  %14325 = vst [vmem:[#allocation69_spill] sm:$0xff] %v11662_v51  ;;  %v7266_v15 = vpop.eup %7265  ;;  %v3950_v25 = vadd.f32 1.0, %v7264_v1  ;;  %v2543_v7 = vmul.f32 0.044715, %v11638_v39  ;;  %v2165_v28 = vmul.f32 0.5, %v14327_v45  ;;  %v3045_v5 = vmul.f32 %v2789_v54, %v11573_v38  ;;  %v11676_v58 = vpop.f32.mrf.mxu0 }
 0x302   : > { %v11660_v57 = vadd.f32 %v14324_v3, %v10193_v19  ;;  %14326 = vst [vmem:[#allocation43_spill] sm:$0xff] %v11664_v10  ;;  %v3949_v22 = vadd.f32 1.0, %v14328_v21  ;;  %v3958_v35 = vadd.f32 1.0, %v7266_v15  ;;  %v2791_v59 = vmul.f32 %v2535_v0, %v11604_v48  ;;  %v14331_v1 = vld [vmem:[#allocation19_spill] sm:$0xff]  ;;  %v14332_v21 = vld [vmem:[#allocation50_spill] sm:$0xff]  ;;  %14333 = vst [vmem:[#allocation81_spill] sm:$0xff] %v11676_v58  ;;  %v11678_v54 = vpop.f32.mrf.mxu1 }
 0x303   : > { %v3959_v3 = vadd.f32 1.0, %v14329_v6  ;;  %v7268_v18 = vpop.eup %7267  ;;  %v2797_v51 = vmul.f32 %v2541_v46, %v11615_v56  ;;  %v2157_v10 = vmul.f32 0.5, %v14330_v60  ;;  %v4213_v29 = vmul.f32 %v3957_v20, %v2165_v28  ;;  %14334 = vst [vmem:[#allocation75_spill] sm:$0xff] %v11678_v54  ;;  %v14336_v60 = vld [vmem:[#allocation58_spill] sm:$0xff]  ;;  %v11690_v9 = vpop.f32.mrf.mxu0 }
 0x304   : > { %v2167_v43 = vmul.f32 0.5, %v14331_v1  ;;  %v7270_v31 = vpop.eup %7269  ;;  %v4206_v26 = vmul.f32 %v3950_v25, %v2158_v37  ;;  %v4214_v45 = vmul.f32 %v3958_v35, %v2166_v12  ;;  %v3952_v32 = vadd.f32 1.0, %v7268_v18  ;;  %v14338_v35 = vld [vmem:[#allocation39_spill] sm:$0xff]  ;;  %v14339_v18 = vld [vmem:[#allocation42_spill] sm:$0xff]  ;;  %14342 = vst [vmem:[#allocation19_spill] sm:$0xff] %v11690_v9  ;;  %v11692_v54 = vpop.f32.mrf.mxu1 }
 0x305   : > { %v3951_v15 = vadd.f32 1.0, %v14332_v21  ;;  %v11680_v0 = vpop.eup %7271  ;;  %v3960_v6 = vadd.f32 1.0, %v7270_v31  ;;  %v2799_v46 = vmul.f32 %v2543_v7, %v11638_v39  ;;  %v4205_v40 = vmul.f32 %v3949_v22, %v2157_v10  ;;  %v14340_v12 = vld [vmem:[#allocation26_spill] sm:$0xff]  ;;  %v14341_v21 = vld [vmem:[#allocation23_spill] sm:$0xff]  ;;  %14343 = vst [vmem:[#allocation50_spill] sm:$0xff] %v11692_v54 }
 0x306   : > { %14335 = vst [vmem:[#allocation83_spill] sm:$0xff] %v11680_v0  ;;  %v2159_v20 = vmul.f32 0.5, %v14336_v60  ;;  %v11684_v28 = vpop.eup %7273  ;;  %v4502_v1 = vpack.c.bf16 %v4214_v45, %v4206_v26  ;;  %v4215_v25 = vmul.f32 %v3959_v3, %v2167_v43  ;;  %v3198_v37 = vadd.f32 %v14339_v18, %v14338_v35  ;;  %v14345_v60 = vld [vmem:[#allocation47_spill] sm:$0xff]  ;;  %v14346_v0 = vld [vmem:[#allocation124_spill] sm:$0xff]  ;;  %v14347_v45 = vld [vmem:[#allocation73_spill] sm:$0xff]  ;;  %v11702_v9 = vpop.f32.mrf.mxu1 }
 0x307   : > { %14337 = vst [vmem:[#allocation40_spill] sm:$0xff] %v11684_v28  ;;  %v3206_v58 = vadd.f32 %v14341_v21, %v14340_v12  ;;  %v11694_v31 = vpop.eup %7275  ;;  %v4208_v7 = vmul.f32 %v3952_v32, %v2160_v61  ;;  %v4216_v22 = vmul.f32 %v3960_v6, %v2168_v2  ;;  %v4501_v10 = vpack.c.bf16 %v4213_v29, %v4205_v40  ;;  %v14348_v18 = vld [vmem:[#allocation20_spill] sm:$0xff]  ;;  %v11700_v21 = vpop.f32.mrf.mxu0  ;;  %v14352_v40 = vld [vmem:[#allocation127_spill] sm:$0xff] }
 0x308   : > { %14344 = vst [vmem:[#allocation58_spill] sm:$0xff] %v11694_v31  ;;  %v3200_v28 = vadd.f32 %v14346_v0, %v14345_v60  ;;  %5822 = vmatprep.mubr.bf16.mxu0 %v4502_v1  ;;  %v4207_v43 = vmul.f32 %v3951_v15, %v2159_v20  ;;  %v3454_v26 = vmul.f32 0.7978846, %v3198_v37  ;;  %v3208_v50 = vadd.f32 %v14348_v18, %v14347_v45 }
 0x309   : > { %v3462_v3 = vmul.f32 0.7978846, %v3206_v58  ;;  %14349 = vst [vmem:[#allocation39_spill] sm:$0xff] %v11700_v21  ;;  %14350 = vst [vmem:[#allocation42_spill] sm:$0xff] %v11702_v9  ;;  %v11704_v54 = vpop.eup %7277  ;;  %v4504_v31 = vpack.c.bf16 %v4216_v22, %v4208_v7  ;;  %v3047_v32 = vmul.f32 %v2791_v59, %v11604_v48  ;;  %v11709_v29 = vadd.f32 %v14352_v40, %v13948_v23  ;;  %v11720_v1 = vpop.f32.mrf.mxu0  ;;  %v14381_v9 = vld [vmem:[#allocation92_spill] sm:$0xff] }
 0x30a   : > { %14351 = vst [vmem:[#allocation26_spill] sm:$0xff] %v11704_v54  ;;  %5823 = vmatmul.mubr.bf16.gmra.mxu0 %v4501_v10  ;;  %v3456_v61 = vmul.f32 0.7978846, %v3200_v28  ;;  %v11711_v2 = vpop.eup %7279  ;;  %v3301_v58 = vadd.f32 %v3045_v5, %v11573_v38  ;;  %v4503_v15 = vpack.c.bf16 %v4215_v25, %v4207_v43  ;;  %7281 = vtanh.f32 %v3454_v26  ;;  %14355 = vst [vmem:[#allocation124_spill] sm:$0xff] %v11720_v1  ;;  %v11722_v28 = vpop.f32.mrf.mxu1  ;;  %v14382_v21 = vld [vmem:[#allocation44_spill] sm:$0xff] }
 0x30b   : > { %14353 = vst [vmem:[#allocation23_spill] sm:$0xff] %v11711_v2  ;;  %v3464_v0 = vmul.f32 0.7978846, %v3208_v50  ;;  %6015 = vmatprep.mubr.bf16.mxu1 %v4504_v31  ;;  %v3053_v6 = vmul.f32 %v2797_v51, %v11615_v56  ;;  %v3055_v20 = vmul.f32 %v2799_v46, %v11638_v39  ;;  %7283 = vtanh.f32 %v3462_v3  ;;  %14356 = vst [vmem:[#allocation73_spill] sm:$0xff] %v11722_v28  ;;  %v11746_v7 = vpop.f32.mrf.mxu0  ;;  %v14364_v3 = vld [vmem:[#allocation99_spill] sm:$0xff] }
 0x30c   : > { %v11718_v59 = vadd.f32 %v11169_v11, %v10042_v34  ;;  %v2776_v5 = vmul.f32 %v11610_v8, %v11578_v41  ;;  %v3551_v25 = vmul.f32 0.7978846, %v11641_v62  ;;  %v2782_v50 = vmul.f32 %v11653_v4, %v11622_v47  ;;  %6016 = vmatmul.mubr.bf16.gmra.mxu1 %v4503_v15  ;;  %14358 = vst [vmem:[#allocation127_spill] sm:$0xff] %v11746_v7  ;;  %v11748_v22 = vpop.f32.mrf.mxu1 }
 0x30d   : > { %7285 = vtanh.f32 %v3456_v61  ;;  %v11731_v51 = vmul.f32 %v11607_v42, %v11524_v63  ;;  %v2784_v11 = vmul.f32 %v11656_v14, %v11626_v33  ;;  %v2534_v46 = vmul.f32 0.044715, %v11660_v57  ;;  %14359 = vst [vmem:[#allocation136_spill] sm:$0xff] %v11748_v22  ;;  %v11774_v61 = vpop.f32.mrf.mxu0 }
 0x30e   : > { %14354 = vst [vmem:[#allocation47_spill] sm:$0xff] %v11718_v59  ;;  %7287 = vtanh.f32 %v3464_v0  ;;  %v3557_v37 = vmul.f32 0.7978846, %v3301_v58  ;;  %v3303_v8 = vadd.f32 %v3047_v32, %v11604_v48  ;;  %v2536_v62 = vmul.f32 0.044715, %v11709_v29  ;;  %v14366_v32 = vld [vmem:[#allocation74_spill] sm:$0xff]  ;;  %v11776_v58 = vpop.f32.mrf.mxu1 }
 0x30f   : > { %v11740_v4 = vadd.f32 %v11171_v55, %v10062_v44  ;;  %7289 = vtanh.f32 %v11646_v49  ;;  %v3309_v42 = vadd.f32 %v3053_v6, %v11615_v56  ;;  %v3311_v31 = vadd.f32 %v3055_v20, %v11638_v39  ;;  %14368 = vst [vmem:[#allocation141_spill] sm:$0xff] %v11774_v61  ;;  %14369 = vst [vmem:[#allocation142_spill] sm:$0xff] %v11776_v58 }
 0x310   : > { %v2549_v14 = vmul.f32 0.044715, %v11718_v59  ;;  %v11751_v10 = vmul.f32 %v2776_v5, %v11578_v41  ;;  %7291 = vtanh.f32 %v3551_v25  ;;  %v11754_v43 = vmul.f32 %v2782_v50, %v11622_v47  ;;  %v11793_v50 = vpop.f32.mrf.mxu0  ;;  %v14390_v41 = vld [vmem:[#allocation71_spill] sm:$0xff] }
 0x311   : > { %14357 = vst [vmem:[#allocation20_spill] sm:$0xff] %v11740_v4  ;;  %v11758_v55 = vadd.f32 %v11224_v24, %v10042_v34  ;;  %v11761_v49 = vmul.f32 %v2784_v11, %v11626_v33  ;;  %v11764_v26 = vmul.f32 %v2534_v46, %v11660_v57  ;;  %v11768_v18 = vadd.f32 %v14364_v3, %v10193_v19  ;;  %v11795_v11 = vpop.f32.mrf.mxu1  ;;  %v14386_v33 = vld [vmem:[#allocation32_spill] sm:$0xff] }
 0x312   : > { %14360 = vst [vmem:[#allocation137_spill] sm:$0xff] %v11751_v10  ;;  %14361 = vst [vmem:[#allocation138_spill] sm:$0xff] %v11754_v43  ;;  %v11772_v40 = vadd.f32 %v14366_v32, %v13948_v23  ;;  %7293 = vtanh.f32 %v3557_v37  ;;  %v11778_v24 = vmul.f32 0.7978846, %v3303_v8  ;;  %v11781_v15 = vmul.f32 %v2536_v62, %v11709_v29 }
 0x313   : > { %14362 = vst [vmem:[#allocation139_spill] sm:$0xff] %v11758_v55  ;;  %14363 = vst [vmem:[#allocation140_spill] sm:$0xff] %v11761_v49  ;;  %v2551_v0 = vmul.f32 0.044715, %v11740_v4  ;;  %v11784_v6 = vmul.f32 0.7978846, %v3309_v42  ;;  %v2805_v5 = vmul.f32 %v2549_v14, %v11718_v59  ;;  %v11791_v25 = vadd.f32 %v11226_v16, %v10062_v44 }
 0x314   : > { %14365 = vst [vmem:[#allocation99_spill] sm:$0xff] %v11768_v18  ;;  %14367 = vst [vmem:[#allocation74_spill] sm:$0xff] %v11772_v40  ;;  %v11786_v20 = vmul.f32 0.7978846, %v3311_v31  ;;  %v2174_v46 = vmul.f32 0.5, %v14338_v35  ;;  %v2182_v37 = vmul.f32 0.5, %v14340_v12  ;;  %v11812_v35 = vadd.f32 %v11185_v53, %v10193_v19 }
 0x315   : > { %14370 = vst [vmem:[#allocation143_spill] sm:$0xff] %v11791_v25  ;;  %14371 = vst [vmem:[#allocation144_spill] sm:$0xff] %v11793_v50  ;;  %v2176_v8 = vmul.f32 0.5, %v14345_v60  ;;  %v2557_v62 = vmul.f32 0.044715, %v11758_v55  ;;  %v2184_v42 = vmul.f32 0.5, %v14347_v45  ;;  %v2807_v32 = vmul.f32 %v2551_v0, %v11740_v4  ;;  %v11821_v50 = vpop.f32.mrf.mxu1 }
 0x316   : > { %14372 = vst [vmem:[#allocation145_spill] sm:$0xff] %v11795_v11  ;;  %v11803_v31 = vmul.f32 0.044715, %v11768_v18  ;;  %v11806_v16 = vmul.f32 0.044715, %v11772_v40  ;;  %v14373_v14 = vld [vmem:[#allocation82_spill] sm:$0xff]  ;;  %v11816_v12 = vadd.f32 %v11187_v30, %v13948_v23  ;;  %v11819_v11 = vpop.f32.mrf.mxu0  ;;  %v11824_v61 = vmul.f32 %v2805_v5, %v11718_v59 }
 0x317   : > { %v3965_v3 = vadd.f32 1.0, %v14373_v14  ;;  %14374 = vst [vmem:[#allocation82_spill] sm:$0xff] %v11812_v35  ;;  %v14376_v60 = vld [vmem:[#allocation34_spill] sm:$0xff]  ;;  %14378 = vst [vmem:[#allocation147_spill] sm:$0xff] %v11821_v50  ;;  %v7282_v58 = vpop.eup %7281  ;;  %v2559_v0 = vmul.f32 0.044715, %v11791_v25  ;;  %v2813_v30 = vmul.f32 %v2557_v62, %v11758_v55  ;;  %v3222_v2 = vadd.f32 %v11195_v13, %v10988_v52 }
 0x318   : > { %14375 = vst [vmem:[#allocation146_spill] sm:$0xff] %v11816_v12  ;;  %v3973_v45 = vadd.f32 1.0, %v14376_v60  ;;  %14377 = vst [vmem:[#allocation34_spill] sm:$0xff] %v11819_v11  ;;  %v14379_v14 = vld [vmem:[#allocation105_spill] sm:$0xff]  ;;  %v7284_v28 = vpop.eup %7283  ;;  %v3966_v1 = vadd.f32 1.0, %v7282_v58  ;;  %v3975_v60 = vadd.f32 1.0, %v14381_v9  ;;  %v11838_v43 = vpop.f32.mrf.mxu0 }
 0x319   : > { %v2173_v22 = vmul.f32 0.5, %v14379_v14  ;;  %v14380_v53 = vld [vmem:[#allocation85_spill] sm:$0xff]  ;;  %v14383_v11 = vld [vmem:[#allocation98_spill] sm:$0xff]  ;;  %v3974_v56 = vadd.f32 1.0, %v7284_v28  ;;  %v14385_v49 = vld [vmem:[#allocation36_spill] sm:$0xff]  ;;  %v3967_v62 = vadd.f32 1.0, %v14386_v33  ;;  %v11840_v9 = vpop.f32.mrf.mxu1 }
 0x31a   : > { %v2181_v7 = vmul.f32 0.5, %v14380_v53  ;;  %v3214_v39 = vadd.f32 %v14383_v11, %v14382_v21  ;;  %v7286_v50 = vpop.eup %7285  ;;  %v14384_v5 = vld [vmem:[#allocation86_spill] sm:$0xff]  ;;  %v2183_v58 = vmul.f32 0.5, %v14385_v49  ;;  %14387 = vst [vmem:[#allocation105_spill] sm:$0xff] %v11838_v43  ;;  %14388 = vst [vmem:[#allocation85_spill] sm:$0xff] %v11840_v9  ;;  %v4222_v11 = vmul.f32 %v3966_v1, %v2174_v46  ;;  %v14396_v1 = vld [vmem:[#allocation51_spill] sm:$0xff] }
 0x31b   : > { %v4221_v48 = vmul.f32 %v3965_v3, %v2173_v22  ;;  %v2175_v38 = vmul.f32 0.5, %v14384_v5  ;;  %v7288_v14 = vpop.eup %7287  ;;  %v3968_v54 = vadd.f32 1.0, %v7286_v50  ;;  %v4230_v47 = vmul.f32 %v3974_v56, %v2182_v37  ;;  %v14391_v50 = vld [vmem:[#allocation24_spill] sm:$0xff]  ;;  %v11848_v49 = vpop.f32.mrf.mxu1  ;;  %v14395_v56 = vld [vmem:[#allocation38_spill] sm:$0xff] }
 0x31c   : > { %v4229_v53 = vmul.f32 %v3973_v45, %v2181_v7  ;;  %v3976_v28 = vadd.f32 1.0, %v7288_v14  ;;  %v3470_v22 = vmul.f32 0.7978846, %v3214_v39  ;;  %v11842_v3 = vpop.eup %7289  ;;  %v4231_v10 = vmul.f32 %v3975_v60, %v2183_v58  ;;  %v11846_v45 = vpop.f32.mrf.mxu0  ;;  %14393 = vst [vmem:[#allocation98_spill] sm:$0xff] %v11848_v49 }
 0x31d   : > { %14389 = vst [vmem:[#allocation92_spill] sm:$0xff] %v11842_v3  ;;  %v4224_v5 = vmul.f32 %v3968_v54, %v2176_v8  ;;  %v3478_v13 = vmul.f32 0.7978846, %v3222_v2  ;;  %v3216_v7 = vadd.f32 %v14391_v50, %v14390_v41  ;;  %14392 = vst [vmem:[#allocation44_spill] sm:$0xff] %v11846_v45  ;;  %v11850_v33 = vpop.eup %7291  ;;  %v4510_v43 = vpack.c.bf16 %v4230_v47, %v4222_v11  ;;  %v11856_v8 = vpop.f32.mrf.mxu1  ;;  %v14409_v50 = vld [vmem:[#allocation52_spill] sm:$0xff]  ;;  %v14428_v45 = vld [vmem:[#allocation106_spill] sm:$0xff] }
 0x31e   : > { %14394 = vst [vmem:[#allocation86_spill] sm:$0xff] %v11850_v33  ;;  %v4232_v9 = vmul.f32 %v3976_v28, %v2184_v42  ;;  %7295 = vtanh.f32 %v3470_v22  ;;  %v3224_v39 = vadd.f32 %v14396_v1, %v14395_v56  ;;  %v4509_v46 = vpack.c.bf16 %v4229_v53, %v4221_v48  ;;  %v11854_v2 = vpop.f32.mrf.mxu0  ;;  %14398 = vst [vmem:[#allocation32_spill] sm:$0xff] %v11856_v8 }
 0x31f   : > { %v4223_v37 = vmul.f32 %v3967_v62, %v2175_v38  ;;  %7297 = vtanh.f32 %v3478_v13  ;;  %v3472_v54 = vmul.f32 0.7978846, %v3216_v7  ;;  %14397 = vst [vmem:[#allocation36_spill] sm:$0xff] %v11854_v2  ;;  %v11858_v60 = vpop.eup %7293  ;;  %5832 = vmatprep.mubr.bf16.mxu0 %v4510_v43  ;;  %v3063_v58 = vmul.f32 %v2807_v32, %v11740_v4  ;;  %v14400_v38 = vld [vmem:[#allocation108_spill] sm:$0xff] }
 0x320   : > { %14399 = vst [vmem:[#allocation71_spill] sm:$0xff] %v11858_v60  ;;  %v4512_v14 = vpack.c.bf16 %v4232_v9, %v4224_v5  ;;  %v2815_v47 = vmul.f32 %v2559_v0, %v11791_v25  ;;  %v3480_v42 = vmul.f32 0.7978846, %v3224_v39  ;;  %v3069_v11 = vmul.f32 %v2813_v30, %v11758_v55  ;;  %5833 = vmatmul.mubr.bf16.gmra.mxu0 %v4509_v46  ;;  %v11872_v0 = vpop.f32.mrf.mxu0  ;;  %v11874_v30 = vpop.f32.mrf.mxu1 }
 0x321   : > { %v4511_v48 = vpack.c.bf16 %v4231_v10, %v4223_v37  ;;  %7299 = vtanh.f32 %v3472_v54  ;;  %v11865_v53 = vadd.f32 %v14400_v38, %v10042_v34  ;;  %v2798_v62 = vmul.f32 %v11803_v31, %v11768_v18  ;;  %14402 = vst [vmem:[#allocation38_spill] sm:$0xff] %v11872_v0  ;;  %14403 = vst [vmem:[#allocation51_spill] sm:$0xff] %v11874_v30  ;;  %v14413_v37 = vld [vmem:[#allocation9_spill] sm:$0xff]  ;;  %v14427_v30 = vld [vmem:[#allocation88_spill] sm:$0xff] }
 0x322   : > { %6025 = vmatprep.mubr.bf16.mxu1 %v4512_v14  ;;  %v2800_v43 = vmul.f32 %v11806_v16, %v11772_v40  ;;  %v2550_v32 = vmul.f32 0.044715, %v11812_v35  ;;  %7301 = vtanh.f32 %v3480_v42  ;;  %v11879_v10 = vmul.f32 %v11764_v26, %v11660_v57  ;;  %v11911_v7 = vpop.f32.mrf.mxu0  ;;  %v11913_v1 = vpop.f32.mrf.mxu1  ;;  %v14415_v14 = vld [vmem:[#allocation80_spill] sm:$0xff] }
 0x323   : > { %14401 = vst [vmem:[#allocation24_spill] sm:$0xff] %v11865_v53  ;;  %7303 = vtanh.f32 %v11778_v24  ;;  %v3317_v9 = vadd.f32 %v11824_v61, %v11718_v59  ;;  %v2552_v31 = vmul.f32 0.044715, %v11816_v12  ;;  %6026 = vmatmul.mubr.bf16.gmra.mxu1 %v4511_v48  ;;  %v11886_v16 = vmul.f32 %v11781_v15, %v11709_v29  ;;  %v14405_v61 = vld [vmem:[#allocation111_spill] sm:$0xff]  ;;  %14411 = vst [vmem:[#allocation150_spill] sm:$0xff] %v11911_v7  ;;  %v14417_v48 = vld [vmem:[#allocation29_spill] sm:$0xff] }
 0x324   : > { %7305 = vtanh.f32 %v11784_v6  ;;  %v3319_v28 = vadd.f32 %v3063_v58, %v11740_v4  ;;  %v3071_v24 = vmul.f32 %v2815_v47, %v11791_v25  ;;  %v3325_v26 = vadd.f32 %v3069_v11, %v11758_v55  ;;  %14412 = vst [vmem:[#allocation151_spill] sm:$0xff] %v11913_v1  ;;  %v14431_v4 = vld [vmem:[#allocation55_spill] sm:$0xff] }
 0x325   : > { %14404 = vst [vmem:[#allocation108_spill] sm:$0xff] %v11886_v16  ;;  %7307 = vtanh.f32 %v11786_v20  ;;  %v2565_v22 = vmul.f32 0.044715, %v11865_v53  ;;  %v11896_v5 = vadd.f32 %v14405_v61, %v10062_v44  ;;  %v11899_v13 = vmul.f32 %v2798_v62, %v11768_v18  ;;  %v11938_v62 = vpop.f32.mrf.mxu0 }
 0x326   : > { %v11902_v15 = vmul.f32 %v2800_v43, %v11772_v40  ;;  %v11905_v6 = vmul.f32 %v2550_v32, %v11812_v35  ;;  %v11909_v20 = vadd.f32 %v14409_v50, %v10042_v34  ;;  %v11915_v39 = vmul.f32 0.7978846, %v3317_v9  ;;  %14419 = vst [vmem:[#allocation152_spill] sm:$0xff] %v11938_v62  ;;  %v11940_v43 = vpop.f32.mrf.mxu1  ;;  %v14421_v50 = vld [vmem:[#allocation21_spill] sm:$0xff] }
 0x327   : > { %14406 = vst [vmem:[#allocation111_spill] sm:$0xff] %v11896_v5  ;;  %14407 = vst [vmem:[#allocation148_spill] sm:$0xff] %v11899_v13  ;;  %v11918_v46 = vmul.f32 %v2552_v31, %v11816_v12  ;;  %v11922_v54 = vadd.f32 %v14413_v37, %v10193_v19  ;;  %v11926_v58 = vadd.f32 %v14415_v14, %v13948_v23  ;;  %v11928_v47 = vmul.f32 0.7978846, %v3319_v28  ;;  %v11951_v14 = vpop.f32.mrf.mxu0  ;;  %v14435_v13 = vld [vmem:[#allocation101_spill] sm:$0xff] }
 0x328   : > { %14408 = vst [vmem:[#allocation149_spill] sm:$0xff] %v11902_v15  ;;  %14410 = vst [vmem:[#allocation52_spill] sm:$0xff] %v11909_v20  ;;  %v11931_v42 = vadd.f32 %v3071_v24, %v11791_v25  ;;  %v2190_v11 = vmul.f32 0.5, %v14382_v21  ;;  %v11936_v38 = vadd.f32 %v14417_v48, %v10062_v44  ;;  %v11942_v32 = vmul.f32 0.7978846, %v3325_v26  ;;  %v11953_v48 = vpop.f32.mrf.mxu1  ;;  %v14433_v15 = vld [vmem:[#allocation94_spill] sm:$0xff] }
 0x329   : > { %14414 = vst [vmem:[#allocation9_spill] sm:$0xff] %v11922_v54  ;;  %14416 = vst [vmem:[#allocation80_spill] sm:$0xff] %v11926_v58  ;;  %v2198_v9 = vmul.f32 0.5, %v10988_v52  ;;  %v2821_v31 = vmul.f32 %v2565_v22, %v11865_v53  ;;  %v2567_v28 = vmul.f32 0.044715, %v11896_v5  ;;  %v2192_v24 = vmul.f32 0.5, %v14390_v41  ;;  %v11975_v25 = vpop.f32.mrf.mxu0 }
 0x32a   : > { %14418 = vst [vmem:[#allocation29_spill] sm:$0xff] %v11936_v38  ;;  %14420 = vst [vmem:[#allocation153_spill] sm:$0xff] %v11940_v43  ;;  %v2200_v21 = vmul.f32 0.5, %v14395_v56  ;;  %v2573_v61 = vmul.f32 0.044715, %v11909_v20  ;;  %v3989_v37 = vadd.f32 1.0, %v14421_v50  ;;  %v11977_v55 = vpop.f32.mrf.mxu1 }
 0x32b   : > { %14422 = vst [vmem:[#allocation21_spill] sm:$0xff] %v11951_v14  ;;  %14423 = vst [vmem:[#allocation154_spill] sm:$0xff] %v11953_v48  ;;  %v7296_v26 = vpop.eup %7295  ;;  %v11956_v43 = vmul.f32 0.044715, %v11922_v54  ;;  %v11959_v52 = vmul.f32 0.044715, %v11926_v58  ;;  %v3077_v2 = vmul.f32 %v2821_v31, %v11865_v53  ;;  %v2823_v49 = vmul.f32 %v2567_v28, %v11896_v5 }
 0x32c   : > { %v14424_v22 = vld [vmem:[#allocation129_spill] sm:$0xff]  ;;  %v14425_v56 = vld [vmem:[#allocation130_spill] sm:$0xff]  ;;  %v7298_v50 = vpop.eup %7297  ;;  %v3982_v1 = vadd.f32 1.0, %v7296_v26  ;;  %v2575_v14 = vmul.f32 0.044715, %v11936_v38  ;;  %v3981_v0 = vadd.f32 1.0, %v14427_v30  ;;  %v2829_v26 = vmul.f32 %v2573_v61, %v11909_v20 }
 0x32d   : > { %v11963_v41 = vadd.f32 %v14424_v22, %v10193_v19  ;;  %v11967_v62 = vadd.f32 %v14425_v56, %v13948_v23  ;;  %v14426_v48 = vld [vmem:[#allocation97_spill] sm:$0xff]  ;;  %v3990_v8 = vadd.f32 1.0, %v7298_v50  ;;  %v3991_v22 = vadd.f32 1.0, %v14428_v45  ;;  %14429 = vst [vmem:[#allocation129_spill] sm:$0xff] %v11975_v25  ;;  %14430 = vst [vmem:[#allocation130_spill] sm:$0xff] %v11977_v55 }
 0x32e   : > { %v2197_v7 = vmul.f32 0.5, %v14426_v48  ;;  %v7300_v56 = vpop.eup %7299  ;;  %v2189_v59 = vmul.f32 0.5, %v14431_v4  ;;  %v14432_v48 = vld [vmem:[#allocation45_spill] sm:$0xff]  ;;  %v4238_v50 = vmul.f32 %v3982_v1, %v2190_v11  ;;  %v3983_v28 = vadd.f32 1.0, %v14433_v15  ;;  %v11995_v15 = vpop.f32.mrf.mxu1 }
 0x32f   : > { %v2199_v3 = vmul.f32 0.5, %v14432_v48  ;;  %v7302_v30 = vpop.eup %7301  ;;  %v4246_v60 = vmul.f32 %v3990_v8, %v2198_v9  ;;  %v3984_v31 = vadd.f32 1.0, %v7300_v56  ;;  %v2831_v25 = vmul.f32 %v2575_v14, %v11936_v38  ;;  %v14438_v48 = vld [vmem:[#allocation114_spill] sm:$0xff]  ;;  %v14439_v1 = vld [vmem:[#allocation33_spill] sm:$0xff]  ;;  %v11993_v9 = vpop.f32.mrf.mxu0  ;;  %14442 = vst [vmem:[#allocation55_spill] sm:$0xff] %v11995_v15 }
 0x330   : > { %v4245_v33 = vmul.f32 %v3989_v37, %v2197_v7  ;;  %v11983_v40 = vpop.eup %7303  ;;  %v3992_v45 = vadd.f32 1.0, %v7302_v30  ;;  %v4237_v55 = vmul.f32 %v3981_v0, %v2189_v59  ;;  %v2191_v18 = vmul.f32 0.5, %v14435_v13  ;;  %v14437_v37 = vld [vmem:[#allocation14_spill] sm:$0xff]  ;;  %v14440_v8 = vld [vmem:[#allocation133_spill] sm:$0xff]  ;;  %14441 = vst [vmem:[#allocation106_spill] sm:$0xff] %v11993_v9  ;;  %v14445_v30 = vld [vmem:[#allocation132_spill] sm:$0xff]  ;;  %v12005_v9 = vpop.f32.mrf.mxu1 }
 0x331   : > { %14434 = vst [vmem:[#allocation97_spill] sm:$0xff] %v11983_v40  ;;  %v11987_v61 = vpop.eup %7305  ;;  %v4518_v4 = vpack.c.bf16 %v4246_v60, %v4238_v50  ;;  %v4247_v7 = vmul.f32 %v3991_v22, %v2199_v3  ;;  %v3230_v16 = vadd.f32 %v14438_v48, %v14437_v37  ;;  %v3238_v11 = vadd.f32 %v14440_v8, %v14439_v1  ;;  %v14444_v13 = vld [vmem:[#allocation121_spill] sm:$0xff]  ;;  %v14447_v48 = vld [vmem:[#allocation134_spill] sm:$0xff]  ;;  %v12003_v8 = vpop.f32.mrf.mxu0 }
 0x332   : > { %14436 = vst [vmem:[#allocation88_spill] sm:$0xff] %v11987_v61  ;;  %v11997_v56 = vpop.eup %7307  ;;  %v4240_v14 = vmul.f32 %v3984_v31, %v2192_v24  ;;  %v4248_v59 = vmul.f32 %v3992_v45, %v2200_v21  ;;  %v4517_v0 = vpack.c.bf16 %v4245_v33, %v4237_v55  ;;  %v3232_v61 = vadd.f32 %v14445_v30, %v14444_v13  ;;  %v14446_v50 = vld [vmem:[#allocation61_spill] sm:$0xff]  ;;  %v14450_v55 = vld [vmem:[#allocation46_spill] sm:$0xff]  ;;  %v12018_v45 = vpop.f32.mrf.mxu1 }
 0x333   : > { %14443 = vst [vmem:[#allocation45_spill] sm:$0xff] %v11997_v56  ;;  %5842 = vmatprep.mubr.bf16.mxu0 %v4518_v4  ;;  %v4239_v3 = vmul.f32 %v3983_v28, %v2191_v18  ;;  %v3486_v60 = vmul.f32 0.7978846, %v3230_v16  ;;  %v3494_v22 = vmul.f32 0.7978846, %v3238_v11  ;;  %v3240_v40 = vadd.f32 %v14447_v48, %v14446_v50  ;;  %14448 = vst [vmem:[#allocation94_spill] sm:$0xff] %v12003_v8  ;;  %v12016_v28 = vpop.f32.mrf.mxu0 }
 0x334   : > { %14449 = vst [vmem:[#allocation101_spill] sm:$0xff] %v12005_v9  ;;  %v4520_v15 = vpack.c.bf16 %v4248_v59, %v4240_v14  ;;  %v3079_v56 = vmul.f32 %v2823_v49, %v11896_v5  ;;  %5843 = vmatmul.mubr.bf16.gmra.mxu0 %v4517_v0  ;;  %v3488_v24 = vmul.f32 0.7978846, %v3232_v61  ;;  %v12010_v33 = vadd.f32 %v14450_v55, %v10042_v34  ;;  %v14452_v16 = vld [vmem:[#allocation17_spill] sm:$0xff]  ;;  %v12033_v59 = vpop.f32.mrf.mxu1  ;;  %v14482_v9 = vld [vmem:[#allocation102_spill] sm:$0xff] }
 0x335   : > { %v4519_v21 = vpack.c.bf16 %v4247_v7, %v4239_v3  ;;  %7309 = vtanh.f32 %v3486_v60  ;;  %v3496_v18 = vmul.f32 0.7978846, %v3240_v40  ;;  %v12014_v31 = vadd.f32 %v14452_v16, %v10062_v44  ;;  %14454 = vst [vmem:[#allocation33_spill] sm:$0xff] %v12016_v28  ;;  %14455 = vst [vmem:[#allocation133_spill] sm:$0xff] %v12018_v45  ;;  %v14481_v28 = vld [vmem:[#allocation49_spill] sm:$0xff] }
 0x336   : > { %14451 = vst [vmem:[#allocation14_spill] sm:$0xff] %v12010_v33  ;;  %6035 = vmatprep.mubr.bf16.mxu1 %v4520_v15  ;;  %v3333_v49 = vadd.f32 %v3077_v2, %v11865_v53  ;;  %v3085_v61 = vmul.f32 %v2829_v26, %v11909_v20  ;;  %7311 = vtanh.f32 %v3494_v22  ;;  %v2581_v4 = vmul.f32 0.044715, %v12010_v33  ;;  %v12031_v26 = vpop.f32.mrf.mxu0  ;;  %14457 = vst [vmem:[#allocation132_spill] sm:$0xff] %v12033_v59  ;;  %v14487_v53 = vld [vmem:[#allocation135_spill] sm:$0xff] }
 0x337   : > { %14453 = vst [vmem:[#allocation114_spill] sm:$0xff] %v12014_v31  ;;  %v3583_v7 = vmul.f32 0.7978846, %v11931_v42  ;;  %v3087_v40 = vmul.f32 %v2831_v25, %v11936_v38  ;;  %6036 = vmatmul.mubr.bf16.gmra.mxu1 %v4519_v21  ;;  %7313 = vtanh.f32 %v3488_v24  ;;  %v2583_v11 = vmul.f32 0.044715, %v12014_v31  ;;  %14456 = vst [vmem:[#allocation121_spill] sm:$0xff] %v12031_v26 }
 0x338   : > { %v2814_v14 = vmul.f32 %v11956_v43, %v11922_v54  ;;  %v2816_v15 = vmul.f32 %v11959_v52, %v11926_v58  ;;  %v2566_v2 = vmul.f32 0.044715, %v11963_v41  ;;  %7315 = vtanh.f32 %v3496_v18  ;;  %v12061_v22 = vpop.f32.mrf.mxu0  ;;  %v14464_v24 = vld [vmem:[#allocation100_spill] sm:$0xff]  ;;  %v14466_v21 = vld [vmem:[#allocation41_spill] sm:$0xff] }
 0x339   : > { %7317 = vtanh.f32 %v11915_v39  ;;  %v12038_v25 = vmul.f32 %v11905_v6, %v11812_v35  ;;  %v3335_v42 = vadd.f32 %v3079_v56, %v11896_v5  ;;  %v2568_v43 = vmul.f32 0.044715, %v11967_v62  ;;  %14462 = vst [vmem:[#allocation155_spill] sm:$0xff] %v12061_v22 }
 0x33a   : > { %7319 = vtanh.f32 %v11928_v47  ;;  %v3589_v52 = vmul.f32 0.7978846, %v3333_v49  ;;  %v3341_v0 = vadd.f32 %v3085_v61, %v11909_v20  ;;  %v2837_v30 = vmul.f32 %v2581_v4, %v12010_v33  ;;  %v14468_v61 = vld [vmem:[#allocation6_spill] sm:$0xff] }
 0x33b   : > { %14458 = vst [vmem:[#allocation61_spill] sm:$0xff] %v12038_v25  ;;  %v12047_v3 = vmul.f32 %v11918_v46, %v11816_v12  ;;  %7321 = vtanh.f32 %v11942_v32  ;;  %v3343_v6 = vadd.f32 %v3087_v40, %v11936_v38  ;;  %v2839_v39 = vmul.f32 %v2583_v11, %v12014_v31  ;;  %v12063_v46 = vpop.f32.mrf.mxu1  ;;  %v14492_v25 = vld [vmem:[#allocation72_spill] sm:$0xff] }
 0x33c   : > { %7323 = vtanh.f32 %v3583_v7  ;;  %v12053_v56 = vmul.f32 %v2814_v14, %v11922_v54  ;;  %v12056_v47 = vmul.f32 %v2816_v15, %v11926_v58  ;;  %v12059_v60 = vmul.f32 %v2566_v2, %v11963_v41  ;;  %14463 = vst [vmem:[#allocation156_spill] sm:$0xff] %v12063_v46  ;;  %v12085_v7 = vpop.f32.mrf.mxu0  ;;  %v14488_v58 = vld [vmem:[#allocation112_spill] sm:$0xff] }
 0x33d   : > { %14459 = vst [vmem:[#allocation134_spill] sm:$0xff] %v12047_v3  ;;  %v12065_v48 = vmul.f32 0.7978846, %v3335_v42  ;;  %v12068_v32 = vmul.f32 %v2568_v43, %v11967_v62  ;;  %v12072_v55 = vadd.f32 %v14464_v24, %v10193_v19  ;;  %v12076_v18 = vadd.f32 %v14466_v21, %v10042_v34  ;;  %14470 = vst [vmem:[#allocation157_spill] sm:$0xff] %v12085_v7  ;;  %v12087_v40 = vpop.f32.mrf.mxu1 }
 0x33e   : > { %14460 = vst [vmem:[#allocation46_spill] sm:$0xff] %v12053_v56  ;;  %14461 = vst [vmem:[#allocation17_spill] sm:$0xff] %v12056_v47  ;;  %7325 = vtanh.f32 %v3589_v52  ;;  %v12078_v16 = vmul.f32 0.7978846, %v3341_v0  ;;  %v3093_v49 = vmul.f32 %v2837_v30, %v12010_v33  ;;  %v12083_v4 = vadd.f32 %v14468_v61, %v10062_v44  ;;  %v14472_v52 = vld [vmem:[#allocation60_spill] sm:$0xff]  ;;  %v14473_v30 = vld [vmem:[#allocation122_spill] sm:$0xff]  ;;  %v12101_v21 = vpop.f32.mrf.mxu0 }
 0x33f   : > { %14465 = vst [vmem:[#allocation100_spill] sm:$0xff] %v12072_v55  ;;  %14467 = vst [vmem:[#allocation41_spill] sm:$0xff] %v12076_v18  ;;  %v12089_v11 = vmul.f32 0.7978846, %v3343_v6  ;;  %v2206_v14 = vmul.f32 0.5, %v14437_v37  ;;  %v2214_v15 = vmul.f32 0.5, %v14439_v1  ;;  %v3095_v2 = vmul.f32 %v2839_v39, %v12014_v31  ;;  %v12103_v6 = vpop.f32.mrf.mxu1 }
 0x340   : > { %14469 = vst [vmem:[#allocation6_spill] sm:$0xff] %v12083_v4  ;;  %14471 = vst [vmem:[#allocation158_spill] sm:$0xff] %v12087_v40  ;;  %v2208_v42 = vmul.f32 0.5, %v14444_v13  ;;  %v2216_v43 = vmul.f32 0.5, %v14446_v50  ;;  %v12098_v0 = vadd.f32 %v14472_v52, %v13948_v23  ;;  %v3997_v24 = vadd.f32 1.0, %v14473_v30  ;;  %v14476_v1 = vld [vmem:[#allocation16_spill] sm:$0xff]  ;;  %v12126_v8 = vpop.f32.mrf.mxu0 }
 0x341   : > { %14474 = vst [vmem:[#allocation60_spill] sm:$0xff] %v12101_v21  ;;  %14475 = vst [vmem:[#allocation122_spill] sm:$0xff] %v12103_v6  ;;  %v12106_v37 = vmul.f32 0.044715, %v12072_v55  ;;  %v12110_v39 = vadd.f32 %v14476_v1, %v10193_v19  ;;  %v2589_v13 = vmul.f32 0.044715, %v12076_v18  ;;  %v12115_v52 = vadd.f32 %v3093_v49, %v12010_v33  ;;  %v12128_v49 = vpop.f32.mrf.mxu1 }
 0x342   : > { %v14477_v50 = vld [vmem:[#allocation128_spill] sm:$0xff]  ;;  %v7310_v40 = vpop.eup %7309  ;;  %v2591_v30 = vmul.f32 0.044715, %v12083_v4  ;;  %v14478_v21 = vld [vmem:[#allocation125_spill] sm:$0xff]  ;;  %v14479_v6 = vld [vmem:[#allocation91_spill] sm:$0xff]  ;;  %v12121_v26 = vadd.f32 %v3095_v2, %v12014_v31  ;;  %14483 = vst [vmem:[#allocation16_spill] sm:$0xff] %v12126_v8 }
 0x343   : > { %v4005_v61 = vadd.f32 1.0, %v14477_v50  ;;  %v2205_v7 = vmul.f32 0.5, %v14478_v21  ;;  %v2213_v46 = vmul.f32 0.5, %v14479_v6  ;;  %v7312_v22 = vpop.eup %7311  ;;  %v3998_v59 = vadd.f32 1.0, %v7310_v40  ;;  %v14480_v1 = vld [vmem:[#allocation131_spill] sm:$0xff]  ;;  %14484 = vst [vmem:[#allocation128_spill] sm:$0xff] %v12128_v49 }
 0x344   : > { %v4007_v45 = vadd.f32 1.0, %v14480_v1  ;;  %v3246_v50 = vadd.f32 %v14482_v9, %v14481_v28  ;;  %v7314_v38 = vpop.eup %7313  ;;  %v4006_v20 = vadd.f32 1.0, %v7312_v22  ;;  %v14485_v21 = vld [vmem:[#allocation13_spill] sm:$0xff]  ;;  %v14486_v6 = vld [vmem:[#allocation30_spill] sm:$0xff]  ;;  %v2215_v1 = vmul.f32 0.5, %v14488_v58  ;;  %v14489_v56 = vld [vmem:[#allocation7_spill] sm:$0xff] }
 0x345   : > { %v4253_v33 = vmul.f32 %v3997_v24, %v2205_v7  ;;  %v2207_v5 = vmul.f32 0.5, %v14485_v21  ;;  %v3254_v40 = vadd.f32 %v14487_v53, %v14486_v6  ;;  %v7316_v47 = vpop.eup %7315  ;;  %v4000_v2 = vadd.f32 1.0, %v7314_v38  ;;  %v14493_v53 = vld [vmem:[#allocation118_spill] sm:$0xff]  ;;  %v12141_v38 = vpop.f32.mrf.mxu0 }
 0x346   : > { %v4261_v31 = vmul.f32 %v4005_v61, %v2213_v46  ;;  %v3999_v54 = vadd.f32 1.0, %v14489_v56  ;;  %v12135_v9 = vpop.eup %7317  ;;  %v4254_v8 = vmul.f32 %v3998_v59, %v2206_v14  ;;  %v4262_v3 = vmul.f32 %v4006_v20, %v2214_v15  ;;  %14494 = vst [vmem:[#allocation131_spill] sm:$0xff] %v12141_v38  ;;  %v12143_v46 = vpop.f32.mrf.mxu1  ;;  %v14497_v20 = vld [vmem:[#allocation116_spill] sm:$0xff]  ;;  %v14498_v59 = vld [vmem:[#allocation77_spill] sm:$0xff] }
 0x347   : > { %14490 = vst [vmem:[#allocation125_spill] sm:$0xff] %v12135_v9  ;;  %v4008_v49 = vadd.f32 1.0, %v7316_v47  ;;  %v3502_v12 = vmul.f32 0.7978846, %v3246_v50  ;;  %v12137_v22 = vpop.eup %7319  ;;  %v4256_v7 = vmul.f32 %v4000_v2, %v2208_v42  ;;  %v4263_v24 = vmul.f32 %v4007_v45, %v2215_v1  ;;  %14495 = vst [vmem:[#allocation49_spill] sm:$0xff] %v12143_v46  ;;  %v12151_v50 = vpop.f32.mrf.mxu0  ;;  %v14532_v38 = vld [vmem:[#allocation117_spill] sm:$0xff] }
 0x348   : > { %14491 = vst [vmem:[#allocation91_spill] sm:$0xff] %v12137_v22  ;;  %v3510_v21 = vmul.f32 0.7978846, %v3254_v40  ;;  %v3248_v35 = vadd.f32 %v14493_v53, %v14492_v25  ;;  %v12145_v58 = vpop.eup %7321  ;;  %v4526_v56 = vpack.c.bf16 %v4262_v3, %v4254_v8  ;;  %v3256_v47 = vadd.f32 %v14498_v59, %v14497_v20  ;;  %14500 = vst [vmem:[#allocation30_spill] sm:$0xff] %v12151_v50  ;;  %v12153_v40 = vpop.f32.mrf.mxu1 }
 0x349   : > { %14496 = vst [vmem:[#allocation102_spill] sm:$0xff] %v12145_v58  ;;  %v4264_v61 = vmul.f32 %v4008_v49, %v2216_v43  ;;  %7327 = vtanh.f32 %v3502_v12  ;;  %v12149_v14 = vpop.eup %7323  ;;  %v4525_v15 = vpack.c.bf16 %v4261_v31, %v4253_v33  ;;  %v4255_v45 = vmul.f32 %v3999_v54, %v2207_v5  ;;  %14501 = vst [vmem:[#allocation135_spill] sm:$0xff] %v12153_v40  ;;  %v14503_v5 = vld [vmem:[#allocation5_spill] sm:$0xff]  ;;  %v12167_v31 = vpop.f32.mrf.mxu0 }
 0x34a   : > { %14499 = vst [vmem:[#allocation13_spill] sm:$0xff] %v12149_v14  ;;  %7329 = vtanh.f32 %v3510_v21  ;;  %v3504_v42 = vmul.f32 0.7978846, %v3248_v35  ;;  %5852 = vmatprep.mubr.bf16.mxu0 %v4526_v56  ;;  %v2845_v1 = vmul.f32 %v2589_v13, %v12076_v18  ;;  %v2847_v8 = vmul.f32 %v2591_v30, %v12083_v4  ;;  %v14505_v35 = vld [vmem:[#allocation90_spill] sm:$0xff]  ;;  %14507 = vst [vmem:[#allocation118_spill] sm:$0xff] %v12167_v31  ;;  %v12169_v49 = vpop.f32.mrf.mxu1  ;;  %v14531_v31 = vld [vmem:[#allocation64_spill] sm:$0xff] }
 0x34b   : > { %v4528_v2 = vpack.c.bf16 %v4264_v61, %v4256_v7  ;;  %v3512_v12 = vmul.f32 0.7978846, %v3256_v47  ;;  %v12157_v3 = vpop.eup %7325  ;;  %5853 = vmatmul.mubr.bf16.gmra.mxu0 %v4525_v15  ;;  %v4527_v43 = vpack.c.bf16 %v4263_v24, %v4255_v45  ;;  %v12161_v54 = vadd.f32 %v14503_v5, %v10042_v34  ;;  %14508 = vst [vmem:[#allocation116_spill] sm:$0xff] %v12169_v49  ;;  %v14509_v7 = vld [vmem:[#allocation4_spill] sm:$0xff]  ;;  %v12185_v61 = vpop.f32.mrf.mxu0 }
 0x34c   : > { %14502 = vst [vmem:[#allocation112_spill] sm:$0xff] %v12157_v3  ;;  %7331 = vtanh.f32 %v3504_v42  ;;  %v12165_v33 = vadd.f32 %v14505_v35, %v10062_v44  ;;  %v2830_v13 = vmul.f32 %v12106_v37, %v12072_v55  ;;  %v2576_v30 = vmul.f32 0.044715, %v12098_v0  ;;  %14510 = vst [vmem:[#allocation77_spill] sm:$0xff] %v12185_v61  ;;  %v12187_v37 = vpop.f32.mrf.mxu1  ;;  %v14530_v61 = vld [vmem:[#allocation113_spill] sm:$0xff] }
 0x34d   : > { %14504 = vst [vmem:[#allocation7_spill] sm:$0xff] %v12161_v54  ;;  %6045 = vmatprep.mubr.bf16.mxu1 %v4528_v2  ;;  %v12176_v24 = vadd.f32 %v14509_v7, %v13948_v23  ;;  %7333 = vtanh.f32 %v3512_v12  ;;  %v12181_v21 = vmul.f32 %v12059_v60, %v11963_v41  ;;  %v3605_v53 = vmul.f32 0.7978846, %v12115_v52  ;;  %14511 = vst [vmem:[#allocation5_spill] sm:$0xff] %v12187_v37  ;;  %v12200_v45 = vpop.f32.mrf.mxu0  ;;  %v14518_v12 = vld [vmem:[#allocation109_spill] sm:$0xff] }
 0x34e   : > { %14506 = vst [vmem:[#allocation72_spill] sm:$0xff] %v12165_v33  ;;  %7335 = vtanh.f32 %v12065_v48  ;;  %v2582_v56 = vmul.f32 0.044715, %v12110_v39  ;;  %6046 = vmatmul.mubr.bf16.gmra.mxu1 %v4527_v43  ;;  %v12191_v59 = vmul.f32 %v12068_v32, %v11967_v62  ;;  %v3607_v48 = vmul.f32 0.7978846, %v12121_v26  ;;  %14513 = vst [vmem:[#allocation4_spill] sm:$0xff] %v12200_v45  ;;  %v12202_v42 = vpop.f32.mrf.mxu1 }
 0x34f   : > { %7337 = vtanh.f32 %v12078_v16  ;;  %v3101_v60 = vmul.f32 %v2845_v1, %v12076_v18  ;;  %v3103_v52 = vmul.f32 %v2847_v8, %v12083_v4  ;;  %v2597_v47 = vmul.f32 0.044715, %v12161_v54  ;;  %14514 = vst [vmem:[#allocation159_spill] sm:$0xff] %v12202_v42  ;;  %v14517_v1 = vld [vmem:[#allocation37_spill] sm:$0xff]  ;;  %v12228_v5 = vpop.f32.mrf.mxu0 }
 0x350   : > { %14512 = vst [vmem:[#allocation90_spill] sm:$0xff] %v12191_v59  ;;  %7339 = vtanh.f32 %v12089_v11  ;;  %v2599_v15 = vmul.f32 0.044715, %v12165_v33  ;;  %v12205_v32 = vmul.f32 %v2830_v13, %v12072_v55  ;;  %v12208_v16 = vmul.f32 %v2576_v30, %v12098_v0  ;;  %14520 = vst [vmem:[#allocation109_spill] sm:$0xff] %v12228_v5  ;;  %v12230_v35 = vpop.f32.mrf.mxu1  ;;  %v14537_v55 = vld [vmem:[#allocation103_spill] sm:$0xff] }
 0x351   : > { %v12211_v26 = vmul.f32 0.044715, %v12176_v24  ;;  %v12215_v11 = vadd.f32 %v11548_v17, %v10042_v34  ;;  %7341 = vtanh.f32 %v3605_v53  ;;  %v12218_v2 = vmul.f32 %v2582_v56, %v12110_v39  ;;  %14521 = vst [vmem:[#allocation162_spill] sm:$0xff] %v12230_v35  ;;  %v14525_v35 = vld [vmem:[#allocation10_spill] sm:$0xff] }
 0x352   : > { %14515 = vst [vmem:[#allocation160_spill] sm:$0xff] %v12205_v32  ;;  %v12222_v8 = vadd.f32 %v14517_v1, %v10193_v19  ;;  %v12226_v43 = vadd.f32 %v14518_v12, %v13948_v23  ;;  %7343 = vtanh.f32 %v3607_v48  ;;  %v12233_v17 = vadd.f32 %v3101_v60, %v12076_v18  ;;  %v12246_v12 = vpop.f32.mrf.mxu0  ;;  %v12248_v48 = vpop.f32.mrf.mxu1  ;;  %v14535_v18 = vld [vmem:[#allocation79_spill] sm:$0xff] }
 0x353   : > { %14516 = vst [vmem:[#allocation161_spill] sm:$0xff] %v12215_v11  ;;  %v2222_v13 = vmul.f32 0.5, %v14481_v28  ;;  %v12238_v30 = vadd.f32 %v11550_v27, %v10062_v44  ;;  %v12241_v7 = vadd.f32 %v3103_v52, %v12083_v4  ;;  %v2230_v53 = vmul.f32 0.5, %v14486_v6  ;;  %14523 = vst [vmem:[#allocation164_spill] sm:$0xff] %v12246_v12 }
 0x354   : > { %14519 = vst [vmem:[#allocation37_spill] sm:$0xff] %v12226_v43  ;;  %v2853_v56 = vmul.f32 %v2597_v47, %v12161_v54  ;;  %v2855_v1 = vmul.f32 %v2599_v15, %v12165_v33  ;;  %14524 = vst [vmem:[#allocation165_spill] sm:$0xff] %v12248_v48  ;;  %v2224_v60 = vmul.f32 0.5, %v14492_v25  ;;  %v2232_v28 = vmul.f32 0.5, %v14497_v20  ;;  %v14526_v47 = vld [vmem:[#allocation104_spill] sm:$0xff]  ;;  %v14527_v48 = vld [vmem:[#allocation15_spill] sm:$0xff]  ;;  %v12268_v20 = vpop.f32.mrf.mxu0  ;;  %v12270_v12 = vpop.f32.mrf.mxu1 }
 0x355   : > { %14522 = vst [vmem:[#allocation163_spill] sm:$0xff] %v12238_v30  ;;  %v2605_v27 = vmul.f32 0.044715, %v12215_v11  ;;  %v4021_v5 = vadd.f32 1.0, %v14525_v35  ;;  %v12255_v42 = vmul.f32 0.044715, %v12222_v8  ;;  %v12262_v15 = vadd.f32 %v14526_v47, %v10193_v19 }
 0x356   : > { %v7328_v52 = vpop.eup %7327  ;;  %v12258_v6 = vmul.f32 0.044715, %v12226_v43  ;;  %v12266_v25 = vadd.f32 %v14527_v48, %v13948_v23  ;;  %14528 = vst [vmem:[#allocation10_spill] sm:$0xff] %v12268_v20  ;;  %14529 = vst [vmem:[#allocation104_spill] sm:$0xff] %v12270_v12  ;;  %v2607_v37 = vmul.f32 0.044715, %v12238_v30  ;;  %v3109_v47 = vmul.f32 %v2853_v56, %v12161_v54  ;;  %v12278_v4 = vpop.f32.mrf.mxu0 }
 0x357   : > { %v7330_v35 = vpop.eup %7329  ;;  %v4014_v45 = vadd.f32 1.0, %v7328_v52  ;;  %v2229_v49 = vmul.f32 0.5, %v14530_v61  ;;  %v4013_v40 = vadd.f32 1.0, %v14531_v31  ;;  %v3111_v46 = vmul.f32 %v2855_v1, %v12165_v33  ;;  %14533 = vst [vmem:[#allocation15_spill] sm:$0xff] %v12278_v4  ;;  %v12280_v20 = vpop.f32.mrf.mxu1  ;;  %v14536_v61 = vld [vmem:[#allocation31_spill] sm:$0xff] }
 0x358   : > { %v4022_v50 = vadd.f32 1.0, %v7330_v35  ;;  %v4023_v48 = vadd.f32 1.0, %v14532_v38  ;;  %14534 = vst [vmem:[#allocation113_spill] sm:$0xff] %v12280_v20  ;;  %v2861_v52 = vmul.f32 %v2605_v27, %v12215_v11  ;;  %v2221_v14 = vmul.f32 0.5, %v14535_v18  ;;  %v12286_v22 = vpop.f32.mrf.mxu0  ;;  %v14541_v18 = vld [vmem:[#allocation22_spill] sm:$0xff] }
 0x359   : > { %v7332_v12 = vpop.eup %7331  ;;  %v4277_v58 = vmul.f32 %v4021_v5, %v2229_v49  ;;  %v2231_v3 = vmul.f32 0.5, %v14536_v61  ;;  %v4270_v35 = vmul.f32 %v4014_v45, %v2222_v13  ;;  %v4015_v1 = vadd.f32 1.0, %v14537_v55  ;;  %14538 = vst [vmem:[#allocation64_spill] sm:$0xff] %v12286_v22  ;;  %v12288_v38 = vpop.f32.mrf.mxu1  ;;  %v14544_v13 = vld [vmem:[#allocation56_spill] sm:$0xff]  ;;  %v14545_v55 = vld [vmem:[#allocation62_spill] sm:$0xff] }
 0x35a   : > { %v7334_v31 = vpop.eup %7333  ;;  %v4278_v32 = vmul.f32 %v4022_v50, %v2230_v53  ;;  %v4016_v56 = vadd.f32 1.0, %v7332_v12  ;;  %14539 = vst [vmem:[#allocation117_spill] sm:$0xff] %v12288_v38  ;;  %v2863_v27 = vmul.f32 %v2607_v37, %v12238_v30  ;;  %v4269_v9 = vmul.f32 %v4013_v40, %v2221_v14  ;;  %v14543_v50 = vld [vmem:[#allocation35_spill] sm:$0xff]  ;;  %v12300_v22 = vpop.f32.mrf.mxu0 }
 0x35b   : > { %v12290_v4 = vpop.eup %7335  ;;  %v4024_v20 = vadd.f32 1.0, %v7334_v31  ;;  %v2223_v49 = vmul.f32 0.5, %v14541_v18  ;;  %v4279_v45 = vmul.f32 %v4023_v48, %v2231_v3  ;;  %v3262_v53 = vadd.f32 %v14544_v13, %v14543_v50  ;;  %14546 = vst [vmem:[#allocation103_spill] sm:$0xff] %v12300_v22  ;;  %v12302_v38 = vpop.f32.mrf.mxu1  ;;  %v14549_v18 = vld [vmem:[#allocation120_spill] sm:$0xff]  ;;  %v14552_v13 = vld [vmem:[#allocation70_spill] sm:$0xff] }
 0x35c   : > { %14540 = vst [vmem:[#allocation79_spill] sm:$0xff] %v12290_v4  ;;  %v12294_v5 = vpop.eup %7337  ;;  %v4534_v61 = vpack.c.bf16 %v4278_v32, %v4270_v35  ;;  %v3270_v12 = vadd.f32 %v14545_v55, %v11408_v36  ;;  %14547 = vst [vmem:[#allocation22_spill] sm:$0xff] %v12302_v38  ;;  %v4272_v37 = vmul.f32 %v4016_v56, %v2224_v60  ;;  %v14550_v4 = vld [vmem:[#allocation54_spill] sm:$0xff]  ;;  %v14551_v35 = vld [vmem:[#allocation25_spill] sm:$0xff]  ;;  %v12310_v55 = vpop.f32.mrf.mxu0 }
 0x35d   : > { %14542 = vst [vmem:[#allocation31_spill] sm:$0xff] %v12294_v5  ;;  %v12304_v31 = vpop.eup %7339  ;;  %v4280_v14 = vmul.f32 %v4024_v20, %v2232_v28  ;;  %v4533_v40 = vpack.c.bf16 %v4277_v58, %v4269_v9  ;;  %v3264_v5 = vadd.f32 %v14550_v4, %v14549_v18  ;;  %v4271_v3 = vmul.f32 %v4015_v1, %v2223_v49  ;;  %v12312_v22 = vpop.f32.mrf.mxu1 }
 0x35e   : > { %14548 = vst [vmem:[#allocation35_spill] sm:$0xff] %v12304_v31  ;;  %5862 = vmatprep.mubr.bf16.mxu0 %v4534_v61  ;;  %v3518_v32 = vmul.f32 0.7978846, %v3262_v53  ;;  %v3526_v48 = vmul.f32 0.7978846, %v3270_v12  ;;  %v3272_v59 = vadd.f32 %v14552_v13, %v14551_v35  ;;  %14553 = vst [vmem:[#allocation56_spill] sm:$0xff] %v12310_v55  ;;  %v12314_v38 = vpop.eup %7341  ;;  %v3365_v60 = vadd.f32 %v3109_v47, %v12161_v54  ;;  %v12321_v1 = vpop.f32.mrf.mxu0 }
 0x35f   : > { %14554 = vst [vmem:[#allocation62_spill] sm:$0xff] %v12312_v22  ;;  %14555 = vst [vmem:[#allocation120_spill] sm:$0xff] %v12314_v38  ;;  %v4536_v31 = vpack.c.bf16 %v4280_v14, %v4272_v37  ;;  %v3367_v9 = vadd.f32 %v3111_v46, %v12165_v33  ;;  %5863 = vmatmul.mubr.bf16.gmra.mxu0 %v4533_v40  ;;  %v3520_v4 = vmul.f32 0.7978846, %v3264_v5  ;;  %v12318_v58 = vpop.eup %7343  ;;  %v12323_v49 = vpop.f32.mrf.mxu1  ;;  %v3613_v47 = vmul.f32 0.7978846, %v12233_v17 }
 0x360   : > { %14556 = vst [vmem:[#allocation54_spill] sm:$0xff] %v12318_v58  ;;  %v3117_v28 = vmul.f32 %v2861_v52, %v12215_v11  ;;  %v4535_v20 = vpack.c.bf16 %v4279_v45, %v4271_v3  ;;  %7345 = vtanh.f32 %v3518_v32  ;;  %v3528_v56 = vmul.f32 0.7978846, %v3272_v59  ;;  %14557 = vst [vmem:[#allocation25_spill] sm:$0xff] %v12321_v1  ;;  %v12336_v45 = vpop.f32.mrf.mxu0  ;;  %v14561_v53 = vld [vmem:[#allocation93_spill] sm:$0xff]  ;;  %v14586_v1 = vld [vmem:[#allocation67_spill] sm:$0xff] }
 0x361   : > { %14558 = vst [vmem:[#allocation70_spill] sm:$0xff] %v12323_v49  ;;  %v2840_v61 = vmul.f32 %v12211_v26, %v12176_v24  ;;  %6055 = vmatprep.mubr.bf16.mxu1 %v4536_v31  ;;  %v3119_v46 = vmul.f32 %v2863_v27, %v12238_v30  ;;  %7347 = vtanh.f32 %v3526_v48  ;;  %v12331_v5 = vmul.f32 %v12208_v16, %v12098_v0  ;;  %v12338_v26 = vpop.f32.mrf.mxu1  ;;  %v14565_v48 = vld [vmem:[#allocation119_spill] sm:$0xff]  ;;  %v14588_v22 = vld [vmem:[#allocation84_spill] sm:$0xff] }
 0x362   : > { %v3615_v52 = vmul.f32 0.7978846, %v12241_v7  ;;  %v2846_v59 = vmul.f32 %v12255_v42, %v12222_v8  ;;  %6056 = vmatmul.mubr.bf16.gmra.mxu1 %v4535_v20  ;;  %7349 = vtanh.f32 %v3520_v4  ;;  %14559 = vst [vmem:[#allocation166_spill] sm:$0xff] %v12336_v45  ;;  %14560 = vst [vmem:[#allocation167_spill] sm:$0xff] %v12338_v26  ;;  %v2848_v17 = vmul.f32 %v12258_v6, %v12226_v43  ;;  %v12349_v37 = vpop.f32.mrf.mxu0  ;;  %v14584_v45 = vld [vmem:[#allocation8_spill] sm:$0xff] }
 0x363   : > { %v3621_v27 = vmul.f32 0.7978846, %v3365_v60  ;;  %7351 = vtanh.f32 %v3528_v56  ;;  %v12344_v16 = vadd.f32 %v14561_v53, %v10193_v19  ;;  %v3623_v12 = vmul.f32 0.7978846, %v3367_v9  ;;  %14562 = vst [vmem:[#allocation93_spill] sm:$0xff] %v12349_v37  ;;  %v12351_v14 = vpop.f32.mrf.mxu1  ;;  %v14566_v60 = vld [vmem:[#allocation107_spill] sm:$0xff] }
 0x364   : > { %v2598_v7 = vmul.f32 0.044715, %v12262_v15  ;;  %v2600_v42 = vmul.f32 0.044715, %v12266_v25  ;;  %v3373_v31 = vadd.f32 %v3117_v28, %v12215_v11  ;;  %14563 = vst [vmem:[#allocation168_spill] sm:$0xff] %v12351_v14  ;;  %v12355_v6 = vmul.f32 %v12218_v2, %v12110_v39  ;;  %v12372_v2 = vpop.f32.mrf.mxu0  ;;  %v14570_v56 = vld [vmem:[#allocation96_spill] sm:$0xff] }
 0x365   : > { %v12358_v40 = vmul.f32 %v2840_v61, %v12176_v24  ;;  %7353 = vtanh.f32 %v3613_v47  ;;  %v3375_v3 = vadd.f32 %v3119_v46, %v12238_v30  ;;  %v12362_v32 = vmul.f32 %v2846_v59, %v12222_v8  ;;  %14567 = vst [vmem:[#allocation119_spill] sm:$0xff] %v12372_v2  ;;  %v12374_v4 = vpop.f32.mrf.mxu1  ;;  %v14590_v11 = vld [vmem:[#allocation83_spill] sm:$0xff]  ;;  %v14593_v54 = vld [vmem:[#allocation76_spill] sm:$0xff] }
 0x366   : > { %7355 = vtanh.f32 %v3615_v52  ;;  %v12366_v13 = vadd.f32 %v14565_v48, %v13948_v23  ;;  %v12370_v9 = vadd.f32 %v14566_v60, %v10042_v34  ;;  %14568 = vst [vmem:[#allocation107_spill] sm:$0xff] %v12374_v4  ;;  %v12377_v28 = vmul.f32 %v2848_v17, %v12226_v43  ;;  %v12392_v52 = vpop.f32.mrf.mxu0  ;;  %v14575_v48 = vld [vmem:[#allocation48_spill] sm:$0xff]  ;;  %v14580_v4 = vld [vmem:[#allocation78_spill] sm:$0xff] }
 0x367   : > { %14564 = vst [vmem:[#allocation169_spill] sm:$0xff] %v12362_v32  ;;  %7357 = vtanh.f32 %v3621_v27  ;;  %v2606_v20 = vmul.f32 0.044715, %v12344_v16  ;;  %v12382_v61 = vadd.f32 %v14570_v56, %v10062_v44  ;;  %v12385_v47 = vmul.f32 %v2598_v7, %v12262_v15  ;;  %14572 = vst [vmem:[#allocation171_spill] sm:$0xff] %v12392_v52  ;;  %v12394_v59 = vpop.f32.mrf.mxu1 }
 0x368   : > { %14569 = vst [vmem:[#allocation170_spill] sm:$0xff] %v12377_v28  ;;  %7359 = vtanh.f32 %v3623_v12  ;;  %v12388_v34 = vmul.f32 %v2600_v42, %v12266_v25  ;;  %v12390_v46 = vmul.f32 0.7978846, %v3373_v31  ;;  %14573 = vst [vmem:[#allocation172_spill] sm:$0xff] %v12394_v59  ;;  %v12396_v17 = vmul.f32 0.7978846, %v3375_v3  ;;  %v12408_v56 = vpop.f32.mrf.mxu0 }
 0x369   : > { %14571 = vst [vmem:[#allocation96_spill] sm:$0xff] %v12382_v61  ;;  %v2238_v27 = vmul.f32 0.5, %v14543_v50  ;;  %v2246_v44 = vmul.f32 0.5, %v11408_v36  ;;  %v2240_v53 = vmul.f32 0.5, %v14549_v18  ;;  %v2248_v12 = vmul.f32 0.5, %v14551_v35  ;;  %v14574_v31 = vld [vmem:[#allocation126_spill] sm:$0xff]  ;;  %v12410_v3 = vpop.f32.mrf.mxu1 }
 0x36a   : > { %v12403_v7 = vmul.f32 0.044715, %v12366_v13  ;;  %v2613_v42 = vmul.f32 0.044715, %v12370_v9  ;;  %v3278_v60 = vadd.f32 %v14575_v48, %v14574_v31  ;;  %14576 = vst [vmem:[#allocation126_spill] sm:$0xff] %v12408_v56  ;;  %14577 = vst [vmem:[#allocation48_spill] sm:$0xff] %v12410_v3  ;;  %v12413_v50 = vmul.f32 %v2606_v20, %v12344_v16  ;;  %v12428_v20 = vpop.f32.mrf.mxu0 }
 0x36b   : > { %v2615_v36 = vmul.f32 0.044715, %v12382_v61  ;;  %v14578_v18 = vld [vmem:[#allocation3_spill] sm:$0xff]  ;;  %v14579_v59 = vld [vmem:[#allocation53_spill] sm:$0xff]  ;;  %v2237_v2 = vmul.f32 0.5, %v14580_v4  ;;  %v3286_v3 = vadd.f32 %v11731_v51, %v11524_v63  ;;  %v12430_v37 = vpop.f32.mrf.mxu1  ;;  %v4039_v51 = vadd.f32 1.0, %v14590_v11 }
 0x36c   : > { %v12418_v35 = vadd.f32 %v14578_v18, %v10193_v19  ;;  %v12422_v52 = vadd.f32 %v14579_v59, %v13948_v23  ;;  %v14581_v48 = vld [vmem:[#allocation65_spill] sm:$0xff]  ;;  %v3534_v56 = vmul.f32 0.7978846, %v3278_v60  ;;  %14582 = vst [vmem:[#allocation3_spill] sm:$0xff] %v12428_v20  ;;  %14583 = vst [vmem:[#allocation53_spill] sm:$0xff] %v12430_v37  ;;  %v2245_v19 = vmul.f32 0.5, %v14584_v45  ;;  %v12439_v20 = vpop.f32.mrf.mxu0 }
 0x36d   : > { %v4037_v14 = vadd.f32 1.0, %v14581_v48  ;;  %v7346_v26 = vpop.eup %7345  ;;  %v14585_v18 = vld [vmem:[#allocation11_spill] sm:$0xff]  ;;  %v14589_v4 = vld [vmem:[#allocation137_spill] sm:$0xff]  ;;  %v3542_v60 = vmul.f32 0.7978846, %v3286_v3  ;;  %14591 = vst [vmem:[#allocation78_spill] sm:$0xff] %v12439_v20  ;;  %v12441_v37 = vpop.f32.mrf.mxu1 }
 0x36e   : > { %v4029_v49 = vadd.f32 1.0, %v14585_v18  ;;  %v14587_v23 = vld [vmem:[#allocation27_spill] sm:$0xff]  ;;  %v3288_v55 = vadd.f32 %v14589_v4, %v14588_v22  ;;  %v7348_v48 = vpop.eup %7347  ;;  %v4030_v30 = vadd.f32 1.0, %v7346_v26  ;;  %7361 = vtanh.f32 %v3534_v56  ;;  %14592 = vst [vmem:[#allocation65_spill] sm:$0xff] %v12441_v37  ;;  %v14594_v4 = vld [vmem:[#allocation68_spill] sm:$0xff]  ;;  %v12445_v26 = vpop.f32.mrf.mxu0 }
 0x36f   : > { %v3280_v59 = vadd.f32 %v14587_v23, %v14586_v1  ;;  %v7350_v33 = vpop.eup %7349  ;;  %v4038_v45 = vadd.f32 1.0, %v7348_v48  ;;  %v2247_v18 = vmul.f32 0.5, %v14593_v54  ;;  %v4293_v43 = vmul.f32 %v4037_v14, %v2245_v19  ;;  %14595 = vst [vmem:[#allocation8_spill] sm:$0xff] %v12445_v26  ;;  %v12447_v11 = vpop.f32.mrf.mxu1  ;;  %v14597_v54 = vld [vmem:[#allocation63_spill] sm:$0xff] }
 0x370   : > { %v3544_v38 = vmul.f32 0.7978846, %v3288_v55  ;;  %v7352_v23 = vpop.eup %7351  ;;  %v4032_v28 = vadd.f32 1.0, %v7350_v33  ;;  %v4031_v32 = vadd.f32 1.0, %v14594_v4  ;;  %7363 = vtanh.f32 %v3542_v60  ;;  %14596 = vst [vmem:[#allocation11_spill] sm:$0xff] %v12447_v11  ;;  %v12452_v33 = vpop.f32.mrf.mxu0 }
 0x371   : > { %v3536_v58 = vmul.f32 0.7978846, %v3280_v59  ;;  %v4286_v56 = vmul.f32 %v4030_v30, %v2238_v27  ;;  %v4294_v3 = vmul.f32 %v4038_v45, %v2246_v44  ;;  %v4040_v20 = vadd.f32 1.0, %v7352_v23  ;;  %14598 = vst [vmem:[#allocation67_spill] sm:$0xff] %v12452_v33  ;;  %v12454_v14 = vpop.f32.mrf.mxu1  ;;  %v14606_v23 = vld [vmem:[#allocation69_spill] sm:$0xff] }
 0x372   : > { %v12449_v37 = vpop.eup %7353  ;;  %v4285_v48 = vmul.f32 %v4029_v49, %v2237_v2  ;;  %v2239_v59 = vmul.f32 0.5, %v14597_v54  ;;  %v4295_v55 = vmul.f32 %v4039_v51, %v2247_v18  ;;  %14599 = vst [vmem:[#allocation27_spill] sm:$0xff] %v12454_v14  ;;  %v4288_v4 = vmul.f32 %v4032_v28, %v2240_v53  ;;  %v12466_v2 = vpop.f32.mrf.mxu0  ;;  %v14610_v54 = vld [vmem:[#allocation140_spill] sm:$0xff] }
 0x373   : > { %7365 = vtanh.f32 %v3536_v58  ;;  %v12456_v19 = vpop.eup %7355  ;;  %v4542_v60 = vpack.c.bf16 %v4294_v3, %v4286_v56  ;;  %v4296_v11 = vmul.f32 %v4040_v20, %v2248_v12  ;;  %v2869_v30 = vmul.f32 %v2613_v42, %v12370_v9  ;;  %14600 = vst [vmem:[#allocation84_spill] sm:$0xff] %v12466_v2  ;;  %v12468_v44 = vpop.f32.mrf.mxu1  ;;  %v14603_v42 = vld [vmem:[#allocation138_spill] sm:$0xff] }
 0x374   : > { %7367 = vtanh.f32 %v3544_v38  ;;  %v12459_v27 = vpop.eup %7357  ;;  %v12463_v58 = vmul.f32 %v12385_v47, %v12262_v15  ;;  %v4541_v38 = vpack.c.bf16 %v4293_v43, %v4285_v48  ;;  %v4287_v49 = vmul.f32 %v4031_v32, %v2239_v59  ;;  %14601 = vst [vmem:[#allocation137_spill] sm:$0xff] %v12468_v44  ;;  %v14602_v32 = vld [vmem:[#allocation12_spill] sm:$0xff]  ;;  %v12483_v45 = vpop.f32.mrf.mxu0  ;;  %v14609_v48 = vld [vmem:[#allocation18_spill] sm:$0xff]  ;;  %v14624_v44 = vld [vmem:[#allocation115_spill] sm:$0xff] }
 0x375   : > { %7369 = vtanh.f32 %v12390_v46  ;;  %v12470_v51 = vpop.eup %7359  ;;  %5872 = vmatprep.mubr.bf16.mxu0 %v4542_v60  ;;  %v4544_v28 = vpack.c.bf16 %v4296_v11, %v4288_v4  ;;  %v2864_v53 = vmul.f32 %v12403_v7, %v12366_v13  ;;  %v2871_v12 = vmul.f32 %v2615_v36, %v12382_v61  ;;  %14604 = vst [vmem:[#allocation83_spill] sm:$0xff] %v12483_v45  ;;  %v12485_v18 = vpop.f32.mrf.mxu1  ;;  %v14607_v11 = vld [vmem:[#allocation43_spill] sm:$0xff]  ;;  %v14623_v45 = vld [vmem:[#allocation58_spill] sm:$0xff] }
 0x376   : > { %v2614_v47 = vmul.f32 0.044715, %v12418_v35  ;;  %v12478_v46 = vmul.f32 %v12388_v34, %v12266_v25  ;;  %7371 = vtanh.f32 %v12396_v17  ;;  %5873 = vmatmul.mubr.bf16.gmra.mxu0 %v4541_v38  ;;  %v4543_v43 = vpack.c.bf16 %v4295_v55, %v4287_v49  ;;  %14605 = vst [vmem:[#allocation76_spill] sm:$0xff] %v12485_v18  ;;  %v12505_v60 = vpop.f32.mrf.mxu0  ;;  %v14619_v18 = vld [vmem:[#allocation23_spill] sm:$0xff] }
 0x377   : > { %v3294_v20 = vadd.f32 %v14603_v42, %v14602_v32  ;;  %6065 = vmatprep.mubr.bf16.mxu1 %v4544_v28  ;;  %v12489_v7 = vmul.f32 %v12413_v50, %v12344_v16  ;;  %v3125_v36 = vmul.f32 %v2869_v30, %v12370_v9  ;;  %v12493_v34 = vmul.f32 0.044715, %v12422_v52  ;;  %v14611_v50 = vld [vmem:[#allocation108_spill] sm:$0xff]  ;;  %14612 = vst [vmem:[#allocation63_spill] sm:$0xff] %v12505_v60  ;;  %v12507_v4 = vpop.f32.mrf.mxu1  ;;  %v14614_v28 = vld [vmem:[#allocation26_spill] sm:$0xff]  ;;  %v14618_v60 = vld [vmem:[#allocation123_spill] sm:$0xff] }
 0x378   : > { %v3302_v17 = vadd.f32 %v11879_v10, %v11660_v57  ;;  %v12499_v56 = vadd.f32 %v14607_v11, %v14606_v23  ;;  %6066 = vmatmul.mubr.bf16.gmra.mxu1 %v4543_v43  ;;  %v3296_v59 = vadd.f32 %v14610_v54, %v14609_v48  ;;  %v3304_v55 = vadd.f32 %v14611_v50, %v11709_v29  ;;  %v12517_v23 = vpop.f32.mrf.mxu0 }
 0x379   : > { %v3550_v3 = vmul.f32 0.7978846, %v3294_v20  ;;  %14613 = vst [vmem:[#allocation12_spill] sm:$0xff] %v12507_v4  ;;  %v12510_v30 = vmul.f32 %v2864_v53, %v12366_v13  ;;  %v3127_v10 = vmul.f32 %v2871_v12, %v12382_v61  ;;  %v12514_v38 = vmul.f32 %v2614_v47, %v12418_v35  ;;  %14615 = vst [vmem:[#allocation138_spill] sm:$0xff] %v12517_v23  ;;  %v12519_v11 = vpop.f32.mrf.mxu1  ;;  %v14617_v4 = vld [vmem:[#allocation40_spill] sm:$0xff]  ;;  %v14622_v23 = vld [vmem:[#allocation95_spill] sm:$0xff] }
 0x37a   : > { %14608 = vst [vmem:[#allocation68_spill] sm:$0xff] %v12499_v56  ;;  %v3558_v49 = vmul.f32 0.7978846, %v3302_v17  ;;  %v4053_v43 = vadd.f32 1.0, %v14614_v28  ;;  %v3552_v42 = vmul.f32 0.7978846, %v3296_v59  ;;  %v3381_v50 = vadd.f32 %v3125_v36, %v12370_v9 }
 0x37b   : > { %7373 = vtanh.f32 %v3550_v3  ;;  %v3560_v20 = vmul.f32 0.7978846, %v3304_v55  ;;  %14616 = vst [vmem:[#allocation69_spill] sm:$0xff] %v12519_v11  ;;  %v7362_v54 = vpop.eup %7361  ;;  %v2254_v53 = vmul.f32 0.5, %v14574_v31  ;;  %v4045_v12 = vadd.f32 1.0, %v14617_v4  ;;  %v12526_v3 = vpop.f32.mrf.mxu0 }
 0x37c   : > { %7375 = vtanh.f32 %v3558_v49  ;;  %v4046_v47 = vadd.f32 1.0, %v7362_v54  ;;  %v2261_v17 = vmul.f32 0.5, %v14618_v60  ;;  %v4055_v28 = vadd.f32 1.0, %v14619_v18  ;;  %14620 = vst [vmem:[#allocation43_spill] sm:$0xff] %v12526_v3  ;;  %v12528_v59 = vpop.f32.mrf.mxu1 }
 0x37d   : > { %7377 = vtanh.f32 %v3552_v42  ;;  %14621 = vst [vmem:[#allocation18_spill] sm:$0xff] %v12528_v59  ;;  %v7364_v55 = vpop.eup %7363  ;;  %v2262_v11 = vmul.f32 0.5, %v11524_v63  ;;  %v2253_v36 = vmul.f32 0.5, %v14622_v23  ;;  %v4047_v31 = vadd.f32 1.0, %v14623_v45  ;;  %v12535_v42 = vpop.f32.mrf.mxu0  ;;  %v14627_v23 = vld [vmem:[#allocation57_spill] sm:$0xff] }
 0x37e   : > { %7379 = vtanh.f32 %v3560_v20  ;;  %v4054_v49 = vadd.f32 1.0, %v7364_v55  ;;  %v2256_v54 = vmul.f32 0.5, %v14586_v1  ;;  %v4309_v60 = vmul.f32 %v4053_v43, %v2261_v17  ;;  %14625 = vst [vmem:[#allocation140_spill] sm:$0xff] %v12535_v42  ;;  %v12537_v2 = vpop.f32.mrf.mxu1  ;;  %v14632_v42 = vld [vmem:[#allocation148_spill] sm:$0xff] }
 0x37f   : > { %v2263_v18 = vmul.f32 0.5, %v14624_v44  ;;  %14626 = vst [vmem:[#allocation108_spill] sm:$0xff] %v12537_v2  ;;  %v2264_v33 = vmul.f32 0.5, %v14588_v22  ;;  %v4301_v26 = vmul.f32 %v4045_v12, %v2253_v36  ;;  %v2255_v56 = vmul.f32 0.5, %v14627_v23  ;;  %v12541_v3 = vpop.f32.mrf.mxu0  ;;  %v14631_v2 = vld [vmem:[#allocation99_spill] sm:$0xff]  ;;  %v14634_v12 = vld [vmem:[#allocation61_spill] sm:$0xff] }
 0x380   : > { %v7366_v4 = vpop.eup %7365  ;;  %v4302_v45 = vmul.f32 %v4046_v47, %v2254_v53  ;;  %v4310_v20 = vmul.f32 %v4054_v49, %v2262_v11  ;;  %14628 = vst [vmem:[#allocation26_spill] sm:$0xff] %v12541_v3  ;;  %v12543_v1 = vpop.f32.mrf.mxu1  ;;  %v3383_v43 = vadd.f32 %v3127_v10, %v12382_v61  ;;  %v3310_v22 = vadd.f32 %v14632_v42, %v14631_v2  ;;  %v14636_v10 = vld [vmem:[#allocation74_spill] sm:$0xff] }
 0x381   : > { %v7368_v14 = vpop.eup %7367  ;;  %v4048_v63 = vadd.f32 1.0, %v7366_v4  ;;  %v4311_v55 = vmul.f32 %v4055_v28, %v2263_v18  ;;  %14629 = vst [vmem:[#allocation40_spill] sm:$0xff] %v12543_v1  ;;  %v4303_v17 = vmul.f32 %v4047_v31, %v2255_v56  ;;  %v14633_v4 = vld [vmem:[#allocation82_spill] sm:$0xff]  ;;  %v12552_v47 = vpop.f32.mrf.mxu0  ;;  %v14637_v56 = vld [vmem:[#allocation149_spill] sm:$0xff] }
 0x382   : > { %v4056_v59 = vadd.f32 1.0, %v7368_v14  ;;  %v12545_v44 = vpop.eup %7369  ;;  %v3318_v36 = vadd.f32 %v14634_v12, %v14633_v4  ;;  %v4550_v23 = vpack.c.bf16 %v4310_v20, %v4302_v45  ;;  %v4549_v14 = vpack.c.bf16 %v4309_v60, %v4301_v26  ;;  %v12554_v28 = vpop.f32.mrf.mxu1  ;;  %v14638_v3 = vld [vmem:[#allocation146_spill] sm:$0xff] }
 0x383   : > { %14630 = vst [vmem:[#allocation123_spill] sm:$0xff] %v12545_v44  ;;  %v4304_v53 = vmul.f32 %v4048_v63, %v2256_v54  ;;  %14635 = vst [vmem:[#allocation23_spill] sm:$0xff] %v12554_v28  ;;  %v12556_v49 = vpop.eup %7371  ;;  %v3566_v18 = vmul.f32 0.7978846, %v3310_v22  ;;  %v3312_v31 = vadd.f32 %v14637_v56, %v14636_v10  ;;  %v14639_v42 = vld [vmem:[#allocation134_spill] sm:$0xff]  ;;  %v12564_v54 = vmul.f32 %v12493_v34, %v12422_v52  ;;  %v14642_v63 = vld [vmem:[#allocation71_spill] sm:$0xff] }
 0x384   : > { %v4312_v11 = vmul.f32 %v4056_v59, %v2264_v33  ;;  %v3574_v1 = vmul.f32 0.7978846, %v3318_v36  ;;  %v3320_v61 = vadd.f32 %v14639_v42, %v14638_v3  ;;  %v3637_v44 = vmul.f32 0.7978846, %v3381_v50  ;;  %5882 = vmatprep.mubr.bf16.mxu0 %v4550_v23  ;;  %v12566_v59 = vpop.f32.mrf.mxu0  ;;  %v12568_v60 = vpop.f32.mrf.mxu1  ;;  %v14643_v36 = vld [vmem:[#allocation92_spill] sm:$0xff]  ;;  %v14649_v42 = vld [vmem:[#allocation86_spill] sm:$0xff] }
 0x385   : > { %v4551_v33 = vpack.c.bf16 %v4311_v55, %v4303_v17  ;;  %14640 = vst [vmem:[#allocation95_spill] sm:$0xff] %v12566_v59  ;;  %14641 = vst [vmem:[#allocation58_spill] sm:$0xff] %v12568_v60  ;;  %5883 = vmatmul.mubr.bf16.gmra.mxu0 %v4549_v14  ;;  %v4069_v45 = vadd.f32 1.0, %v14642_v63  ;;  %7381 = vtanh.f32 %v3566_v18  ;;  %v3568_v20 = vmul.f32 0.7978846, %v3312_v31  ;;  %v14647_v18 = vld [vmem:[#allocation97_spill] sm:$0xff] }
 0x386   : > { %v4552_v26 = vpack.c.bf16 %v4312_v11, %v4304_v53  ;;  %v3576_v22 = vmul.f32 0.7978846, %v3320_v61  ;;  %v3639_v12 = vmul.f32 0.7978846, %v3383_v43  ;;  %v2270_v50 = vmul.f32 0.5, %v14602_v32  ;;  %v12573_v23 = vpop.f32.mrf.mxu0  ;;  %v12575_v55 = vpop.f32.mrf.mxu1  ;;  %v14646_v11 = vld [vmem:[#allocation66_spill] sm:$0xff] }
 0x387   : > { %v4061_v34 = vadd.f32 1.0, %v14643_v36  ;;  %7383 = vtanh.f32 %v3574_v1  ;;  %14644 = vst [vmem:[#allocation115_spill] sm:$0xff] %v12573_v23  ;;  %14645 = vst [vmem:[#allocation57_spill] sm:$0xff] %v12575_v55  ;;  %v2278_v53 = vmul.f32 0.5, %v11660_v57  ;;  %v2277_v14 = vmul.f32 0.5, %v14646_v11  ;;  %v14648_v31 = vld [vmem:[#allocation87_spill] sm:$0xff] }
 0x388   : > { %6075 = vmatprep.mubr.bf16.mxu1 %v4552_v26  ;;  %v7374_v17 = vpop.eup %7373  ;;  %v4071_v56 = vadd.f32 1.0, %v14647_v18  ;;  %7385 = vtanh.f32 %v3568_v20  ;;  %v2269_v32 = vmul.f32 0.5, %v14648_v31  ;;  %v4063_v26 = vadd.f32 1.0, %v14649_v42  ;;  %v12582_v1 = vpop.f32.mrf.mxu0  ;;  %v14652_v11 = vld [vmem:[#allocation110_spill] sm:$0xff]  ;;  %v14653_v31 = vld [vmem:[#allocation59_spill] sm:$0xff] }
 0x389   : > { %6076 = vmatmul.mubr.bf16.gmra.mxu1 %v4551_v33  ;;  %v7376_v61 = vpop.eup %7375  ;;  %v4062_v43 = vadd.f32 1.0, %v7374_v17  ;;  %7387 = vtanh.f32 %v3576_v22  ;;  %14650 = vst [vmem:[#allocation99_spill] sm:$0xff] %v12582_v1  ;;  %v12584_v63 = vpop.f32.mrf.mxu1  ;;  %v2272_v57 = vmul.f32 0.5, %v14609_v48  ;;  %v4325_v55 = vmul.f32 %v4069_v45, %v2277_v14  ;;  %v14656_v45 = vld [vmem:[#allocation9_spill] sm:$0xff]  ;;  %v14657_v14 = vld [vmem:[#allocation46_spill] sm:$0xff] }
 0x38a   : > { %14651 = vst [vmem:[#allocation148_spill] sm:$0xff] %v12584_v63  ;;  %v7378_v36 = vpop.eup %7377  ;;  %v4070_v33 = vadd.f32 1.0, %v7376_v61  ;;  %v2279_v23 = vmul.f32 0.5, %v14652_v11  ;;  %v2280_v20 = vmul.f32 0.5, %v11709_v29  ;;  %v4317_v60 = vmul.f32 %v4061_v34, %v2269_v32  ;;  %v12590_v42 = vpop.f32.mrf.mxu0 }
 0x38b   : > { %v7380_v18 = vpop.eup %7379  ;;  %v4064_v17 = vadd.f32 1.0, %v7378_v36  ;;  %v2271_v59 = vmul.f32 0.5, %v14653_v31  ;;  %14654 = vst [vmem:[#allocation82_spill] sm:$0xff] %v12590_v42  ;;  %v12592_v22 = vpop.f32.mrf.mxu1  ;;  %v4318_v1 = vmul.f32 %v4062_v43, %v2270_v50  ;;  %7389 = vtanh.f32 %v3637_v44  ;;  %v14658_v43 = vld [vmem:[#allocation80_spill] sm:$0xff] }
 0x38c   : > { %14655 = vst [vmem:[#allocation61_spill] sm:$0xff] %v12592_v22  ;;  %v4326_v63 = vmul.f32 %v4070_v33, %v2278_v53  ;;  %v4072_v28 = vadd.f32 1.0, %v7380_v18  ;;  %v4327_v61 = vmul.f32 %v4071_v56, %v2279_v23  ;;  %v3326_v11 = vadd.f32 %v14657_v14, %v14656_v45  ;;  %v12598_v36 = vpop.f32.mrf.mxu0  ;;  %v14659_v23 = vld [vmem:[#allocation17_spill] sm:$0xff]  ;;  %v14666_v14 = vld [vmem:[#allocation91_spill] sm:$0xff] }
 0x38d   : > { %v4319_v48 = vmul.f32 %v4063_v26, %v2271_v59  ;;  %v3334_v29 = vadd.f32 %v12181_v21, %v11963_v41  ;;  %v12600_v34 = vpop.f32.mrf.mxu1  ;;  %v4320_v31 = vmul.f32 %v4064_v17, %v2272_v57  ;;  %v4557_v22 = vpack.c.bf16 %v4325_v55, %v4317_v60  ;;  %v14660_v59 = vld [vmem:[#allocation90_spill] sm:$0xff]  ;;  %v14662_v55 = vld [vmem:[#allocation125_spill] sm:$0xff] }
 0x38e   : > { %v4558_v32 = vpack.c.bf16 %v4326_v63, %v4318_v1  ;;  %v4328_v42 = vmul.f32 %v4072_v28, %v2280_v20  ;;  %v3582_v50 = vmul.f32 0.7978846, %v3326_v11  ;;  %v3328_v44 = vadd.f32 %v14659_v23, %v14658_v43  ;;  %v12606_v26 = vpop.f32.mrf.mxu0  ;;  %v14669_v23 = vld [vmem:[#allocation45_spill] sm:$0xff] }
 0x38f   : > { %v3590_v53 = vmul.f32 0.7978846, %v3334_v29  ;;  %v3336_v56 = vadd.f32 %v14660_v59, %v11967_v62  ;;  %v12608_v33 = vpop.f32.mrf.mxu1  ;;  %7391 = vtanh.f32 %v3639_v12  ;;  %v12612_v21 = vmul.f32 %v12514_v38, %v12418_v35  ;;  %v14664_v38 = vld [vmem:[#allocation88_spill] sm:$0xff] }
 0x390   : > { %14661 = vst [vmem:[#allocation74_spill] sm:$0xff] %v12608_v33  ;;  %5892 = vmatprep.mubr.bf16.mxu0 %v4558_v32  ;;  %v4560_v28 = vpack.c.bf16 %v4328_v42, %v4320_v31  ;;  %v4559_v60 = vpack.c.bf16 %v4327_v61, %v4319_v48  ;;  %v4085_v1 = vadd.f32 1.0, %v14662_v55  ;;  %7393 = vtanh.f32 %v3582_v50  ;;  %v12615_v18 = vpop.f32.mrf.mxu0  ;;  %v14665_v61 = vld [vmem:[#allocation47_spill] sm:$0xff]  ;;  %v14668_v31 = vld [vmem:[#allocation89_spill] sm:$0xff] }
 0x391   : > { %5893 = vmatmul.mubr.bf16.gmra.mxu0 %v4557_v22  ;;  %v3584_v63 = vmul.f32 0.7978846, %v3328_v44  ;;  %v3592_v57 = vmul.f32 0.7978846, %v3336_v56  ;;  %14663 = vst [vmem:[#allocation149_spill] sm:$0xff] %v12615_v18  ;;  %v12619_v20 = vmul.f32 %v12564_v54, %v12422_v52  ;;  %v2286_v12 = vmul.f32 0.5, %v14631_v2  ;;  %v12626_v29 = vpop.f32.mrf.mxu1 }
 0x392   : > { %6085 = vmatprep.mubr.bf16.mxu1 %v4560_v28  ;;  %v4077_v17 = vadd.f32 1.0, %v14664_v38  ;;  %7395 = vtanh.f32 %v3590_v53  ;;  %v7382_v42 = vpop.eup %7381  ;;  %v2294_v22 = vmul.f32 0.5, %v14633_v4  ;;  %v2293_v48 = vmul.f32 0.5, %v14665_v61  ;;  %14667 = vst [vmem:[#allocation146_spill] sm:$0xff] %v12626_v29  ;;  %v12630_v44 = vpop.f32.mrf.mxu0  ;;  %v14671_v28 = vld [vmem:[#allocation20_spill] sm:$0xff] }
 0x393   : > { %6086 = vmatmul.mubr.bf16.gmra.mxu1 %v4559_v60  ;;  %v4087_v11 = vadd.f32 1.0, %v14666_v14  ;;  %7397 = vtanh.f32 %v3584_v63  ;;  %v4078_v54 = vadd.f32 1.0, %v7382_v42  ;;  %v2285_v50 = vmul.f32 0.5, %v14668_v31  ;;  %14670 = vst [vmem:[#allocation134_spill] sm:$0xff] %v12630_v44  ;;  %v14672_v42 = vld [vmem:[#allocation28_spill] sm:$0xff]  ;;  %v12636_v18 = vpop.f32.mrf.mxu1  ;;  %v14673_v44 = vld [vmem:[#allocation81_spill] sm:$0xff] }
 0x394   : > { %v7384_v32 = vpop.eup %7383  ;;  %v4079_v2 = vadd.f32 1.0, %v14669_v23  ;;  %7399 = vtanh.f32 %v3592_v57  ;;  %v2288_v4 = vmul.f32 0.5, %v14636_v10  ;;  %v4341_v56 = vmul.f32 %v4085_v1, %v2293_v48  ;;  %v14676_v1 = vld [vmem:[#allocation100_spill] sm:$0xff] }
 0x395   : > { %v7386_v53 = vpop.eup %7385  ;;  %v4086_v59 = vadd.f32 1.0, %v7384_v32  ;;  %v2295_v60 = vmul.f32 0.5, %v14671_v28  ;;  %v2296_v63 = vmul.f32 0.5, %v14638_v3  ;;  %v4333_v61 = vmul.f32 %v4077_v17, %v2285_v50  ;;  %v14674_v32 = vld [vmem:[#allocation75_spill] sm:$0xff]  ;;  %v14677_v48 = vld [vmem:[#allocation160_spill] sm:$0xff]  ;;  %v12646_v17 = vpop.f32.mrf.mxu0 }
 0x396   : > { %v7388_v55 = vpop.eup %7387  ;;  %v4080_v38 = vadd.f32 1.0, %v7386_v53  ;;  %v2287_v14 = vmul.f32 0.5, %v14672_v42  ;;  %v4334_v31 = vmul.f32 %v4078_v54, %v2286_v12  ;;  %v12640_v33 = vadd.f32 %v14674_v32, %v14673_v44  ;;  %v14685_v32 = vld [vmem:[#allocation124_spill] sm:$0xff] }
 0x397   : > { %v4342_v29 = vmul.f32 %v4086_v59, %v2294_v22  ;;  %v4088_v23 = vadd.f32 1.0, %v7388_v55  ;;  %v4343_v57 = vmul.f32 %v4087_v11, %v2295_v60  ;;  %v3342_v28 = vadd.f32 %v14677_v48, %v14676_v1  ;;  %v14678_v60 = vld [vmem:[#allocation19_spill] sm:$0xff]  ;;  %v14679_v55 = vld [vmem:[#allocation50_spill] sm:$0xff]  ;;  %v14686_v48 = vld [vmem:[#allocation73_spill] sm:$0xff] }
 0x398   : > { %14675 = vst [vmem:[#allocation71_spill] sm:$0xff] %v12640_v33  ;;  %v4335_v10 = vmul.f32 %v4079_v2, %v2287_v14  ;;  %v3350_v3 = vadd.f32 %v12355_v6, %v12110_v39  ;;  %v4336_v12 = vmul.f32 %v4080_v38, %v2288_v4  ;;  %v4565_v54 = vpack.c.bf16 %v4341_v56, %v4333_v61  ;;  %v12648_v11 = vpop.eup %7389  ;;  %v14681_v6 = vld [vmem:[#allocation39_spill] sm:$0xff]  ;;  %v14682_v14 = vld [vmem:[#allocation42_spill] sm:$0xff]  ;;  %v14684_v38 = vld [vmem:[#allocation112_spill] sm:$0xff] }
 0x399   : > { %v4566_v50 = vpack.c.bf16 %v4342_v29, %v4334_v31  ;;  %v4344_v22 = vmul.f32 %v4088_v23, %v2296_v63  ;;  %v3598_v53 = vmul.f32 0.7978846, %v3342_v28  ;;  %v3344_v44 = vadd.f32 %v12331_v5, %v12098_v0  ;;  %v12662_v63 = vpop.f32.mrf.mxu1 }
 0x39a   : > { %v3606_v59 = vmul.f32 0.7978846, %v3350_v3  ;;  %v3352_v2 = vadd.f32 %v12358_v40, %v12176_v24  ;;  %v12656_v42 = vadd.f32 %v14679_v55, %v14678_v60  ;;  %v12660_v29 = vadd.f32 %v14682_v14, %v14681_v6  ;;  %v12665_v40 = vpop.f32.mrf.mxu0  ;;  %v14691_v55 = vld [vmem:[#allocation139_spill] sm:$0xff]  ;;  %v14692_v14 = vld [vmem:[#allocation13_spill] sm:$0xff] }
 0x39b   : > { %5902 = vmatprep.mubr.bf16.mxu0 %v4566_v50  ;;  %v4568_v4 = vpack.c.bf16 %v4344_v22, %v4336_v12  ;;  %v4567_v56 = vpack.c.bf16 %v4343_v57, %v4335_v10  ;;  %v4101_v61 = vadd.f32 1.0, %v14684_v38  ;;  %7401 = vtanh.f32 %v3598_v53  ;;  %v14688_v57 = vld [vmem:[#allocation102_spill] sm:$0xff]  ;;  %v14689_v22 = vld [vmem:[#allocation24_spill] sm:$0xff]  ;;  %v14690_v53 = vld [vmem:[#allocation79_spill] sm:$0xff] }
 0x39c   : > { %14680 = vst [vmem:[#allocation92_spill] sm:$0xff] %v12656_v42  ;;  %14683 = vst [vmem:[#allocation66_spill] sm:$0xff] %v12660_v29  ;;  %5903 = vmatmul.mubr.bf16.gmra.mxu0 %v4565_v54  ;;  %v3600_v5 = vmul.f32 0.7978846, %v3344_v44  ;;  %v3608_v31 = vmul.f32 0.7978846, %v3352_v2  ;;  %v12667_v23 = vpop.eup %7391  ;;  %v12671_v28 = vadd.f32 %v14686_v48, %v14685_v32  ;;  %7403 = vtanh.f32 %v3606_v59 }
 0x39d   : > { %6095 = vmatprep.mubr.bf16.mxu1 %v4568_v4  ;;  %v2302_v3 = vmul.f32 0.5, %v14656_v45  ;;  %v4093_v10 = vadd.f32 1.0, %v14688_v57  ;;  %v7394_v50 = vpop.eup %7393  ;;  %v2310_v12 = vmul.f32 0.5, %v11963_v41  ;;  %v2309_v54 = vmul.f32 0.5, %v14689_v22  ;;  %v12680_v45 = vpop.f32.mrf.mxu1  ;;  %v14694_v41 = vld [vmem:[#allocation111_spill] sm:$0xff] }
 0x39e   : > { %14687 = vst [vmem:[#allocation97_spill] sm:$0xff] %v12671_v28  ;;  %6096 = vmatmul.mubr.bf16.gmra.mxu1 %v4567_v56  ;;  %v4103_v44 = vadd.f32 1.0, %v14690_v53  ;;  %7405 = vtanh.f32 %v3600_v5  ;;  %v4094_v60 = vadd.f32 1.0, %v7394_v50  ;;  %v2301_v6 = vmul.f32 0.5, %v14691_v55  ;;  %14693 = vst [vmem:[#allocation87_spill] sm:$0xff] %v12680_v45  ;;  %v12684_v57 = vpop.f32.mrf.mxu0  ;;  %v14695_v55 = vld [vmem:[#allocation143_spill] sm:$0xff] }
 0x39f   : > { %v7396_v2 = vpop.eup %7395  ;;  %v4095_v4 = vadd.f32 1.0, %v14692_v14  ;;  %7407 = vtanh.f32 %v3608_v31  ;;  %v2304_v56 = vmul.f32 0.5, %v14658_v43  ;;  %v4357_v32 = vmul.f32 %v4101_v61, %v2309_v54  ;;  %v14696_v42 = vld [vmem:[#allocation127_spill] sm:$0xff]  ;;  %v14698_v61 = vld [vmem:[#allocation169_spill] sm:$0xff] }
 0x3a0   : > { %v7398_v38 = vpop.eup %7397  ;;  %v4102_v59 = vadd.f32 1.0, %v7396_v2  ;;  %v2311_v48 = vmul.f32 0.5, %v14694_v41  ;;  %v2312_v5 = vmul.f32 0.5, %v11967_v62  ;;  %v4349_v53 = vmul.f32 %v4093_v10, %v2301_v6  ;;  %v14697_v2 = vld [vmem:[#allocation136_spill] sm:$0xff]  ;;  %v12696_v62 = vpop.f32.mrf.mxu1 }
 0x3a1   : > { %v7400_v22 = vpop.eup %7399  ;;  %v4096_v50 = vadd.f32 1.0, %v7398_v38  ;;  %v2303_v28 = vmul.f32 0.5, %v14695_v55  ;;  %v4350_v14 = vmul.f32 %v4094_v60, %v2302_v3  ;;  %v12690_v33 = vadd.f32 %v14697_v2, %v14696_v42  ;;  %v14700_v42 = vld [vmem:[#allocation170_spill] sm:$0xff]  ;;  %v14705_v2 = vld [vmem:[#allocation145_spill] sm:$0xff] }
 0x3a2   : > { %v4358_v31 = vmul.f32 %v4102_v59, %v2310_v12  ;;  %v4104_v29 = vadd.f32 1.0, %v7400_v22  ;;  %v4359_v45 = vmul.f32 %v4103_v44, %v2311_v48  ;;  %v3358_v54 = vadd.f32 %v14698_v61, %v12222_v8  ;;  %v12698_v12 = vpop.f32.mrf.mxu0  ;;  %v14699_v59 = vld [vmem:[#allocation37_spill] sm:$0xff]  ;;  %v14702_v22 = vld [vmem:[#allocation142_spill] sm:$0xff]  ;;  %v14709_v61 = vld [vmem:[#allocation147_spill] sm:$0xff] }
 0x3a3   : > { %v4351_v43 = vmul.f32 %v4095_v4, %v2303_v28  ;;  %v3366_v41 = vadd.f32 %v12463_v58, %v12262_v15  ;;  %v4352_v6 = vmul.f32 %v4096_v50, %v2304_v56  ;;  %v4573_v3 = vpack.c.bf16 %v4357_v32, %v4349_v53  ;;  %v14701_v4 = vld [vmem:[#allocation141_spill] sm:$0xff]  ;;  %v14704_v58 = vld [vmem:[#allocation144_spill] sm:$0xff] }
 0x3a4   : > { %v4574_v10 = vpack.c.bf16 %v4358_v31, %v4350_v14  ;;  %v4360_v38 = vmul.f32 %v4104_v29, %v2312_v5  ;;  %v3614_v44 = vmul.f32 0.7978846, %v3358_v54  ;;  %v3360_v48 = vadd.f32 %v14700_v42, %v14699_v59  ;;  %v14707_v32 = vld [vmem:[#allocation120_spill] sm:$0xff]  ;;  %v12713_v31 = vpop.f32.mrf.mxu1  ;;  %v14711_v42 = vld [vmem:[#allocation31_spill] sm:$0xff] }
 0x3a5   : > { %v3622_v60 = vmul.f32 0.7978846, %v3366_v41  ;;  %v3368_v28 = vadd.f32 %v12478_v46, %v12266_v25  ;;  %v12706_v55 = vadd.f32 %v14702_v22, %v14701_v4  ;;  %v12710_v14 = vadd.f32 %v14705_v2, %v14704_v58  ;;  %v14708_v46 = vld [vmem:[#allocation34_spill] sm:$0xff]  ;;  %v14714_v22 = vld [vmem:[#allocation52_spill] sm:$0xff]  ;;  %v14715_v2 = vld [vmem:[#allocation35_spill] sm:$0xff] }
 0x3a6   : > { %5912 = vmatprep.mubr.bf16.mxu0 %v4574_v10  ;;  %v4576_v29 = vpack.c.bf16 %v4360_v38, %v4352_v6  ;;  %v4575_v56 = vpack.c.bf16 %v4359_v45, %v4351_v43  ;;  %v4117_v5 = vadd.f32 1.0, %v14707_v32  ;;  %7409 = vtanh.f32 %v3614_v44  ;;  %v12721_v10 = vpop.f32.mrf.mxu0  ;;  %v14712_v6 = vld [vmem:[#allocation14_spill] sm:$0xff] }
 0x3a7   : > { %14703 = vst [vmem:[#allocation86_spill] sm:$0xff] %v12706_v55  ;;  %14706 = vst [vmem:[#allocation110_spill] sm:$0xff] %v12710_v14  ;;  %5913 = vmatmul.mubr.bf16.gmra.mxu0 %v4573_v3  ;;  %v3616_v50 = vmul.f32 0.7978846, %v3360_v48  ;;  %v3624_v53 = vmul.f32 0.7978846, %v3368_v28  ;;  %v12717_v54 = vadd.f32 %v14709_v61, %v14708_v46  ;;  %7411 = vtanh.f32 %v3622_v60 }
 0x3a8   : > { %6105 = vmatprep.mubr.bf16.mxu1 %v4576_v29  ;;  %v2318_v41 = vmul.f32 0.5, %v14676_v1  ;;  %v4109_v4 = vadd.f32 1.0, %v14711_v42  ;;  %v7402_v45 = vpop.eup %7401  ;;  %v2326_v43 = vmul.f32 0.5, %v12110_v39  ;;  %v2325_v38 = vmul.f32 0.5, %v14712_v6  ;;  %v14713_v3 = vld [vmem:[#allocation54_spill] sm:$0xff]  ;;  %v12730_v39 = vpop.f32.mrf.mxu1  ;;  %v14719_v55 = vld [vmem:[#allocation105_spill] sm:$0xff] }
 0x3a9   : > { %14710 = vst [vmem:[#allocation59_spill] sm:$0xff] %v12717_v54  ;;  %6106 = vmatmul.mubr.bf16.gmra.mxu1 %v4575_v56  ;;  %v4119_v44 = vadd.f32 1.0, %v14713_v3  ;;  %7413 = vtanh.f32 %v3616_v50  ;;  %v7404_v48 = vpop.eup %7403  ;;  %v4110_v28 = vadd.f32 1.0, %v7402_v45  ;;  %v2317_v58 = vmul.f32 0.5, %v14714_v22  ;;  %v14716_v56 = vld [vmem:[#allocation114_spill] sm:$0xff]  ;;  %14717 = vst [vmem:[#allocation9_spill] sm:$0xff] %v12730_v39  ;;  %v12734_v22 = vpop.f32.mrf.mxu0 }
 0x3aa   : > { %v4111_v1 = vadd.f32 1.0, %v14715_v2  ;;  %7415 = vtanh.f32 %v3624_v53  ;;  %v4118_v60 = vadd.f32 1.0, %v7404_v48  ;;  %v2320_v32 = vmul.f32 0.5, %v12098_v0  ;;  %v14718_v45 = vld [vmem:[#allocation29_spill] sm:$0xff]  ;;  %v12744_v39 = vpop.f32.mrf.mxu1 }
 0x3ab   : > { %v7406_v29 = vpop.eup %7405  ;;  %v4373_v46 = vmul.f32 %v4117_v5, %v2325_v38  ;;  %v2327_v61 = vmul.f32 0.5, %v14716_v56  ;;  %v2328_v6 = vmul.f32 0.5, %v12176_v24  ;;  %v4365_v3 = vmul.f32 %v4109_v4, %v2317_v58  ;;  %v14720_v0 = vld [vmem:[#allocation85_spill] sm:$0xff] }
 0x3ac   : > { %v7408_v42 = vpop.eup %7407  ;;  %v4112_v50 = vadd.f32 1.0, %v7406_v29  ;;  %v2319_v54 = vmul.f32 0.5, %v14718_v45  ;;  %v4366_v2 = vmul.f32 %v4110_v28, %v2318_v41  ;;  %v4374_v53 = vmul.f32 %v4118_v60, %v2326_v43 }
 0x3ad   : > { %v4120_v14 = vadd.f32 1.0, %v7408_v42  ;;  %v4375_v48 = vmul.f32 %v4119_v44, %v2327_v61  ;;  %v12738_v5 = vadd.f32 %v14720_v0, %v14719_v55  ;;  %v3374_v56 = vadd.f32 %v12489_v7, %v12344_v16  ;;  %v12758_v61 = vpop.f32.mrf.mxu1 }
 0x3ae   : > { %v4367_v38 = vmul.f32 %v4111_v1, %v2319_v54  ;;  %v3382_v24 = vadd.f32 %v12612_v21, %v12418_v35  ;;  %v4582_v4 = vpack.c.bf16 %v4374_v53, %v4366_v2  ;;  %v4368_v58 = vmul.f32 %v4112_v50, %v2320_v32  ;;  %v12750_v54 = vpop.f32.mrf.mxu0 }
 0x3af   : > { %v4376_v29 = vmul.f32 %v4120_v14, %v2328_v6  ;;  %v4581_v45 = vpack.c.bf16 %v4373_v46, %v4365_v3  ;;  %v3630_v41 = vmul.f32 0.7978846, %v3374_v56  ;;  %v3376_v44 = vadd.f32 %v12510_v30, %v12366_v13  ;;  %v14722_v6 = vld [vmem:[#allocation7_spill] sm:$0xff] }
 0x3b0   : > { %v3638_v43 = vmul.f32 0.7978846, %v3382_v24  ;;  %v3384_v55 = vadd.f32 %v12619_v20, %v12422_v52  ;;  %5922 = vmatprep.mubr.bf16.mxu0 %v4582_v4  ;;  %v4583_v28 = vpack.c.bf16 %v4375_v48, %v4367_v38  ;;  %v2334_v21 = vmul.f32 0.5, %v12222_v8  ;;  %v14721_v8 = vld [vmem:[#allocation41_spill] sm:$0xff]  ;;  %v12763_v2 = vpop.f32.mrf.mxu0  ;;  %v14724_v48 = vld [vmem:[#allocation72_spill] sm:$0xff] }
 0x3b1   : > { %v4584_v7 = vpack.c.bf16 %v4376_v29, %v4368_v58  ;;  %v2342_v14 = vmul.f32 0.5, %v12262_v15  ;;  %5923 = vmatmul.mubr.bf16.gmra.mxu0 %v4581_v45  ;;  %v4125_v1 = vadd.f32 1.0, %v12449_v37  ;;  %7417 = vtanh.f32 %v3630_v41  ;;  %v14723_v37 = vld [vmem:[#allocation6_spill] sm:$0xff] }
 0x3b2   : > { %v3632_v60 = vmul.f32 0.7978846, %v3376_v44  ;;  %v3640_v32 = vmul.f32 0.7978846, %v3384_v55  ;;  %v2336_v30 = vmul.f32 0.5, %v14699_v59  ;;  %v2344_v20 = vmul.f32 0.5, %v12266_v25  ;;  %v12771_v44 = vpop.f32.mrf.mxu1 }
 0x3b3   : > { %6115 = vmatprep.mubr.bf16.mxu1 %v4584_v7  ;;  %v4133_v46 = vadd.f32 1.0, %v12459_v27  ;;  %7419 = vtanh.f32 %v3638_v43  ;;  %v7410_v42 = vpop.eup %7409  ;;  %v2333_v15 = vmul.f32 0.5, %v14721_v8  ;;  %v2341_v50 = vmul.f32 0.5, %v14722_v6 }
 0x3b4   : > { %6116 = vmatmul.mubr.bf16.gmra.mxu1 %v4583_v28  ;;  %v2335_v3 = vmul.f32 0.5, %v14723_v37  ;;  %7421 = vtanh.f32 %v3632_v60  ;;  %v7412_v53 = vpop.eup %7411  ;;  %v4126_v59 = vadd.f32 1.0, %v7410_v42  ;;  %v2343_v25 = vmul.f32 0.5, %v14724_v48  ;;  %v14725_v28 = vld [vmem:[#allocation123_spill] sm:$0xff]  ;;  %v14729_v48 = vld [vmem:[#allocation44_spill] sm:$0xff] }
 0x3b5   : > { %v4135_v27 = vadd.f32 1.0, %v12470_v51  ;;  %7423 = vtanh.f32 %v3640_v32  ;;  %v4134_v38 = vadd.f32 1.0, %v7412_v53  ;;  %v4381_v56 = vmul.f32 %v4125_v1, %v2333_v15  ;;  %v12774_v32 = vpop.f32.mrf.mxu0 }
 0x3b6   : > { %v7414_v0 = vpop.eup %7413  ;;  %v4127_v24 = vadd.f32 1.0, %v12456_v19  ;;  %v4149_v4 = vadd.f32 1.0, %v12648_v11  ;;  %v4389_v45 = vmul.f32 %v4133_v46, %v2341_v50  ;;  %v2357_v41 = vmul.f32 0.5, %v12370_v9  ;;  %v14726_v19 = vld [vmem:[#allocation161_spill] sm:$0xff]  ;;  %v14727_v11 = vld [vmem:[#allocation96_spill] sm:$0xff] }
 0x3b7   : > { %v7416_v58 = vpop.eup %7415  ;;  %v4128_v29 = vadd.f32 1.0, %v7414_v0  ;;  %v4151_v43 = vadd.f32 1.0, %v12667_v23  ;;  %v4382_v55 = vmul.f32 %v4126_v59, %v2334_v21  ;;  %v4390_v7 = vmul.f32 %v4134_v38, %v2342_v14  ;;  %v14728_v14 = vld [vmem:[#allocation163_spill] sm:$0xff]  ;;  %v12784_v59 = vpop.f32.mrf.mxu1  ;;  %v14731_v0 = vld [vmem:[#allocation36_spill] sm:$0xff] }
 0x3b8   : > { %v4136_v51 = vadd.f32 1.0, %v7416_v58  ;;  %v4141_v60 = vadd.f32 1.0, %v14725_v28  ;;  %v4391_v1 = vmul.f32 %v4135_v27, %v2343_v25  ;;  %v2349_v42 = vmul.f32 0.5, %v14726_v19  ;;  %v14730_v25 = vld [vmem:[#allocation98_spill] sm:$0xff]  ;;  %v14732_v38 = vld [vmem:[#allocation32_spill] sm:$0xff] }
 0x3b9   : > { %v2359_v8 = vmul.f32 0.5, %v14727_v11  ;;  %v4143_v46 = vadd.f32 1.0, %v12556_v49  ;;  %v4590_v15 = vpack.c.bf16 %v4390_v7, %v4382_v55  ;;  %v4384_v9 = vmul.f32 %v4128_v29, %v2336_v30 }
 0x3ba   : > { %v4392_v6 = vmul.f32 %v4136_v51, %v2344_v20  ;;  %v12779_v23 = vmul.f32 %v4149_v4, %v2357_v41  ;;  %v4589_v50 = vpack.c.bf16 %v4389_v45, %v4381_v56  ;;  %v4383_v21 = vmul.f32 %v4127_v24, %v2335_v3  ;;  %v12794_v4 = vpop.f32.mrf.mxu0  ;;  %v14733_v3 = vld [vmem:[#allocation38_spill] sm:$0xff]  ;;  %v14734_v56 = vld [vmem:[#allocation51_spill] sm:$0xff] }
 0x3bb   : > { %v2351_v37 = vmul.f32 0.5, %v14728_v14  ;;  %v12782_v53 = vmul.f32 %v4151_v43, %v2359_v8  ;;  %v12788_v27 = vadd.f32 %v14730_v25, %v14729_v48  ;;  %v12792_v49 = vadd.f32 %v14732_v38, %v14731_v0  ;;  %5932 = vmatprep.mubr.bf16.mxu0 %v4590_v15  ;;  %v14740_v8 = vld [vmem:[#allocation40_spill] sm:$0xff]  ;;  %v14744_v14 = vld [vmem:[#allocation115_spill] sm:$0xff] }
 0x3bc   : > { %v4592_v30 = vpack.c.bf16 %v4392_v6, %v4384_v9  ;;  %v4397_v20 = vmul.f32 %v4141_v60, %v2349_v42  ;;  %v12798_v24 = vadd.f32 %v14734_v56, %v14733_v3  ;;  %5933 = vmatmul.mubr.bf16.gmra.mxu0 %v4589_v50  ;;  %v4591_v58 = vpack.c.bf16 %v4391_v1, %v4383_v21  ;;  %v14735_v60 = vld [vmem:[#allocation43_spill] sm:$0xff]  ;;  %v14736_v1 = vld [vmem:[#allocation18_spill] sm:$0xff]  ;;  %v14738_v42 = vld [vmem:[#allocation108_spill] sm:$0xff]  ;;  %v5816_v48 = vpop.f32.mrf.mxu0 }
 0x3bd   : > { %v2350_v29 = vmul.f32 0.5, %v12344_v16  ;;  %v12801_v45 = vmul.f32 %v4143_v46, %v2351_v37  ;;  %v2358_v41 = vmul.f32 0.5, %v12418_v35  ;;  %v2352_v43 = vmul.f32 0.5, %v12366_v13  ;;  %v14737_v16 = vld [vmem:[#allocation140_spill] sm:$0xff]  ;;  %v14739_v35 = vld [vmem:[#allocation26_spill] sm:$0xff]  ;;  %v14741_v9 = vld [vmem:[#allocation23_spill] sm:$0xff] }
 0x3be   : > { %6125 = vmatprep.mubr.bf16.mxu1 %v4592_v30  ;;  %v2360_v55 = vmul.f32 0.5, %v12422_v52  ;;  %v4597_v7 = vpack.c.bf16 %v12779_v23, %v4397_v20  ;;  %v7418_v51 = vpop.eup %7417  ;;  %v12811_v19 = vadd.f32 %v14736_v1, %v14735_v60  ;;  %v12815_v11 = vadd.f32 %v14738_v42, %v14737_v16  ;;  %v12821_v52 = vpop.f32.mrf.mxu1  ;;  %v14742_v23 = vld [vmem:[#allocation95_spill] sm:$0xff]  ;;  %v14743_v50 = vld [vmem:[#allocation58_spill] sm:$0xff]  ;;  %v14745_v37 = vld [vmem:[#allocation57_spill] sm:$0xff] }
 0x3bf   : > { %6126 = vmatmul.mubr.bf16.gmra.mxu1 %v4591_v58  ;;  %v4599_v28 = vpack.c.bf16 %v12782_v53, %v12801_v45  ;;  %v12819_v13 = vadd.f32 %v14740_v8, %v14739_v35  ;;  %v4142_v15 = vadd.f32 1.0, %v7418_v51  ;;  %v12825_v6 = vadd.f32 %v14741_v9, %v12552_v47  ;;  %v14746_v38 = vld [vmem:[#allocation99_spill] sm:$0xff]  ;;  %v14747_v30 = vld [vmem:[#allocation148_spill] sm:$0xff]  ;;  %v14748_v3 = vld [vmem:[#allocation82_spill] sm:$0xff] }
 0x3c0   : > { %v7420_v46 = vpop.eup %7419  ;;  %v12829_v21 = vadd.f32 %v14743_v50, %v14742_v23  ;;  %v12833_v53 = vadd.f32 %v14745_v37, %v14744_v14  ;;  %v12837_v20 = vadd.f32 %v14747_v30, %v14746_v38  ;;  %v14749_v56 = vld [vmem:[#allocation61_spill] sm:$0xff]  ;;  %v12845_v58 = vadd.f32 %v12600_v34, %v12598_v36  ;;  %v249_v45 = vld [vmem:[%s13141_s4] sm:$0x3]  ;;  %v14754_v14 = vld [vmem:[#allocation68_spill] sm:$0xff]  ;;  %v5818_v30 = vpop.f32.mrf.mxu0 }
 0x3c1   : > { %v7422_v25 = vpop.eup %7421  ;;  %v4150_v0 = vadd.f32 1.0, %v7420_v46  ;;  %v12841_v47 = vadd.f32 %v14749_v56, %v14748_v3  ;;  %v4398_v60 = vmul.f32 %v4142_v15, %v2350_v29  ;;  %v14750_v16 = vld [vmem:[#allocation74_spill] sm:$0xff]  ;;  %v14751_v35 = vld [vmem:[#allocation149_spill] sm:$0xff]  ;;  %v12864_v34 = vadd.f32 %v12662_v63, %v12646_v17  ;;  %v6009_v29 = vpop.f32.mrf.mxu1  ;;  %v14759_v63 = vld [vmem:[#allocation92_spill] sm:$0xff] }
 0x3c2   : > { %v7424_v51 = vpop.eup %7423  ;;  %v4144_v1 = vadd.f32 1.0, %v7422_v25  ;;  %v12852_v42 = vadd.f32 %v14750_v16, %v12606_v26  ;;  %v14752_v8 = vld [vmem:[#allocation146_spill] sm:$0xff]  ;;  %v5795_v26 = vadd.f32 %v12665_v40, %v14754_v14 }
 0x3c3   : > { %v12856_v46 = vadd.f32 %v14752_v8, %v14751_v35  ;;  %v4406_v9 = vmul.f32 %v4150_v0, %v2358_v41  ;;  %v4152_v23 = vadd.f32 1.0, %v7424_v51  ;;  %v14753_v50 = vld [vmem:[#allocation134_spill] sm:$0xff]  ;;  %v14757_v41 = vld [vmem:[#allocation71_spill] sm:$0xff]  ;;  %v14762_v8 = vld [vmem:[#allocation97_spill] sm:$0xff] }
 0x3c4   : > { %v12860_v36 = vadd.f32 %v12636_v18, %v14753_v50  ;;  %v4400_v15 = vmul.f32 %v4144_v1, %v2352_v43  ;;  %v14755_v37 = vld [vmem:[#allocation2_spill] sm:$0xff]  ;;  %v5797_v0 = vadd.f32 %v12684_v57, %v14757_v41  ;;  %v5799_v43 = vadd.f32 %v12698_v12, %v14759_v63  ;;  %v14760_v51 = vld [vmem:[#allocation87_spill] sm:$0xff] }
 0x3c5   : > { %v14756_v25 = vsub.s32 0, %v14755_v37  ;;  %v4598_v18 = vpack.c.bf16 %v4406_v9, %v4398_v60  ;;  %v4408_v3 = vmul.f32 %v4152_v23, %v2360_v55  ;;  %v14758_v56 = vsub.s32 1, %v14755_v37  ;;  %v14761_v16 = vld [vmem:[#allocation66_spill] sm:$0xff]  ;;  %v6011_v60 = vpop.f32.mrf.mxu1  ;;  %v14764_v23 = vld [vmem:[#allocation9_spill] sm:$0xff]  ;;  %v14766_v37 = vld [vmem:[#allocation59_spill] sm:$0xff] }
 0x3c6   : > { %v5988_v1 = vadd.f32 %v14760_v51, %v5795_v26  ;;  %v5990_v40 = vadd.f32 %v12696_v62, %v5797_v0  ;;  %v5801_v35 = vadd.f32 %v12721_v10, %v14761_v16  ;;  %v5805_v57 = vadd.f32 %v12734_v22, %v14762_v8  ;;  %v14763_v62 = vld [vmem:[#allocation86_spill] sm:$0xff]  ;;  %v14769_v51 = vld [vmem:[#allocation152_spill] sm:$0xff] }
 0x3c7   : > { %v12871_v38 = vrot.slane %v249_v45, %v14756_v25  ;;  %v12877_v17 = vrot.slane %v249_v45, %v14758_v56  ;;  %5942 = vmatprep.mubr.bf16.mxu0 %v4598_v18  ;;  %v4600_v55 = vpack.c.bf16 %v4408_v3, %v4400_v15  ;;  %v5992_v45 = vadd.f32 %v12713_v31, %v5799_v43  ;;  %v5820_v31 = vpop.f32.mrf.mxu0  ;;  %v6013_v0 = vpop.f32.mrf.mxu1 }
 0x3c8   : > { %v5807_v12 = vadd.f32 %v12750_v54, %v12690_v33  ;;  %v5809_v10 = vadd.f32 %v12763_v2, %v14763_v62  ;;  %5943 = vmatmul.mubr.bf16.gmra.mxu0 %v4597_v7  ;;  %v5994_v50 = vadd.f32 %v14764_v23, %v5801_v35  ;;  %v5998_v15 = vadd.f32 %v12744_v39, %v5805_v57  ;;  %v14765_v2 = vld [vmem:[#allocation110_spill] sm:$0xff] }
 0x3c9   : > { %v6146_v22 = vadd.f32 %v5988_v1, %v12871_v38  ;;  %v6147_v9 = vadd.f32 %v5990_v40, %v12877_v17  ;;  %6135 = vmatprep.mubr.bf16.mxu1 %v4600_v55  ;;  %v6148_v14 = vadd.f32 %v5992_v45, %v12871_v38  ;;  %v5811_v7 = vadd.f32 %v12774_v32, %v14765_v2  ;;  %v14770_v1 = vld [vmem:[#allocation153_spill] sm:$0xff] }
 0x3ca   : > { %v6000_v33 = vadd.f32 %v12758_v61, %v5807_v12  ;;  %v6002_v54 = vadd.f32 %v12771_v44, %v5809_v10  ;;  %6136 = vmatmul.mubr.bf16.gmra.mxu1 %v4599_v28  ;;  %v6149_v26 = vadd.f32 %v5994_v50, %v12877_v17  ;;  %v6150_v39 = vadd.f32 %v5998_v15, %v12871_v38  ;;  %v5824_v56 = vpop.f32.mrf.mxu0  ;;  %v14771_v45 = vld [vmem:[#allocation21_spill] sm:$0xff]  ;;  %v14772_v12 = vld [vmem:[#allocation154_spill] sm:$0xff] }
 0x3cb   : > { %6210 = vst [vmem:[%s12890_s14] sm:$0xff] %v6146_v22  ;;  %6211 = vst [vmem:[%s12890_s14 + $0x8] sm:$0xff] %v6147_v9  ;;  %v5815_v25 = vadd.f32 %v12794_v4, %v14766_v37  ;;  %v5817_v61 = vadd.f32 %v5816_v48, %v12738_v5  ;;  %v6004_v32 = vadd.f32 %v12784_v59, %v5811_v7  ;;  %v14767_v5 = vld [vmem:[#allocation150_spill] sm:$0xff]  ;;  %v14768_v48 = vld [vmem:[#allocation151_spill] sm:$0xff] }
 0x3cc   : > { %6212 = vst [vmem:[%s12890_s14 + $0x10] sm:$0xff] %v6148_v14  ;;  %v6151_v44 = vadd.f32 %v6000_v33, %v12877_v17  ;;  %v6152_v41 = vadd.f32 %v6002_v54, %v12871_v38  ;;  %v5819_v28 = vadd.f32 %v5818_v30, %v12788_v27  ;;  %6213 = vst [vmem:[%s12890_s14 + $0x18] sm:$0xff] %v6149_v26  ;;  %v6017_v35 = vpop.f32.mrf.mxu1  ;;  %v14773_v26 = vld [vmem:[#allocation129_spill] sm:$0xff] }
 0x3cd   : > { %6214 = vst [vmem:[%s12890_s14 + $0x20] sm:$0xff] %v6150_v39  ;;  %v6008_v18 = vadd.f32 %v12821_v52, %v5815_v25  ;;  %v6010_v3 = vadd.f32 %v6009_v29, %v5817_v61  ;;  %v5821_v4 = vadd.f32 %v5820_v31, %v12792_v49  ;;  %v5634_v63 = vadd.f32 %v14768_v48, %v14767_v5  ;;  %v5826_v49 = vpop.f32.mrf.mxu0  ;;  %v14774_v39 = vld [vmem:[#allocation130_spill] sm:$0xff] }
 0x3ce   : > { %6215 = vst [vmem:[%s12890_s14 + $0x28] sm:$0xff] %v6151_v44  ;;  %6216 = vst [vmem:[%s12890_s14 + $0x30] sm:$0xff] %v6152_v41  ;;  %v6153_v59 = vadd.f32 %v6004_v32, %v12877_v17  ;;  %v6012_v27 = vadd.f32 %v6011_v60, %v5819_v28  ;;  %v5825_v30 = vadd.f32 %v5824_v56, %v12798_v24  ;;  %v6019_v10 = vpop.f32.mrf.mxu1  ;;  %v14775_v61 = vld [vmem:[#allocation106_spill] sm:$0xff]  ;;  %v14776_v44 = vld [vmem:[#allocation55_spill] sm:$0xff] }
 0x3cf   : > { %v6154_v43 = vadd.f32 %v6008_v18, %v12871_v38  ;;  %v6155_v52 = vadd.f32 %v6010_v3, %v12877_v17  ;;  %v6014_v29 = vadd.f32 %v6013_v0, %v5821_v4  ;;  %v5636_v40 = vadd.f32 %v14770_v1, %v14769_v51  ;;  %v5828_v55 = vpop.f32.mrf.mxu0  ;;  %v14777_v18 = vld [vmem:[#allocation94_spill] sm:$0xff]  ;;  %v14778_v3 = vld [vmem:[#allocation101_spill] sm:$0xff] }
 0x3d0   : > { %6217 = vst [vmem:[%s12890_s14 + $0x38] sm:$0xff] %v6153_v59  ;;  %v6156_v16 = vadd.f32 %v6012_v27, %v12871_v38  ;;  %v5827_v8 = vadd.f32 %v5826_v49, %v5634_v63  ;;  %v6018_v57 = vadd.f32 %v6017_v35, %v5825_v30  ;;  %v5638_v62 = vadd.f32 %v14772_v12, %v14771_v45  ;;  %v6021_v50 = vpop.f32.mrf.mxu1  ;;  %v14779_v59 = vld [vmem:[#allocation33_spill] sm:$0xff]  ;;  %v14782_v45 = vld [vmem:[#allocation132_spill] sm:$0xff] }
 0x3d1   : > { %6218 = vst [vmem:[%s12890_s14 + $0x40] sm:$0xff] %v6154_v43  ;;  %6219 = vst [vmem:[%s12890_s14 + $0x48] sm:$0xff] %v6155_v52  ;;  %v6157_v24 = vadd.f32 %v6014_v29, %v12877_v17  ;;  %v5829_v60 = vadd.f32 %v5828_v55, %v5636_v40  ;;  %v5830_v23 = vpop.f32.mrf.mxu0  ;;  %v5642_v37 = vadd.f32 %v14774_v39, %v14773_v26  ;;  %v14780_v27 = vld [vmem:[#allocation133_spill] sm:$0xff]  ;;  %v14788_v26 = vld [vmem:[#allocation122_spill] sm:$0xff] }
 0x3d2   : > { %6220 = vst [vmem:[%s12890_s14 + $0x50] sm:$0xff] %v6156_v16  ;;  %v6158_v22 = vadd.f32 %v6018_v57, %v12871_v38  ;;  %v6020_v9 = vadd.f32 %v6019_v10, %v5827_v8  ;;  %v5831_v15 = vadd.f32 %v5830_v23, %v5638_v62  ;;  %v6023_v33 = vpop.f32.mrf.mxu1  ;;  %v5644_v41 = vadd.f32 %v14776_v44, %v14775_v61  ;;  %v14781_v55 = vld [vmem:[#allocation121_spill] sm:$0xff]  ;;  %v14783_v10 = vld [vmem:[#allocation155_spill] sm:$0xff] }
 0x3d3   : > { %6221 = vst [vmem:[%s12890_s14 + $0x58] sm:$0xff] %v6157_v24  ;;  %v6022_v14 = vadd.f32 %v6021_v50, %v5829_v60  ;;  %v5646_v4 = vadd.f32 %v14778_v3, %v14777_v18  ;;  %v5648_v30 = vadd.f32 %v14780_v27, %v14779_v59  ;;  %v5652_v12 = vadd.f32 %v14782_v45, %v14781_v55  ;;  %v14784_v60 = vld [vmem:[#allocation156_spill] sm:$0xff]  ;;  %v14785_v50 = vld [vmem:[#allocation157_spill] sm:$0xff]  ;;  %v14795_v55 = vld [vmem:[#allocation118_spill] sm:$0xff] }
 0x3d4   : > { %6222 = vst [vmem:[%s12890_s14 + $0x60] sm:$0xff] %v6158_v22  ;;  %v6159_v31 = vadd.f32 %v6020_v9, %v12877_v17  ;;  %v6024_v2 = vadd.f32 %v6023_v33, %v5831_v15  ;;  %v5654_v22 = vadd.f32 %v14784_v60, %v14783_v10  ;;  %v14786_v15 = vld [vmem:[#allocation158_spill] sm:$0xff]  ;;  %v14796_v45 = vld [vmem:[#allocation116_spill] sm:$0xff] }
 0x3d5   : > { %v6160_v54 = vadd.f32 %v6022_v14, %v12871_v38 }
 0x3d6   : > { %6223 = vst [vmem:[%s12890_s14 + $0x68] sm:$0xff] %v6159_v31  ;;  %v6161_v7 = vadd.f32 %v6024_v2, %v12877_v17  ;;  %v5656_v31 = vadd.f32 %v14786_v15, %v14785_v50 }
 0x3d7   : > { %6224 = vst [vmem:[%s12890_s14 + $0x70] sm:$0xff] %v6160_v54 }
 0x3d8   : > { %6225 = vst [vmem:[%s12890_s14 + $0x78] sm:$0xff] %v6161_v7  ;;  %v14787_v7 = vld [vmem:[#allocation60_spill] sm:$0xff] }
 0x3d9   : > { %v5658_v39 = vadd.f32 %v14788_v26, %v14787_v7  ;;  %v14798_v7 = vld [vmem:[#allocation5_spill] sm:$0xff] }
 0x3e0   : > { %v5834_v25 = vpop.f32.mrf.mxu0 }
 0x3e1   : > { %v5835_v32 = vadd.f32 %v5834_v25, %v5642_v37 }
 0x3e2   : > { %v5836_v0 = vpop.f32.mrf.mxu0 }
 0x3e3   : > { %v6027_v28 = vpop.f32.mrf.mxu1  ;;  %v5837_v5 = vadd.f32 %v5836_v0, %v5644_v41 }
 0x3e4   : > { %v6028_v56 = vadd.f32 %v6027_v28, %v5835_v32  ;;  %v5838_v63 = vpop.f32.mrf.mxu0 }
 0x3e5   : > { %v6029_v48 = vpop.f32.mrf.mxu1  ;;  %v5839_v29 = vadd.f32 %v5838_v63, %v5646_v4  ;;  %v14790_v63 = vld [vmem:[#allocation128_spill] sm:$0xff] }
 0x3e6   : > { %v6162_v43 = vadd.f32 %v6028_v56, %v12871_v38  ;;  %v6030_v52 = vadd.f32 %v6029_v48, %v5837_v5  ;;  %v5840_v51 = vpop.f32.mrf.mxu0  ;;  %v14789_v48 = vld [vmem:[#allocation16_spill] sm:$0xff] }
 0x3e7   : > { %v6031_v49 = vpop.f32.mrf.mxu1  ;;  %v5841_v16 = vadd.f32 %v5840_v51, %v5648_v30  ;;  %v5662_v59 = vadd.f32 %v14790_v63, %v14789_v48  ;;  %v14791_v30 = vld [vmem:[#allocation131_spill] sm:$0xff]  ;;  %v14804_v48 = vld [vmem:[#allocation165_spill] sm:$0xff] }
 0x3e8   : > { %6226 = vst [vmem:[%s12890_s14 + $0x80] sm:$0xff] %v6162_v43  ;;  %v6163_v1 = vadd.f32 %v6030_v52, %v12877_v17  ;;  %v6032_v40 = vadd.f32 %v6031_v49, %v5839_v29  ;;  %v14792_v43 = vld [vmem:[#allocation49_spill] sm:$0xff] }
 0x3e9   : > { %v6033_v35 = vpop.f32.mrf.mxu1  ;;  %v5664_v52 = vadd.f32 %v14792_v43, %v14791_v30 }
 0x3ea   : > { %6227 = vst [vmem:[%s12890_s14 + $0x88] sm:$0xff] %v6163_v1  ;;  %v6164_v8 = vadd.f32 %v6032_v40, %v12871_v38  ;;  %v6034_v24 = vadd.f32 %v6033_v35, %v5841_v16  ;;  %v14793_v1 = vld [vmem:[#allocation30_spill] sm:$0xff]  ;;  %v14794_v40 = vld [vmem:[#allocation135_spill] sm:$0xff] }
 0x3eb   : > { %v5666_v16 = vadd.f32 %v14794_v40, %v14793_v1 }
 0x3ec   : > { %6228 = vst [vmem:[%s12890_s14 + $0x90] sm:$0xff] %v6164_v8  ;;  %v6165_v57 = vadd.f32 %v6034_v24, %v12877_v17 }
 0x3ee   : > { %6229 = vst [vmem:[%s12890_s14 + $0x98] sm:$0xff] %v6165_v57 }
 0x3f4   : > { %v5844_v62 = vpop.f32.mrf.mxu0 }
 0x3f5   : > { %v5845_v9 = vadd.f32 %v5844_v62, %v5652_v12  ;;  %v5668_v12 = vadd.f32 %v14796_v45, %v14795_v55 }
 0x3f6   : > { %v5846_v23 = vpop.f32.mrf.mxu0 }
 0x3f7   : > { %v6037_v14 = vpop.f32.mrf.mxu1  ;;  %v5847_v33 = vadd.f32 %v5846_v23, %v5654_v22 }
 0x3f8   : > { %v6038_v54 = vadd.f32 %v6037_v14, %v5845_v9  ;;  %v5848_v2 = vpop.f32.mrf.mxu0 }
 0x3f9   : > { %v6039_v37 = vpop.f32.mrf.mxu1  ;;  %v5849_v25 = vadd.f32 %v5848_v2, %v5656_v31  ;;  %v14797_v2 = vld [vmem:[#allocation77_spill] sm:$0xff] }
 0x3fa   : > { %v6166_v61 = vadd.f32 %v6038_v54, %v12871_v38  ;;  %v6040_v44 = vadd.f32 %v6039_v37, %v5847_v33  ;;  %v5850_v41 = vpop.f32.mrf.mxu0  ;;  %v5672_v26 = vadd.f32 %v14798_v7, %v14797_v2  ;;  %v14799_v37 = vld [vmem:[#allocation4_spill] sm:$0xff]  ;;  %v14811_v2 = vld [vmem:[#allocation103_spill] sm:$0xff]  ;;  %v14812_v7 = vld [vmem:[#allocation22_spill] sm:$0xff] }
 0x3fb   : > { %v6041_v32 = vpop.f32.mrf.mxu1  ;;  %v5851_v28 = vadd.f32 %v5850_v41, %v5658_v39 }
 0x3fc   : > { %6230 = vst [vmem:[%s12890_s14 + $0xa0] sm:$0xff] %v6166_v61  ;;  %v6167_v0 = vadd.f32 %v6040_v44, %v12877_v17  ;;  %v6042_v18 = vadd.f32 %v6041_v32, %v5849_v25  ;;  %v14800_v25 = vld [vmem:[#allocation159_spill] sm:$0xff]  ;;  %v14801_v32 = vld [vmem:[#allocation109_spill] sm:$0xff] }
 0x3fd   : > { %v6043_v3 = vpop.f32.mrf.mxu1  ;;  %v5674_v61 = vadd.f32 %v14800_v25, %v14799_v37 }
 0x3fe   : > { %6231 = vst [vmem:[%s12890_s14 + $0xa8] sm:$0xff] %v6167_v0  ;;  %v6168_v4 = vadd.f32 %v6042_v18, %v12871_v38  ;;  %v6044_v56 = vadd.f32 %v6043_v3, %v5851_v28  ;;  %v14802_v28 = vld [vmem:[#allocation162_spill] sm:$0xff] }
 0x3ff   : > { %v5676_v0 = vadd.f32 %v14802_v28, %v14801_v32 }
 0x400   : > { %6232 = vst [vmem:[%s12890_s14 + $0xb0] sm:$0xff] %v6168_v4  ;;  %v6169_v5 = vadd.f32 %v6044_v56, %v12877_v17 }
 0x402   : > { %6233 = vst [vmem:[%s12890_s14 + $0xb8] sm:$0xff] %v6169_v5  ;;  %v14803_v5 = vld [vmem:[#allocation164_spill] sm:$0xff] }
 0x403   : > { %v5678_v63 = vadd.f32 %v14804_v48, %v14803_v5  ;;  %v14814_v5 = vld [vmem:[#allocation62_spill] sm:$0xff] }
 0x40b   : > { %v5854_v27 = vpop.f32.mrf.mxu0 }
 0x40c   : > { %v5855_v29 = vadd.f32 %v5854_v27, %v5662_v59 }
 0x40d   : > { %v5856_v51 = vpop.f32.mrf.mxu0 }
 0x40e   : > { %v6047_v49 = vpop.f32.mrf.mxu1  ;;  %v5857_v8 = vadd.f32 %v5856_v51, %v5664_v52 }
 0x40f   : > { %v6048_v35 = vadd.f32 %v6047_v49, %v5855_v29  ;;  %v5858_v57 = vpop.f32.mrf.mxu0 }
 0x410   : > { %v6049_v24 = vpop.f32.mrf.mxu1  ;;  %v5859_v60 = vadd.f32 %v5858_v57, %v5666_v16  ;;  %v14806_v57 = vld [vmem:[#allocation104_spill] sm:$0xff] }
 0x411   : > { %v6170_v62 = vadd.f32 %v6048_v35, %v12871_v38  ;;  %v6050_v10 = vadd.f32 %v6049_v24, %v5857_v8  ;;  %v5860_v9 = vpop.f32.mrf.mxu0  ;;  %v14805_v24 = vld [vmem:[#allocation10_spill] sm:$0xff] }
 0x412   : > { %v6051_v22 = vpop.f32.mrf.mxu1  ;;  %v5861_v15 = vadd.f32 %v5860_v9, %v5668_v12  ;;  %v5682_v55 = vadd.f32 %v14806_v57, %v14805_v24  ;;  %v14807_v12 = vld [vmem:[#allocation15_spill] sm:$0xff]  ;;  %v14819_v24 = vld [vmem:[#allocation93_spill] sm:$0xff]  ;;  %v14820_v57 = vld [vmem:[#allocation168_spill] sm:$0xff] }
 0x413   : > { %6234 = vst [vmem:[%s12890_s14 + $0xc0] sm:$0xff] %v6170_v62  ;;  %v6171_v23 = vadd.f32 %v6050_v10, %v12877_v17  ;;  %v6052_v50 = vadd.f32 %v6051_v22, %v5859_v60  ;;  %v14808_v62 = vld [vmem:[#allocation113_spill] sm:$0xff] }
 0x414   : > { %v6053_v31 = vpop.f32.mrf.mxu1  ;;  %v5684_v10 = vadd.f32 %v14808_v62, %v14807_v12 }
 0x415   : > { %6235 = vst [vmem:[%s12890_s14 + $0xc8] sm:$0xff] %v6171_v23  ;;  %v6172_v14 = vadd.f32 %v6052_v50, %v12871_v38  ;;  %v6054_v33 = vadd.f32 %v6053_v31, %v5861_v15  ;;  %v14809_v23 = vld [vmem:[#allocation64_spill] sm:$0xff]  ;;  %v14810_v50 = vld [vmem:[#allocation117_spill] sm:$0xff] }
 0x416   : > { %v5686_v15 = vadd.f32 %v14810_v50, %v14809_v23 }
 0x417   : > { %6236 = vst [vmem:[%s12890_s14 + $0xd0] sm:$0xff] %v6172_v14  ;;  %v6173_v54 = vadd.f32 %v6054_v33, %v12877_v17 }
 0x419   : > { %6237 = vst [vmem:[%s12890_s14 + $0xd8] sm:$0xff] %v6173_v54 }
 0x41f   : > { %v5864_v39 = vpop.f32.mrf.mxu0 }
 0x420   : > { %v5865_v44 = vadd.f32 %v5864_v39, %v5672_v26  ;;  %v5688_v26 = vadd.f32 %v14812_v7, %v14811_v2 }
 0x421   : > { %v5866_v41 = vpop.f32.mrf.mxu0 }
 0x422   : > { %v6057_v18 = vpop.f32.mrf.mxu1  ;;  %v5867_v3 = vadd.f32 %v5866_v41, %v5674_v61 }
 0x423   : > { %v6058_v4 = vadd.f32 %v6057_v18, %v5865_v44  ;;  %v5868_v56 = vpop.f32.mrf.mxu0 }
 0x424   : > { %v6059_v59 = vpop.f32.mrf.mxu1  ;;  %v5869_v27 = vadd.f32 %v5868_v56, %v5676_v0  ;;  %v14813_v56 = vld [vmem:[#allocation56_spill] sm:$0xff] }
 0x425   : > { %v6174_v30 = vadd.f32 %v6058_v4, %v12871_v38  ;;  %v6060_v43 = vadd.f32 %v6059_v59, %v5867_v3  ;;  %v5870_v52 = vpop.f32.mrf.mxu0  ;;  %v5692_v48 = vadd.f32 %v14814_v5, %v14813_v56  ;;  %v14815_v59 = vld [vmem:[#allocation25_spill] sm:$0xff]  ;;  %v14827_v56 = vld [vmem:[#allocation3_spill] sm:$0xff] }
 0x426   : > { %v6061_v29 = vpop.f32.mrf.mxu1  ;;  %v5871_v49 = vadd.f32 %v5870_v52, %v5678_v63  ;;  %v14828_v5 = vld [vmem:[#allocation53_spill] sm:$0xff] }
 0x427   : > { %6238 = vst [vmem:[%s12890_s14 + $0xe0] sm:$0xff] %v6174_v30  ;;  %v6175_v51 = vadd.f32 %v6060_v43, %v12877_v17  ;;  %v6062_v1 = vadd.f32 %v6061_v29, %v5869_v27  ;;  %v14816_v27 = vld [vmem:[#allocation70_spill] sm:$0xff] }
 0x428   : > { %v6063_v40 = vpop.f32.mrf.mxu1  ;;  %v5694_v30 = vadd.f32 %v14816_v27, %v14815_v59 }
 0x429   : > { %6239 = vst [vmem:[%s12890_s14 + $0xe8] sm:$0xff] %v6175_v51  ;;  %v6176_v16 = vadd.f32 %v6062_v1, %v12871_v38  ;;  %v6064_v35 = vadd.f32 %v6063_v40, %v5871_v49  ;;  %v14817_v49 = vld [vmem:[#allocation166_spill] sm:$0xff]  ;;  %v14818_v51 = vld [vmem:[#allocation167_spill] sm:$0xff] }
 0x42a   : > { %v5696_v1 = vadd.f32 %v14818_v51, %v14817_v49 }
 0x42b   : > { %6240 = vst [vmem:[%s12890_s14 + $0xf0] sm:$0xff] %v6176_v16  ;;  %v6177_v8 = vadd.f32 %v6064_v35, %v12877_v17 }
 0x42d   : > { %6241 = vst [vmem:[%s12890_s14 + $0xf8] sm:$0xff] %v6177_v8 }
 0x436   : > { %v5874_v45 = vpop.f32.mrf.mxu0 }
 0x437   : > { %v5875_v60 = vadd.f32 %v5874_v45, %v5682_v55  ;;  %v5698_v55 = vadd.f32 %v14820_v57, %v14819_v24 }
 0x438   : > { %v6067_v22 = vpop.f32.mrf.mxu1  ;;  %v5876_v9 = vpop.f32.mrf.mxu0 }
 0x439   : > { %v6068_v31 = vadd.f32 %v6067_v22, %v5875_v60  ;;  %v5877_v14 = vadd.f32 %v5876_v9, %v5684_v10 }
 0x43a   : > { %v6069_v33 = vpop.f32.mrf.mxu1  ;;  %v5878_v54 = vpop.f32.mrf.mxu0 }
 0x43b   : > { %v6178_v39 = vadd.f32 %v6068_v31, %v12871_v38  ;;  %v6070_v37 = vadd.f32 %v6069_v33, %v5877_v14  ;;  %v5879_v25 = vadd.f32 %v5878_v54, %v5686_v15  ;;  %v14821_v14 = vld [vmem:[#allocation119_spill] sm:$0xff] }
 0x43c   : > { %v6071_v61 = vpop.f32.mrf.mxu1  ;;  %v5880_v44 = vpop.f32.mrf.mxu0  ;;  %v14822_v33 = vld [vmem:[#allocation107_spill] sm:$0xff] }
 0x43d   : > { %6242 = vst [vmem:[%s12890_s14 + $0x100] sm:$0xff] %v6178_v39  ;;  %v6179_v41 = vadd.f32 %v6070_v37, %v12877_v17  ;;  %v6072_v32 = vadd.f32 %v6071_v61, %v5879_v25  ;;  %v5881_v28 = vadd.f32 %v5880_v44, %v5688_v26  ;;  %v5702_v54 = vadd.f32 %v14822_v33, %v14821_v14  ;;  %v14823_v26 = vld [vmem:[#allocation171_spill] sm:$0xff]  ;;  %v14824_v39 = vld [vmem:[#allocation172_spill] sm:$0xff] }
 0x43e   : > { %v6073_v0 = vpop.f32.mrf.mxu1  ;;  %v5704_v37 = vadd.f32 %v14824_v39, %v14823_v26  ;;  %v14835_v33 = vld [vmem:[#allocation84_spill] sm:$0xff] }
 0x43f   : > { %6243 = vst [vmem:[%s12890_s14 + $0x108] sm:$0xff] %v6179_v41  ;;  %v6180_v18 = vadd.f32 %v6072_v32, %v12871_v38  ;;  %v6074_v3 = vadd.f32 %v6073_v0, %v5881_v28  ;;  %v14825_v41 = vld [vmem:[#allocation126_spill] sm:$0xff]  ;;  %v14826_v32 = vld [vmem:[#allocation48_spill] sm:$0xff] }
 0x440   : > { %v5706_v28 = vadd.f32 %v14826_v32, %v14825_v41 }
 0x441   : > { %6244 = vst [vmem:[%s12890_s14 + $0x110] sm:$0xff] %v6180_v18  ;;  %v6181_v4 = vadd.f32 %v6074_v3, %v12877_v17 }
 0x443   : > { %6245 = vst [vmem:[%s12890_s14 + $0x118] sm:$0xff] %v6181_v4 }
 0x445   : > { %v5884_v63 = vpop.f32.mrf.mxu0 }
 0x446   : > { %v5885_v43 = vadd.f32 %v5884_v63, %v5692_v48  ;;  %v5708_v48 = vadd.f32 %v14828_v5, %v14827_v56 }
 0x447   : > { %v5886_v29 = vpop.f32.mrf.mxu0 }
 0x448   : > { %v5887_v16 = vadd.f32 %v5886_v29, %v5694_v30 }
 0x449   : > { %v6077_v52 = vpop.f32.mrf.mxu1  ;;  %v5888_v8 = vpop.f32.mrf.mxu0 }
 0x44a   : > { %v6078_v40 = vadd.f32 %v6077_v52, %v5885_v43  ;;  %v5889_v62 = vadd.f32 %v5888_v8, %v5696_v1 }
 0x44b   : > { %v6079_v35 = vpop.f32.mrf.mxu1  ;;  %v5890_v60 = vpop.f32.mrf.mxu0 }
 0x44c   : > { %v6182_v45 = vadd.f32 %v6078_v40, %v12871_v38  ;;  %v6080_v12 = vadd.f32 %v6079_v35, %v5887_v16  ;;  %v5891_v23 = vadd.f32 %v5890_v60, %v5698_v55  ;;  %v14829_v16 = vld [vmem:[#allocation78_spill] sm:$0xff]  ;;  %v14830_v35 = vld [vmem:[#allocation65_spill] sm:$0xff]  ;;  %v14831_v55 = vld [vmem:[#allocation8_spill] sm:$0xff] }
 0x44d   : > { %v6081_v10 = vpop.f32.mrf.mxu1  ;;  %v5712_v8 = vadd.f32 %v14830_v35, %v14829_v16 }
 0x44e   : > { %6246 = vst [vmem:[%s12890_s14 + $0x120] sm:$0xff] %v6182_v45  ;;  %v6183_v22 = vadd.f32 %v6080_v12, %v12877_v17  ;;  %v6082_v9 = vadd.f32 %v6081_v10, %v5889_v62  ;;  %v14832_v45 = vld [vmem:[#allocation11_spill] sm:$0xff] }
 0x44f   : > { %v6083_v50 = vpop.f32.mrf.mxu1  ;;  %v5714_v12 = vadd.f32 %v14832_v45, %v14831_v55 }
 0x450   : > { %6247 = vst [vmem:[%s12890_s14 + $0x128] sm:$0xff] %v6183_v22  ;;  %v6184_v15 = vadd.f32 %v6082_v9, %v12871_v38  ;;  %v6084_v31 = vadd.f32 %v6083_v50, %v5891_v23  ;;  %v14833_v22 = vld [vmem:[#allocation67_spill] sm:$0xff] }
 0x451   : > { %v5894_v7 = vpop.f32.mrf.mxu0  ;;  %v14834_v9 = vld [vmem:[#allocation27_spill] sm:$0xff] }
 0x452   : > { %6248 = vst [vmem:[%s12890_s14 + $0x130] sm:$0xff] %v6184_v15  ;;  %v6185_v2 = vadd.f32 %v6084_v31, %v12877_v17  ;;  %v5895_v25 = vadd.f32 %v5894_v7, %v5702_v54  ;;  %v5716_v23 = vadd.f32 %v14834_v9, %v14833_v22  ;;  %v14836_v54 = vld [vmem:[#allocation137_spill] sm:$0xff] }
 0x453   : > { %v6087_v61 = vpop.f32.mrf.mxu1  ;;  %v5896_v44 = vpop.f32.mrf.mxu0 }
 0x454   : > { %6249 = vst [vmem:[%s12890_s14 + $0x138] sm:$0xff] %v6185_v2  ;;  %v6088_v0 = vadd.f32 %v6087_v61, %v5895_v25  ;;  %v5897_v18 = vadd.f32 %v5896_v44, %v5704_v37  ;;  %v5718_v2 = vadd.f32 %v14836_v54, %v14835_v33 }
 0x455   : > { %v6089_v3 = vpop.f32.mrf.mxu1  ;;  %v5898_v4 = vpop.f32.mrf.mxu0 }
 0x456   : > { %v6186_v63 = vadd.f32 %v6088_v0, %v12871_v38  ;;  %v6090_v59 = vadd.f32 %v6089_v3, %v5897_v18  ;;  %v5899_v27 = vadd.f32 %v5898_v4, %v5706_v28  ;;  %v14837_v18 = vld [vmem:[#allocation83_spill] sm:$0xff]  ;;  %v14838_v3 = vld [vmem:[#allocation76_spill] sm:$0xff] }
 0x457   : > { %v6091_v30 = vpop.f32.mrf.mxu1  ;;  %v5900_v43 = vpop.f32.mrf.mxu0  ;;  %v5722_v4 = vadd.f32 %v14838_v3, %v14837_v18 }
 0x458   : > { %6250 = vst [vmem:[%s12890_s14 + $0x140] sm:$0xff] %v6186_v63  ;;  %v6187_v52 = vadd.f32 %v6090_v59, %v12877_v17  ;;  %v6092_v29 = vadd.f32 %v6091_v30, %v5899_v27  ;;  %v5901_v49 = vadd.f32 %v5900_v43, %v5708_v48  ;;  %v14839_v48 = vld [vmem:[#allocation63_spill] sm:$0xff]  ;;  %v14840_v63 = vld [vmem:[#allocation12_spill] sm:$0xff] }
 0x459   : > { %v6093_v51 = vpop.f32.mrf.mxu1  ;;  %v5724_v59 = vadd.f32 %v14840_v63, %v14839_v48 }
 0x45a   : > { %6251 = vst [vmem:[%s12890_s14 + $0x148] sm:$0xff] %v6187_v52  ;;  %v6188_v1 = vadd.f32 %v6092_v29, %v12871_v38  ;;  %v6094_v40 = vadd.f32 %v6093_v51, %v5901_v49  ;;  %v14841_v52 = vld [vmem:[#allocation138_spill] sm:$0xff]  ;;  %v14842_v29 = vld [vmem:[#allocation69_spill] sm:$0xff] }
 0x45b   : > { %v5726_v49 = vadd.f32 %v14842_v29, %v14841_v52 }
 0x45c   : > { %6252 = vst [vmem:[%s12890_s14 + $0x150] sm:$0xff] %v6188_v1  ;;  %v6189_v24 = vadd.f32 %v6094_v40, %v12877_v17  ;;  %v5904_v57 = vpop.f32.mrf.mxu0 }
 0x45d   : > { %v5905_v62 = vadd.f32 %v5904_v57, %v5712_v8 }
 0x45e   : > { %6253 = vst [vmem:[%s12890_s14 + $0x158] sm:$0xff] %v6189_v24  ;;  %v6097_v10 = vpop.f32.mrf.mxu1  ;;  %v5906_v60 = vpop.f32.mrf.mxu0 }
 0x45f   : > { %v6098_v50 = vadd.f32 %v6097_v10, %v5905_v62  ;;  %v5907_v15 = vadd.f32 %v5906_v60, %v5714_v12 }
 0x460   : > { %v6099_v31 = vpop.f32.mrf.mxu1  ;;  %v5908_v14 = vpop.f32.mrf.mxu0 }
 0x461   : > { %v6190_v7 = vadd.f32 %v6098_v50, %v12871_v38  ;;  %v6100_v26 = vadd.f32 %v6099_v31, %v5907_v15  ;;  %v5909_v39 = vadd.f32 %v5908_v14, %v5716_v23 }
 0x462   : > { %v6101_v37 = vpop.f32.mrf.mxu1  ;;  %v5910_v25 = vpop.f32.mrf.mxu0 }
 0x463   : > { %6254 = vst [vmem:[%s12890_s14 + $0x160] sm:$0xff] %v6190_v7  ;;  %v6191_v61 = vadd.f32 %v6100_v26, %v12877_v17  ;;  %v6102_v44 = vadd.f32 %v6101_v37, %v5909_v39  ;;  %v5911_v41 = vadd.f32 %v5910_v25, %v5718_v2 }
 0x464   : > { %v6103_v32 = vpop.f32.mrf.mxu1 }
 0x465   : > { %6255 = vst [vmem:[%s12890_s14 + $0x168] sm:$0xff] %v6191_v61  ;;  %v6192_v28 = vadd.f32 %v6102_v44, %v12871_v38  ;;  %v6104_v0 = vadd.f32 %v6103_v32, %v5911_v41 }
 0x467   : > { %6256 = vst [vmem:[%s12890_s14 + $0x170] sm:$0xff] %v6192_v28  ;;  %v6193_v56 = vadd.f32 %v6104_v0, %v12877_v17  ;;  %v5914_v5 = vpop.f32.mrf.mxu0 }
 0x468   : > { %v5915_v27 = vadd.f32 %v5914_v5, %v5722_v4 }
 0x469   : > { %6257 = vst [vmem:[%s12890_s14 + $0x178] sm:$0xff] %v6193_v56  ;;  %v6107_v30 = vpop.f32.mrf.mxu1  ;;  %v5916_v43 = vpop.f32.mrf.mxu0 }
 0x46a   : > { %v6108_v51 = vadd.f32 %v6107_v30, %v5915_v27  ;;  %v5917_v1 = vadd.f32 %v5916_v43, %v5724_v59 }
 0x46b   : > { %v6109_v40 = vpop.f32.mrf.mxu1  ;;  %v5918_v16 = vpop.f32.mrf.mxu0 }
 0x46c   : > { %v6194_v35 = vadd.f32 %v6108_v51, %v12871_v38  ;;  %v6110_v8 = vadd.f32 %v6109_v40, %v5917_v1  ;;  %v5919_v24 = vadd.f32 %v5918_v16, %v5726_v49 }
 0x46d   : > { %v6111_v57 = vpop.f32.mrf.mxu1  ;;  %v5920_v55 = vpop.f32.mrf.mxu0 }
 0x46e   : > { %6258 = vst [vmem:[%s12890_s14 + $0x180] sm:$0xff] %v6194_v35  ;;  %v6195_v45 = vadd.f32 %v6110_v8, %v12877_v17  ;;  %v6112_v12 = vadd.f32 %v6111_v57, %v5919_v24  ;;  %v5921_v62 = vadd.f32 %v5920_v55, %v12811_v19 }
 0x46f   : > { %v6113_v10 = vpop.f32.mrf.mxu1 }
 0x470   : > { %6259 = vst [vmem:[%s12890_s14 + $0x188] sm:$0xff] %v6195_v45  ;;  %v6196_v60 = vadd.f32 %v6112_v12, %v12871_v38  ;;  %v6114_v22 = vadd.f32 %v6113_v10, %v5921_v62 }
 0x471   : > { %v5924_v23 = vpop.f32.mrf.mxu0 }
 0x472   : > { %6260 = vst [vmem:[%s12890_s14 + $0x190] sm:$0xff] %v6196_v60  ;;  %v6197_v9 = vadd.f32 %v6114_v22, %v12877_v17  ;;  %v5925_v50 = vadd.f32 %v5924_v23, %v12815_v11 }
 0x473   : > { %v5926_v31 = vpop.f32.mrf.mxu0 }
 0x474   : > { %6261 = vst [vmem:[%s12890_s14 + $0x198] sm:$0xff] %v6197_v9  ;;  %v6117_v15 = vpop.f32.mrf.mxu1  ;;  %v5927_v33 = vadd.f32 %v5926_v31, %v12819_v13 }
 0x475   : > { %v6118_v14 = vadd.f32 %v6117_v15, %v5925_v50  ;;  %v5928_v54 = vpop.f32.mrf.mxu0 }
 0x476   : > { %v6119_v19 = vpop.f32.mrf.mxu1  ;;  %v5929_v26 = vadd.f32 %v5928_v54, %v12825_v6 }
 0x477   : > { %v6198_v2 = vadd.f32 %v6118_v14, %v12871_v38  ;;  %v6120_v7 = vadd.f32 %v6119_v19, %v5927_v33  ;;  %v5930_v37 = vpop.f32.mrf.mxu0 }
 0x478   : > { %v6121_v39 = vpop.f32.mrf.mxu1  ;;  %v5931_v61 = vadd.f32 %v5930_v37, %v12829_v21 }
 0x479   : > { %6262 = vst [vmem:[%s12890_s14 + $0x1a0] sm:$0xff] %v6198_v2  ;;  %v6199_v11 = vadd.f32 %v6120_v7, %v12877_v17  ;;  %v6122_v25 = vadd.f32 %v6121_v39, %v5929_v26 }
 0x47a   : > { %v6123_v44 = vpop.f32.mrf.mxu1 }
 0x47b   : > { %6263 = vst [vmem:[%s12890_s14 + $0x1a8] sm:$0xff] %v6199_v11  ;;  %v6200_v13 = vadd.f32 %v6122_v25, %v12871_v38  ;;  %v6124_v41 = vadd.f32 %v6123_v44, %v5931_v61 }
 0x47c   : > { %v5934_v28 = vpop.f32.mrf.mxu0 }
 0x47d   : > { %6264 = vst [vmem:[%s12890_s14 + $0x1b0] sm:$0xff] %v6200_v13  ;;  %v6201_v32 = vadd.f32 %v6124_v41, %v12877_v17  ;;  %v5935_v6 = vadd.f32 %v5934_v28, %v12833_v53 }
 0x47e   : > { %v5936_v18 = vpop.f32.mrf.mxu0 }
 0x47f   : > { %6265 = vst [vmem:[%s12890_s14 + $0x1b8] sm:$0xff] %v6201_v32  ;;  %v6127_v0 = vpop.f32.mrf.mxu1  ;;  %v5937_v4 = vadd.f32 %v5936_v18, %v12837_v20 }
 0x480   : > { %v6128_v3 = vadd.f32 %v6127_v0, %v5935_v6  ;;  %v5938_v56 = vpop.f32.mrf.mxu0 }
 0x481   : > { %v6129_v21 = vpop.f32.mrf.mxu1  ;;  %v5939_v63 = vadd.f32 %v5938_v56, %v12841_v47 }
 0x482   : > { %v6202_v5 = vadd.f32 %v6128_v3, %v12871_v38  ;;  %v6130_v48 = vadd.f32 %v6129_v21, %v5937_v4  ;;  %v5940_v27 = vpop.f32.mrf.mxu0 }
 0x483   : > { %v6131_v59 = vpop.f32.mrf.mxu1  ;;  %v5941_v43 = vadd.f32 %v5940_v27, %v12845_v58 }
 0x484   : > { %6266 = vst [vmem:[%s12890_s14 + $0x1c0] sm:$0xff] %v6202_v5  ;;  %v6203_v53 = vadd.f32 %v6130_v48, %v12877_v17  ;;  %v6132_v30 = vadd.f32 %v6131_v59, %v5939_v63 }
 0x485   : > { %v6133_v52 = vpop.f32.mrf.mxu1 }
 0x486   : > { %6267 = vst [vmem:[%s12890_s14 + $0x1c8] sm:$0xff] %v6203_v53  ;;  %v6204_v20 = vadd.f32 %v6132_v30, %v12871_v38  ;;  %v6134_v29 = vadd.f32 %v6133_v52, %v5941_v43 }
 0x488   : > { %6268 = vst [vmem:[%s12890_s14 + $0x1d0] sm:$0xff] %v6204_v20  ;;  %v6205_v49 = vadd.f32 %v6134_v29, %v12877_v17  ;;  %v5944_v51 = vpop.f32.mrf.mxu0 }
 0x489   : > { %v5945_v47 = vadd.f32 %v5944_v51, %v12852_v42 }
 0x48a   : > { %6269 = vst [vmem:[%s12890_s14 + $0x1d8] sm:$0xff] %v6205_v49  ;;  %v6137_v1 = vpop.f32.mrf.mxu1  ;;  %v5946_v40 = vpop.f32.mrf.mxu0 }
 0x48b   : > { %v6138_v16 = vadd.f32 %v6137_v1, %v5945_v47  ;;  %v5947_v35 = vadd.f32 %v5946_v40, %v12856_v46 }
 0x48c   : > { %v6139_v58 = vpop.f32.mrf.mxu1  ;;  %v5948_v8 = vpop.f32.mrf.mxu0 }
 0x48d   : > { %v6206_v24 = vadd.f32 %v6138_v16, %v12871_v38  ;;  %v6140_v57 = vadd.f32 %v6139_v58, %v5947_v35  ;;  %v5949_v55 = vadd.f32 %v5948_v8, %v12860_v36 }
 0x48e   : > { %v6141_v45 = vpop.f32.mrf.mxu1  ;;  %v5950_v12 = vpop.f32.mrf.mxu0 }
 0x48f   : > { %6270 = vst [vmem:[%s12890_s14 + $0x1e0] sm:$0xff] %v6206_v24  ;;  %v6207_v42 = vadd.f32 %v6140_v57, %v12877_v17  ;;  %v6142_v62 = vadd.f32 %v6141_v45, %v5949_v55  ;;  %v5951_v10 = vadd.f32 %v5950_v12, %v12864_v34 }
 0x490   : > { %v6143_v60 = vpop.f32.mrf.mxu1 }
 0x491   : > { %6271 = vst [vmem:[%s12890_s14 + $0x1e8] sm:$0xff] %v6207_v42  ;;  %v6208_v46 = vadd.f32 %v6142_v62, %v12871_v38  ;;  %v6144_v22 = vadd.f32 %v6143_v60, %v5951_v10 }
 0x493   : > { %6272 = vst [vmem:[%s12890_s14 + $0x1f0] sm:$0xff] %v6208_v46  ;;  %v6209_v9 = vadd.f32 %v6144_v22, %v12877_v17 }
 0x495   : > { %6273 = vst [vmem:[%s12890_s14 + $0x1f8] sm:$0xff] %v6209_v9 }
 0x496 PF: > { %s15_s20 = sadd.s32 1, %s7449_s20   ;;  %s14843_s18 = smov %s7445_s19 }
 0x497   : > { %p12_p5 = scmp.ge.s32.totalorder %s15_s20, 4   ;;  %s14844_s19 = smov %s14846_s21 }
 0x499   :  { %14 = sbr.rel (!%p12_p5) target bundleno = 2 (0x2), region = 77 }

</bundles_post_ra>
